<compile_context>
chip_gen: v7x
topology: tpu7x:2x2x1
jax: 0.10.0
libtpu: 0.0.40
codegen_flags: <defaults>
</compile_context>

<pallas_src>
import functools

import jax
import jax.numpy as jnp
from jax.experimental import pallas as pl
from jax.experimental.pallas import tpu as pltpu


_VMEM_LIMIT_BYTES = 40 * 1024 * 1024
_TARGET_WEIGHT_TILE_BYTES = 8 * 1024 * 1024

LAYER_DIMS = [
    (2048, 4096), (4096, 2048), (2048, 1024), (1024, 512), (512, 256), (256, 6)
]


# ---------------------------------------------------------------------------
# Grid-dimension semantic for the N-tile axis (CORE_PARALLEL when available)
# ---------------------------------------------------------------------------
_N_AXIS_SEMANTIC = None


def _probe_core_parallel():
    """Pick the semantic for the N-tile grid axis of the big layers.

    On v7x (2 TensorCores/chip) CORE_PARALLEL shards the N-tile loop across
    both cores, splitting the dominant weight stream (~2x on fc1/fc2).  Plain
    "parallel" is measured to change nothing in codegen, so prefer
    CORE_PARALLEL whenever this jax/Mosaic accepts it; otherwise fall back to
    "parallel" (single-TC chips lose nothing either way).
    """
    core_parallel = getattr(pltpu, "CORE_PARALLEL", None)
    if core_parallel is None:
        return "parallel"

    def _copy(x_ref, o_ref):
        o_ref[...] = x_ref[...]

    try:
        x = jnp.arange(16 * 256, dtype=jnp.float32).reshape(16, 256)
        out = pl.pallas_call(
            _copy,
            out_shape=jax.ShapeDtypeStruct((16, 256), jnp.float32),
            grid=(2,),
            in_specs=[pl.BlockSpec((16, 128), lambda n: (0, n))],
            out_specs=pl.BlockSpec((16, 128), lambda n: (0, n)),
            compiler_params=pltpu.CompilerParams(
                dimension_semantics=(core_parallel,),
                vmem_limit_bytes=_VMEM_LIMIT_BYTES,
            ),
        )(x)
        out = jax.block_until_ready(out)
        if not bool(jnp.all(out == x)):
            return "parallel"
        return core_parallel
    except Exception:  # conservative fallback on chips/jax that reject it
        return "parallel"


def _n_axis_semantic():
    global _N_AXIS_SEMANTIC
    if _N_AXIS_SEMANTIC is None:
        _N_AXIS_SEMANTIC = _probe_core_parallel()
    return _N_AXIS_SEMANTIC


# ---------------------------------------------------------------------------
# Kernels
# ---------------------------------------------------------------------------
def _dot_bf16(a, w):
    # Single MXU pass per 128x128 tile: bf16 operands, f32 accumulation.
    return jnp.dot(a.astype(jnp.bfloat16), w.astype(jnp.bfloat16),
                   preferred_element_type=jnp.float32)


def _linear_kernel(x_ref, w_ref, b_ref, o_ref, *, apply_relu):
    # One N-tile per grid step, full K reduction in a single MXU call.
    out = _dot_bf16(x_ref[...], w_ref[...]) + b_ref[...]
    if apply_relu:
        out = jnp.maximum(out, 0.0)
    o_ref[...] = out.astype(o_ref.dtype)


def _pick_tn(K, N, min_tiles=4):
    """Largest N-tile (multiple of 128) whose f32 weight slab is ~<= 8 MiB.

    Keeps >= `min_tiles` grid steps when possible (2 steps per core on a
    2-TensorCore chip) so the next slab's DMA overlaps the current compute.
    """
    if N % 128 != 0:
        return N  # lane-sparse small layer: full-dim block (allowed by Pallas)
    tn = min(N, max(128, (_TARGET_WEIGHT_TILE_BYTES // (K * 4)) // 128 * 128))
    while N % tn != 0:
        tn -= 128
    while (tn > 128 and N // tn < min_tiles
           and (tn // 2) % 128 == 0 and N % (tn // 2) == 0):
        tn //= 2
    return tn


def pallas_linear(x, w, b, *, apply_relu, n_axis_semantic):
    """y = relu?(x @ w + b) with x:(M,K), w:(K,N), b:(N,). Grid over N only."""
    M, K = x.shape
    Kw, N = w.shape
    assert K == Kw and b.shape == (N,)

    tn = _pick_tn(K, N)
    grid = (N // tn,)
    b2 = b.reshape(1, N)  # keep this reshape: the (1, tn) spec relies on it

    kernel = functools.partial(_linear_kernel, apply_relu=apply_relu)

    return pl.pallas_call(
        kernel,
        out_shape=jax.ShapeDtypeStruct((M, N), x.dtype),
        grid_spec=pltpu.PrefetchScalarGridSpec(
            num_scalar_prefetch=0,
            grid=grid,
            in_specs=[
                pl.BlockSpec((M, K), lambda n: (0, 0)),   # activation resident
                pl.BlockSpec((K, tn), lambda n: (0, n)),  # ~8 MiB weight slab
                pl.BlockSpec((1, tn), lambda n: (0, n)),
            ],
            out_specs=pl.BlockSpec((M, tn), lambda n: (0, n)),
        ),
        compiler_params=pltpu.CompilerParams(
            dimension_semantics=(n_axis_semantic,),
            vmem_limit_bytes=_VMEM_LIMIT_BYTES,
        ),
    )(x, w, b2)


def _tail_kernel(x_ref, w3_ref, b3_ref, w4_ref, b4_ref, w5_ref, b5_ref,
                 w6_ref, b6_ref, o_ref):
    # fc3+ReLU, fc4+ReLU, fc5+ReLU, fc6 — activation never leaves VMEM.
    h = jnp.maximum(_dot_bf16(x_ref[...], w3_ref[...]) + b3_ref[...], 0.0)
    h = jnp.maximum(_dot_bf16(h, w4_ref[...]) + b4_ref[...], 0.0)
    h = jnp.maximum(_dot_bf16(h, w5_ref[...]) + b5_ref[...], 0.0)
    out = _dot_bf16(h, w6_ref[...]) + b6_ref[...]
    o_ref[...] = out.astype(o_ref.dtype)


def pallas_tail(x, params_tail):
    """Fused fc3->fc4->fc5->fc6 (~10.5 MiB of weights, all co-resident in VMEM)."""
    (w3, b3), (w4, b4), (w5, b5), (w6, b6) = params_tail
    M, _ = x.shape
    N = w6.shape[1]

    args = (
        x,
        w3, b3.reshape(1, -1),
        w4, b4.reshape(1, -1),
        w5, b5.reshape(1, -1),
        w6, b6.reshape(1, -1),
    )

    def full_spec(a):
        return pl.BlockSpec(a.shape, lambda i: (0,) * a.ndim)

    return pl.pallas_call(
        _tail_kernel,
        out_shape=jax.ShapeDtypeStruct((M, N), x.dtype),
        grid_spec=pltpu.PrefetchScalarGridSpec(
            num_scalar_prefetch=0,
            grid=(1,),
            in_specs=[full_spec(a) for a in args],
            out_specs=pl.BlockSpec((M, N), lambda i: (0, 0)),
        ),
        compiler_params=pltpu.CompilerParams(
            dimension_semantics=("arbitrary",),
            vmem_limit_bytes=_VMEM_LIMIT_BYTES,
        ),
    )(*args)


# ---------------------------------------------------------------------------
# Parameter initialization (deterministic, PyTorch-like uniform(-1/sqrt(fan_in)))
# ---------------------------------------------------------------------------
def init_params(key):
    params = []
    for (fan_in, fan_out) in LAYER_DIMS:
        key, kw, kb = jax.random.split(key, 3)
        bound = 1.0 / jnp.sqrt(fan_in)
        w = jax.random.uniform(kw, (fan_in, fan_out), jnp.float32, -bound, bound)
        b = jax.random.uniform(kb, (fan_out,), jnp.float32, -bound, bound)
        params.append((w, b))
    return params


def simple_nn_forward(x, params):
    sem = _n_axis_semantic()
    # Big layers fc1/fc2: one call each, full-K blocks, ~8 MiB N-slabs.
    for i in range(2):
        w, b = params[i]
        x = pallas_linear(x, w, b, apply_relu=True, n_axis_semantic=sem)
    # fc3..fc6: single fused call, everything resident in VMEM.
    return pallas_tail(x, params[2:])


def simple_nn_reference(x, params):
    # Pure-JAX reference with the SAME pinned matmul operand precision as the
    # kernel (bf16 operands, f32 accumulation — also the TPU MXU default
    # policy for f32 dots), so the tight tolerance check below is meaningful.
    n_layers = len(params)
    for i, (w, b) in enumerate(params):
        x = _dot_bf16(x, w) + b
        if i < n_layers - 1:
            x = jnp.maximum(x, 0.0)
    return x


if __name__ == "__main__":
    key = jax.random.PRNGKey(0)
    key_x, key_p = jax.random.split(key)

    batch = 8
    x = jax.random.normal(key_x, (batch, 2048), jnp.float32)
    params = init_params(key_p)

    out = simple_nn_forward(x, params)
    out = jax.block_until_ready(out)

    ref = simple_nn_reference(x, params)
    assert out.shape == (batch, 6), out.shape
    assert jnp.allclose(out, ref, atol=1e-4, rtol=1e-4), "mismatch vs. JAX reference"

    print("KERNEL_OK")
</pallas_src>

<mosaic_0001>
module attributes {stable_mosaic.version = 11 : i64} {
  func.func @_copy(%arg0: i32, %arg1: memref<16x128xf32, #tpu.memory_space<vmem>>, %arg2: memref<16x128xf32, #tpu.memory_space<vmem>>) attributes {dimension_semantics = [#tpu.dimension_semantics<core_parallel>], iteration_bounds = array<i64: 2>, scalar_prefetch = 0 : i64, scratch_operands = 0 : i64, tpu.core_type = #tpu.core_type<tc>, window_params = [{transform_indices = @transform_0, window_bounds = array<i64: 16, 128>}, {transform_indices = @transform_1, window_bounds = array<i64: 16, 128>}]} {
    %c0 = arith.constant 0 : index
    %c0_0 = arith.constant 0 : index
    %0 = vector.load %arg1[%c0, %c0_0] : memref<16x128xf32, #tpu.memory_space<vmem>>, vector<16x128xf32>
    %c0_1 = arith.constant 0 : index
    %c0_2 = arith.constant 0 : index
    %1 = vector.load %arg2[%c0_1, %c0_2] : memref<16x128xf32, #tpu.memory_space<vmem>>, vector<16x128xf32>
    tpu.vector_store %arg2[%c0_1, %c0_2], %0 {strides = array<i32>} : memref<16x128xf32, #tpu.memory_space<vmem>>, vector<16x128xf32>,
    return
  }
  func.func @transform_0(%arg0: i32) -> (i32, i32) {
    %c0_i32 = arith.constant 0 : i32
    %c0_i32_0 = arith.constant 0 : i32
    return %c0_i32, %arg0 : i32, i32
  }
  func.func @transform_1(%arg0: i32) -> (i32, i32) {
    %c0_i32 = arith.constant 0 : i32
    %c0_i32_0 = arith.constant 0 : i32
    return %c0_i32, %arg0 : i32, i32
  }
}

module attributes {stable_mosaic.version = 11 : i64} {
  func.func @_linear_kernel(%arg0: i32, %arg1: memref<8x2048xf32, #tpu.memory_space<vmem>>, %arg2: memref<2048x1024xf32, #tpu.memory_space<vmem>>, %arg3: memref<1x1024xf32, #tpu.memory_space<vmem>>, %arg4: memref<8x1024xf32, #tpu.memory_space<vmem>>) attributes {dimension_semantics = [#tpu.dimension_semantics<parallel>], iteration_bounds = array<i64: 4>, scalar_prefetch = 0 : i64, scratch_operands = 0 : i64, tpu.core_type = #tpu.core_type<tc>, window_params = [{pipeline_mode = #tpu.pipeline_mode<synchronous>, transform_indices = @transform_0, window_bounds = array<i64: 8, 2048>}, {transform_indices = @transform_1, window_bounds = array<i64: 2048, 1024>}, {transform_indices = @transform_2, window_bounds = array<i64: 1, 1024>}, {transform_indices = @transform_3, window_bounds = array<i64: 8, 1024>}]} {
    %c0 = arith.constant 0 : index
    %c0_0 = arith.constant 0 : index
    %0 = vector.load %arg1[%c0, %c0_0] : memref<8x2048xf32, #tpu.memory_space<vmem>>, vector<8x2048xf32>
    %c0_1 = arith.constant 0 : index
    %c0_2 = arith.constant 0 : index
    %1 = vector.load %arg2[%c0_1, %c0_2] : memref<2048x1024xf32, #tpu.memory_space<vmem>>, vector<2048x1024xf32>
    %2 = arith.truncf %0 : vector<8x2048xf32> to vector<8x2048xbf16>
    %3 = arith.truncf %1 : vector<2048x1024xf32> to vector<2048x1024xbf16>
    %cst = arith.constant dense<0.000000e+00> : vector<8x1024xf32>
    %4 = tpu.matmul %2, %3, %cst {dimension_numbers = #tpu.dot_dimension_numbers<[1], [0], [0], [1], [0, 0, 1, 1], [], []>} : vector<8x2048xbf16>, vector<2048x1024xbf16>, vector<8x1024xf32> -> vector<8x1024xf32>
    %c0_3 = arith.constant 0 : index
    %c0_4 = arith.constant 0 : index
    %5 = vector.load %arg3[%c0_3, %c0_4] : memref<1x1024xf32, #tpu.memory_space<vmem>>, vector<1x1024xf32>
    %6 = vector.broadcast %5 : vector<1x1024xf32> to vector<8x1024xf32>
    %7 = arith.addf %4, %6 : vector<8x1024xf32>
    %cst_5 = arith.constant 0.000000e+00 : f32
    %8 = vector.broadcast %cst_5 : f32 to vector<8x1024xf32>
    %9 = arith.maximumf %7, %8 : vector<8x1024xf32>
    %c0_6 = arith.constant 0 : index
    %c0_7 = arith.constant 0 : index
    %10 = vector.load %arg4[%c0_6, %c0_7] : memref<8x1024xf32, #tpu.memory_space<vmem>>, vector<8x1024xf32>
    tpu.vector_store %arg4[%c0_6, %c0_7], %9 {strides = array<i32>} : memref<8x1024xf32, #tpu.memory_space<vmem>>, vector<8x1024xf32>,
    return
  }
  func.func @transform_0(%arg0: i32) -> (i32, i32) {
    %c0_i32 = arith.constant 0 : i32
    %c0_i32_0 = arith.constant 0 : i32
    %c0_i32_1 = arith.constant 0 : i32
    return %c0_i32, %c0_i32_0 : i32, i32
  }
  func.func @transform_1(%arg0: i32) -> (i32, i32) {
    %c0_i32 = arith.constant 0 : i32
    %c0_i32_0 = arith.constant 0 : i32
    return %c0_i32, %arg0 : i32, i32
  }
  func.func @transform_2(%arg0: i32) -> (i32, i32) {
    %c0_i32 = arith.constant 0 : i32
    %c0_i32_0 = arith.constant 0 : i32
    return %c0_i32, %arg0 : i32, i32
  }
  func.func @transform_3(%arg0: i32) -> (i32, i32) {
    %c0_i32 = arith.constant 0 : i32
    %c0_i32_0 = arith.constant 0 : i32
    return %c0_i32, %arg0 : i32, i32
  }
}

</mosaic_0001>

<bundles_post_ra>
// kernel: tpu_custom_call.1
= control target key start
LH: loop header
LB: loop body
LE: loop exit
PB: predicated region body
PF: predicated region fallthrough
CT: control target
= control target key end

     0   :  { %8 = vsyncpa [#allocation3], 0  ;;  %s7633_s0 = inlined_call_operand.hbm [shape: f32[8,2048], index: 0, kind: input, shape index: {}]   ;;  %s7634_s1 = inlined_call_operand.hbm [shape: f32[2048,4096], index: 1, kind: input, shape index: {}]   ;;  %s7635_s2 = inlined_call_operand.hbm [shape: f32[1,4096], index: 2, kind: input, shape index: {}]   ;;  %s7636_s3 = inlined_call_operand.hbm [shape: f32[8,4096], index: 3, kind: output, shape index: {}]  }
   0x1   :  { %9 = vsyncpa [#allocation6], 0 }
   0x2   :  { %11 = vsyncpa [#allocation6 + $0x1], 0 }
   0x3   :  { %12 = vsyncpa [#allocation4], 0 }
   0x4   :  { %14 = vsyncpa [#allocation4 + $0x1], 0  ;;  %s5227_s12 = smov 0   ;;  %s5229_s13 = smov 0  }
   0x5   :  { %s5231_s14 = smov 0   ;;  %s5233_s15 = smov 0  }
   0x6 LB: > { %s5248_s16 = sadd.s32 1, %s5198_s15   ;;  %s48_s17 = sadd.s32 1, %s5194_s14  ;;  %s5198_s15 = sphi %s5233_s15, %s7662_s15   ;;  %s5194_s14 = sphi %s5231_s14, %s7661_s14   ;;  %s5190_s13 = sphi %s5229_s13, %s7660_s13   ;;  %s5186_s12 = sphi %s5227_s12, %s7659_s12  }
   0x7   : > { %s45_s18 = ssub.s32 %s5198_s15, %s5248_s16  ;;  %p55_p0 = scmp.ne.s32.totalorder %s5194_s14, %s5190_s13 }
   0x8   : > { %p46_p1 = scmp.eq.s32.totalorder %s45_s18, 0  ;;  %p56_p2 = scmp.eq.s32.totalorder %s5198_s15, 0 }
   0x9   : > { %p5000_p3 = scmp.lt.s32.totalorder %s5198_s15, 4  ;;  %s148_s20 = sand.u32 1, %s5198_s15  }
   0xa   : > { %s5258_s19 = scalar_select %p46_p1, %s5194_s14, %s48_s17  }
   0xb   : > { %p57_p4 = por %p56_p2, %p55_p0  ;;  %s150_s21 = sand.u32 1, %s5194_s14  }
   0xc   : > { %s4835_s22 = sshll.u32 %s150_s21, 14  ;;  %s4851_s23 = sshll.u32 %s5198_s15, 10 }
   0xd   : > { %s5271_s26 = scalar_lea.hbm %s7634_s1, %s4851_s23  ;;  %s152_s27 = scalar_lea.vmem [#allocation5], %s4835_s22 }
   0xe   : > { %s159_s28 = sshll.u32 %s152_s27, 4  ;;  %p5273_p5 = pnand %p5000_p3, %p57_p4  ;;  %s5277_s28 = int_to_ptr.vmem [resolvable:$true] %s159_s28 }
   0xf   : > { %s5279_s30 = scalar_lea.sflag [#allocation6], %s148_s20  ;;  %s5040_s4 = scalar_lea.hbm %s5271_s26, 262144 }
  0x10   : > { %s7644_s29 = scalar_select %p5273_p5, 1, 0 }
  0x11   : > { %p5041_p6 = scmp.ne.s32.totalorder %s5271_s26, %s5040_s4  ;;  %p7638_p7 = pneg %p5273_p5 }
  0x12   : > { %s5045_s7 = scalar_lea.hbm %s7634_s1, 1048576  ;;  %p5046_p10 = scmp.lt.u32.totalorder %s5271_s26, %s7634_s1 }
  0x13   : > { %p5043_p8 = pnand %p7638_p7, %p5041_p6  ;;  %p5047_p11 = scmp.lt.u32.totalorder %s5045_s7, %s5040_s4 }
  0x14   : > { %p5049_p13 = scmp.lt.u32.totalorder %s5040_s4, %s5271_s26 }
  0x15   : > { %p5044_p9 = pneg %p5043_p8  ;;  %p5048_p12 = por %p5047_p11, %p5046_p10 }
  0x17   : > { %p5050_p1 = por %p5049_p13, %p5048_p12 }
  0x19   : > { %p5051_p2 = pnand %p5050_p1, %p5044_p9 }
  0x1b   : > { %5054 = shalt.err (!%p5051_p2)
}
  0x1c   : > { %s5055_s10 = scalar_lea.vmem %s5277_s28, 262144  ;;  %s5200_s11 = smov [#allocation5]  }
  0x1d   : > { %p5056_p3 = scmp.ne.s32.totalorder %s5277_s28, %s5055_s10  ;;  %s5060_s17 = sshll.u32 %s5200_s11, 4  ;;  %s5061_s17 = int_to_ptr.vmem [resolvable:$false] %s5060_s17 }
  0x1e   : > { %s5062_s18 = scalar_lea.vmem %s5061_s17, 524288  ;;  %p5063_p8 = scmp.lt.s32.totalorder %s5277_s28, %s5061_s17 }
  0x1f   : > { %p5058_p4 = pnand %p5056_p3, %p7638_p7  ;;  %p5064_p10 = scmp.lt.s32.totalorder %s5062_s18, %s5055_s10 }
  0x21   : > { %p5059_p6 = pneg %p5058_p4  ;;  %p5065_p11 = por %p5064_p10, %p5063_p8 }
  0x23   : > { %p5066_p12 = pnand %p5065_p11, %p5059_p6 }
  0x25   : > { %5069 = shalt.err (!%p5066_p12)
}
  0x26   : > { %s5201_s20 = smov 4096   ;;  %s5202_s22 = smov 1024  }
  0x27   : > { %s5203_s23 = smov 64   ;;  %s5308_s24 = sadd.s32 4294967295, %s5198_s15  }
  0x28   : > { %4991 = dma.hbm_to_vmem [thread:$0]  (!%p5273_p5), %s5271_s26, 262144, %s5277_s28, %s5279_s30, %s5201_s20, %s5202_s22, %s5203_s23  }
  0x29   : > { %s4831_s25 = sadd.s32 4294967294, %s5198_s15   ;;  %p61_p9 = scmp.ne.s32.totalorder %s5190_s13, %s5186_s12 }
  0x2a   : > { %p7637_p13 = scmp.eq.s32.totalorder %s5308_s24, 0  ;;  %p111_p1 = scmp.eq.s32.totalorder %s5308_s24, 3 }
  0x2b   : > { %p117_p2 = scmp.eq.s32.totalorder %s4831_s25, 3  ;;  %p4832_p3 = scmp.ge.s32.totalorder %s5198_s15, 1 }
  0x2c   : > { %p5318_p4 = por %p7637_p13, %p61_p9  ;;  %p5325_p6 = por %p111_p1, %p55_p0 }
  0x2d   : > { %p5329_p8 = por %p117_p2, %p61_p9  ;;  %p124_p10 = scmp.lt.s32.totalorder %s5198_s15, 5 }
  0x2e   : > { %s7645_s27 = scalar_select %p5318_p4, 1, 0 }
  0x2f   : > { %s7646_s26 = scalar_select %p5325_p6, 1, 0 }
  0x30   : > { %s7647_s28 = scalar_select %p5329_p8, 1, 0 }
  0x31   : > { %p5334_p11 = pnand %p4832_p3, %p124_p10  ;;  %s5204_s5 = smov [#allocation2]  }
  0x32   : > { %s137_s6 = sshll.u32 %s5204_s5, 4  ;;  %s4838_s7 = sshll.u32 %s150_s21, 3  ;;  %s138_s6 = int_to_ptr.vmem [resolvable:$true] %s137_s6 }
  0x33   : > { %s7648_s4 = scalar_select %p5334_p11, 1, 0 }
  0x34   : > { %p4984_p12 = pneg %p5334_p11  ;;  %s4852_s8 = sshll.u32 %s5198_s15, 7 }
  0x35   : > { %s173_s9 = scalar_lea.vmem [#allocation7], %s4838_s7  ;;  %s5352_s20 = scalar_lea.hbm %s7635_s2, %s4852_s8 }
  0x36   : > { %s181_s10 = sshll.u32 %s173_s9, 4  ;;  %p5345_p0 = pnand %p4984_p12, %p7637_p13  ;;  %s5354_s10 = int_to_ptr.vmem [resolvable:$true] %s181_s10 }
  0x37   : > { %s5070_s23 = scalar_lea.hbm %s7633_s0, 2048 }
  0x38   : > { %p5071_p9 = scmp.ne.s32.totalorder %s7633_s0, %s5070_s23  ;;  %p5072_p1 = pneg %p5345_p0 }
  0x39   : > { %p5077_p10 = scmp.lt.u32.totalorder %s5070_s23, %s7633_s0 }
  0x3a   : > { %p5073_p2 = pnand %p5072_p1, %p5071_p9 }
  0x3c   : > { %p5074_p3 = pneg %p5073_p2 }
  0x3e   : > { %p5079_p12 = pnand %p5077_p10, %p5074_p3 }
  0x40   : > { %5082 = shalt.err (!%p5079_p12)
}
  0x41   : > { %s5083_s8 = scalar_lea.vmem %s138_s6, 2048  ;;  %p5091_p6 = scmp.lt.s32.totalorder %s138_s6, %s138_s6 }
  0x42   : > { %p5084_p13 = scmp.ne.s32.totalorder %s138_s6, %s5083_s8  ;;  %p5092_p4 = scmp.lt.s32.totalorder %s5083_s8, %s5083_s8 }
  0x44   : > { %p5086_p7 = pnand %p5084_p13, %p5072_p1  ;;  %p5093_p11 = por %p5092_p4, %p5091_p6 }
  0x46   : > { %p5087_p8 = pneg %p5086_p7 }
  0x48   : > { %p5094_p5 = pnand %p5093_p11, %p5087_p8 }
  0x4a   : > { %5097 = shalt.err (!%p5094_p5)
}
  0x4b   : > { %4987 = dma.hbm_to_vmem [thread:$0]  (!%p5345_p0), %s7633_s0, 2048, %s138_s6, [#allocation3]  }
  0x4c   : > { %s5098_s21 = scalar_lea.hbm %s5352_s20, 128  ;;  %p7650_p13 = scmp.ne.s32.totalorder %s7644_s29, 0 }
  0x4d   : > { %p5099_p9 = scmp.ne.s32.totalorder %s5352_s20, %s5098_s21  ;;  %s5103_s25 = scalar_lea.hbm %s7635_s2, 512 }
  0x4e   : > { %p7651_p7 = pneg %p7650_p13  ;;  %p5104_p5 = scmp.lt.u32.totalorder %s5352_s20, %s7635_s2 }
  0x4f   : > { %p5105_p4 = scmp.lt.u32.totalorder %s5103_s25, %s5098_s21  ;;  %p5107_p8 = scmp.lt.u32.totalorder %s5098_s21, %s5352_s20 }
  0x50   : > { %p5101_p1 = pnand %p5099_p9, %p7651_p7 }
  0x51   : > { %p5106_p6 = por %p5105_p4, %p5104_p5 }
  0x52   : > { %p5102_p2 = pneg %p5101_p1 }
  0x53   : > { %p5108_p11 = por %p5107_p8, %p5106_p6 }
  0x55   : > { %p5109_p3 = pnand %p5108_p11, %p5102_p2 }
  0x57   : > { %5112 = shalt.err (!%p5109_p3)
}
  0x58   : > { %s5113_s6 = scalar_lea.vmem %s5354_s10, 128  ;;  %p7652_p10 = pmov %p7651_p7 }
  0x59   : > { %p5114_p0 = scmp.ne.s32.totalorder %s5354_s10, %s5113_s6  ;;  %s5205_s7 = smov [#allocation7]  }
  0x5a   : > { %s5118_s9 = sshll.u32 %s5205_s7, 4  ;;  %s5119_s9 = int_to_ptr.vmem [resolvable:$false] %s5118_s9 }
  0x5b   : > { %p5116_p12 = pnand %p5114_p0, %p7652_p10  ;;  %s5120_s8 = scalar_lea.vmem %s5119_s9, 256 }
  0x5c   : > { %p5121_p7 = scmp.lt.s32.totalorder %s5354_s10, %s5119_s9  ;;  %p5122_p1 = scmp.lt.s32.totalorder %s5120_s8, %s5113_s6 }
  0x5d   : > { %p5117_p9 = pneg %p5116_p12 }
  0x5e   : > { %p5123_p5 = por %p5122_p1, %p5121_p7 }
  0x60   : > { %p5124_p4 = pnand %p5123_p5, %p5117_p9 }
  0x62   : > { %5127 = shalt.err (!%p5124_p4)
}
  0x63   : > { %4994 = dma.hbm_to_vmem [thread:$0]  (!%p7650_p13), %s5352_s20, 128, %s5354_s10, %s5279_s30  }
  0x64   : > { %p7653_p2 = scmp.ne.s32.totalorder %s7648_s4, 0 }
  0x65   : > { %p7654_p6 = scmp.eq.s32.totalorder (!%p7653_p2), %s5308_s24, 0 }
  0x66   : > { %190 = sbr.rel (%p7653_p2) target bundleno = 1375 (0x55f), region = 32 }
  0x6d   : > { %5173 = dma.done.wait (%p7654_p6), [#allocation3], 2048   ;;  %p7655_p8 = pmov %p7654_p6 }
  0x6e   : > { %s196_s17 = sand.u32 1, %s5308_s24   ;;  %s5404_s18 = sand.u32 1, %s5190_s13  }
  0x6f   : > { %5175 = vsyncadd (%p7655_p8), [#allocation3], 4294965248  ;;  %s4843_s29 = sshll.u32 %s5404_s18, 14  ;;  %s197_s21 = scalar_lea.sflag [#allocation6], %s196_s17 }
  0x70   : > { %s5407_s22 = scalar_lea.vmem [#allocation5], %s4843_s29  ;;  %p7656_p13 = scmp.ne.s32.totalorder %s7645_s27, 0 }
  0x72   : > { %5177 = dma.done.wait (%p7656_p13), %s197_s21, 262272  }
  0x73   : > { %5179 = vsyncadd (%p7656_p13), %s197_s21, 4294705024  ;;  %v257_v0 = vld [vmem:[%s5407_s22 + $0x8] sm:$0xff]  ;;  %v259_v2 = vld [vmem:[%s5407_s22 + $0x18] sm:$0xff]  ;;  %s4844_s30 = sshll.u32 %s5404_s18, 3  ;;  %s4845_s4 = sshll.u32 %s5404_s18, 6 }
  0x74   : > { %v265_v1 = vld [vmem:[%s5407_s22 + $0x48] sm:$0xff]  ;;  %v267_v4 = vld [vmem:[%s5407_s22 + $0x58] sm:$0xff]  ;;  %v256_v5 = vld [vmem:[%s5407_s22] sm:$0xff]  ;;  %s6947_s27 = scalar_lea.vmem [#allocation7], %s4844_s30  ;;  %s6978_s10 = scalar_lea.vmem [#allocation8], %s4845_s4 }
  0x75   : > { %v2321_v3 = vpack.c.bf16 %v265_v1, %v257_v0  ;;  %v264_v6 = vld [vmem:[%s5407_s22 + $0x40] sm:$0xff]  ;;  %v2323_v7 = vpack.c.bf16 %v267_v4, %v259_v2  ;;  %v258_v9 = vld [vmem:[%s5407_s22 + $0x10] sm:$0xff]  ;;  %v273_v11 = vld [vmem:[%s5407_s22 + $0x88] sm:$0xff]  ;;  %s4853_s20 = sshll.u32 %s5308_s24, 10  ;;  %s4729_s23 = sshll.u32 %s6978_s10, 4  ;;  %s7589_s23 = int_to_ptr.vmem [resolvable:$true] %s4729_s23 }
  0x76   : > { %v2320_v8 = vpack.c.bf16 %v264_v6, %v256_v5  ;;  %v266_v10 = vld [vmem:[%s5407_s22 + $0x50] sm:$0xff]  ;;  %v281_v13 = vld [vmem:[%s5407_s22 + $0xc8] sm:$0xff]  ;;  %v275_v14 = vld [vmem:[%s5407_s22 + $0x98] sm:$0xff]  ;;  %s7587_s5 = scalar_lea.hbm %s7636_s3, %s4853_s20  ;;  %s4715_s24 = scalar_lea.sflag [#allocation4], %s5404_s18 }
  0x77   : > { %3386 = vmatprep.subr.bf16.mxu0 %v2321_v3  ;;  %v2322_v12 = vpack.c.bf16 %v266_v10, %v258_v9  ;;  %v283_v15 = vld [vmem:[%s5407_s22 + $0xd8] sm:$0xff]  ;;  %3714 = vmatprep.subr.bf16.mxu1 %v2323_v7  ;;  %v2329_v16 = vpack.c.bf16 %v281_v13, %v273_v11  ;;  %v272_v18 = vld [vmem:[%s5407_s22 + $0x80] sm:$0xff]  ;;  %v274_v20 = vld [vmem:[%s5407_s22 + $0x90] sm:$0xff]  ;;  %s5128_s6 = scalar_lea.vmem %s7589_s23, 1024  ;;  %p7657_p3 = scmp.ne.s32.totalorder %s7646_s26, 0 }
  0x78   : > { %3387 = vmatpush1.bf16.msra.mxu0 %v2320_v8  ;;  %v2331_v17 = vpack.c.bf16 %v283_v15, %v275_v14  ;;  %v280_v19 = vld [vmem:[%s5407_s22 + $0xc0] sm:$0xff]  ;;  %v282_v22 = vld [vmem:[%s5407_s22 + $0xd0] sm:$0xff]  ;;  %v289_v23 = vld [vmem:[%s5407_s22 + $0x108] sm:$0xff]  ;;  %p5129_p11 = scmp.ne.s32.totalorder %s7589_s23, %s5128_s6  ;;  %s5206_s7 = smov [#allocation8]  }
  0x79   : > { %3715 = vmatpush1.bf16.msra.mxu1 %v2322_v12  ;;  %v2328_v21 = vpack.c.bf16 %v280_v19, %v272_v18  ;;  %v297_v24 = vld [vmem:[%s5407_s22 + $0x148] sm:$0xff]  ;;  %3388 = vmatprep.subr.bf16.mxu0 %v2329_v16  ;;  %v2330_v25 = vpack.c.bf16 %v282_v22, %v274_v20  ;;  %v291_v27 = vld [vmem:[%s5407_s22 + $0x118] sm:$0xff]  ;;  %v288_v29 = vld [vmem:[%s5407_s22 + $0x100] sm:$0xff]  ;;  %s5132_s9 = sshll.u32 %s5206_s7, 4  ;;  %s5133_s9 = int_to_ptr.vmem [resolvable:$false] %s5132_s9 }
  0x7a   : > { %3716 = vmatprep.subr.bf16.mxu1 %v2331_v17  ;;  %v2337_v26 = vpack.c.bf16 %v297_v24, %v289_v23  ;;  %v299_v28 = vld [vmem:[%s5407_s22 + $0x158] sm:$0xff]  ;;  %v296_v31 = vld [vmem:[%s5407_s22 + $0x140] sm:$0xff]  ;;  %v290_v32 = vld [vmem:[%s5407_s22 + $0x110] sm:$0xff]  ;;  %p5130_p0 = pnand %p5129_p11, %p7657_p3  ;;  %s5134_s8 = scalar_lea.vmem %s5133_s9, 2048 }
  0x7b   : > { %v2339_v30 = vpack.c.bf16 %v299_v28, %v291_v27  ;;  %v298_v33 = vld [vmem:[%s5407_s22 + $0x150] sm:$0xff]  ;;  %v2336_v34 = vpack.c.bf16 %v296_v31, %v288_v29  ;;  %v305_v35 = vld [vmem:[%s5407_s22 + $0x188] sm:$0xff]  ;;  %v307_v37 = vld [vmem:[%s5407_s22 + $0x198] sm:$0xff]  ;;  %p5135_p12 = scmp.lt.s32.totalorder %s7589_s23, %s5133_s9  ;;  %p5136_p9 = scmp.lt.s32.totalorder %s5134_s8, %s5128_s6 }
  0x7c   : > { %3389 = vmatpush1.bf16.msra.mxu0 %v2328_v21  ;;  %v313_v36 = vld [vmem:[%s5407_s22 + $0x1c8] sm:$0xff]  ;;  %v2338_v38 = vpack.c.bf16 %v298_v33, %v290_v32  ;;  %v315_v40 = vld [vmem:[%s5407_s22 + $0x1d8] sm:$0xff]  ;;  %v304_v41 = vld [vmem:[%s5407_s22 + $0x180] sm:$0xff]  ;;  %p5131_p10 = pneg %p5130_p0 }
  0x7d   : > { %3717 = vmatpush1.bf16.msra.mxu1 %v2330_v25  ;;  %3390 = vmatprep.subr.bf16.mxu0 %v2337_v26  ;;  %v2345_v39 = vpack.c.bf16 %v313_v36, %v305_v35  ;;  %v312_v42 = vld [vmem:[%s5407_s22 + $0x1c0] sm:$0xff]  ;;  %v2347_v43 = vpack.c.bf16 %v315_v40, %v307_v37  ;;  %v306_v44 = vld [vmem:[%s5407_s22 + $0x190] sm:$0xff]  ;;  %v321_v46 = vld [vmem:[%s5407_s22 + $0x208] sm:$0xff]  ;;  %p5137_p7 = por %p5136_p9, %p5135_p12 }
  0x7e   : > { %3718 = vmatprep.subr.bf16.mxu1 %v2339_v30  ;;  %v314_v45 = vld [vmem:[%s5407_s22 + $0x1d0] sm:$0xff]  ;;  %v329_v47 = vld [vmem:[%s5407_s22 + $0x248] sm:$0xff]  ;;  %v323_v48 = vld [vmem:[%s5407_s22 + $0x218] sm:$0xff]  ;;  %v2344_v50 = vpack.c.bf16 %v312_v42, %v304_v41 }
  0x7f   : > { %v331_v49 = vld [vmem:[%s5407_s22 + $0x258] sm:$0xff]  ;;  %v2346_v51 = vpack.c.bf16 %v314_v45, %v306_v44  ;;  %v2353_v52 = vpack.c.bf16 %v329_v47, %v321_v46  ;;  %v320_v53 = vld [vmem:[%s5407_s22 + $0x200] sm:$0xff]  ;;  %v322_v55 = vld [vmem:[%s5407_s22 + $0x210] sm:$0xff]  ;;  %p5138_p1 = pnand %p5137_p7, %p5131_p10 }
  0x80   : > { %3391 = vmatpush1.bf16.msra.mxu0 %v2336_v34  ;;  %v328_v54 = vld [vmem:[%s5407_s22 + $0x240] sm:$0xff]  ;;  %v2355_v56 = vpack.c.bf16 %v331_v49, %v323_v48  ;;  %v330_v57 = vld [vmem:[%s5407_s22 + $0x250] sm:$0xff]  ;;  %v337_v58 = vld [vmem:[%s5407_s22 + $0x288] sm:$0xff] }
  0x81   : > { %3719 = vmatpush1.bf16.msra.mxu1 %v2338_v38  ;;  %3392 = vmatprep.subr.bf16.mxu0 %v2345_v39  ;;  %v345_v59 = vld [vmem:[%s5407_s22 + $0x2c8] sm:$0xff]  ;;  %v339_v60 = vld [vmem:[%s5407_s22 + $0x298] sm:$0xff]  ;;  %v2352_v62 = vpack.c.bf16 %v328_v54, %v320_v53  ;;  %v2354_v63 = vpack.c.bf16 %v330_v57, %v322_v55  ;;  %v336_v1 = vld [vmem:[%s5407_s22 + $0x280] sm:$0xff] }
  0x82   : > { %3720 = vmatprep.subr.bf16.mxu1 %v2347_v43  ;;  %v347_v61 = vld [vmem:[%s5407_s22 + $0x2d8] sm:$0xff]  ;;  %v2361_v0 = vpack.c.bf16 %v345_v59, %v337_v58  ;;  %v344_v2 = vld [vmem:[%s5407_s22 + $0x2c0] sm:$0xff]  ;;  %v338_v3 = vld [vmem:[%s5407_s22 + $0x290] sm:$0xff] }
  0x83   : > { %v2363_v4 = vpack.c.bf16 %v347_v61, %v339_v60  ;;  %v346_v5 = vld [vmem:[%s5407_s22 + $0x2d0] sm:$0xff]  ;;  %v353_v6 = vld [vmem:[%s5407_s22 + $0x308] sm:$0xff]  ;;  %v355_v8 = vld [vmem:[%s5407_s22 + $0x318] sm:$0xff]  ;;  %v2360_v10 = vpack.c.bf16 %v344_v2, %v336_v1 }
  0x84   : > { %3393 = vmatpush1.bf16.msra.mxu0 %v2344_v50  ;;  %v361_v7 = vld [vmem:[%s5407_s22 + $0x348] sm:$0xff]  ;;  %v363_v9 = vld [vmem:[%s5407_s22 + $0x358] sm:$0xff]  ;;  %v2362_v11 = vpack.c.bf16 %v346_v5, %v338_v3  ;;  %v352_v13 = vld [vmem:[%s5407_s22 + $0x300] sm:$0xff] }
  0x85   : > { %3721 = vmatpush1.bf16.msra.mxu1 %v2346_v51  ;;  %3394 = vmatprep.subr.bf16.mxu0 %v2353_v52  ;;  %v2369_v12 = vpack.c.bf16 %v361_v7, %v353_v6  ;;  %v360_v14 = vld [vmem:[%s5407_s22 + $0x340] sm:$0xff]  ;;  %v354_v15 = vld [vmem:[%s5407_s22 + $0x310] sm:$0xff]  ;;  %v2371_v16 = vpack.c.bf16 %v363_v9, %v355_v8  ;;  %v369_v18 = vld [vmem:[%s5407_s22 + $0x388] sm:$0xff] }
  0x86   : > { %3722 = vmatprep.subr.bf16.mxu1 %v2355_v56  ;;  %v362_v17 = vld [vmem:[%s5407_s22 + $0x350] sm:$0xff]  ;;  %v377_v19 = vld [vmem:[%s5407_s22 + $0x3c8] sm:$0xff]  ;;  %v371_v20 = vld [vmem:[%s5407_s22 + $0x398] sm:$0xff]  ;;  %v2368_v22 = vpack.c.bf16 %v360_v14, %v352_v13 }
  0x87   : > { %v379_v21 = vld [vmem:[%s5407_s22 + $0x3d8] sm:$0xff]  ;;  %v2370_v23 = vpack.c.bf16 %v362_v17, %v354_v15  ;;  %v2377_v24 = vpack.c.bf16 %v377_v19, %v369_v18  ;;  %v368_v25 = vld [vmem:[%s5407_s22 + $0x380] sm:$0xff]  ;;  %v370_v27 = vld [vmem:[%s5407_s22 + $0x390] sm:$0xff] }
  0x88   : > { %3395 = vmatpush1.bf16.msra.mxu0 %v2352_v62  ;;  %v376_v26 = vld [vmem:[%s5407_s22 + $0x3c0] sm:$0xff]  ;;  %v2379_v28 = vpack.c.bf16 %v379_v21, %v371_v20  ;;  %v378_v29 = vld [vmem:[%s5407_s22 + $0x3d0] sm:$0xff]  ;;  %v385_v30 = vld [vmem:[%s5407_s22 + $0x408] sm:$0xff] }
  0x89   : > { %3723 = vmatpush1.bf16.msra.mxu1 %v2354_v63  ;;  %3396 = vmatprep.subr.bf16.mxu0 %v2361_v0  ;;  %v393_v31 = vld [vmem:[%s5407_s22 + $0x448] sm:$0xff]  ;;  %v387_v32 = vld [vmem:[%s5407_s22 + $0x418] sm:$0xff]  ;;  %v2376_v34 = vpack.c.bf16 %v376_v26, %v368_v25  ;;  %v2378_v35 = vpack.c.bf16 %v378_v29, %v370_v27  ;;  %v384_v37 = vld [vmem:[%s5407_s22 + $0x400] sm:$0xff] }
  0x8a   : > { %3724 = vmatprep.subr.bf16.mxu1 %v2363_v4  ;;  %v395_v33 = vld [vmem:[%s5407_s22 + $0x458] sm:$0xff]  ;;  %v2385_v36 = vpack.c.bf16 %v393_v31, %v385_v30  ;;  %v392_v38 = vld [vmem:[%s5407_s22 + $0x440] sm:$0xff]  ;;  %v386_v39 = vld [vmem:[%s5407_s22 + $0x410] sm:$0xff] }
  0x8b   : > { %v2387_v40 = vpack.c.bf16 %v395_v33, %v387_v32  ;;  %v394_v41 = vld [vmem:[%s5407_s22 + $0x450] sm:$0xff]  ;;  %v401_v42 = vld [vmem:[%s5407_s22 + $0x488] sm:$0xff]  ;;  %v403_v44 = vld [vmem:[%s5407_s22 + $0x498] sm:$0xff]  ;;  %v2384_v46 = vpack.c.bf16 %v392_v38, %v384_v37 }
  0x8c   : > { %3397 = vmatpush1.bf16.msra.mxu0 %v2360_v10  ;;  %v409_v43 = vld [vmem:[%s5407_s22 + $0x4c8] sm:$0xff]  ;;  %v411_v45 = vld [vmem:[%s5407_s22 + $0x4d8] sm:$0xff]  ;;  %v2386_v47 = vpack.c.bf16 %v394_v41, %v386_v39  ;;  %v400_v49 = vld [vmem:[%s5407_s22 + $0x480] sm:$0xff] }
  0x8d   : > { %3725 = vmatpush1.bf16.msra.mxu1 %v2362_v11  ;;  %3398 = vmatprep.subr.bf16.mxu0 %v2369_v12  ;;  %v2393_v48 = vpack.c.bf16 %v409_v43, %v401_v42  ;;  %v408_v50 = vld [vmem:[%s5407_s22 + $0x4c0] sm:$0xff]  ;;  %v402_v51 = vld [vmem:[%s5407_s22 + $0x490] sm:$0xff]  ;;  %v2395_v52 = vpack.c.bf16 %v411_v45, %v403_v44  ;;  %v417_v54 = vld [vmem:[%s5407_s22 + $0x508] sm:$0xff] }
  0x8e   : > { %3726 = vmatprep.subr.bf16.mxu1 %v2371_v16  ;;  %v410_v53 = vld [vmem:[%s5407_s22 + $0x4d0] sm:$0xff]  ;;  %v425_v55 = vld [vmem:[%s5407_s22 + $0x548] sm:$0xff]  ;;  %v419_v56 = vld [vmem:[%s5407_s22 + $0x518] sm:$0xff]  ;;  %v2392_v58 = vpack.c.bf16 %v408_v50, %v400_v49 }
  0x8f   : > { %v427_v57 = vld [vmem:[%s5407_s22 + $0x558] sm:$0xff]  ;;  %v2394_v59 = vpack.c.bf16 %v410_v53, %v402_v51  ;;  %v2401_v60 = vpack.c.bf16 %v425_v55, %v417_v54  ;;  %v416_v61 = vld [vmem:[%s5407_s22 + $0x500] sm:$0xff]  ;;  %v418_v63 = vld [vmem:[%s5407_s22 + $0x510] sm:$0xff] }
  0x90   : > { %3399 = vmatpush1.bf16.msra.mxu0 %v2368_v22  ;;  %v424_v62 = vld [vmem:[%s5407_s22 + $0x540] sm:$0xff]  ;;  %v2403_v0 = vpack.c.bf16 %v427_v57, %v419_v56  ;;  %v426_v1 = vld [vmem:[%s5407_s22 + $0x550] sm:$0xff]  ;;  %v433_v2 = vld [vmem:[%s5407_s22 + $0x588] sm:$0xff] }
  0x91   : > { %3727 = vmatpush1.bf16.msra.mxu1 %v2370_v23  ;;  %3400 = vmatprep.subr.bf16.mxu0 %v2377_v24  ;;  %v441_v3 = vld [vmem:[%s5407_s22 + $0x5c8] sm:$0xff]  ;;  %v435_v4 = vld [vmem:[%s5407_s22 + $0x598] sm:$0xff]  ;;  %v2400_v6 = vpack.c.bf16 %v424_v62, %v416_v61  ;;  %v432_v7 = vld [vmem:[%s5407_s22 + $0x580] sm:$0xff]  ;;  %v2402_v8 = vpack.c.bf16 %v426_v1, %v418_v63 }
  0x92   : > { %3728 = vmatprep.subr.bf16.mxu1 %v2379_v28  ;;  %v443_v5 = vld [vmem:[%s5407_s22 + $0x5d8] sm:$0xff]  ;;  %v2409_v9 = vpack.c.bf16 %v441_v3, %v433_v2  ;;  %v440_v10 = vld [vmem:[%s5407_s22 + $0x5c0] sm:$0xff]  ;;  %v434_v11 = vld [vmem:[%s5407_s22 + $0x590] sm:$0xff] }
  0x93   : > { %v442_v12 = vld [vmem:[%s5407_s22 + $0x5d0] sm:$0xff]  ;;  %v2411_v13 = vpack.c.bf16 %v443_v5, %v435_v4  ;;  %v449_v14 = vld [vmem:[%s5407_s22 + $0x608] sm:$0xff]  ;;  %v451_v17 = vld [vmem:[%s5407_s22 + $0x618] sm:$0xff]  ;;  %v2408_v20 = vpack.c.bf16 %v440_v10, %v432_v7 }
  0x94   : > { %3401 = vmatpush1.bf16.msra.mxu0 %v2376_v34  ;;  %v457_v15 = vld [vmem:[%s5407_s22 + $0x648] sm:$0xff]  ;;  %v459_v18 = vld [vmem:[%s5407_s22 + $0x658] sm:$0xff]  ;;  %v2410_v21 = vpack.c.bf16 %v442_v12, %v434_v11  ;;  %v448_v23 = vld [vmem:[%s5407_s22 + $0x600] sm:$0xff] }
  0x95   : > { %3729 = vmatpush1.bf16.msra.mxu1 %v2378_v35  ;;  %3402 = vmatprep.subr.bf16.mxu0 %v2385_v36  ;;  %v241_v16 = vld [vmem:[#allocation2 + $0x8] sm:$0xff]  ;;  %v2417_v22 = vpack.c.bf16 %v457_v15, %v449_v14  ;;  %v456_v24 = vld [vmem:[%s5407_s22 + $0x640] sm:$0xff]  ;;  %v450_v25 = vld [vmem:[%s5407_s22 + $0x610] sm:$0xff]  ;;  %v2419_v26 = vpack.c.bf16 %v459_v18, %v451_v17 }
  0x96   : > { %3730 = vmatprep.subr.bf16.mxu1 %v2387_v40  ;;  %v5513_v19 = vpack.c.bf16 %v241_v16, %v241_v16  ;;  %v458_v27 = vld [vmem:[%s5407_s22 + $0x650] sm:$0xff]  ;;  %v465_v28 = vld [vmem:[%s5407_s22 + $0x688] sm:$0xff]  ;;  %v467_v30 = vld [vmem:[%s5407_s22 + $0x698] sm:$0xff]  ;;  %v2416_v32 = vpack.c.bf16 %v456_v24, %v448_v23 }
  0x97   : > { %v473_v29 = vld [vmem:[%s5407_s22 + $0x6c8] sm:$0xff]  ;;  %v475_v31 = vld [vmem:[%s5407_s22 + $0x6d8] sm:$0xff]  ;;  %v2418_v33 = vpack.c.bf16 %v458_v27, %v450_v25  ;;  %v464_v35 = vld [vmem:[%s5407_s22 + $0x680] sm:$0xff] }
  0x98   : > { %3403 = vmatpush1.bf16.msra.mxu0 %v2384_v46  ;;  %3418 = vmatprep.mubr.bf16.mxu0 %v5513_v19  ;;  %v2425_v34 = vpack.c.bf16 %v473_v29, %v465_v28  ;;  %v472_v36 = vld [vmem:[%s5407_s22 + $0x6c0] sm:$0xff]  ;;  %v466_v37 = vld [vmem:[%s5407_s22 + $0x690] sm:$0xff]  ;;  %v2427_v38 = vpack.c.bf16 %v475_v31, %v467_v30  ;;  %v481_v40 = vld [vmem:[%s5407_s22 + $0x708] sm:$0xff] }
  0x99   : > { %3731 = vmatpush1.bf16.msra.mxu1 %v2386_v47  ;;  %3404 = vmatprep.subr.bf16.mxu0 %v2393_v48  ;;  %v474_v39 = vld [vmem:[%s5407_s22 + $0x6d0] sm:$0xff]  ;;  %v489_v41 = vld [vmem:[%s5407_s22 + $0x748] sm:$0xff]  ;;  %v483_v42 = vld [vmem:[%s5407_s22 + $0x718] sm:$0xff]  ;;  %v2424_v44 = vpack.c.bf16 %v472_v36, %v464_v35 }
  0x9a   : > { %3732 = vmatprep.subr.bf16.mxu1 %v2395_v52  ;;  %3746 = vmatprep.mubr.bf16.mxu1 %v5513_v19  ;;  %v491_v43 = vld [vmem:[%s5407_s22 + $0x758] sm:$0xff]  ;;  %v2426_v45 = vpack.c.bf16 %v474_v39, %v466_v37  ;;  %v2433_v46 = vpack.c.bf16 %v489_v41, %v481_v40  ;;  %v480_v47 = vld [vmem:[%s5407_s22 + $0x700] sm:$0xff]  ;;  %v482_v49 = vld [vmem:[%s5407_s22 + $0x710] sm:$0xff] }
  0x9b   : > { %v488_v48 = vld [vmem:[%s5407_s22 + $0x740] sm:$0xff]  ;;  %v2435_v50 = vpack.c.bf16 %v491_v43, %v483_v42  ;;  %v490_v51 = vld [vmem:[%s5407_s22 + $0x750] sm:$0xff]  ;;  %v497_v52 = vld [vmem:[%s5407_s22 + $0x788] sm:$0xff] }
  0x9c   : > { %3405 = vmatpush1.bf16.msra.mxu0 %v2392_v58  ;;  %v505_v53 = vld [vmem:[%s5407_s22 + $0x7c8] sm:$0xff]  ;;  %v499_v54 = vld [vmem:[%s5407_s22 + $0x798] sm:$0xff]  ;;  %v2432_v56 = vpack.c.bf16 %v488_v48, %v480_v47  ;;  %v2434_v57 = vpack.c.bf16 %v490_v51, %v482_v49  ;;  %v498_v61 = vld [vmem:[%s5407_s22 + $0x790] sm:$0xff] }
  0x9d   : > { %3733 = vmatpush1.bf16.msra.mxu1 %v2394_v59  ;;  %3406 = vmatprep.subr.bf16.mxu0 %v2401_v60  ;;  %v507_v55 = vld [vmem:[%s5407_s22 + $0x7d8] sm:$0xff]  ;;  %v2441_v58 = vpack.c.bf16 %v505_v53, %v497_v52  ;;  %v496_v59 = vld [vmem:[%s5407_s22 + $0x780] sm:$0xff]  ;;  %v506_v63 = vld [vmem:[%s5407_s22 + $0x7d0] sm:$0xff] }
  0x9e   : > { %3734 = vmatprep.subr.bf16.mxu1 %v2403_v0  ;;  %v504_v60 = vld [vmem:[%s5407_s22 + $0x7c0] sm:$0xff]  ;;  %v2443_v62 = vpack.c.bf16 %v507_v55, %v499_v54  ;;  %v513_v0 = vld [vmem:[%s5407_s22 + $0x808] sm:$0xff]  ;;  %v515_v2 = vld [vmem:[%s5407_s22 + $0x818] sm:$0xff] }
  0x9f   : > { %v521_v1 = vld [vmem:[%s5407_s22 + $0x848] sm:$0xff]  ;;  %v523_v3 = vld [vmem:[%s5407_s22 + $0x858] sm:$0xff]  ;;  %v2440_v4 = vpack.c.bf16 %v504_v60, %v496_v59  ;;  %v240_v5 = vld [vmem:[#allocation2] sm:$0xff] }
  0xa0   : > { %3407 = vmatpush1.bf16.msra.mxu0 %v2400_v6  ;;  %v2442_v6 = vpack.c.bf16 %v506_v63, %v498_v61  ;;  %v2449_v7 = vpack.c.bf16 %v521_v1, %v513_v0  ;;  %v514_v10 = vld [vmem:[%s5407_s22 + $0x810] sm:$0xff]  ;;  %v2451_v11 = vpack.c.bf16 %v523_v3, %v515_v2  ;;  %v537_v14 = vld [vmem:[%s5407_s22 + $0x8c8] sm:$0xff]  ;;  %v5555_v15 = vpack.c.bf16 %v240_v5, %v240_v5  ;;  %v531_v16 = vld [vmem:[%s5407_s22 + $0x898] sm:$0xff] }
  0xa1   : > { %3735 = vmatpush1.bf16.msra.mxu1 %v2402_v8  ;;  %3408 = vmatprep.subr.bf16.mxu0 %v2409_v9  ;;  %v512_v8 = vld [vmem:[%s5407_s22 + $0x800] sm:$0xff]  ;;  %v522_v12 = vld [vmem:[%s5407_s22 + $0x850] sm:$0xff]  ;;  %v539_v17 = vld [vmem:[%s5407_s22 + $0x8d8] sm:$0xff] }
  0xa2   : > { %3736 = vmatprep.subr.bf16.mxu1 %v2411_v13  ;;  %v520_v9 = vld [vmem:[%s5407_s22 + $0x840] sm:$0xff]  ;;  %v529_v13 = vld [vmem:[%s5407_s22 + $0x888] sm:$0xff]  ;;  %v530_v24 = vld [vmem:[%s5407_s22 + $0x890] sm:$0xff]  ;;  %v2459_v25 = vpack.c.bf16 %v539_v17, %v531_v16 }
  0xa3   : > { %v2448_v18 = vpack.c.bf16 %v520_v9, %v512_v8  ;;  %v536_v23 = vld [vmem:[%s5407_s22 + $0x8c0] sm:$0xff]  ;;  %v545_v27 = vld [vmem:[%s5407_s22 + $0x908] sm:$0xff]  ;;  %v547_v29 = vld [vmem:[%s5407_s22 + $0x918] sm:$0xff] }
  0xa4   : > { %3409 = vmatpush1.bf16.msra.mxu0 %v2408_v20  ;;  %v2450_v20 = vpack.c.bf16 %v522_v12, %v514_v10  ;;  %v553_v28 = vld [vmem:[%s5407_s22 + $0x948] sm:$0xff]  ;;  %v555_v30 = vld [vmem:[%s5407_s22 + $0x958] sm:$0xff]  ;;  %v552_v35 = vld [vmem:[%s5407_s22 + $0x940] sm:$0xff] }
  0xa5   : > { %3737 = vmatpush1.bf16.msra.mxu1 %v2410_v21  ;;  %3410 = vmatprep.subr.bf16.mxu0 %v2417_v22  ;;  %v2457_v21 = vpack.c.bf16 %v537_v14, %v529_v13  ;;  %v528_v22 = vld [vmem:[%s5407_s22 + $0x880] sm:$0xff]  ;;  %v546_v36 = vld [vmem:[%s5407_s22 + $0x910] sm:$0xff]  ;;  %v2467_v37 = vpack.c.bf16 %v555_v30, %v547_v29  ;;  %v561_v39 = vld [vmem:[%s5407_s22 + $0x988] sm:$0xff] }
  0xa6   : > { %3738 = vmatprep.subr.bf16.mxu1 %v2419_v26  ;;  %v538_v26 = vld [vmem:[%s5407_s22 + $0x8d0] sm:$0xff]  ;;  %v2456_v31 = vpack.c.bf16 %v536_v23, %v528_v22  ;;  %v569_v40 = vld [vmem:[%s5407_s22 + $0x9c8] sm:$0xff]  ;;  %v563_v41 = vld [vmem:[%s5407_s22 + $0x998] sm:$0xff] }
  0xa7   : > { %v571_v42 = vld [vmem:[%s5407_s22 + $0x9d8] sm:$0xff]  ;;  %v568_v47 = vld [vmem:[%s5407_s22 + $0x9c0] sm:$0xff]  ;;  %v562_v48 = vld [vmem:[%s5407_s22 + $0x990] sm:$0xff] }
  0xa8   : > { %3411 = vmatpush1.bf16.msra.mxu0 %v2416_v32  ;;  %v2458_v32 = vpack.c.bf16 %v538_v26, %v530_v24  ;;  %v2475_v49 = vpack.c.bf16 %v571_v42, %v563_v41  ;;  %v577_v51 = vld [vmem:[%s5407_s22 + $0xa08] sm:$0xff]  ;;  %v579_v53 = vld [vmem:[%s5407_s22 + $0xa18] sm:$0xff]  ;;  %v584_v59 = vld [vmem:[%s5407_s22 + $0xa40] sm:$0xff] }
  0xa9   : > { %3739 = vmatpush1.bf16.msra.mxu1 %v2418_v33  ;;  %3412 = vmatprep.subr.bf16.mxu0 %v2425_v34  ;;  %v2465_v33 = vpack.c.bf16 %v553_v28, %v545_v27  ;;  %v544_v34 = vld [vmem:[%s5407_s22 + $0x900] sm:$0xff]  ;;  %v585_v52 = vld [vmem:[%s5407_s22 + $0xa48] sm:$0xff]  ;;  %v587_v54 = vld [vmem:[%s5407_s22 + $0xa58] sm:$0xff] }
  0xaa   : > { %3740 = vmatprep.subr.bf16.mxu1 %v2427_v38  ;;  %v554_v38 = vld [vmem:[%s5407_s22 + $0x950] sm:$0xff]  ;;  %v2464_v43 = vpack.c.bf16 %v552_v35, %v544_v34  ;;  %v2483_v61 = vpack.c.bf16 %v587_v54, %v579_v53  ;;  %v593_v63 = vld [vmem:[%s5407_s22 + $0xa88] sm:$0xff]  ;;  %v595_v1 = vld [vmem:[%s5407_s22 + $0xa98] sm:$0xff] }
  0xab   : > { %v578_v60 = vld [vmem:[%s5407_s22 + $0xa10] sm:$0xff]  ;;  %v601_v0 = vld [vmem:[%s5407_s22 + $0xac8] sm:$0xff]  ;;  %v603_v2 = vld [vmem:[%s5407_s22 + $0xad8] sm:$0xff] }
  0xac   : > { %3413 = vmatpush1.bf16.msra.mxu0 %v2424_v44  ;;  %v2466_v44 = vpack.c.bf16 %v554_v38, %v546_v36  ;;  %v2489_v5 = vpack.c.bf16 %v601_v0, %v593_v63  ;;  %v594_v8 = vld [vmem:[%s5407_s22 + $0xa90] sm:$0xff]  ;;  %v2491_v9 = vpack.c.bf16 %v603_v2, %v595_v1  ;;  %v617_v12 = vld [vmem:[%s5407_s22 + $0xb48] sm:$0xff]  ;;  %v611_v13 = vld [vmem:[%s5407_s22 + $0xb18] sm:$0xff] }
  0xad   : > { %3741 = vmatpush1.bf16.msra.mxu1 %v2426_v45  ;;  %3414 = vmatprep.subr.bf16.mxu0 %v2433_v46  ;;  %v2473_v45 = vpack.c.bf16 %v569_v40, %v561_v39  ;;  %v560_v46 = vld [vmem:[%s5407_s22 + $0x980] sm:$0xff]  ;;  %v602_v10 = vld [vmem:[%s5407_s22 + $0xad0] sm:$0xff]  ;;  %v619_v14 = vld [vmem:[%s5407_s22 + $0xb58] sm:$0xff] }
  0xae   : > { %3742 = vmatprep.subr.bf16.mxu1 %v2435_v50  ;;  %v570_v50 = vld [vmem:[%s5407_s22 + $0x9d0] sm:$0xff]  ;;  %v2472_v55 = vpack.c.bf16 %v568_v47, %v560_v46  ;;  %v608_v17 = vld [vmem:[%s5407_s22 + $0xb00] sm:$0xff]  ;;  %v2499_v24 = vpack.c.bf16 %v619_v14, %v611_v13  ;;  %v633_v26 = vld [vmem:[%s5407_s22 + $0xbc8] sm:$0xff] }
  0xaf   : > { %v610_v22 = vld [vmem:[%s5407_s22 + $0xb10] sm:$0xff]  ;;  %v243_v27 = vld [vmem:[#allocation2 + $0x18] sm:$0xff]  ;;  %v624_v34 = vld [vmem:[%s5407_s22 + $0xb80] sm:$0xff] }
  0xb0   : > { %3415 = vmatpush1.bf16.msra.mxu0 %v2432_v56  ;;  %v2474_v56 = vpack.c.bf16 %v570_v50, %v562_v48  ;;  %v618_v23 = vld [vmem:[%s5407_s22 + $0xb50] sm:$0xff]  ;;  %v627_v28 = vld [vmem:[%s5407_s22 + $0xb98] sm:$0xff]  ;;  %v5609_v30 = vpack.c.bf16 %v243_v27, %v243_v27  ;;  %v632_v35 = vld [vmem:[%s5407_s22 + $0xbc0] sm:$0xff] }
  0xb1   : > { %3743 = vmatpush1.bf16.msra.mxu1 %v2434_v57  ;;  %3416 = vmatprep.subr.bf16.mxu0 %v2441_v58  ;;  %v2481_v57 = vpack.c.bf16 %v585_v52, %v577_v51  ;;  %v576_v58 = vld [vmem:[%s5407_s22 + $0xa00] sm:$0xff]  ;;  %v635_v29 = vld [vmem:[%s5407_s22 + $0xbd8] sm:$0xff]  ;;  %v626_v36 = vld [vmem:[%s5407_s22 + $0xb90] sm:$0xff] }
  0xb2   : > { %3744 = vmatprep.subr.bf16.mxu1 %v2443_v62  ;;  %v586_v62 = vld [vmem:[%s5407_s22 + $0xa50] sm:$0xff]  ;;  %v2480_v3 = vpack.c.bf16 %v584_v59, %v576_v58  ;;  %v641_v39 = vld [vmem:[%s5407_s22 + $0xc08] sm:$0xff]  ;;  %v643_v41 = vld [vmem:[%s5407_s22 + $0xc18] sm:$0xff] }
  0xb3   : > { %v634_v38 = vld [vmem:[%s5407_s22 + $0xbd0] sm:$0xff]  ;;  %v649_v40 = vld [vmem:[%s5407_s22 + $0xc48] sm:$0xff]  ;;  %v651_v42 = vld [vmem:[%s5407_s22 + $0xc58] sm:$0xff] }
  0xb4   : > { %3417 = vmatpush1.bf16.msra.mxu0 %v2440_v4  ;;  %v2482_v4 = vpack.c.bf16 %v586_v62, %v578_v60  ;;  %v640_v46 = vld [vmem:[%s5407_s22 + $0xc00] sm:$0xff]  ;;  %v642_v48 = vld [vmem:[%s5407_s22 + $0xc10] sm:$0xff]  ;;  %v657_v51 = vld [vmem:[%s5407_s22 + $0xc88] sm:$0xff] }
  0xb5   : > { %3745 = vmatpush1.bf16.msra.mxu1 %v2442_v6  ;;  %3427 = vmatprep.subr.bf16.mxu0 %v2449_v7  ;;  %v592_v6 = vld [vmem:[%s5407_s22 + $0xa80] sm:$0xff]  ;;  %v650_v50 = vld [vmem:[%s5407_s22 + $0xc50] sm:$0xff]  ;;  %v665_v52 = vld [vmem:[%s5407_s22 + $0xcc8] sm:$0xff] }
  0xb6   : > { %3755 = vmatprep.subr.bf16.mxu1 %v2451_v11  ;;  %v600_v7 = vld [vmem:[%s5407_s22 + $0xac0] sm:$0xff]  ;;  %v609_v11 = vld [vmem:[%s5407_s22 + $0xb08] sm:$0xff]  ;;  %v659_v53 = vld [vmem:[%s5407_s22 + $0xc98] sm:$0xff] }
  0xb7   : > { %3419 = vmatmul.mubr.bf16.vlgmr.msra.gmra.mrb[0].mxu0 %v5555_v15  ;;  %v2488_v16 = vpack.c.bf16 %v600_v7, %v592_v6  ;;  %v648_v47 = vld [vmem:[%s5407_s22 + $0xc40] sm:$0xff]  ;;  %v667_v54 = vld [vmem:[%s5407_s22 + $0xcd8] sm:$0xff]  ;;  %v658_v60 = vld [vmem:[%s5407_s22 + $0xc90] sm:$0xff] }
  0xb8   : > { %3428 = vmatpush1.bf16.msra.mxu0 %v2448_v18  ;;  %3747 = vmatmul.mubr.bf16.vlgmr.msra.gmra.mrb[0].mxu1 %v5555_v15  ;;  %v2490_v18 = vpack.c.bf16 %v602_v10, %v594_v8  ;;  %v656_v58 = vld [vmem:[%s5407_s22 + $0xc80] sm:$0xff]  ;;  %v666_v62 = vld [vmem:[%s5407_s22 + $0xcd0] sm:$0xff]  ;;  %v673_v63 = vld [vmem:[%s5407_s22 + $0xd08] sm:$0xff] }
  0xb9   : > { %3756 = vmatpush1.bf16.msra.mxu1 %v2450_v20  ;;  %3429 = vmatprep.subr.bf16.mxu0 %v2457_v21  ;;  %v2497_v20 = vpack.c.bf16 %v617_v12, %v609_v11  ;;  %v616_v21 = vld [vmem:[%s5407_s22 + $0xb40] sm:$0xff]  ;;  %v681_v0 = vld [vmem:[%s5407_s22 + $0xd48] sm:$0xff]  ;;  %v675_v1 = vld [vmem:[%s5407_s22 + $0xd18] sm:$0xff] }
  0xba   : > { %3757 = vmatprep.subr.bf16.mxu1 %v2459_v25  ;;  %v625_v25 = vld [vmem:[%s5407_s22 + $0xb88] sm:$0xff]  ;;  %3459 = vmatprep.mubr.bf16.mxu0 %v5609_v30  ;;  %v664_v59 = vld [vmem:[%s5407_s22 + $0xcc0] sm:$0xff]  ;;  %v683_v2 = vld [vmem:[%s5407_s22 + $0xd58] sm:$0xff] }
  0xbb   : > { %3787 = vmatprep.mubr.bf16.mxu1 %v5609_v30  ;;  %v672_v6 = vld [vmem:[%s5407_s22 + $0xd00] sm:$0xff]  ;;  %v674_v8 = vld [vmem:[%s5407_s22 + $0xd10] sm:$0xff]  ;;  %v689_v11 = vld [vmem:[%s5407_s22 + $0xd88] sm:$0xff] }
  0xbc   : > { %3430 = vmatpush1.bf16.msra.mxu0 %v2456_v31  ;;  %v2496_v31 = vpack.c.bf16 %v616_v21, %v608_v17  ;;  %v680_v7 = vld [vmem:[%s5407_s22 + $0xd40] sm:$0xff]  ;;  %v682_v10 = vld [vmem:[%s5407_s22 + $0xd50] sm:$0xff]  ;;  %v697_v12 = vld [vmem:[%s5407_s22 + $0xdc8] sm:$0xff] }
  0xbd   : > { %3758 = vmatpush1.bf16.msra.mxu1 %v2458_v32  ;;  %3431 = vmatprep.subr.bf16.mxu0 %v2465_v33  ;;  %v2498_v32 = vpack.c.bf16 %v618_v23, %v610_v22  ;;  %v2505_v33 = vpack.c.bf16 %v633_v26, %v625_v25  ;;  %v691_v13 = vld [vmem:[%s5407_s22 + $0xd98] sm:$0xff]  ;;  %v2530_v17 = vpack.c.bf16 %v682_v10, %v674_v8  ;;  %v696_v21 = vld [vmem:[%s5407_s22 + $0xdc0] sm:$0xff]  ;;  %v690_v22 = vld [vmem:[%s5407_s22 + $0xd90] sm:$0xff] }
  0xbe   : > { %3759 = vmatprep.subr.bf16.mxu1 %v2467_v37  ;;  %v2507_v37 = vpack.c.bf16 %v635_v29, %v627_v28  ;;  %v699_v14 = vld [vmem:[%s5407_s22 + $0xdd8] sm:$0xff]  ;;  %v705_v25 = vld [vmem:[%s5407_s22 + $0xe08] sm:$0xff] }
  0xbf   : > { %v2539_v23 = vpack.c.bf16 %v699_v14, %v691_v13  ;;  %v713_v26 = vld [vmem:[%s5407_s22 + $0xe48] sm:$0xff]  ;;  %v707_v27 = vld [vmem:[%s5407_s22 + $0xe18] sm:$0xff] }
  0xc0   : > { %3432 = vmatpush1.bf16.msra.mxu0 %v2464_v43  ;;  %v2504_v43 = vpack.c.bf16 %v632_v35, %v624_v34  ;;  %v715_v28 = vld [vmem:[%s5407_s22 + $0xe58] sm:$0xff]  ;;  %v712_v34 = vld [vmem:[%s5407_s22 + $0xe40] sm:$0xff]  ;;  %v706_v35 = vld [vmem:[%s5407_s22 + $0xe10] sm:$0xff] }
  0xc1   : > { %3760 = vmatpush1.bf16.msra.mxu1 %v2466_v44  ;;  %3433 = vmatprep.subr.bf16.mxu0 %v2473_v45  ;;  %v2506_v44 = vpack.c.bf16 %v634_v38, %v626_v36  ;;  %v2513_v45 = vpack.c.bf16 %v649_v40, %v641_v39  ;;  %v2547_v36 = vpack.c.bf16 %v715_v28, %v707_v27  ;;  %v721_v38 = vld [vmem:[%s5407_s22 + $0xe88] sm:$0xff]  ;;  %v723_v40 = vld [vmem:[%s5407_s22 + $0xe98] sm:$0xff] }
  0xc2   : > { %3761 = vmatprep.subr.bf16.mxu1 %v2475_v49  ;;  %v2515_v49 = vpack.c.bf16 %v651_v42, %v643_v41  ;;  %v729_v39 = vld [vmem:[%s5407_s22 + $0xec8] sm:$0xff]  ;;  %v731_v41 = vld [vmem:[%s5407_s22 + $0xed8] sm:$0xff] }
  0xc3   : > { %v769_v10 = vld [vmem:[%s5407_s22 + $0x1008] sm:$0xff]  ;;  %v779_v13 = vld [vmem:[%s5407_s22 + $0x1058] sm:$0xff] }
  0xc4   : > { %3434 = vmatpush1.bf16.msra.mxu0 %v2472_v55  ;;  %v2512_v55 = vpack.c.bf16 %v648_v47, %v640_v46  ;;  %v728_v46 = vld [vmem:[%s5407_s22 + $0xec0] sm:$0xff]  ;;  %v722_v47 = vld [vmem:[%s5407_s22 + $0xe90] sm:$0xff]  ;;  %v787_v28 = vld [vmem:[%s5407_s22 + $0x1098] sm:$0xff] }
  0xc5   : > { %3762 = vmatpush1.bf16.msra.mxu1 %v2474_v56  ;;  %3435 = vmatprep.subr.bf16.mxu0 %v2481_v57  ;;  %v2514_v56 = vpack.c.bf16 %v650_v50, %v642_v48  ;;  %v2521_v57 = vpack.c.bf16 %v665_v52, %v657_v51  ;;  %v2555_v48 = vpack.c.bf16 %v731_v41, %v723_v40  ;;  %v737_v50 = vld [vmem:[%s5407_s22 + $0xf08] sm:$0xff]  ;;  %v739_v52 = vld [vmem:[%s5407_s22 + $0xf18] sm:$0xff] }
  0xc6   : > { %3763 = vmatprep.subr.bf16.mxu1 %v2483_v61  ;;  %v2523_v61 = vpack.c.bf16 %v667_v54, %v659_v53  ;;  %v745_v51 = vld [vmem:[%s5407_s22 + $0xf48] sm:$0xff]  ;;  %v747_v53 = vld [vmem:[%s5407_s22 + $0xf58] sm:$0xff] }
  0xc7   : > { %v801_v40 = vld [vmem:[%s5407_s22 + $0x1108] sm:$0xff] }
  0xc8   : > { %3436 = vmatpush1.bf16.msra.mxu0 %v2480_v3  ;;  %v2520_v3 = vpack.c.bf16 %v664_v59, %v656_v58  ;;  %v744_v58 = vld [vmem:[%s5407_s22 + $0xf40] sm:$0xff]  ;;  %v738_v59 = vld [vmem:[%s5407_s22 + $0xf10] sm:$0xff]  ;;  %v809_v41 = vld [vmem:[%s5407_s22 + $0x1148] sm:$0xff] }
  0xc9   : > { %3764 = vmatpush1.bf16.msra.mxu1 %v2482_v4  ;;  %3437 = vmatprep.subr.bf16.mxu0 %v2489_v5  ;;  %v2522_v4 = vpack.c.bf16 %v666_v62, %v658_v60  ;;  %v2529_v5 = vpack.c.bf16 %v681_v0, %v673_v63  ;;  %v2563_v60 = vpack.c.bf16 %v747_v53, %v739_v52  ;;  %v753_v62 = vld [vmem:[%s5407_s22 + $0xf88] sm:$0xff]  ;;  %v755_v0 = vld [vmem:[%s5407_s22 + $0xf98] sm:$0xff]  ;;  %v810_v52 = vld [vmem:[%s5407_s22 + $0x1150] sm:$0xff] }
  0xca   : > { %3765 = vmatprep.subr.bf16.mxu1 %v2491_v9  ;;  %v2531_v9 = vpack.c.bf16 %v683_v2, %v675_v1  ;;  %v761_v63 = vld [vmem:[%s5407_s22 + $0xfc8] sm:$0xff]  ;;  %v763_v1 = vld [vmem:[%s5407_s22 + $0xfd8] sm:$0xff] }
  0xcb   : > { %v2571_v8 = vpack.c.bf16 %v763_v1, %v755_v0  ;;  %v817_v53 = vld [vmem:[%s5407_s22 + $0x1188] sm:$0xff]  ;;  %v826_v0 = vld [vmem:[%s5407_s22 + $0x11d0] sm:$0xff] }
  0xcc   : > { %3438 = vmatpush1.bf16.msra.mxu0 %v2488_v16  ;;  %v2528_v16 = vpack.c.bf16 %v680_v7, %v672_v6  ;;  %v760_v6 = vld [vmem:[%s5407_s22 + $0xfc0] sm:$0xff]  ;;  %v754_v7 = vld [vmem:[%s5407_s22 + $0xf90] sm:$0xff]  ;;  %v833_v1 = vld [vmem:[%s5407_s22 + $0x1208] sm:$0xff] }
  0xcd   : > { %3766 = vmatpush1.bf16.msra.mxu1 %v2490_v18  ;;  %3439 = vmatprep.subr.bf16.mxu0 %v2497_v20  ;;  %v2537_v18 = vpack.c.bf16 %v697_v12, %v689_v11  ;;  %v688_v20 = vld [vmem:[%s5407_s22 + $0xd80] sm:$0xff]  ;;  %v777_v11 = vld [vmem:[%s5407_s22 + $0x1048] sm:$0xff]  ;;  %v771_v12 = vld [vmem:[%s5407_s22 + $0x1018] sm:$0xff] }
  0xce   : > { %3767 = vmatprep.subr.bf16.mxu1 %v2499_v24  ;;  %v698_v24 = vld [vmem:[%s5407_s22 + $0xdd0] sm:$0xff]  ;;  %v2536_v29 = vpack.c.bf16 %v696_v21, %v688_v20  ;;  %v768_v20 = vld [vmem:[%s5407_s22 + $0x1000] sm:$0xff] }
  0xcf   : > { %v776_v21 = vld [vmem:[%s5407_s22 + $0x1040] sm:$0xff] }
  0xd0   : > { %3440 = vmatpush1.bf16.msra.mxu0 %v2496_v31  ;;  %v2538_v31 = vpack.c.bf16 %v698_v24, %v690_v22  ;;  %v770_v22 = vld [vmem:[%s5407_s22 + $0x1010] sm:$0xff] }
  0xd1   : > { %3768 = vmatpush1.bf16.msra.mxu1 %v2498_v32  ;;  %3441 = vmatprep.subr.bf16.mxu0 %v2505_v33  ;;  %v2545_v32 = vpack.c.bf16 %v713_v26, %v705_v25  ;;  %v704_v33 = vld [vmem:[%s5407_s22 + $0xe00] sm:$0xff]  ;;  %v778_v24 = vld [vmem:[%s5407_s22 + $0x1050] sm:$0xff]  ;;  %v785_v25 = vld [vmem:[%s5407_s22 + $0x1088] sm:$0xff] }
  0xd2   : > { %3769 = vmatprep.subr.bf16.mxu1 %v2507_v37  ;;  %v714_v37 = vld [vmem:[%s5407_s22 + $0xe50] sm:$0xff]  ;;  %v2544_v42 = vpack.c.bf16 %v712_v34, %v704_v33  ;;  %v793_v26 = vld [vmem:[%s5407_s22 + $0x10c8] sm:$0xff]  ;;  %v2578_v33 = vpack.c.bf16 %v778_v24, %v770_v22  ;;  %v848_v22 = vld [vmem:[%s5407_s22 + $0x1280] sm:$0xff] }
  0xd3   : > { %v2585_v34 = vpack.c.bf16 %v793_v26, %v785_v25  ;;  %v850_v24 = vld [vmem:[%s5407_s22 + $0x1290] sm:$0xff] }
  0xd4   : > { %3442 = vmatpush1.bf16.msra.mxu0 %v2504_v43  ;;  %v2546_v43 = vpack.c.bf16 %v714_v37, %v706_v35  ;;  %v792_v35 = vld [vmem:[%s5407_s22 + $0x10c0] sm:$0xff]  ;;  %v245_v37 = vld [vmem:[#allocation2 + $0x28] sm:$0xff]  ;;  %v858_v26 = vld [vmem:[%s5407_s22 + $0x12d0] sm:$0xff] }
  0xd5   : > { %3770 = vmatpush1.bf16.msra.mxu1 %v2506_v44  ;;  %3443 = vmatprep.subr.bf16.mxu0 %v2513_v45  ;;  %v2553_v44 = vpack.c.bf16 %v729_v39, %v721_v38  ;;  %v720_v45 = vld [vmem:[%s5407_s22 + $0xe80] sm:$0xff]  ;;  %v794_v39 = vld [vmem:[%s5407_s22 + $0x10d0] sm:$0xff] }
  0xd6   : > { %3771 = vmatprep.subr.bf16.mxu1 %v2515_v49  ;;  %v730_v49 = vld [vmem:[%s5407_s22 + $0xed0] sm:$0xff]  ;;  %v2552_v54 = vpack.c.bf16 %v728_v46, %v720_v45 }
  0xd8   : > { %3444 = vmatpush1.bf16.msra.mxu0 %v2512_v55  ;;  %v2554_v55 = vpack.c.bf16 %v730_v49, %v722_v47  ;;  %v2593_v47 = vpack.c.bf16 %v809_v41, %v801_v40  ;;  %v808_v49 = vld [vmem:[%s5407_s22 + $0x1140] sm:$0xff]  ;;  %v874_v40 = vld [vmem:[%s5407_s22 + $0x1350] sm:$0xff]  ;;  %v881_v41 = vld [vmem:[%s5407_s22 + $0x1388] sm:$0xff] }
  0xd9   : > { %3772 = vmatpush1.bf16.msra.mxu1 %v2514_v56  ;;  %3445 = vmatprep.subr.bf16.mxu0 %v2521_v57  ;;  %v2561_v56 = vpack.c.bf16 %v745_v51, %v737_v50  ;;  %v736_v57 = vld [vmem:[%s5407_s22 + $0xf00] sm:$0xff]  ;;  %v802_v50 = vld [vmem:[%s5407_s22 + $0x1110] sm:$0xff] }
  0xda   : > { %3773 = vmatprep.subr.bf16.mxu1 %v2523_v61  ;;  %v746_v61 = vld [vmem:[%s5407_s22 + $0xf50] sm:$0xff]  ;;  %v2560_v2 = vpack.c.bf16 %v744_v58, %v736_v57  ;;  %v2594_v58 = vpack.c.bf16 %v810_v52, %v802_v50  ;;  %v888_v50 = vld [vmem:[%s5407_s22 + $0x13c0] sm:$0xff] }
  0xdc   : > { %3446 = vmatpush1.bf16.msra.mxu0 %v2520_v3  ;;  %v2562_v3 = vpack.c.bf16 %v746_v61, %v738_v59  ;;  %v824_v61 = vld [vmem:[%s5407_s22 + $0x11c0] sm:$0xff] }
  0xdd   : > { %3774 = vmatpush1.bf16.msra.mxu1 %v2522_v4  ;;  %3447 = vmatprep.subr.bf16.mxu0 %v2529_v5  ;;  %v2569_v4 = vpack.c.bf16 %v761_v63, %v753_v62  ;;  %v752_v5 = vld [vmem:[%s5407_s22 + $0xf80] sm:$0xff]  ;;  %v818_v62 = vld [vmem:[%s5407_s22 + $0x1190] sm:$0xff] }
  0xde   : > { %3775 = vmatprep.subr.bf16.mxu1 %v2531_v9  ;;  %v762_v9 = vld [vmem:[%s5407_s22 + $0xfd0] sm:$0xff]  ;;  %v2568_v14 = vpack.c.bf16 %v760_v6, %v752_v5  ;;  %v2602_v6 = vpack.c.bf16 %v826_v0, %v818_v62  ;;  %v904_v62 = vld [vmem:[%s5407_s22 + $0x1440] sm:$0xff] }
  0xe0   : > { %3448 = vmatpush1.bf16.msra.mxu0 %v2528_v16  ;;  %v242_v16 = vld [vmem:[#allocation2 + $0x10] sm:$0xff] }
  0xe1   : > { %3776 = vmatpush1.bf16.msra.mxu1 %v2530_v17  ;;  %3449 = vmatprep.subr.bf16.mxu0 %v2537_v18  ;;  %v2570_v17 = vpack.c.bf16 %v762_v9, %v754_v7  ;;  %v2577_v18 = vpack.c.bf16 %v777_v11, %v769_v10  ;;  %v5691_v27 = vpack.c.bf16 %v242_v16, %v242_v16  ;;  %v840_v9 = vld [vmem:[%s5407_s22 + $0x1240] sm:$0xff]  ;;  %v834_v10 = vld [vmem:[%s5407_s22 + $0x1210] sm:$0xff]  ;;  %v851_v16 = vld [vmem:[%s5407_s22 + $0x1298] sm:$0xff] }
  0xe2   : > { %3777 = vmatprep.subr.bf16.mxu1 %v2539_v23  ;;  %v2579_v23 = vpack.c.bf16 %v779_v13, %v771_v12  ;;  %v842_v12 = vld [vmem:[%s5407_s22 + $0x1250] sm:$0xff]  ;;  %v849_v13 = vld [vmem:[%s5407_s22 + $0x1288] sm:$0xff] }
  0xe4   : > { %3450 = vmatpush1.bf16.msra.mxu0 %v2536_v29  ;;  %v795_v29 = vld [vmem:[%s5407_s22 + $0x10d8] sm:$0xff] }
  0xe5   : > { %3778 = vmatpush1.bf16.msra.mxu1 %v2538_v31  ;;  %3451 = vmatprep.subr.bf16.mxu0 %v2545_v32  ;;  %v2576_v31 = vpack.c.bf16 %v776_v21, %v768_v20  ;;  %v784_v32 = vld [vmem:[%s5407_s22 + $0x1080] sm:$0xff]  ;;  %v2587_v38 = vpack.c.bf16 %v795_v29, %v787_v28  ;;  %v2610_v20 = vpack.c.bf16 %v842_v12, %v834_v10  ;;  %v865_v28 = vld [vmem:[%s5407_s22 + $0x1308] sm:$0xff] }
  0xe6   : > { %3779 = vmatprep.subr.bf16.mxu1 %v2547_v36  ;;  %v786_v36 = vld [vmem:[%s5407_s22 + $0x1090] sm:$0xff]  ;;  %v2584_v45 = vpack.c.bf16 %v792_v35, %v784_v32  ;;  %v873_v29 = vld [vmem:[%s5407_s22 + $0x1348] sm:$0xff]  ;;  %v875_v32 = vld [vmem:[%s5407_s22 + $0x1358] sm:$0xff] }
  0xe7   : > { %v2586_v46 = vpack.c.bf16 %v794_v39, %v786_v36  ;;  %v2625_v35 = vpack.c.bf16 %v873_v29, %v865_v28  ;;  %v864_v36 = vld [vmem:[%s5407_s22 + $0x1300] sm:$0xff]  ;;  %v938_v28 = vld [vmem:[%s5407_s22 + $0x1550] sm:$0xff]  ;;  %v945_v29 = vld [vmem:[%s5407_s22 + $0x1588] sm:$0xff] }
  0xe8   : > { %3452 = vmatpush1.bf16.msra.mxu0 %v2544_v42  ;;  %v5701_v42 = vpack.c.bf16 %v245_v37, %v245_v37  ;;  %v872_v37 = vld [vmem:[%s5407_s22 + $0x1340] sm:$0xff] }
  0xe9   : > { %3780 = vmatpush1.bf16.msra.mxu1 %v2546_v43  ;;  %3453 = vmatprep.subr.bf16.mxu0 %v2553_v44  ;;  %v803_v43 = vld [vmem:[%s5407_s22 + $0x1118] sm:$0xff]  ;;  %v920_v10 = vld [vmem:[%s5407_s22 + $0x14c0] sm:$0xff] }
  0xea   : > { %3781 = vmatprep.subr.bf16.mxu1 %v2555_v48  ;;  %v811_v44 = vld [vmem:[%s5407_s22 + $0x1158] sm:$0xff]  ;;  %v800_v48 = vld [vmem:[%s5407_s22 + $0x1100] sm:$0xff] }
  0xeb   : > { %v2595_v51 = vpack.c.bf16 %v811_v44, %v803_v43  ;;  %v2592_v57 = vpack.c.bf16 %v808_v49, %v800_v48  ;;  %v889_v43 = vld [vmem:[%s5407_s22 + $0x13c8] sm:$0xff]  ;;  %v883_v44 = vld [vmem:[%s5407_s22 + $0x1398] sm:$0xff]  ;;  %v880_v49 = vld [vmem:[%s5407_s22 + $0x1380] sm:$0xff] }
  0xec   : > { %3454 = vmatpush1.bf16.msra.mxu0 %v2552_v54  ;;  %v825_v54 = vld [vmem:[%s5407_s22 + $0x11c8] sm:$0xff]  ;;  %v2633_v48 = vpack.c.bf16 %v889_v43, %v881_v41  ;;  %v954_v41 = vld [vmem:[%s5407_s22 + $0x15d0] sm:$0xff] }
  0xed   : > { %3782 = vmatpush1.bf16.msra.mxu1 %v2554_v55  ;;  %3455 = vmatprep.subr.bf16.mxu0 %v2561_v56  ;;  %v819_v55 = vld [vmem:[%s5407_s22 + $0x1198] sm:$0xff]  ;;  %v2601_v59 = vpack.c.bf16 %v825_v54, %v817_v53  ;;  %v890_v53 = vld [vmem:[%s5407_s22 + $0x13d0] sm:$0xff]  ;;  %v897_v54 = vld [vmem:[%s5407_s22 + $0x1408] sm:$0xff] }
  0xee   : > { %3783 = vmatprep.subr.bf16.mxu1 %v2563_v60  ;;  %v827_v56 = vld [vmem:[%s5407_s22 + $0x11d8] sm:$0xff]  ;;  %v816_v60 = vld [vmem:[%s5407_s22 + $0x1180] sm:$0xff]  ;;  %v961_v43 = vld [vmem:[%s5407_s22 + $0x1608] sm:$0xff] }
  0xef   : > { %v2603_v63 = vpack.c.bf16 %v827_v56, %v819_v55  ;;  %v2600_v5 = vpack.c.bf16 %v824_v61, %v816_v60  ;;  %v905_v55 = vld [vmem:[%s5407_s22 + $0x1448] sm:$0xff]  ;;  %v899_v56 = vld [vmem:[%s5407_s22 + $0x1418] sm:$0xff]  ;;  %v896_v61 = vld [vmem:[%s5407_s22 + $0x1400] sm:$0xff] }
  0xf0   : > { %3456 = vmatpush1.bf16.msra.mxu0 %v2560_v2  ;;  %v841_v2 = vld [vmem:[%s5407_s22 + $0x1248] sm:$0xff]  ;;  %v2641_v60 = vpack.c.bf16 %v905_v55, %v897_v54  ;;  %v970_v54 = vld [vmem:[%s5407_s22 + $0x1650] sm:$0xff] }
  0xf1   : > { %3784 = vmatpush1.bf16.msra.mxu1 %v2562_v3  ;;  %3457 = vmatprep.subr.bf16.mxu0 %v2569_v4  ;;  %v835_v3 = vld [vmem:[%s5407_s22 + $0x1218] sm:$0xff]  ;;  %v2609_v7 = vpack.c.bf16 %v841_v2, %v833_v1  ;;  %v906_v1 = vld [vmem:[%s5407_s22 + $0x1450] sm:$0xff]  ;;  %v913_v2 = vld [vmem:[%s5407_s22 + $0x1488] sm:$0xff] }
  0xf2   : > { %3785 = vmatprep.subr.bf16.mxu1 %v2571_v8  ;;  %v843_v4 = vld [vmem:[%s5407_s22 + $0x1258] sm:$0xff]  ;;  %v832_v8 = vld [vmem:[%s5407_s22 + $0x1200] sm:$0xff]  ;;  %v977_v55 = vld [vmem:[%s5407_s22 + $0x1688] sm:$0xff] }
  0xf3   : > { %v2611_v11 = vpack.c.bf16 %v843_v4, %v835_v3  ;;  %v921_v3 = vld [vmem:[%s5407_s22 + $0x14c8] sm:$0xff]  ;;  %v915_v4 = vld [vmem:[%s5407_s22 + $0x1498] sm:$0xff] }
  0xf4   : > { %3458 = vmatpush1.bf16.msra.mxu0 %v2568_v14  ;;  %v857_v14 = vld [vmem:[%s5407_s22 + $0x12c8] sm:$0xff] }
  0xf5   : > { %3786 = vmatpush1.bf16.msra.mxu1 %v2570_v17  ;;  %3468 = vmatprep.subr.bf16.mxu0 %v2577_v18  ;;  %v859_v17 = vld [vmem:[%s5407_s22 + $0x12d8] sm:$0xff]  ;;  %v2608_v18 = vpack.c.bf16 %v840_v9, %v832_v8  ;;  %v2617_v21 = vpack.c.bf16 %v857_v14, %v849_v13  ;;  %v2649_v8 = vpack.c.bf16 %v921_v3, %v913_v2  ;;  %v912_v9 = vld [vmem:[%s5407_s22 + $0x1480] sm:$0xff]  ;;  %v922_v13 = vld [vmem:[%s5407_s22 + $0x14d0] sm:$0xff] }
  0xf6   : > { %3796 = vmatprep.subr.bf16.mxu1 %v2579_v23  ;;  %v856_v23 = vld [vmem:[%s5407_s22 + $0x12c0] sm:$0xff]  ;;  %v2619_v25 = vpack.c.bf16 %v859_v17, %v851_v16  ;;  %v929_v14 = vld [vmem:[%s5407_s22 + $0x1508] sm:$0xff]  ;;  %v931_v17 = vld [vmem:[%s5407_s22 + $0x1518] sm:$0xff] }
  0xf7   : > { %3460 = vmatmul.mubr.bf16.vlgmr.msra.gmra.mrb[0].mxu0 %v5691_v27  ;;  %v937_v16 = vld [vmem:[%s5407_s22 + $0x1548] sm:$0xff]  ;;  %v986_v2 = vld [vmem:[%s5407_s22 + $0x16d0] sm:$0xff] }
  0xf8   : > { %3469 = vmatpush1.bf16.msra.mxu0 %v2576_v31  ;;  %3788 = vmatmul.mubr.bf16.vlgmr.msra.gmra.mrb[0].mxu1 %v5691_v27  ;;  %v867_v31 = vld [vmem:[%s5407_s22 + $0x1318] sm:$0xff]  ;;  %v993_v3 = vld [vmem:[%s5407_s22 + $0x1708] sm:$0xff] }
  0xf9   : > { %3797 = vmatpush1.bf16.msra.mxu1 %v2578_v33  ;;  %3470 = vmatprep.subr.bf16.mxu0 %v2585_v34  ;;  %v2616_v33 = vpack.c.bf16 %v856_v23, %v848_v22  ;;  %v2618_v34 = vpack.c.bf16 %v858_v26, %v850_v24  ;;  %v2627_v39 = vpack.c.bf16 %v875_v32, %v867_v31  ;;  %v928_v23 = vld [vmem:[%s5407_s22 + $0x1500] sm:$0xff]  ;;  %v953_v31 = vld [vmem:[%s5407_s22 + $0x15c8] sm:$0xff]  ;;  %v947_v32 = vld [vmem:[%s5407_s22 + $0x1598] sm:$0xff] }
  0xfa   : > { %3798 = vmatprep.subr.bf16.mxu1 %v2587_v38  ;;  %3500 = vmatprep.mubr.bf16.mxu0 %v5701_v42  ;;  %v866_v38 = vld [vmem:[%s5407_s22 + $0x1310] sm:$0xff]  ;;  %v2657_v22 = vpack.c.bf16 %v937_v16, %v929_v14  ;;  %v936_v24 = vld [vmem:[%s5407_s22 + $0x1540] sm:$0xff]  ;;  %v1009_v16 = vld [vmem:[%s5407_s22 + $0x1788] sm:$0xff] }
  0xfb   : > { %3828 = vmatprep.mubr.bf16.mxu1 %v5701_v42  ;;  %v1002_v14 = vld [vmem:[%s5407_s22 + $0x1750] sm:$0xff] }
  0xfc   : > { %3471 = vmatpush1.bf16.msra.mxu0 %v2584_v45  ;;  %v891_v45 = vld [vmem:[%s5407_s22 + $0x13d8] sm:$0xff] }
  0xfd   : > { %3799 = vmatpush1.bf16.msra.mxu1 %v2586_v46  ;;  %3472 = vmatprep.subr.bf16.mxu0 %v2593_v47  ;;  %v2624_v46 = vpack.c.bf16 %v872_v37, %v864_v36  ;;  %v2626_v47 = vpack.c.bf16 %v874_v40, %v866_v38  ;;  %v2635_v52 = vpack.c.bf16 %v891_v45, %v883_v44  ;;  %v944_v37 = vld [vmem:[%s5407_s22 + $0x1580] sm:$0xff]  ;;  %v969_v44 = vld [vmem:[%s5407_s22 + $0x1648] sm:$0xff]  ;;  %v963_v45 = vld [vmem:[%s5407_s22 + $0x1618] sm:$0xff] }
  0xfe   : > { %3800 = vmatprep.subr.bf16.mxu1 %v2595_v51  ;;  %v882_v51 = vld [vmem:[%s5407_s22 + $0x1390] sm:$0xff]  ;;  %v2665_v36 = vpack.c.bf16 %v953_v31, %v945_v29  ;;  %v952_v38 = vld [vmem:[%s5407_s22 + $0x15c0] sm:$0xff]  ;;  %v1025_v31 = vld [vmem:[%s5407_s22 + $0x1808] sm:$0xff] }
  0xff   : > { %v1018_v29 = vld [vmem:[%s5407_s22 + $0x17d0] sm:$0xff] }
 0x100   : > { %3473 = vmatpush1.bf16.msra.mxu0 %v2592_v57  ;;  %v907_v57 = vld [vmem:[%s5407_s22 + $0x1458] sm:$0xff] }
 0x101   : > { %3801 = vmatpush1.bf16.msra.mxu1 %v2594_v58  ;;  %3474 = vmatprep.subr.bf16.mxu0 %v2601_v59  ;;  %v2632_v58 = vpack.c.bf16 %v888_v50, %v880_v49  ;;  %v2634_v59 = vpack.c.bf16 %v890_v53, %v882_v51  ;;  %v2643_v0 = vpack.c.bf16 %v907_v57, %v899_v56  ;;  %v960_v50 = vld [vmem:[%s5407_s22 + $0x1600] sm:$0xff]  ;;  %v985_v56 = vld [vmem:[%s5407_s22 + $0x16c8] sm:$0xff]  ;;  %v979_v57 = vld [vmem:[%s5407_s22 + $0x1698] sm:$0xff] }
 0x102   : > { %3802 = vmatprep.subr.bf16.mxu1 %v2603_v63  ;;  %v898_v63 = vld [vmem:[%s5407_s22 + $0x1410] sm:$0xff]  ;;  %v2673_v49 = vpack.c.bf16 %v969_v44, %v961_v43  ;;  %v968_v51 = vld [vmem:[%s5407_s22 + $0x1640] sm:$0xff] }
 0x103   : > { %v1034_v44 = vld [vmem:[%s5407_s22 + $0x1850] sm:$0xff] }
 0x104   : > { %3475 = vmatpush1.bf16.msra.mxu0 %v2600_v5  ;;  %v923_v5 = vld [vmem:[%s5407_s22 + $0x14d8] sm:$0xff] }
 0x105   : > { %3803 = vmatpush1.bf16.msra.mxu1 %v2602_v6  ;;  %3476 = vmatprep.subr.bf16.mxu0 %v2609_v7  ;;  %v2640_v6 = vpack.c.bf16 %v904_v62, %v896_v61  ;;  %v2642_v7 = vpack.c.bf16 %v906_v1, %v898_v63  ;;  %v2651_v12 = vpack.c.bf16 %v923_v5, %v915_v4  ;;  %v976_v62 = vld [vmem:[%s5407_s22 + $0x1680] sm:$0xff]  ;;  %v1001_v4 = vld [vmem:[%s5407_s22 + $0x1748] sm:$0xff]  ;;  %v995_v5 = vld [vmem:[%s5407_s22 + $0x1718] sm:$0xff] }
 0x106   : > { %3804 = vmatprep.subr.bf16.mxu1 %v2611_v11  ;;  %v914_v11 = vld [vmem:[%s5407_s22 + $0x1490] sm:$0xff]  ;;  %v2681_v61 = vpack.c.bf16 %v985_v56, %v977_v55  ;;  %v984_v63 = vld [vmem:[%s5407_s22 + $0x16c0] sm:$0xff] }
 0x107   : > { %v1048_v55 = vld [vmem:[%s5407_s22 + $0x18c0] sm:$0xff]  ;;  %v1042_v56 = vld [vmem:[%s5407_s22 + $0x1890] sm:$0xff] }
 0x108   : > { %3477 = vmatpush1.bf16.msra.mxu0 %v2608_v18  ;;  %v939_v18 = vld [vmem:[%s5407_s22 + $0x1558] sm:$0xff] }
 0x109   : > { %3805 = vmatpush1.bf16.msra.mxu1 %v2610_v20  ;;  %3478 = vmatprep.subr.bf16.mxu0 %v2617_v21  ;;  %v2648_v20 = vpack.c.bf16 %v920_v10, %v912_v9  ;;  %v2650_v21 = vpack.c.bf16 %v922_v13, %v914_v11  ;;  %v2659_v26 = vpack.c.bf16 %v939_v18, %v931_v17  ;;  %v992_v10 = vld [vmem:[%s5407_s22 + $0x1700] sm:$0xff]  ;;  %v1017_v17 = vld [vmem:[%s5407_s22 + $0x17c8] sm:$0xff]  ;;  %v1011_v18 = vld [vmem:[%s5407_s22 + $0x1798] sm:$0xff] }
 0x10a   : > { %3806 = vmatprep.subr.bf16.mxu1 %v2619_v25  ;;  %v930_v25 = vld [vmem:[%s5407_s22 + $0x1510] sm:$0xff]  ;;  %v2689_v9 = vpack.c.bf16 %v1001_v4, %v993_v3  ;;  %v1000_v11 = vld [vmem:[%s5407_s22 + $0x1740] sm:$0xff] }
 0x10b   : > { %v1056_v3 = vld [vmem:[%s5407_s22 + $0x1900] sm:$0xff] }
 0x10c   : > { %3479 = vmatpush1.bf16.msra.mxu0 %v2616_v33  ;;  %v955_v33 = vld [vmem:[%s5407_s22 + $0x15d8] sm:$0xff]  ;;  %v1064_v4 = vld [vmem:[%s5407_s22 + $0x1940] sm:$0xff] }
 0x10d   : > { %3807 = vmatpush1.bf16.msra.mxu1 %v2618_v34  ;;  %3480 = vmatprep.subr.bf16.mxu0 %v2625_v35  ;;  %v2656_v34 = vpack.c.bf16 %v936_v24, %v928_v23  ;;  %v2658_v35 = vpack.c.bf16 %v938_v28, %v930_v25  ;;  %v2667_v40 = vpack.c.bf16 %v955_v33, %v947_v32  ;;  %v1008_v24 = vld [vmem:[%s5407_s22 + $0x1780] sm:$0xff]  ;;  %v1033_v32 = vld [vmem:[%s5407_s22 + $0x1848] sm:$0xff]  ;;  %v1027_v33 = vld [vmem:[%s5407_s22 + $0x1818] sm:$0xff] }
 0x10e   : > { %3808 = vmatprep.subr.bf16.mxu1 %v2627_v39  ;;  %v946_v39 = vld [vmem:[%s5407_s22 + $0x1590] sm:$0xff]  ;;  %v2697_v23 = vpack.c.bf16 %v1017_v17, %v1009_v16  ;;  %v1016_v25 = vld [vmem:[%s5407_s22 + $0x17c0] sm:$0xff] }
 0x10f   : > { %v1072_v16 = vld [vmem:[%s5407_s22 + $0x1980] sm:$0xff] }
 0x110   : > { %3481 = vmatpush1.bf16.msra.mxu0 %v2624_v46  ;;  %v971_v46 = vld [vmem:[%s5407_s22 + $0x1658] sm:$0xff]  ;;  %v1080_v17 = vld [vmem:[%s5407_s22 + $0x19c0] sm:$0xff] }
 0x111   : > { %3809 = vmatpush1.bf16.msra.mxu1 %v2626_v47  ;;  %3482 = vmatprep.subr.bf16.mxu0 %v2633_v48  ;;  %v2664_v47 = vpack.c.bf16 %v952_v38, %v944_v37  ;;  %v2666_v48 = vpack.c.bf16 %v954_v41, %v946_v39  ;;  %v2675_v53 = vpack.c.bf16 %v971_v46, %v963_v45  ;;  %v1024_v39 = vld [vmem:[%s5407_s22 + $0x1800] sm:$0xff]  ;;  %v1026_v41 = vld [vmem:[%s5407_s22 + $0x1810] sm:$0xff]  ;;  %v1041_v45 = vld [vmem:[%s5407_s22 + $0x1888] sm:$0xff] }
 0x112   : > { %3810 = vmatprep.subr.bf16.mxu1 %v2635_v52  ;;  %v962_v52 = vld [vmem:[%s5407_s22 + $0x1610] sm:$0xff]  ;;  %v2705_v38 = vpack.c.bf16 %v1033_v32, %v1025_v31  ;;  %v1049_v46 = vld [vmem:[%s5407_s22 + $0x18c8] sm:$0xff]  ;;  %v1088_v31 = vld [vmem:[%s5407_s22 + $0x1a00] sm:$0xff] }
 0x113   : > { %v1096_v32 = vld [vmem:[%s5407_s22 + $0x1a40] sm:$0xff] }
 0x114   : > { %3483 = vmatpush1.bf16.msra.mxu0 %v2632_v58  ;;  %v987_v58 = vld [vmem:[%s5407_s22 + $0x16d8] sm:$0xff] }
 0x115   : > { %3811 = vmatpush1.bf16.msra.mxu1 %v2634_v59  ;;  %3484 = vmatprep.subr.bf16.mxu0 %v2641_v60  ;;  %v2672_v59 = vpack.c.bf16 %v968_v51, %v960_v50  ;;  %v2674_v60 = vpack.c.bf16 %v970_v54, %v962_v52  ;;  %v2683_v1 = vpack.c.bf16 %v987_v58, %v979_v57  ;;  %v247_v50 = vld [vmem:[#allocation2 + $0x38] sm:$0xff]  ;;  %v1040_v54 = vld [vmem:[%s5407_s22 + $0x1880] sm:$0xff]  ;;  %v1050_v58 = vld [vmem:[%s5407_s22 + $0x18d0] sm:$0xff] }
 0x116   : > { %3812 = vmatprep.subr.bf16.mxu1 %v2643_v0  ;;  %v978_v0 = vld [vmem:[%s5407_s22 + $0x1690] sm:$0xff]  ;;  %v2706_v52 = vpack.c.bf16 %v1034_v44, %v1026_v41  ;;  %v1104_v44 = vld [vmem:[%s5407_s22 + $0x1a80] sm:$0xff] }
 0x118   : > { %3485 = vmatpush1.bf16.msra.mxu0 %v2640_v6  ;;  %v1003_v6 = vld [vmem:[%s5407_s22 + $0x1758] sm:$0xff] }
 0x119   : > { %3813 = vmatpush1.bf16.msra.mxu1 %v2642_v7  ;;  %3486 = vmatprep.subr.bf16.mxu0 %v2649_v8  ;;  %v2680_v7 = vpack.c.bf16 %v984_v63, %v976_v62  ;;  %v2682_v8 = vpack.c.bf16 %v986_v2, %v978_v0  ;;  %v2691_v13 = vpack.c.bf16 %v1003_v6, %v995_v5  ;;  %v1059_v62 = vld [vmem:[%s5407_s22 + $0x1918] sm:$0xff]  ;;  %v1058_v5 = vld [vmem:[%s5407_s22 + $0x1910] sm:$0xff] }
 0x11a   : > { %3814 = vmatprep.subr.bf16.mxu1 %v2651_v12  ;;  %v994_v12 = vld [vmem:[%s5407_s22 + $0x1710] sm:$0xff]  ;;  %v1067_v63 = vld [vmem:[%s5407_s22 + $0x1958] sm:$0xff]  ;;  %v2712_v0 = vpack.c.bf16 %v1048_v55, %v1040_v54 }
 0x11b   : > { %v2723_v6 = vpack.c.bf16 %v1067_v63, %v1059_v62  ;;  %v1130_v62 = vld [vmem:[%s5407_s22 + $0x1b50] sm:$0xff]  ;;  %v1137_v63 = vld [vmem:[%s5407_s22 + $0x1b88] sm:$0xff] }
 0x11c   : > { %3487 = vmatpush1.bf16.msra.mxu0 %v2648_v20  ;;  %v1019_v20 = vld [vmem:[%s5407_s22 + $0x17d8] sm:$0xff] }
 0x11d   : > { %3815 = vmatpush1.bf16.msra.mxu1 %v2650_v21  ;;  %3488 = vmatprep.subr.bf16.mxu0 %v2657_v22  ;;  %v2688_v21 = vpack.c.bf16 %v1000_v11, %v992_v10  ;;  %v2690_v22 = vpack.c.bf16 %v1002_v14, %v994_v12  ;;  %v2699_v28 = vpack.c.bf16 %v1019_v20, %v1011_v18  ;;  %v1075_v10 = vld [vmem:[%s5407_s22 + $0x1998] sm:$0xff]  ;;  %v1074_v18 = vld [vmem:[%s5407_s22 + $0x1990] sm:$0xff] }
 0x11e   : > { %3816 = vmatprep.subr.bf16.mxu1 %v2659_v26  ;;  %v1010_v26 = vld [vmem:[%s5407_s22 + $0x1790] sm:$0xff]  ;;  %v1083_v11 = vld [vmem:[%s5407_s22 + $0x19d8] sm:$0xff]  ;;  %v2720_v12 = vpack.c.bf16 %v1064_v4, %v1056_v3 }
 0x11f   : > { %v2698_v37 = vpack.c.bf16 %v1018_v29, %v1010_v26  ;;  %v2731_v20 = vpack.c.bf16 %v1083_v11, %v1075_v10  ;;  %v2728_v26 = vpack.c.bf16 %v1080_v17, %v1072_v16  ;;  %v1146_v10 = vld [vmem:[%s5407_s22 + $0x1bd0] sm:$0xff]  ;;  %v1153_v11 = vld [vmem:[%s5407_s22 + $0x1c08] sm:$0xff] }
 0x120   : > { %3489 = vmatpush1.bf16.msra.mxu0 %v2656_v34  ;;  %v1035_v34 = vld [vmem:[%s5407_s22 + $0x1858] sm:$0xff] }
 0x121   : > { %3817 = vmatpush1.bf16.msra.mxu1 %v2658_v35  ;;  %3490 = vmatprep.subr.bf16.mxu0 %v2665_v36  ;;  %v2696_v35 = vpack.c.bf16 %v1016_v25, %v1008_v24  ;;  %v244_v36 = vld [vmem:[#allocation2 + $0x20] sm:$0xff]  ;;  %v2707_v43 = vpack.c.bf16 %v1035_v34, %v1027_v33  ;;  %v1091_v24 = vld [vmem:[%s5407_s22 + $0x1a18] sm:$0xff]  ;;  %v1090_v33 = vld [vmem:[%s5407_s22 + $0x1a10] sm:$0xff] }
 0x122   : > { %3818 = vmatprep.subr.bf16.mxu1 %v2667_v40  ;;  %v1032_v40 = vld [vmem:[%s5407_s22 + $0x1840] sm:$0xff]  ;;  %v1099_v25 = vld [vmem:[%s5407_s22 + $0x1a58] sm:$0xff] }
 0x123   : > { %v2704_v51 = vpack.c.bf16 %v1032_v40, %v1024_v39  ;;  %v2739_v34 = vpack.c.bf16 %v1099_v25, %v1091_v24  ;;  %v1115_v39 = vld [vmem:[%s5407_s22 + $0x1ad8] sm:$0xff]  ;;  %v2736_v40 = vpack.c.bf16 %v1096_v32, %v1088_v31  ;;  %v1162_v24 = vld [vmem:[%s5407_s22 + $0x1c50] sm:$0xff]  ;;  %v1169_v25 = vld [vmem:[%s5407_s22 + $0x1c88] sm:$0xff] }
 0x124   : > { %3491 = vmatpush1.bf16.msra.mxu0 %v2664_v47  ;;  %v5827_v47 = vpack.c.bf16 %v244_v36, %v244_v36  ;;  %v1105_v36 = vld [vmem:[%s5407_s22 + $0x1a88] sm:$0xff] }
 0x125   : > { %3819 = vmatpush1.bf16.msra.mxu1 %v2666_v48  ;;  %3492 = vmatprep.subr.bf16.mxu0 %v2673_v49  ;;  %v1043_v48 = vld [vmem:[%s5407_s22 + $0x1898] sm:$0xff] }
 0x126   : > { %3820 = vmatprep.subr.bf16.mxu1 %v2675_v53  ;;  %v1051_v49 = vld [vmem:[%s5407_s22 + $0x18d8] sm:$0xff]  ;;  %v2713_v53 = vpack.c.bf16 %v1049_v46, %v1041_v45  ;;  %v1112_v45 = vld [vmem:[%s5407_s22 + $0x1ac0] sm:$0xff]  ;;  %v1106_v46 = vld [vmem:[%s5407_s22 + $0x1a90] sm:$0xff] }
 0x127   : > { %v2715_v57 = vpack.c.bf16 %v1051_v49, %v1043_v48  ;;  %v1114_v49 = vld [vmem:[%s5407_s22 + $0x1ad0] sm:$0xff]  ;;  %v2744_v54 = vpack.c.bf16 %v1112_v45, %v1104_v44 }
 0x128   : > { %3493 = vmatpush1.bf16.msra.mxu0 %v2672_v59  ;;  %v1057_v59 = vld [vmem:[%s5407_s22 + $0x1908] sm:$0xff]  ;;  %v2746_v55 = vpack.c.bf16 %v1114_v49, %v1106_v46  ;;  %v1192_v49 = vld [vmem:[%s5407_s22 + $0x1d40] sm:$0xff] }
 0x129   : > { %3821 = vmatpush1.bf16.msra.mxu1 %v2674_v60  ;;  %3494 = vmatprep.subr.bf16.mxu0 %v2681_v61  ;;  %v1065_v60 = vld [vmem:[%s5407_s22 + $0x1948] sm:$0xff]  ;;  %v5837_v61 = vpack.c.bf16 %v247_v50, %v247_v50 }
 0x12a   : > { %3822 = vmatprep.subr.bf16.mxu1 %v2683_v1  ;;  %v2714_v1 = vpack.c.bf16 %v1050_v58, %v1042_v56  ;;  %v2721_v2 = vpack.c.bf16 %v1065_v60, %v1057_v59  ;;  %v1121_v50 = vld [vmem:[%s5407_s22 + $0x1b08] sm:$0xff]  ;;  %v1128_v58 = vld [vmem:[%s5407_s22 + $0x1b40] sm:$0xff]  ;;  %v1122_v59 = vld [vmem:[%s5407_s22 + $0x1b10] sm:$0xff] }
 0x12b   : > { %v2754_v4 = vpack.c.bf16 %v1130_v62, %v1122_v59  ;;  %v1208_v62 = vld [vmem:[%s5407_s22 + $0x1dc0] sm:$0xff] }
 0x12c   : > { %3495 = vmatpush1.bf16.msra.mxu0 %v2680_v7  ;;  %v1066_v7 = vld [vmem:[%s5407_s22 + $0x1950] sm:$0xff] }
 0x12d   : > { %3823 = vmatpush1.bf16.msra.mxu1 %v2682_v8  ;;  %3496 = vmatprep.subr.bf16.mxu0 %v2689_v9  ;;  %v1073_v8 = vld [vmem:[%s5407_s22 + $0x1988] sm:$0xff] }
 0x12e   : > { %3824 = vmatprep.subr.bf16.mxu1 %v2691_v13  ;;  %v1081_v9 = vld [vmem:[%s5407_s22 + $0x19c8] sm:$0xff]  ;;  %v2722_v13 = vpack.c.bf16 %v1066_v7, %v1058_v5  ;;  %v1144_v7 = vld [vmem:[%s5407_s22 + $0x1bc0] sm:$0xff] }
 0x12f   : > { %v2729_v14 = vpack.c.bf16 %v1081_v9, %v1073_v8  ;;  %v1138_v8 = vld [vmem:[%s5407_s22 + $0x1b90] sm:$0xff] }
 0x130   : > { %3497 = vmatpush1.bf16.msra.mxu0 %v2688_v21  ;;  %v1082_v21 = vld [vmem:[%s5407_s22 + $0x19d0] sm:$0xff]  ;;  %v2762_v17 = vpack.c.bf16 %v1146_v10, %v1138_v8  ;;  %v1224_v10 = vld [vmem:[%s5407_s22 + $0x1e40] sm:$0xff] }
 0x131   : > { %3825 = vmatpush1.bf16.msra.mxu1 %v2690_v22  ;;  %3498 = vmatprep.subr.bf16.mxu0 %v2697_v23  ;;  %v1089_v22 = vld [vmem:[%s5407_s22 + $0x1a08] sm:$0xff] }
 0x132   : > { %3826 = vmatprep.subr.bf16.mxu1 %v2699_v28  ;;  %v1097_v23 = vld [vmem:[%s5407_s22 + $0x1a48] sm:$0xff]  ;;  %v2730_v28 = vpack.c.bf16 %v1082_v21, %v1074_v18  ;;  %v1160_v21 = vld [vmem:[%s5407_s22 + $0x1c40] sm:$0xff] }
 0x133   : > { %v2737_v29 = vpack.c.bf16 %v1097_v23, %v1089_v22  ;;  %v1154_v22 = vld [vmem:[%s5407_s22 + $0x1c10] sm:$0xff] }
 0x134   : > { %3499 = vmatpush1.bf16.msra.mxu0 %v2696_v35  ;;  %v1098_v35 = vld [vmem:[%s5407_s22 + $0x1a50] sm:$0xff]  ;;  %v2770_v32 = vpack.c.bf16 %v1162_v24, %v1154_v22  ;;  %v1240_v24 = vld [vmem:[%s5407_s22 + $0x1ec0] sm:$0xff] }
 0x135   : > { %3827 = vmatpush1.bf16.msra.mxu1 %v2698_v37  ;;  %3509 = vmatprep.subr.bf16.mxu0 %v2705_v38  ;;  %v1113_v37 = vld [vmem:[%s5407_s22 + $0x1ac8] sm:$0xff]  ;;  %v1107_v38 = vld [vmem:[%s5407_s22 + $0x1a98] sm:$0xff]  ;;  %v2738_v41 = vpack.c.bf16 %v1098_v35, %v1090_v33  ;;  %v1176_v35 = vld [vmem:[%s5407_s22 + $0x1cc0] sm:$0xff] }
 0x136   : > { %3837 = vmatprep.subr.bf16.mxu1 %v2707_v43  ;;  %v2745_v43 = vpack.c.bf16 %v1113_v37, %v1105_v36  ;;  %v2747_v48 = vpack.c.bf16 %v1115_v39, %v1107_v38  ;;  %v1170_v36 = vld [vmem:[%s5407_s22 + $0x1c90] sm:$0xff]  ;;  %v1185_v39 = vld [vmem:[%s5407_s22 + $0x1d08] sm:$0xff] }
 0x137   : > { %3501 = vmatmul.mubr.bf16.vlgmr.msra.gmra.mrb[0].mxu0 %v5827_v47  ;;  %v1178_v38 = vld [vmem:[%s5407_s22 + $0x1cd0] sm:$0xff] }
 0x138   : > { %3510 = vmatpush1.bf16.msra.mxu0 %v2704_v51  ;;  %3829 = vmatmul.mubr.bf16.vlgmr.msra.gmra.mrb[0].mxu1 %v5827_v47  ;;  %v1129_v51 = vld [vmem:[%s5407_s22 + $0x1b48] sm:$0xff]  ;;  %v2778_v45 = vpack.c.bf16 %v1178_v38, %v1170_v36  ;;  %v1256_v38 = vld [vmem:[%s5407_s22 + $0x1f40] sm:$0xff] }
 0x139   : > { %3838 = vmatpush1.bf16.msra.mxu1 %v2706_v52  ;;  %3511 = vmatprep.subr.bf16.mxu0 %v2713_v53  ;;  %v1123_v52 = vld [vmem:[%s5407_s22 + $0x1b18] sm:$0xff]  ;;  %v2753_v56 = vpack.c.bf16 %v1129_v51, %v1121_v50  ;;  %v1186_v50 = vld [vmem:[%s5407_s22 + $0x1d10] sm:$0xff] }
 0x13a   : > { %3839 = vmatprep.subr.bf16.mxu1 %v2715_v57  ;;  %3541 = vmatprep.mubr.bf16.mxu0 %v5837_v61  ;;  %v1131_v53 = vld [vmem:[%s5407_s22 + $0x1b58] sm:$0xff]  ;;  %v1120_v57 = vld [vmem:[%s5407_s22 + $0x1b00] sm:$0xff] }
 0x13b   : > { %3869 = vmatprep.mubr.bf16.mxu1 %v5837_v61  ;;  %v2755_v60 = vpack.c.bf16 %v1131_v53, %v1123_v52  ;;  %v2752_v3 = vpack.c.bf16 %v1128_v58, %v1120_v57  ;;  %v1194_v52 = vld [vmem:[%s5407_s22 + $0x1d50] sm:$0xff]  ;;  %v1201_v53 = vld [vmem:[%s5407_s22 + $0x1d88] sm:$0xff] }
 0x13c   : > { %3512 = vmatpush1.bf16.msra.mxu0 %v2712_v0  ;;  %v1145_v0 = vld [vmem:[%s5407_s22 + $0x1bc8] sm:$0xff]  ;;  %v2786_v58 = vpack.c.bf16 %v1194_v52, %v1186_v50  ;;  %v1272_v52 = vld [vmem:[%s5407_s22 + $0x1fc0] sm:$0xff] }
 0x13d   : > { %3840 = vmatpush1.bf16.msra.mxu1 %v2714_v1  ;;  %3513 = vmatprep.subr.bf16.mxu0 %v2721_v2  ;;  %v1139_v1 = vld [vmem:[%s5407_s22 + $0x1b98] sm:$0xff]  ;;  %v2761_v5 = vpack.c.bf16 %v1145_v0, %v1137_v63  ;;  %v1202_v63 = vld [vmem:[%s5407_s22 + $0x1d90] sm:$0xff] }
 0x13e   : > { %3841 = vmatprep.subr.bf16.mxu1 %v2723_v6  ;;  %v1147_v2 = vld [vmem:[%s5407_s22 + $0x1bd8] sm:$0xff]  ;;  %v1136_v6 = vld [vmem:[%s5407_s22 + $0x1b80] sm:$0xff] }
 0x13f   : > { %v2763_v9 = vpack.c.bf16 %v1147_v2, %v1139_v1  ;;  %v2760_v16 = vpack.c.bf16 %v1144_v7, %v1136_v6  ;;  %v1210_v1 = vld [vmem:[%s5407_s22 + $0x1dd0] sm:$0xff]  ;;  %v1217_v2 = vld [vmem:[%s5407_s22 + $0x1e08] sm:$0xff] }
 0x140   : > { %3514 = vmatpush1.bf16.msra.mxu0 %v2720_v12  ;;  %v1161_v12 = vld [vmem:[%s5407_s22 + $0x1c48] sm:$0xff]  ;;  %v2794_v7 = vpack.c.bf16 %v1210_v1, %v1202_v63  ;;  %v1280_v1 = vld [vmem:[%s5407_s22 + $0x2000] sm:$0xff] }
 0x141   : > { %3842 = vmatpush1.bf16.msra.mxu1 %v2722_v13  ;;  %3515 = vmatprep.subr.bf16.mxu0 %v2729_v14  ;;  %v1155_v13 = vld [vmem:[%s5407_s22 + $0x1c18] sm:$0xff]  ;;  %v2769_v18 = vpack.c.bf16 %v1161_v12, %v1153_v11  ;;  %v1218_v11 = vld [vmem:[%s5407_s22 + $0x1e10] sm:$0xff] }
 0x142   : > { %3843 = vmatprep.subr.bf16.mxu1 %v2731_v20  ;;  %v1163_v14 = vld [vmem:[%s5407_s22 + $0x1c58] sm:$0xff]  ;;  %v1152_v20 = vld [vmem:[%s5407_s22 + $0x1c00] sm:$0xff] }
 0x143   : > { %v2771_v23 = vpack.c.bf16 %v1163_v14, %v1155_v13  ;;  %v2768_v31 = vpack.c.bf16 %v1160_v21, %v1152_v20  ;;  %v1226_v13 = vld [vmem:[%s5407_s22 + $0x1e50] sm:$0xff]  ;;  %v1233_v14 = vld [vmem:[%s5407_s22 + $0x1e88] sm:$0xff] }
 0x144   : > { %3516 = vmatpush1.bf16.msra.mxu0 %v2728_v26  ;;  %v1177_v26 = vld [vmem:[%s5407_s22 + $0x1cc8] sm:$0xff]  ;;  %v2802_v21 = vpack.c.bf16 %v1226_v13, %v1218_v11 }
 0x145   : > { %3844 = vmatpush1.bf16.msra.mxu1 %v2730_v28  ;;  %3517 = vmatprep.subr.bf16.mxu0 %v2737_v29  ;;  %v1171_v28 = vld [vmem:[%s5407_s22 + $0x1c98] sm:$0xff]  ;;  %v2777_v33 = vpack.c.bf16 %v1177_v26, %v1169_v25  ;;  %v1234_v25 = vld [vmem:[%s5407_s22 + $0x1e90] sm:$0xff]  ;;  %v249_v11 = vld [vmem:[#allocation2 + $0x48] sm:$0xff] }
 0x146   : > { %3845 = vmatprep.subr.bf16.mxu1 %v2739_v34  ;;  %v1179_v29 = vld [vmem:[%s5407_s22 + $0x1cd8] sm:$0xff]  ;;  %v1168_v34 = vld [vmem:[%s5407_s22 + $0x1c80] sm:$0xff] }
 0x147   : > { %v2779_v37 = vpack.c.bf16 %v1179_v29, %v1171_v28  ;;  %v2776_v44 = vpack.c.bf16 %v1176_v35, %v1168_v34  ;;  %v1242_v28 = vld [vmem:[%s5407_s22 + $0x1ed0] sm:$0xff]  ;;  %v1249_v29 = vld [vmem:[%s5407_s22 + $0x1f08] sm:$0xff] }
 0x148   : > { %3518 = vmatpush1.bf16.msra.mxu0 %v2736_v40  ;;  %v1193_v40 = vld [vmem:[%s5407_s22 + $0x1d48] sm:$0xff]  ;;  %v2810_v35 = vpack.c.bf16 %v1242_v28, %v1234_v25  ;;  %v1315_v25 = vld [vmem:[%s5407_s22 + $0x2118] sm:$0xff] }
 0x149   : > { %3846 = vmatpush1.bf16.msra.mxu1 %v2738_v41  ;;  %3519 = vmatprep.subr.bf16.mxu0 %v2745_v43  ;;  %v1187_v41 = vld [vmem:[%s5407_s22 + $0x1d18] sm:$0xff]  ;;  %v2785_v46 = vpack.c.bf16 %v1193_v40, %v1185_v39  ;;  %v1250_v39 = vld [vmem:[%s5407_s22 + $0x1f10] sm:$0xff] }
 0x14a   : > { %3847 = vmatprep.subr.bf16.mxu1 %v2747_v48  ;;  %v1195_v43 = vld [vmem:[%s5407_s22 + $0x1d58] sm:$0xff]  ;;  %v1184_v48 = vld [vmem:[%s5407_s22 + $0x1d00] sm:$0xff] }
 0x14b   : > { %v2787_v51 = vpack.c.bf16 %v1195_v43, %v1187_v41  ;;  %v2784_v57 = vpack.c.bf16 %v1192_v49, %v1184_v48  ;;  %v1258_v41 = vld [vmem:[%s5407_s22 + $0x1f50] sm:$0xff]  ;;  %v1265_v43 = vld [vmem:[%s5407_s22 + $0x1f88] sm:$0xff] }
 0x14c   : > { %3520 = vmatpush1.bf16.msra.mxu0 %v2744_v54  ;;  %v1209_v54 = vld [vmem:[%s5407_s22 + $0x1dc8] sm:$0xff]  ;;  %v2818_v49 = vpack.c.bf16 %v1258_v41, %v1250_v39  ;;  %v1331_v39 = vld [vmem:[%s5407_s22 + $0x2198] sm:$0xff] }
 0x14d   : > { %3848 = vmatpush1.bf16.msra.mxu1 %v2746_v55  ;;  %3521 = vmatprep.subr.bf16.mxu0 %v2753_v56  ;;  %v1203_v55 = vld [vmem:[%s5407_s22 + $0x1d98] sm:$0xff]  ;;  %v2793_v59 = vpack.c.bf16 %v1209_v54, %v1201_v53  ;;  %v1266_v53 = vld [vmem:[%s5407_s22 + $0x1f90] sm:$0xff] }
 0x14e   : > { %3849 = vmatprep.subr.bf16.mxu1 %v2755_v60  ;;  %v1211_v56 = vld [vmem:[%s5407_s22 + $0x1dd8] sm:$0xff]  ;;  %v1200_v60 = vld [vmem:[%s5407_s22 + $0x1d80] sm:$0xff] }
 0x14f   : > { %v2795_v0 = vpack.c.bf16 %v1211_v56, %v1203_v55  ;;  %v2792_v6 = vpack.c.bf16 %v1208_v62, %v1200_v60  ;;  %v1274_v55 = vld [vmem:[%s5407_s22 + $0x1fd0] sm:$0xff]  ;;  %v1281_v56 = vld [vmem:[%s5407_s22 + $0x2008] sm:$0xff] }
 0x150   : > { %3522 = vmatpush1.bf16.msra.mxu0 %v2752_v3  ;;  %v1225_v3 = vld [vmem:[%s5407_s22 + $0x1e48] sm:$0xff]  ;;  %v246_v62 = vld [vmem:[#allocation2 + $0x30] sm:$0xff]  ;;  %v2826_v63 = vpack.c.bf16 %v1274_v55, %v1266_v53  ;;  %v1347_v53 = vld [vmem:[%s5407_s22 + $0x2218] sm:$0xff] }
 0x151   : > { %3850 = vmatpush1.bf16.msra.mxu1 %v2754_v4  ;;  %3523 = vmatprep.subr.bf16.mxu0 %v2761_v5  ;;  %v1219_v4 = vld [vmem:[%s5407_s22 + $0x1e18] sm:$0xff]  ;;  %v2801_v8 = vpack.c.bf16 %v1225_v3, %v1217_v2  ;;  %v1288_v2 = vld [vmem:[%s5407_s22 + $0x2040] sm:$0xff]  ;;  %v1282_v3 = vld [vmem:[%s5407_s22 + $0x2010] sm:$0xff] }
 0x152   : > { %3851 = vmatprep.subr.bf16.mxu1 %v2763_v9  ;;  %v1227_v5 = vld [vmem:[%s5407_s22 + $0x1e58] sm:$0xff]  ;;  %v1216_v9 = vld [vmem:[%s5407_s22 + $0x1e00] sm:$0xff] }
 0x153   : > { %v2803_v12 = vpack.c.bf16 %v1227_v5, %v1219_v4  ;;  %v2800_v20 = vpack.c.bf16 %v1224_v10, %v1216_v9  ;;  %v1290_v5 = vld [vmem:[%s5407_s22 + $0x2050] sm:$0xff]  ;;  %v1299_v9 = vld [vmem:[%s5407_s22 + $0x2098] sm:$0xff] }
 0x154   : > { %3524 = vmatpush1.bf16.msra.mxu0 %v2760_v16  ;;  %v1241_v16 = vld [vmem:[%s5407_s22 + $0x1ec8] sm:$0xff]  ;;  %v1307_v10 = vld [vmem:[%s5407_s22 + $0x20d8] sm:$0xff]  ;;  %v2834_v13 = vpack.c.bf16 %v1290_v5, %v1282_v3 }
 0x155   : > { %3852 = vmatpush1.bf16.msra.mxu1 %v2762_v17  ;;  %3525 = vmatprep.subr.bf16.mxu0 %v2769_v18  ;;  %v1235_v17 = vld [vmem:[%s5407_s22 + $0x1e98] sm:$0xff]  ;;  %v2809_v22 = vpack.c.bf16 %v1241_v16, %v1233_v14  ;;  %v1296_v16 = vld [vmem:[%s5407_s22 + $0x2080] sm:$0xff] }
 0x156   : > { %3853 = vmatprep.subr.bf16.mxu1 %v2771_v23  ;;  %v1243_v18 = vld [vmem:[%s5407_s22 + $0x1ed8] sm:$0xff]  ;;  %v1232_v23 = vld [vmem:[%s5407_s22 + $0x1e80] sm:$0xff] }
 0x157   : > { %v2811_v26 = vpack.c.bf16 %v1243_v18, %v1235_v17  ;;  %v2808_v34 = vpack.c.bf16 %v1240_v24, %v1232_v23  ;;  %v1304_v17 = vld [vmem:[%s5407_s22 + $0x20c0] sm:$0xff]  ;;  %v1298_v18 = vld [vmem:[%s5407_s22 + $0x2090] sm:$0xff]  ;;  %v1321_v23 = vld [vmem:[%s5407_s22 + $0x2148] sm:$0xff]  ;;  %v5973_v24 = vpack.c.bf16 %v249_v11, %v249_v11 }
 0x158   : > { %3526 = vmatpush1.bf16.msra.mxu0 %v2768_v31  ;;  %v1257_v31 = vld [vmem:[%s5407_s22 + $0x1f48] sm:$0xff]  ;;  %v2840_v28 = vpack.c.bf16 %v1304_v17, %v1296_v16  ;;  %v1371_v3 = vld [vmem:[%s5407_s22 + $0x22d8] sm:$0xff] }
 0x159   : > { %3854 = vmatpush1.bf16.msra.mxu1 %v2770_v32  ;;  %3527 = vmatprep.subr.bf16.mxu0 %v2777_v33  ;;  %v1251_v32 = vld [vmem:[%s5407_s22 + $0x1f18] sm:$0xff]  ;;  %v2817_v36 = vpack.c.bf16 %v1257_v31, %v1249_v29 }
 0x15a   : > { %3855 = vmatprep.subr.bf16.mxu1 %v2779_v37  ;;  %v1259_v33 = vld [vmem:[%s5407_s22 + $0x1f58] sm:$0xff]  ;;  %v1248_v37 = vld [vmem:[%s5407_s22 + $0x1f00] sm:$0xff] }
 0x15b   : > { %v2819_v40 = vpack.c.bf16 %v1259_v33, %v1251_v32  ;;  %v2816_v48 = vpack.c.bf16 %v1256_v38, %v1248_v37  ;;  %v1312_v32 = vld [vmem:[%s5407_s22 + $0x2100] sm:$0xff]  ;;  %v1329_v37 = vld [vmem:[%s5407_s22 + $0x2188] sm:$0xff]  ;;  %v1379_v16 = vld [vmem:[%s5407_s22 + $0x2318] sm:$0xff] }
 0x15c   : > { %3528 = vmatpush1.bf16.msra.mxu0 %v2776_v44  ;;  %v1273_v44 = vld [vmem:[%s5407_s22 + $0x1fc8] sm:$0xff]  ;;  %v1320_v33 = vld [vmem:[%s5407_s22 + $0x2140] sm:$0xff]  ;;  %v1387_v17 = vld [vmem:[%s5407_s22 + $0x2358] sm:$0xff] }
 0x15d   : > { %3856 = vmatpush1.bf16.msra.mxu1 %v2778_v45  ;;  %3529 = vmatprep.subr.bf16.mxu0 %v2785_v46  ;;  %v1267_v45 = vld [vmem:[%s5407_s22 + $0x1f98] sm:$0xff]  ;;  %v2825_v50 = vpack.c.bf16 %v1273_v44, %v1265_v43  ;;  %v1337_v38 = vld [vmem:[%s5407_s22 + $0x21c8] sm:$0xff]  ;;  %v2848_v41 = vpack.c.bf16 %v1320_v33, %v1312_v32 }
 0x15e   : > { %3857 = vmatprep.subr.bf16.mxu1 %v2787_v51  ;;  %v1275_v46 = vld [vmem:[%s5407_s22 + $0x1fd8] sm:$0xff]  ;;  %v1264_v51 = vld [vmem:[%s5407_s22 + $0x1f80] sm:$0xff]  ;;  %v2857_v44 = vpack.c.bf16 %v1337_v38, %v1329_v37 }
 0x15f   : > { %v2827_v54 = vpack.c.bf16 %v1275_v46, %v1267_v45  ;;  %v2824_v60 = vpack.c.bf16 %v1272_v52, %v1264_v51  ;;  %v1328_v45 = vld [vmem:[%s5407_s22 + $0x2180] sm:$0xff]  ;;  %v1345_v51 = vld [vmem:[%s5407_s22 + $0x2208] sm:$0xff]  ;;  %v1395_v32 = vld [vmem:[%s5407_s22 + $0x2398] sm:$0xff] }
 0x160   : > { %3530 = vmatpush1.bf16.msra.mxu0 %v2784_v57  ;;  %v1289_v57 = vld [vmem:[%s5407_s22 + $0x2048] sm:$0xff]  ;;  %v1336_v46 = vld [vmem:[%s5407_s22 + $0x21c0] sm:$0xff]  ;;  %v1403_v33 = vld [vmem:[%s5407_s22 + $0x23d8] sm:$0xff] }
 0x161   : > { %3858 = vmatpush1.bf16.msra.mxu1 %v2786_v58  ;;  %3531 = vmatprep.subr.bf16.mxu0 %v2793_v59  ;;  %v1283_v58 = vld [vmem:[%s5407_s22 + $0x2018] sm:$0xff]  ;;  %v1353_v52 = vld [vmem:[%s5407_s22 + $0x2248] sm:$0xff]  ;;  %v2856_v55 = vpack.c.bf16 %v1336_v46, %v1328_v45  ;;  %v1392_v37 = vld [vmem:[%s5407_s22 + $0x2380] sm:$0xff] }
 0x162   : > { %3859 = vmatprep.subr.bf16.mxu1 %v2795_v0  ;;  %v1291_v59 = vld [vmem:[%s5407_s22 + $0x2058] sm:$0xff]  ;;  %v2833_v0 = vpack.c.bf16 %v1289_v57, %v1281_v56  ;;  %v2865_v57 = vpack.c.bf16 %v1353_v52, %v1345_v51  ;;  %v1400_v38 = vld [vmem:[%s5407_s22 + $0x23c0] sm:$0xff] }
 0x163   : > { %v2835_v4 = vpack.c.bf16 %v1291_v59, %v1283_v58  ;;  %v1344_v58 = vld [vmem:[%s5407_s22 + $0x2200] sm:$0xff]  ;;  %v1411_v45 = vld [vmem:[%s5407_s22 + $0x2418] sm:$0xff] }
 0x164   : > { %3532 = vmatpush1.bf16.msra.mxu0 %v2792_v6  ;;  %v1297_v6 = vld [vmem:[%s5407_s22 + $0x2088] sm:$0xff]  ;;  %v1352_v59 = vld [vmem:[%s5407_s22 + $0x2240] sm:$0xff]  ;;  %v1419_v46 = vld [vmem:[%s5407_s22 + $0x2458] sm:$0xff] }
 0x165   : > { %3860 = vmatpush1.bf16.msra.mxu1 %v2794_v7  ;;  %3533 = vmatprep.subr.bf16.mxu0 %v2801_v8  ;;  %v1305_v7 = vld [vmem:[%s5407_s22 + $0x20c8] sm:$0xff]  ;;  %v5963_v8 = vpack.c.bf16 %v246_v62, %v246_v62  ;;  %v1408_v51 = vld [vmem:[%s5407_s22 + $0x2400] sm:$0xff] }
 0x166   : > { %3861 = vmatprep.subr.bf16.mxu1 %v2803_v12  ;;  %v2832_v12 = vpack.c.bf16 %v1288_v2, %v1280_v1  ;;  %v2841_v14 = vpack.c.bf16 %v1305_v7, %v1297_v6  ;;  %v1369_v1 = vld [vmem:[%s5407_s22 + $0x22c8] sm:$0xff]  ;;  %v1363_v2 = vld [vmem:[%s5407_s22 + $0x2298] sm:$0xff]  ;;  %v1360_v7 = vld [vmem:[%s5407_s22 + $0x2280] sm:$0xff] }
 0x167   : > { %v2875_v11 = vpack.c.bf16 %v1371_v3, %v1363_v2  ;;  %v1416_v52 = vld [vmem:[%s5407_s22 + $0x2440] sm:$0xff]  ;;  %v1426_v2 = vld [vmem:[%s5407_s22 + $0x2490] sm:$0xff] }
 0x168   : > { %3534 = vmatpush1.bf16.msra.mxu0 %v2800_v20  ;;  %v2843_v20 = vpack.c.bf16 %v1307_v10, %v1299_v9  ;;  %v1368_v9 = vld [vmem:[%s5407_s22 + $0x22c0] sm:$0xff]  ;;  %v1362_v10 = vld [vmem:[%s5407_s22 + $0x2290] sm:$0xff] }
 0x169   : > { %3862 = vmatpush1.bf16.msra.mxu1 %v2802_v21  ;;  %3535 = vmatprep.subr.bf16.mxu0 %v2809_v22  ;;  %v1306_v21 = vld [vmem:[%s5407_s22 + $0x20d0] sm:$0xff]  ;;  %v1313_v22 = vld [vmem:[%s5407_s22 + $0x2108] sm:$0xff] }
 0x16a   : > { %3863 = vmatprep.subr.bf16.mxu1 %v2811_v26  ;;  %v1323_v26 = vld [vmem:[%s5407_s22 + $0x2158] sm:$0xff]  ;;  %v2842_v29 = vpack.c.bf16 %v1306_v21, %v1298_v18  ;;  %v2849_v31 = vpack.c.bf16 %v1321_v23, %v1313_v22  ;;  %v2872_v18 = vpack.c.bf16 %v1368_v9, %v1360_v7  ;;  %v1376_v22 = vld [vmem:[%s5407_s22 + $0x2300] sm:$0xff] }
 0x16b   : > { %v1384_v23 = vld [vmem:[%s5407_s22 + $0x2340] sm:$0xff]  ;;  %v1443_v7 = vld [vmem:[%s5407_s22 + $0x2518] sm:$0xff] }
 0x16c   : > { %3536 = vmatpush1.bf16.msra.mxu0 %v2808_v34  ;;  %v1314_v34 = vld [vmem:[%s5407_s22 + $0x2110] sm:$0xff]  ;;  %v1451_v9 = vld [vmem:[%s5407_s22 + $0x2558] sm:$0xff] }
 0x16d   : > { %3864 = vmatpush1.bf16.msra.mxu1 %v2810_v35  ;;  %3537 = vmatprep.subr.bf16.mxu0 %v2817_v36  ;;  %v2851_v35 = vpack.c.bf16 %v1323_v26, %v1315_v25  ;;  %v1322_v36 = vld [vmem:[%s5407_s22 + $0x2150] sm:$0xff]  ;;  %v2883_v26 = vpack.c.bf16 %v1387_v17, %v1379_v16  ;;  %v2915_v17 = vpack.c.bf16 %v1451_v9, %v1443_v7 }
 0x16e   : > { %3865 = vmatprep.subr.bf16.mxu1 %v2819_v40  ;;  %v1339_v40 = vld [vmem:[%s5407_s22 + $0x21d8] sm:$0xff]  ;;  %v2850_v43 = vpack.c.bf16 %v1322_v36, %v1314_v34  ;;  %v1378_v25 = vld [vmem:[%s5407_s22 + $0x2310] sm:$0xff]  ;;  %v2880_v34 = vpack.c.bf16 %v1384_v23, %v1376_v22 }
 0x16f   : > { %v1442_v16 = vld [vmem:[%s5407_s22 + $0x2510] sm:$0xff]  ;;  %v1459_v22 = vld [vmem:[%s5407_s22 + $0x2598] sm:$0xff] }
 0x170   : > { %3538 = vmatpush1.bf16.msra.mxu0 %v2816_v48  ;;  %v1330_v48 = vld [vmem:[%s5407_s22 + $0x2190] sm:$0xff]  ;;  %v1467_v23 = vld [vmem:[%s5407_s22 + $0x25d8] sm:$0xff] }
 0x171   : > { %3866 = vmatpush1.bf16.msra.mxu1 %v2818_v49  ;;  %3539 = vmatprep.subr.bf16.mxu0 %v2825_v50  ;;  %v2859_v49 = vpack.c.bf16 %v1339_v40, %v1331_v39  ;;  %v1338_v50 = vld [vmem:[%s5407_s22 + $0x21d0] sm:$0xff]  ;;  %v2891_v40 = vpack.c.bf16 %v1403_v33, %v1395_v32  ;;  %v2923_v33 = vpack.c.bf16 %v1467_v23, %v1459_v22 }
 0x172   : > { %3867 = vmatprep.subr.bf16.mxu1 %v2827_v54  ;;  %v1355_v54 = vld [vmem:[%s5407_s22 + $0x2258] sm:$0xff]  ;;  %v2858_v56 = vpack.c.bf16 %v1338_v50, %v1330_v48  ;;  %v1394_v39 = vld [vmem:[%s5407_s22 + $0x2390] sm:$0xff]  ;;  %v2888_v48 = vpack.c.bf16 %v1400_v38, %v1392_v37 }
 0x173   : > { %v2867_v62 = vpack.c.bf16 %v1355_v54, %v1347_v53  ;;  %v1410_v53 = vld [vmem:[%s5407_s22 + $0x2410] sm:$0xff]  ;;  %v2899_v54 = vpack.c.bf16 %v1419_v46, %v1411_v45  ;;  %v1475_v37 = vld [vmem:[%s5407_s22 + $0x2618] sm:$0xff] }
 0x174   : > { %3540 = vmatpush1.bf16.msra.mxu0 %v2824_v60  ;;  %v1346_v60 = vld [vmem:[%s5407_s22 + $0x2210] sm:$0xff]  ;;  %v1483_v38 = vld [vmem:[%s5407_s22 + $0x2658] sm:$0xff] }
 0x175   : > { %3868 = vmatpush1.bf16.msra.mxu1 %v2826_v63  ;;  %3550 = vmatprep.subr.bf16.mxu0 %v2833_v0  ;;  %v1354_v63 = vld [vmem:[%s5407_s22 + $0x2250] sm:$0xff]  ;;  %v1361_v0 = vld [vmem:[%s5407_s22 + $0x2288] sm:$0xff]  ;;  %v2931_v46 = vpack.c.bf16 %v1483_v38, %v1475_v37  ;;  %v1544_v37 = vld [vmem:[%s5407_s22 + $0x2840] sm:$0xff] }
 0x176   : > { %3878 = vmatprep.subr.bf16.mxu1 %v2835_v4  ;;  %v2864_v4 = vpack.c.bf16 %v1352_v59, %v1344_v58  ;;  %v2866_v5 = vpack.c.bf16 %v1354_v63, %v1346_v60  ;;  %v2873_v6 = vpack.c.bf16 %v1369_v1, %v1361_v0  ;;  %v1427_v58 = vld [vmem:[%s5407_s22 + $0x2498] sm:$0xff]  ;;  %v2896_v60 = vpack.c.bf16 %v1416_v52, %v1408_v51  ;;  %v1424_v0 = vld [vmem:[%s5407_s22 + $0x2480] sm:$0xff]  ;;  %v1458_v32 = vld [vmem:[%s5407_s22 + $0x2590] sm:$0xff] }
 0x177   : > { %3542 = vmatmul.mubr.bf16.vlgmr.msra.gmra.mrb[0].mxu0 %v5963_v8  ;;  %v1435_v59 = vld [vmem:[%s5407_s22 + $0x24d8] sm:$0xff]  ;;  %v1432_v1 = vld [vmem:[%s5407_s22 + $0x24c0] sm:$0xff]  ;;  %v1474_v45 = vld [vmem:[%s5407_s22 + $0x2610] sm:$0xff] }
 0x178   : > { %3551 = vmatpush1.bf16.msra.mxu0 %v2832_v12  ;;  %3870 = vmatmul.mubr.bf16.vlgmr.msra.gmra.mrb[0].mxu1 %v5963_v8  ;;  %v1370_v12 = vld [vmem:[%s5407_s22 + $0x22d0] sm:$0xff]  ;;  %v2907_v3 = vpack.c.bf16 %v1435_v59, %v1427_v58  ;;  %v1491_v51 = vld [vmem:[%s5407_s22 + $0x2698] sm:$0xff] }
 0x179   : > { %3879 = vmatpush1.bf16.msra.mxu1 %v2834_v13  ;;  %3552 = vmatprep.subr.bf16.mxu0 %v2841_v14  ;;  %v1377_v13 = vld [vmem:[%s5407_s22 + $0x2308] sm:$0xff]  ;;  %v1499_v52 = vld [vmem:[%s5407_s22 + $0x26d8] sm:$0xff]  ;;  %v1490_v58 = vld [vmem:[%s5407_s22 + $0x2690] sm:$0xff] }
 0x17a   : > { %3880 = vmatprep.subr.bf16.mxu1 %v2843_v20  ;;  %3582 = vmatprep.mubr.bf16.mxu0 %v5973_v24  ;;  %v1385_v14 = vld [vmem:[%s5407_s22 + $0x2348] sm:$0xff]  ;;  %v2874_v20 = vpack.c.bf16 %v1370_v12, %v1362_v10  ;;  %v2904_v10 = vpack.c.bf16 %v1432_v1, %v1424_v0  ;;  %v2939_v59 = vpack.c.bf16 %v1499_v52, %v1491_v51  ;;  %v1507_v0 = vld [vmem:[%s5407_s22 + $0x2718] sm:$0xff]  ;;  %v1506_v7 = vld [vmem:[%s5407_s22 + $0x2710] sm:$0xff] }
 0x17b   : > { %3910 = vmatprep.mubr.bf16.mxu1 %v5973_v24  ;;  %v2881_v21 = vpack.c.bf16 %v1385_v14, %v1377_v13  ;;  %v1440_v13 = vld [vmem:[%s5407_s22 + $0x2500] sm:$0xff]  ;;  %v1515_v1 = vld [vmem:[%s5407_s22 + $0x2758] sm:$0xff]  ;;  %v1522_v22 = vld [vmem:[%s5407_s22 + $0x2790] sm:$0xff] }
 0x17c   : > { %3553 = vmatpush1.bf16.msra.mxu0 %v2840_v28  ;;  %v1386_v28 = vld [vmem:[%s5407_s22 + $0x2350] sm:$0xff]  ;;  %v1448_v14 = vld [vmem:[%s5407_s22 + $0x2540] sm:$0xff]  ;;  %v2947_v9 = vpack.c.bf16 %v1515_v1, %v1507_v0 }
 0x17d   : > { %3881 = vmatpush1.bf16.msra.mxu1 %v2842_v29  ;;  %3554 = vmatprep.subr.bf16.mxu0 %v2849_v31  ;;  %v1393_v29 = vld [vmem:[%s5407_s22 + $0x2388] sm:$0xff]  ;;  %v1538_v38 = vld [vmem:[%s5407_s22 + $0x2810] sm:$0xff]  ;;  %v1552_v52 = vld [vmem:[%s5407_s22 + $0x2880] sm:$0xff] }
 0x17e   : > { %3882 = vmatprep.subr.bf16.mxu1 %v2851_v35  ;;  %v1401_v31 = vld [vmem:[%s5407_s22 + $0x23c8] sm:$0xff]  ;;  %v2882_v35 = vpack.c.bf16 %v1386_v28, %v1378_v25  ;;  %v2912_v25 = vpack.c.bf16 %v1448_v14, %v1440_v13  ;;  %v1523_v13 = vld [vmem:[%s5407_s22 + $0x2798] sm:$0xff] }
 0x17f   : > { %v2889_v36 = vpack.c.bf16 %v1401_v31, %v1393_v29  ;;  %v1456_v29 = vld [vmem:[%s5407_s22 + $0x2580] sm:$0xff]  ;;  %v1531_v14 = vld [vmem:[%s5407_s22 + $0x27d8] sm:$0xff] }
 0x180   : > { %3555 = vmatpush1.bf16.msra.mxu0 %v2848_v41  ;;  %v1402_v41 = vld [vmem:[%s5407_s22 + $0x23d0] sm:$0xff]  ;;  %v1464_v31 = vld [vmem:[%s5407_s22 + $0x25c0] sm:$0xff]  ;;  %v2955_v23 = vpack.c.bf16 %v1531_v14, %v1523_v13 }
 0x181   : > { %3883 = vmatpush1.bf16.msra.mxu1 %v2850_v43  ;;  %3556 = vmatprep.subr.bf16.mxu0 %v2857_v44  ;;  %v1409_v43 = vld [vmem:[%s5407_s22 + $0x2408] sm:$0xff] }
 0x182   : > { %3884 = vmatprep.subr.bf16.mxu1 %v2859_v49  ;;  %v1417_v44 = vld [vmem:[%s5407_s22 + $0x2448] sm:$0xff]  ;;  %v2890_v49 = vpack.c.bf16 %v1402_v41, %v1394_v39  ;;  %v2920_v39 = vpack.c.bf16 %v1464_v31, %v1456_v29  ;;  %v1539_v29 = vld [vmem:[%s5407_s22 + $0x2818] sm:$0xff] }
 0x183   : > { %v2897_v50 = vpack.c.bf16 %v1417_v44, %v1409_v43  ;;  %v1472_v43 = vld [vmem:[%s5407_s22 + $0x2600] sm:$0xff]  ;;  %v1547_v31 = vld [vmem:[%s5407_s22 + $0x2858] sm:$0xff] }
 0x184   : > { %3557 = vmatpush1.bf16.msra.mxu0 %v2856_v55  ;;  %v1418_v55 = vld [vmem:[%s5407_s22 + $0x2450] sm:$0xff]  ;;  %v1480_v44 = vld [vmem:[%s5407_s22 + $0x2640] sm:$0xff] }
 0x185   : > { %3885 = vmatpush1.bf16.msra.mxu1 %v2858_v56  ;;  %3558 = vmatprep.subr.bf16.mxu0 %v2865_v57  ;;  %v1425_v56 = vld [vmem:[%s5407_s22 + $0x2488] sm:$0xff] }
 0x186   : > { %3886 = vmatprep.subr.bf16.mxu1 %v2867_v62  ;;  %v1433_v57 = vld [vmem:[%s5407_s22 + $0x24c8] sm:$0xff]  ;;  %v2898_v62 = vpack.c.bf16 %v1418_v55, %v1410_v53  ;;  %v2928_v53 = vpack.c.bf16 %v1480_v44, %v1472_v43 }
 0x187   : > { %v2905_v63 = vpack.c.bf16 %v1433_v57, %v1425_v56  ;;  %v1488_v56 = vld [vmem:[%s5407_s22 + $0x2680] sm:$0xff]  ;;  %v1561_v43 = vld [vmem:[%s5407_s22 + $0x28c8] sm:$0xff] }
 0x188   : > { %3559 = vmatpush1.bf16.msra.mxu0 %v2864_v4  ;;  %v1434_v4 = vld [vmem:[%s5407_s22 + $0x24d0] sm:$0xff]  ;;  %v1496_v57 = vld [vmem:[%s5407_s22 + $0x26c0] sm:$0xff] }
 0x189   : > { %3887 = vmatpush1.bf16.msra.mxu1 %v2866_v5  ;;  %3560 = vmatprep.subr.bf16.mxu0 %v2873_v6  ;;  %v1441_v5 = vld [vmem:[%s5407_s22 + $0x2508] sm:$0xff] }
 0x18a   : > { %3888 = vmatprep.subr.bf16.mxu1 %v2875_v11  ;;  %v1449_v6 = vld [vmem:[%s5407_s22 + $0x2548] sm:$0xff]  ;;  %v2906_v11 = vpack.c.bf16 %v1434_v4, %v1426_v2  ;;  %v2936_v2 = vpack.c.bf16 %v1496_v57, %v1488_v56  ;;  %v1562_v56 = vld [vmem:[%s5407_s22 + $0x28d0] sm:$0xff] }
 0x18b   : > { %v2913_v12 = vpack.c.bf16 %v1449_v6, %v1441_v5  ;;  %v1504_v5 = vld [vmem:[%s5407_s22 + $0x2700] sm:$0xff]  ;;  %v1569_v57 = vld [vmem:[%s5407_s22 + $0x2908] sm:$0xff] }
 0x18c   : > { %3561 = vmatpush1.bf16.msra.mxu0 %v2872_v18  ;;  %v1450_v18 = vld [vmem:[%s5407_s22 + $0x2550] sm:$0xff]  ;;  %v1512_v6 = vld [vmem:[%s5407_s22 + $0x2740] sm:$0xff] }
 0x18d   : > { %3889 = vmatpush1.bf16.msra.mxu1 %v2874_v20  ;;  %3562 = vmatprep.subr.bf16.mxu0 %v2881_v21  ;;  %v1457_v20 = vld [vmem:[%s5407_s22 + $0x2588] sm:$0xff] }
 0x18e   : > { %3890 = vmatprep.subr.bf16.mxu1 %v2883_v26  ;;  %v1465_v21 = vld [vmem:[%s5407_s22 + $0x25c8] sm:$0xff]  ;;  %v2914_v26 = vpack.c.bf16 %v1450_v18, %v1442_v16  ;;  %v2944_v16 = vpack.c.bf16 %v1512_v6, %v1504_v5  ;;  %v1578_v6 = vld [vmem:[%s5407_s22 + $0x2950] sm:$0xff] }
 0x18f   : > { %v2921_v28 = vpack.c.bf16 %v1465_v21, %v1457_v20  ;;  %v1520_v20 = vld [vmem:[%s5407_s22 + $0x2780] sm:$0xff] }
 0x190   : > { %3563 = vmatpush1.bf16.msra.mxu0 %v2880_v34  ;;  %v1466_v34 = vld [vmem:[%s5407_s22 + $0x25d0] sm:$0xff]  ;;  %v1528_v21 = vld [vmem:[%s5407_s22 + $0x27c0] sm:$0xff] }
 0x191   : > { %3891 = vmatpush1.bf16.msra.mxu1 %v2882_v35  ;;  %3564 = vmatprep.subr.bf16.mxu0 %v2889_v36  ;;  %v1473_v35 = vld [vmem:[%s5407_s22 + $0x2608] sm:$0xff] }
 0x192   : > { %3892 = vmatprep.subr.bf16.mxu1 %v2891_v40  ;;  %v1481_v36 = vld [vmem:[%s5407_s22 + $0x2648] sm:$0xff]  ;;  %v2922_v40 = vpack.c.bf16 %v1466_v34, %v1458_v32  ;;  %v2952_v32 = vpack.c.bf16 %v1528_v21, %v1520_v20  ;;  %v1594_v21 = vld [vmem:[%s5407_s22 + $0x29d0] sm:$0xff] }
 0x193   : > { %v2929_v41 = vpack.c.bf16 %v1481_v36, %v1473_v35  ;;  %v1536_v36 = vld [vmem:[%s5407_s22 + $0x2800] sm:$0xff] }
 0x194   : > { %3565 = vmatpush1.bf16.msra.mxu0 %v2888_v48  ;;  %v1482_v48 = vld [vmem:[%s5407_s22 + $0x2650] sm:$0xff] }
 0x195   : > { %3893 = vmatpush1.bf16.msra.mxu1 %v2890_v49  ;;  %3566 = vmatprep.subr.bf16.mxu0 %v2897_v50  ;;  %v1489_v49 = vld [vmem:[%s5407_s22 + $0x2688] sm:$0xff] }
 0x196   : > { %3894 = vmatprep.subr.bf16.mxu1 %v2899_v54  ;;  %v1497_v50 = vld [vmem:[%s5407_s22 + $0x26c8] sm:$0xff]  ;;  %v2930_v54 = vpack.c.bf16 %v1482_v48, %v1474_v45  ;;  %v1555_v45 = vld [vmem:[%s5407_s22 + $0x2898] sm:$0xff] }
 0x197   : > { %v2937_v55 = vpack.c.bf16 %v1497_v50, %v1489_v49  ;;  %v251_v48 = vld [vmem:[#allocation2 + $0x58] sm:$0xff]  ;;  %v2960_v49 = vpack.c.bf16 %v1544_v37, %v1536_v36  ;;  %v1610_v36 = vld [vmem:[%s5407_s22 + $0x2a50] sm:$0xff]  ;;  %v1617_v37 = vld [vmem:[%s5407_s22 + $0x2a88] sm:$0xff] }
 0x198   : > { %3567 = vmatpush1.bf16.msra.mxu0 %v2896_v60  ;;  %v1498_v60 = vld [vmem:[%s5407_s22 + $0x26d0] sm:$0xff] }
 0x199   : > { %3895 = vmatpush1.bf16.msra.mxu1 %v2898_v62  ;;  %3568 = vmatprep.subr.bf16.mxu0 %v2905_v63  ;;  %v1505_v62 = vld [vmem:[%s5407_s22 + $0x2708] sm:$0xff] }
 0x19a   : > { %3896 = vmatprep.subr.bf16.mxu1 %v2907_v3  ;;  %v1513_v63 = vld [vmem:[%s5407_s22 + $0x2748] sm:$0xff]  ;;  %v2938_v3 = vpack.c.bf16 %v1498_v60, %v1490_v58  ;;  %v1571_v60 = vld [vmem:[%s5407_s22 + $0x2918] sm:$0xff] }
 0x19b   : > { %v2945_v4 = vpack.c.bf16 %v1513_v63, %v1505_v62  ;;  %v1577_v58 = vld [vmem:[%s5407_s22 + $0x2948] sm:$0xff]  ;;  %v1579_v62 = vld [vmem:[%s5407_s22 + $0x2958] sm:$0xff] }
 0x19c   : > { %3569 = vmatpush1.bf16.msra.mxu0 %v2904_v10  ;;  %v1514_v10 = vld [vmem:[%s5407_s22 + $0x2750] sm:$0xff]  ;;  %v2977_v1 = vpack.c.bf16 %v1577_v58, %v1569_v57  ;;  %v2979_v5 = vpack.c.bf16 %v1579_v62, %v1571_v60  ;;  %v1632_v60 = vld [vmem:[%s5407_s22 + $0x2b00] sm:$0xff] }
 0x19d   : > { %3897 = vmatpush1.bf16.msra.mxu1 %v2906_v11  ;;  %3570 = vmatprep.subr.bf16.mxu0 %v2913_v12  ;;  %v1521_v11 = vld [vmem:[%s5407_s22 + $0x2788] sm:$0xff]  ;;  %v1640_v62 = vld [vmem:[%s5407_s22 + $0x2b40] sm:$0xff] }
 0x19e   : > { %3898 = vmatprep.subr.bf16.mxu1 %v2915_v17  ;;  %v1529_v12 = vld [vmem:[%s5407_s22 + $0x27c8] sm:$0xff]  ;;  %v2946_v17 = vpack.c.bf16 %v1514_v10, %v1506_v7  ;;  %v1587_v10 = vld [vmem:[%s5407_s22 + $0x2998] sm:$0xff] }
 0x19f   : > { %v2953_v18 = vpack.c.bf16 %v1529_v12, %v1521_v11  ;;  %v1585_v7 = vld [vmem:[%s5407_s22 + $0x2988] sm:$0xff]  ;;  %v1595_v11 = vld [vmem:[%s5407_s22 + $0x29d8] sm:$0xff] }
 0x1a0   : > { %3571 = vmatpush1.bf16.msra.mxu0 %v2912_v25  ;;  %v1530_v25 = vld [vmem:[%s5407_s22 + $0x27d0] sm:$0xff]  ;;  %v2987_v20 = vpack.c.bf16 %v1595_v11, %v1587_v10  ;;  %v1648_v10 = vld [vmem:[%s5407_s22 + $0x2b80] sm:$0xff] }
 0x1a1   : > { %3899 = vmatpush1.bf16.msra.mxu1 %v2914_v26  ;;  %3572 = vmatprep.subr.bf16.mxu0 %v2921_v28  ;;  %v1537_v26 = vld [vmem:[%s5407_s22 + $0x2808] sm:$0xff]  ;;  %v2954_v34 = vpack.c.bf16 %v1530_v25, %v1522_v22  ;;  %v1603_v25 = vld [vmem:[%s5407_s22 + $0x2a18] sm:$0xff]  ;;  %v1656_v11 = vld [vmem:[%s5407_s22 + $0x2bc0] sm:$0xff] }
 0x1a2   : > { %3900 = vmatprep.subr.bf16.mxu1 %v2923_v33  ;;  %v1545_v28 = vld [vmem:[%s5407_s22 + $0x2848] sm:$0xff]  ;;  %v248_v33 = vld [vmem:[#allocation2 + $0x40] sm:$0xff] }
 0x1a3   : > { %v2961_v35 = vpack.c.bf16 %v1545_v28, %v1537_v26  ;;  %v6099_v44 = vpack.c.bf16 %v248_v33, %v248_v33  ;;  %v1601_v22 = vld [vmem:[%s5407_s22 + $0x2a08] sm:$0xff]  ;;  %v1611_v26 = vld [vmem:[%s5407_s22 + $0x2a58] sm:$0xff]  ;;  %v1608_v33 = vld [vmem:[%s5407_s22 + $0x2a40] sm:$0xff] }
 0x1a4   : > { %3573 = vmatpush1.bf16.msra.mxu0 %v2920_v39  ;;  %v2963_v39 = vpack.c.bf16 %v1547_v31, %v1539_v29 }
 0x1a5   : > { %3901 = vmatpush1.bf16.msra.mxu1 %v2922_v40  ;;  %3574 = vmatprep.subr.bf16.mxu0 %v2929_v41  ;;  %v1546_v40 = vld [vmem:[%s5407_s22 + $0x2850] sm:$0xff]  ;;  %v1553_v41 = vld [vmem:[%s5407_s22 + $0x2888] sm:$0xff] }
 0x1a6   : > { %3902 = vmatprep.subr.bf16.mxu1 %v2931_v46  ;;  %v1563_v46 = vld [vmem:[%s5407_s22 + $0x28d8] sm:$0xff]  ;;  %v2962_v50 = vpack.c.bf16 %v1546_v40, %v1538_v38  ;;  %v2969_v51 = vpack.c.bf16 %v1561_v43, %v1553_v41  ;;  %v1625_v38 = vld [vmem:[%s5407_s22 + $0x2ac8] sm:$0xff] }
 0x1a7   : > { %v1627_v40 = vld [vmem:[%s5407_s22 + $0x2ad8] sm:$0xff] }
 0x1a8   : > { %3575 = vmatpush1.bf16.msra.mxu0 %v2928_v53  ;;  %v1560_v53 = vld [vmem:[%s5407_s22 + $0x28c0] sm:$0xff] }
 0x1a9   : > { %3903 = vmatpush1.bf16.msra.mxu1 %v2930_v54  ;;  %3576 = vmatprep.subr.bf16.mxu0 %v2937_v55  ;;  %v1554_v54 = vld [vmem:[%s5407_s22 + $0x2890] sm:$0xff]  ;;  %v2971_v55 = vpack.c.bf16 %v1563_v46, %v1555_v45  ;;  %v2968_v63 = vpack.c.bf16 %v1560_v53, %v1552_v52  ;;  %v3001_v45 = vpack.c.bf16 %v1625_v38, %v1617_v37  ;;  %v1616_v46 = vld [vmem:[%s5407_s22 + $0x2a80] sm:$0xff]  ;;  %v1633_v52 = vld [vmem:[%s5407_s22 + $0x2b08] sm:$0xff] }
 0x1aa   : > { %3904 = vmatprep.subr.bf16.mxu1 %v2939_v59  ;;  %v6109_v59 = vpack.c.bf16 %v251_v48, %v251_v48  ;;  %v2970_v0 = vpack.c.bf16 %v1562_v56, %v1554_v54  ;;  %v1624_v48 = vld [vmem:[%s5407_s22 + $0x2ac0] sm:$0xff]  ;;  %v1641_v53 = vld [vmem:[%s5407_s22 + $0x2b48] sm:$0xff]  ;;  %v1635_v54 = vld [vmem:[%s5407_s22 + $0x2b18] sm:$0xff] }
 0x1ab   : > { %v3000_v56 = vpack.c.bf16 %v1624_v48, %v1616_v46  ;;  %v3009_v58 = vpack.c.bf16 %v1641_v53, %v1633_v52  ;;  %v1697_v46 = vld [vmem:[%s5407_s22 + $0x2d08] sm:$0xff] }
 0x1ac   : > { %3577 = vmatpush1.bf16.msra.mxu0 %v2936_v2  ;;  %v1568_v2 = vld [vmem:[%s5407_s22 + $0x2900] sm:$0xff]  ;;  %v1705_v48 = vld [vmem:[%s5407_s22 + $0x2d48] sm:$0xff] }
 0x1ad   : > { %3905 = vmatpush1.bf16.msra.mxu1 %v2938_v3  ;;  %3578 = vmatprep.subr.bf16.mxu0 %v2945_v4  ;;  %v1576_v3 = vld [vmem:[%s5407_s22 + $0x2940] sm:$0xff]  ;;  %v1570_v4 = vld [vmem:[%s5407_s22 + $0x2910] sm:$0xff]  ;;  %v3041_v53 = vpack.c.bf16 %v1705_v48, %v1697_v46 }
 0x1ae   : > { %3906 = vmatprep.subr.bf16.mxu1 %v2947_v9  ;;  %v1593_v9 = vld [vmem:[%s5407_s22 + $0x29c8] sm:$0xff]  ;;  %v2976_v12 = vpack.c.bf16 %v1576_v3, %v1568_v2  ;;  %v2978_v13 = vpack.c.bf16 %v1578_v6, %v1570_v4  ;;  %v1651_v4 = vld [vmem:[%s5407_s22 + $0x2b98] sm:$0xff]  ;;  %v3008_v6 = vpack.c.bf16 %v1640_v62, %v1632_v60 }
 0x1af   : > { %v2985_v14 = vpack.c.bf16 %v1593_v9, %v1585_v7  ;;  %v1649_v2 = vld [vmem:[%s5407_s22 + $0x2b88] sm:$0xff] }
 0x1b0   : > { %3579 = vmatpush1.bf16.msra.mxu0 %v2944_v16  ;;  %v1584_v16 = vld [vmem:[%s5407_s22 + $0x2980] sm:$0xff]  ;;  %v1657_v3 = vld [vmem:[%s5407_s22 + $0x2bc8] sm:$0xff] }
 0x1b1   : > { %3907 = vmatpush1.bf16.msra.mxu1 %v2946_v17  ;;  %3580 = vmatprep.subr.bf16.mxu0 %v2953_v18  ;;  %v1592_v17 = vld [vmem:[%s5407_s22 + $0x29c0] sm:$0xff]  ;;  %v1586_v18 = vld [vmem:[%s5407_s22 + $0x2990] sm:$0xff]  ;;  %v3017_v9 = vpack.c.bf16 %v1657_v3, %v1649_v2  ;;  %v1713_v60 = vld [vmem:[%s5407_s22 + $0x2d88] sm:$0xff] }
 0x1b2   : > { %3908 = vmatprep.subr.bf16.mxu1 %v2955_v23  ;;  %v1609_v23 = vld [vmem:[%s5407_s22 + $0x2a48] sm:$0xff]  ;;  %v2984_v28 = vpack.c.bf16 %v1592_v17, %v1584_v16  ;;  %v2986_v29 = vpack.c.bf16 %v1594_v21, %v1586_v18  ;;  %v1667_v18 = vld [vmem:[%s5407_s22 + $0x2c18] sm:$0xff]  ;;  %v3016_v21 = vpack.c.bf16 %v1656_v11, %v1648_v10 }
 0x1b3   : > { %v2993_v31 = vpack.c.bf16 %v1609_v23, %v1601_v22  ;;  %v1665_v16 = vld [vmem:[%s5407_s22 + $0x2c08] sm:$0xff] }
 0x1b4   : > { %3581 = vmatpush1.bf16.msra.mxu0 %v2952_v32  ;;  %v1600_v32 = vld [vmem:[%s5407_s22 + $0x2a00] sm:$0xff]  ;;  %v1673_v17 = vld [vmem:[%s5407_s22 + $0x2c48] sm:$0xff] }
 0x1b5   : > { %3909 = vmatpush1.bf16.msra.mxu1 %v2954_v34  ;;  %3591 = vmatprep.subr.bf16.mxu0 %v2961_v35  ;;  %v1602_v34 = vld [vmem:[%s5407_s22 + $0x2a10] sm:$0xff]  ;;  %v2995_v35 = vpack.c.bf16 %v1611_v26, %v1603_v25  ;;  %v2992_v41 = vpack.c.bf16 %v1608_v33, %v1600_v32  ;;  %v3025_v23 = vpack.c.bf16 %v1673_v17, %v1665_v16  ;;  %v1664_v25 = vld [vmem:[%s5407_s22 + $0x2c00] sm:$0xff]  ;;  %v1681_v32 = vld [vmem:[%s5407_s22 + $0x2c88] sm:$0xff] }
 0x1b6   : > { %3919 = vmatprep.subr.bf16.mxu1 %v2963_v39  ;;  %v1619_v39 = vld [vmem:[%s5407_s22 + $0x2a98] sm:$0xff]  ;;  %v2994_v43 = vpack.c.bf16 %v1610_v36, %v1602_v34  ;;  %v1672_v26 = vld [vmem:[%s5407_s22 + $0x2c40] sm:$0xff]  ;;  %v1689_v33 = vld [vmem:[%s5407_s22 + $0x2cc8] sm:$0xff] }
 0x1b7   : > { %3583 = vmatmul.mubr.bf16.vlgmr.msra.gmra.mrb[0].mxu0 %v6099_v44  ;;  %v1683_v34 = vld [vmem:[%s5407_s22 + $0x2c98] sm:$0xff]  ;;  %v3024_v36 = vpack.c.bf16 %v1672_v26, %v1664_v25  ;;  %v3033_v38 = vpack.c.bf16 %v1689_v33, %v1681_v32  ;;  %v1721_v62 = vld [vmem:[%s5407_s22 + $0x2dc8] sm:$0xff] }
 0x1b8   : > { %3592 = vmatpush1.bf16.msra.mxu0 %v2960_v49  ;;  %3911 = vmatmul.mubr.bf16.vlgmr.msra.gmra.mrb[0].mxu1 %v6099_v44  ;;  %v1618_v49 = vld [vmem:[%s5407_s22 + $0x2a90] sm:$0xff]  ;;  %v3049_v3 = vpack.c.bf16 %v1721_v62, %v1713_v60  ;;  %v1729_v10 = vld [vmem:[%s5407_s22 + $0x2e08] sm:$0xff] }
 0x1b9   : > { %3920 = vmatpush1.bf16.msra.mxu1 %v2962_v50  ;;  %3593 = vmatprep.subr.bf16.mxu0 %v2969_v51  ;;  %v3003_v50 = vpack.c.bf16 %v1627_v40, %v1619_v39  ;;  %v1626_v51 = vld [vmem:[%s5407_s22 + $0x2ad0] sm:$0xff]  ;;  %v1680_v39 = vld [vmem:[%s5407_s22 + $0x2c80] sm:$0xff]  ;;  %v1737_v11 = vld [vmem:[%s5407_s22 + $0x2e48] sm:$0xff] }
 0x1ba   : > { %3921 = vmatprep.subr.bf16.mxu1 %v2971_v55  ;;  %3623 = vmatprep.mubr.bf16.mxu0 %v6109_v59  ;;  %v1643_v55 = vld [vmem:[%s5407_s22 + $0x2b58] sm:$0xff]  ;;  %v3002_v57 = vpack.c.bf16 %v1626_v51, %v1618_v49  ;;  %v1688_v40 = vld [vmem:[%s5407_s22 + $0x2cc0] sm:$0xff]  ;;  %v3057_v17 = vpack.c.bf16 %v1737_v11, %v1729_v10  ;;  %v1745_v25 = vld [vmem:[%s5407_s22 + $0x2e88] sm:$0xff] }
 0x1bb   : > { %3951 = vmatprep.mubr.bf16.mxu1 %v6109_v59  ;;  %v1699_v49 = vld [vmem:[%s5407_s22 + $0x2d18] sm:$0xff]  ;;  %v3032_v51 = vpack.c.bf16 %v1688_v40, %v1680_v39  ;;  %v1753_v26 = vld [vmem:[%s5407_s22 + $0x2ec8] sm:$0xff]  ;;  %v250_v10 = vld [vmem:[#allocation2 + $0x50] sm:$0xff] }
 0x1bc   : > { %3594 = vmatpush1.bf16.msra.mxu0 %v2968_v63  ;;  %v1634_v63 = vld [vmem:[%s5407_s22 + $0x2b10] sm:$0xff]  ;;  %v3065_v33 = vpack.c.bf16 %v1753_v26, %v1745_v25  ;;  %v1761_v39 = vld [vmem:[%s5407_s22 + $0x2f08] sm:$0xff]  ;;  %v1819_v25 = vld [vmem:[%s5407_s22 + $0x30d8] sm:$0xff] }
 0x1bd   : > { %3922 = vmatpush1.bf16.msra.mxu1 %v2970_v0  ;;  %3595 = vmatprep.subr.bf16.mxu0 %v2977_v1  ;;  %v3011_v0 = vpack.c.bf16 %v1643_v55, %v1635_v54  ;;  %v1642_v1 = vld [vmem:[%s5407_s22 + $0x2b50] sm:$0xff]  ;;  %v1696_v54 = vld [vmem:[%s5407_s22 + $0x2d00] sm:$0xff]  ;;  %v1769_v40 = vld [vmem:[%s5407_s22 + $0x2f48] sm:$0xff] }
 0x1be   : > { %3923 = vmatprep.subr.bf16.mxu1 %v2979_v5  ;;  %v1659_v5 = vld [vmem:[%s5407_s22 + $0x2bd8] sm:$0xff]  ;;  %v3010_v7 = vpack.c.bf16 %v1642_v1, %v1634_v63  ;;  %v1704_v55 = vld [vmem:[%s5407_s22 + $0x2d40] sm:$0xff]  ;;  %v3073_v48 = vpack.c.bf16 %v1769_v40, %v1761_v39  ;;  %v253_v26 = vld [vmem:[#allocation2 + $0x68] sm:$0xff] }
 0x1bf   : > { %v1715_v63 = vld [vmem:[%s5407_s22 + $0x2d98] sm:$0xff]  ;;  %v3040_v1 = vpack.c.bf16 %v1704_v55, %v1696_v54  ;;  %v1777_v54 = vld [vmem:[%s5407_s22 + $0x2f88] sm:$0xff]  ;;  %v6245_v39 = vpack.c.bf16 %v253_v26, %v253_v26 }
 0x1c0   : > { %3596 = vmatpush1.bf16.msra.mxu0 %v2976_v12  ;;  %v1650_v12 = vld [vmem:[%s5407_s22 + $0x2b90] sm:$0xff]  ;;  %v1785_v55 = vld [vmem:[%s5407_s22 + $0x2fc8] sm:$0xff]  ;;  %v1827_v40 = vld [vmem:[%s5407_s22 + $0x3118] sm:$0xff] }
 0x1c1   : > { %3924 = vmatpush1.bf16.msra.mxu1 %v2978_v13  ;;  %3597 = vmatprep.subr.bf16.mxu0 %v2985_v14  ;;  %v3019_v13 = vpack.c.bf16 %v1659_v5, %v1651_v4  ;;  %v1658_v14 = vld [vmem:[%s5407_s22 + $0x2bd0] sm:$0xff]  ;;  %v1712_v4 = vld [vmem:[%s5407_s22 + $0x2d80] sm:$0xff]  ;;  %v3081_v62 = vpack.c.bf16 %v1785_v55, %v1777_v54  ;;  %v1849_v54 = vld [vmem:[%s5407_s22 + $0x31c8] sm:$0xff] }
 0x1c2   : > { %3925 = vmatprep.subr.bf16.mxu1 %v2987_v20  ;;  %v1675_v20 = vld [vmem:[%s5407_s22 + $0x2c58] sm:$0xff]  ;;  %v3018_v22 = vpack.c.bf16 %v1658_v14, %v1650_v12  ;;  %v1720_v5 = vld [vmem:[%s5407_s22 + $0x2dc0] sm:$0xff] }
 0x1c3   : > { %v1731_v12 = vld [vmem:[%s5407_s22 + $0x2e18] sm:$0xff]  ;;  %v3048_v14 = vpack.c.bf16 %v1720_v5, %v1712_v4  ;;  %v1793_v4 = vld [vmem:[%s5407_s22 + $0x3008] sm:$0xff] }
 0x1c4   : > { %3598 = vmatpush1.bf16.msra.mxu0 %v2984_v28  ;;  %v1666_v28 = vld [vmem:[%s5407_s22 + $0x2c10] sm:$0xff]  ;;  %v1801_v5 = vld [vmem:[%s5407_s22 + $0x3048] sm:$0xff]  ;;  %v1843_v55 = vld [vmem:[%s5407_s22 + $0x3198] sm:$0xff] }
 0x1c5   : > { %3926 = vmatpush1.bf16.msra.mxu1 %v2986_v29  ;;  %3599 = vmatprep.subr.bf16.mxu0 %v2993_v31  ;;  %v3027_v29 = vpack.c.bf16 %v1675_v20, %v1667_v18  ;;  %v1674_v31 = vld [vmem:[%s5407_s22 + $0x2c50] sm:$0xff]  ;;  %v1728_v18 = vld [vmem:[%s5407_s22 + $0x2e00] sm:$0xff] }
 0x1c6   : > { %3927 = vmatprep.subr.bf16.mxu1 %v2995_v35  ;;  %v1691_v35 = vld [vmem:[%s5407_s22 + $0x2cd8] sm:$0xff]  ;;  %v3026_v37 = vpack.c.bf16 %v1674_v31, %v1666_v28  ;;  %v1736_v20 = vld [vmem:[%s5407_s22 + $0x2e40] sm:$0xff] }
 0x1c7   : > { %v1747_v28 = vld [vmem:[%s5407_s22 + $0x2e98] sm:$0xff]  ;;  %v3056_v31 = vpack.c.bf16 %v1736_v20, %v1728_v18  ;;  %v1802_v18 = vld [vmem:[%s5407_s22 + $0x3050] sm:$0xff]  ;;  %v1809_v20 = vld [vmem:[%s5407_s22 + $0x3088] sm:$0xff] }
 0x1c8   : > { %3600 = vmatpush1.bf16.msra.mxu0 %v2992_v41  ;;  %v1682_v41 = vld [vmem:[%s5407_s22 + $0x2c90] sm:$0xff] }
 0x1c9   : > { %3928 = vmatpush1.bf16.msra.mxu1 %v2994_v43  ;;  %3601 = vmatprep.subr.bf16.mxu0 %v3001_v45  ;;  %v3035_v43 = vpack.c.bf16 %v1691_v35, %v1683_v34  ;;  %v1690_v45 = vld [vmem:[%s5407_s22 + $0x2cd0] sm:$0xff]  ;;  %v1744_v34 = vld [vmem:[%s5407_s22 + $0x2e80] sm:$0xff] }
 0x1ca   : > { %3929 = vmatprep.subr.bf16.mxu1 %v3003_v50  ;;  %v1707_v50 = vld [vmem:[%s5407_s22 + $0x2d58] sm:$0xff]  ;;  %v3034_v52 = vpack.c.bf16 %v1690_v45, %v1682_v41  ;;  %v1752_v35 = vld [vmem:[%s5407_s22 + $0x2ec0] sm:$0xff] }
 0x1cb   : > { %v1763_v41 = vld [vmem:[%s5407_s22 + $0x2f18] sm:$0xff]  ;;  %v3064_v45 = vpack.c.bf16 %v1752_v35, %v1744_v34  ;;  %v1810_v34 = vld [vmem:[%s5407_s22 + $0x3090] sm:$0xff] }
 0x1cc   : > { %3602 = vmatpush1.bf16.msra.mxu0 %v3000_v56  ;;  %v1698_v56 = vld [vmem:[%s5407_s22 + $0x2d10] sm:$0xff] }
 0x1cd   : > { %3930 = vmatpush1.bf16.msra.mxu1 %v3002_v57  ;;  %3603 = vmatprep.subr.bf16.mxu0 %v3009_v58  ;;  %v3043_v57 = vpack.c.bf16 %v1707_v50, %v1699_v49  ;;  %v1706_v58 = vld [vmem:[%s5407_s22 + $0x2d50] sm:$0xff]  ;;  %v1760_v49 = vld [vmem:[%s5407_s22 + $0x2f00] sm:$0xff] }
 0x1ce   : > { %3931 = vmatprep.subr.bf16.mxu1 %v3011_v0  ;;  %v1723_v0 = vld [vmem:[%s5407_s22 + $0x2dd8] sm:$0xff]  ;;  %v3042_v2 = vpack.c.bf16 %v1706_v58, %v1698_v56  ;;  %v1768_v50 = vld [vmem:[%s5407_s22 + $0x2f40] sm:$0xff] }
 0x1cf   : > { %v1779_v56 = vld [vmem:[%s5407_s22 + $0x2f98] sm:$0xff]  ;;  %v3072_v58 = vpack.c.bf16 %v1768_v50, %v1760_v49  ;;  %v1832_v49 = vld [vmem:[%s5407_s22 + $0x3140] sm:$0xff]  ;;  %v1826_v50 = vld [vmem:[%s5407_s22 + $0x3110] sm:$0xff] }
 0x1d0   : > { %3604 = vmatpush1.bf16.msra.mxu0 %v3008_v6  ;;  %v1714_v6 = vld [vmem:[%s5407_s22 + $0x2d90] sm:$0xff] }
 0x1d1   : > { %3932 = vmatpush1.bf16.msra.mxu1 %v3010_v7  ;;  %3605 = vmatprep.subr.bf16.mxu0 %v3017_v9  ;;  %v3051_v7 = vpack.c.bf16 %v1723_v0, %v1715_v63  ;;  %v1722_v9 = vld [vmem:[%s5407_s22 + $0x2dd0] sm:$0xff]  ;;  %v1776_v63 = vld [vmem:[%s5407_s22 + $0x2f80] sm:$0xff] }
 0x1d2   : > { %3933 = vmatprep.subr.bf16.mxu1 %v3019_v13  ;;  %v1739_v13 = vld [vmem:[%s5407_s22 + $0x2e58] sm:$0xff]  ;;  %v3050_v16 = vpack.c.bf16 %v1722_v9, %v1714_v6  ;;  %v1784_v0 = vld [vmem:[%s5407_s22 + $0x2fc0] sm:$0xff] }
 0x1d3   : > { %v1795_v6 = vld [vmem:[%s5407_s22 + $0x3018] sm:$0xff]  ;;  %v3080_v9 = vpack.c.bf16 %v1784_v0, %v1776_v63  ;;  %v1848_v63 = vld [vmem:[%s5407_s22 + $0x31c0] sm:$0xff]  ;;  %v1842_v0 = vld [vmem:[%s5407_s22 + $0x3190] sm:$0xff] }
 0x1d4   : > { %3606 = vmatpush1.bf16.msra.mxu0 %v3016_v21  ;;  %v1730_v21 = vld [vmem:[%s5407_s22 + $0x2e10] sm:$0xff] }
 0x1d5   : > { %3934 = vmatpush1.bf16.msra.mxu1 %v3018_v22  ;;  %3607 = vmatprep.subr.bf16.mxu0 %v3025_v23  ;;  %v3059_v22 = vpack.c.bf16 %v1739_v13, %v1731_v12  ;;  %v1738_v23 = vld [vmem:[%s5407_s22 + $0x2e50] sm:$0xff]  ;;  %v3089_v12 = vpack.c.bf16 %v1801_v5, %v1793_v4  ;;  %v1792_v13 = vld [vmem:[%s5407_s22 + $0x3000] sm:$0xff]  ;;  %v1865_v4 = vld [vmem:[%s5407_s22 + $0x3248] sm:$0xff] }
 0x1d6   : > { %3935 = vmatprep.subr.bf16.mxu1 %v3027_v29  ;;  %v1755_v29 = vld [vmem:[%s5407_s22 + $0x2ed8] sm:$0xff]  ;;  %v3058_v32 = vpack.c.bf16 %v1738_v23, %v1730_v21  ;;  %v1817_v21 = vld [vmem:[%s5407_s22 + $0x30c8] sm:$0xff] }
 0x1d7   : > { %v1811_v23 = vld [vmem:[%s5407_s22 + $0x3098] sm:$0xff] }
 0x1d8   : > { %3608 = vmatpush1.bf16.msra.mxu0 %v3024_v36  ;;  %v1746_v36 = vld [vmem:[%s5407_s22 + $0x2e90] sm:$0xff]  ;;  %v3099_v35 = vpack.c.bf16 %v1819_v25, %v1811_v23  ;;  %v1859_v5 = vld [vmem:[%s5407_s22 + $0x3218] sm:$0xff] }
 0x1d9   : > { %3936 = vmatpush1.bf16.msra.mxu1 %v3026_v37  ;;  %3609 = vmatprep.subr.bf16.mxu0 %v3033_v38  ;;  %v3067_v37 = vpack.c.bf16 %v1755_v29, %v1747_v28  ;;  %v1754_v38 = vld [vmem:[%s5407_s22 + $0x2ed0] sm:$0xff] }
 0x1da   : > { %3937 = vmatprep.subr.bf16.mxu1 %v3035_v43  ;;  %v1771_v43 = vld [vmem:[%s5407_s22 + $0x2f58] sm:$0xff]  ;;  %v3066_v46 = vpack.c.bf16 %v1754_v38, %v1746_v36  ;;  %v1818_v36 = vld [vmem:[%s5407_s22 + $0x30d0] sm:$0xff]  ;;  %v1833_v38 = vld [vmem:[%s5407_s22 + $0x3148] sm:$0xff] }
 0x1dc   : > { %3610 = vmatpush1.bf16.msra.mxu0 %v3032_v51  ;;  %v1762_v51 = vld [vmem:[%s5407_s22 + $0x2f10] sm:$0xff] }
 0x1dd   : > { %3938 = vmatpush1.bf16.msra.mxu1 %v3034_v52  ;;  %3611 = vmatprep.subr.bf16.mxu0 %v3041_v53  ;;  %v3075_v52 = vpack.c.bf16 %v1771_v43, %v1763_v41  ;;  %v1770_v53 = vld [vmem:[%s5407_s22 + $0x2f50] sm:$0xff]  ;;  %v1835_v41 = vld [vmem:[%s5407_s22 + $0x3158] sm:$0xff] }
 0x1de   : > { %3939 = vmatprep.subr.bf16.mxu1 %v3043_v57  ;;  %v1787_v57 = vld [vmem:[%s5407_s22 + $0x2fd8] sm:$0xff]  ;;  %v3074_v60 = vpack.c.bf16 %v1770_v53, %v1762_v51  ;;  %v3107_v51 = vpack.c.bf16 %v1835_v41, %v1827_v40  ;;  %v1841_v53 = vld [vmem:[%s5407_s22 + $0x3188] sm:$0xff] }
 0x1e0   : > { %3612 = vmatpush1.bf16.msra.mxu0 %v3040_v1  ;;  %v1778_v1 = vld [vmem:[%s5407_s22 + $0x2f90] sm:$0xff] }
 0x1e1   : > { %3940 = vmatpush1.bf16.msra.mxu1 %v3042_v2  ;;  %3613 = vmatprep.subr.bf16.mxu0 %v3049_v3  ;;  %v3083_v2 = vpack.c.bf16 %v1787_v57, %v1779_v56  ;;  %v1786_v3 = vld [vmem:[%s5407_s22 + $0x2fd0] sm:$0xff]  ;;  %v1851_v56 = vld [vmem:[%s5407_s22 + $0x31d8] sm:$0xff] }
 0x1e2   : > { %3941 = vmatprep.subr.bf16.mxu1 %v3051_v7  ;;  %v1803_v7 = vld [vmem:[%s5407_s22 + $0x3058] sm:$0xff]  ;;  %v3082_v11 = vpack.c.bf16 %v1786_v3, %v1778_v1  ;;  %v3115_v1 = vpack.c.bf16 %v1851_v56, %v1843_v55  ;;  %v1857_v3 = vld [vmem:[%s5407_s22 + $0x3208] sm:$0xff] }
 0x1e4   : > { %3614 = vmatpush1.bf16.msra.mxu0 %v3048_v14  ;;  %v1800_v14 = vld [vmem:[%s5407_s22 + $0x3040] sm:$0xff] }
 0x1e5   : > { %3942 = vmatpush1.bf16.msra.mxu1 %v3050_v16  ;;  %3615 = vmatprep.subr.bf16.mxu0 %v3057_v17  ;;  %v1794_v16 = vld [vmem:[%s5407_s22 + $0x3010] sm:$0xff]  ;;  %v3091_v17 = vpack.c.bf16 %v1803_v7, %v1795_v6  ;;  %v3088_v28 = vpack.c.bf16 %v1800_v14, %v1792_v13  ;;  %v1867_v6 = vld [vmem:[%s5407_s22 + $0x3258] sm:$0xff] }
 0x1e6   : > { %3943 = vmatprep.subr.bf16.mxu1 %v3059_v22  ;;  %v6235_v22 = vpack.c.bf16 %v250_v10, %v250_v10  ;;  %v3090_v29 = vpack.c.bf16 %v1802_v18, %v1794_v16  ;;  %v3121_v10 = vpack.c.bf16 %v1865_v4, %v1857_v3  ;;  %v1858_v13 = vld [vmem:[%s5407_s22 + $0x3210] sm:$0xff]  ;;  %v3123_v14 = vpack.c.bf16 %v1867_v6, %v1859_v5  ;;  %v1881_v18 = vld [vmem:[%s5407_s22 + $0x32c8] sm:$0xff]  ;;  %v1931_v3 = vld [vmem:[%s5407_s22 + $0x3458] sm:$0xff] }
 0x1e7   : > { %v1866_v16 = vld [vmem:[%s5407_s22 + $0x3250] sm:$0xff] }
 0x1e8   : > { %3616 = vmatpush1.bf16.msra.mxu0 %v3056_v31  ;;  %v3097_v31 = vpack.c.bf16 %v1817_v21, %v1809_v20  ;;  %v1875_v20 = vld [vmem:[%s5407_s22 + $0x3298] sm:$0xff]  ;;  %v3122_v25 = vpack.c.bf16 %v1866_v16, %v1858_v13  ;;  %v1937_v13 = vld [vmem:[%s5407_s22 + $0x3488] sm:$0xff] }
 0x1e9   : > { %3944 = vmatpush1.bf16.msra.mxu1 %v3058_v32  ;;  %3617 = vmatprep.subr.bf16.mxu0 %v3065_v33  ;;  %v1808_v32 = vld [vmem:[%s5407_s22 + $0x3080] sm:$0xff]  ;;  %v1883_v21 = vld [vmem:[%s5407_s22 + $0x32d8] sm:$0xff] }
 0x1ea   : > { %3945 = vmatprep.subr.bf16.mxu1 %v3067_v37  ;;  %v1816_v33 = vld [vmem:[%s5407_s22 + $0x30c0] sm:$0xff]  ;;  %v1825_v37 = vld [vmem:[%s5407_s22 + $0x3108] sm:$0xff]  ;;  %v1939_v16 = vld [vmem:[%s5407_s22 + $0x3498] sm:$0xff] }
 0x1eb   : > { %v3096_v43 = vpack.c.bf16 %v1816_v33, %v1808_v32  ;;  %v3131_v32 = vpack.c.bf16 %v1883_v21, %v1875_v20  ;;  %v1882_v33 = vld [vmem:[%s5407_s22 + $0x32d0] sm:$0xff] }
 0x1ec   : > { %3618 = vmatpush1.bf16.msra.mxu0 %v3064_v45  ;;  %v3098_v45 = vpack.c.bf16 %v1818_v36, %v1810_v34  ;;  %v1889_v34 = vld [vmem:[%s5407_s22 + $0x3308] sm:$0xff]  ;;  %v1891_v36 = vld [vmem:[%s5407_s22 + $0x3318] sm:$0xff] }
 0x1ed   : > { %3946 = vmatpush1.bf16.msra.mxu1 %v3066_v46  ;;  %3619 = vmatprep.subr.bf16.mxu0 %v3073_v48  ;;  %v3105_v46 = vpack.c.bf16 %v1833_v38, %v1825_v37  ;;  %v1824_v48 = vld [vmem:[%s5407_s22 + $0x3100] sm:$0xff]  ;;  %v1899_v37 = vld [vmem:[%s5407_s22 + $0x3358] sm:$0xff] }
 0x1ee   : > { %3947 = vmatprep.subr.bf16.mxu1 %v3075_v52  ;;  %v1834_v52 = vld [vmem:[%s5407_s22 + $0x3150] sm:$0xff]  ;;  %v3104_v57 = vpack.c.bf16 %v1832_v49, %v1824_v48  ;;  %v3139_v48 = vpack.c.bf16 %v1899_v37, %v1891_v36 }
 0x1ef   : > { %v1898_v49 = vld [vmem:[%s5407_s22 + $0x3350] sm:$0xff] }
 0x1f0   : > { %3620 = vmatpush1.bf16.msra.mxu0 %v3072_v58  ;;  %v3106_v58 = vpack.c.bf16 %v1834_v52, %v1826_v50  ;;  %v1905_v50 = vld [vmem:[%s5407_s22 + $0x3388] sm:$0xff]  ;;  %v1907_v52 = vld [vmem:[%s5407_s22 + $0x3398] sm:$0xff] }
 0x1f1   : > { %3948 = vmatpush1.bf16.msra.mxu1 %v3074_v60  ;;  %3621 = vmatprep.subr.bf16.mxu0 %v3081_v62  ;;  %v3113_v60 = vpack.c.bf16 %v1849_v54, %v1841_v53  ;;  %v1840_v62 = vld [vmem:[%s5407_s22 + $0x3180] sm:$0xff]  ;;  %v1915_v53 = vld [vmem:[%s5407_s22 + $0x33d8] sm:$0xff] }
 0x1f2   : > { %3949 = vmatprep.subr.bf16.mxu1 %v3083_v2  ;;  %v1850_v2 = vld [vmem:[%s5407_s22 + $0x31d0] sm:$0xff]  ;;  %v3112_v7 = vpack.c.bf16 %v1848_v63, %v1840_v62  ;;  %v3147_v62 = vpack.c.bf16 %v1915_v53, %v1907_v52 }
 0x1f3   : > { %v1914_v63 = vld [vmem:[%s5407_s22 + $0x33d0] sm:$0xff] }
 0x1f4   : > { %3622 = vmatpush1.bf16.msra.mxu0 %v3080_v9  ;;  %v3114_v9 = vpack.c.bf16 %v1850_v2, %v1842_v0  ;;  %v1921_v0 = vld [vmem:[%s5407_s22 + $0x3408] sm:$0xff]  ;;  %v1923_v2 = vld [vmem:[%s5407_s22 + $0x3418] sm:$0xff] }
 0x1f5   : > { %3950 = vmatpush1.bf16.msra.mxu1 %v3082_v11  ;;  %3632 = vmatprep.subr.bf16.mxu0 %v3089_v12  ;;  %v1856_v11 = vld [vmem:[%s5407_s22 + $0x3200] sm:$0xff] }
 0x1f6   : > { %3960 = vmatprep.subr.bf16.mxu1 %v3091_v17  ;;  %v1864_v12 = vld [vmem:[%s5407_s22 + $0x3240] sm:$0xff]  ;;  %v1873_v17 = vld [vmem:[%s5407_s22 + $0x3288] sm:$0xff] }
 0x1f7   : > { %3624 = vmatmul.mubr.bf16.vlgmr.msra.gmra.mrb[0].mxu0 %v6235_v22  ;;  %v3120_v23 = vpack.c.bf16 %v1864_v12, %v1856_v11  ;;  %v3129_v26 = vpack.c.bf16 %v1881_v18, %v1873_v17  ;;  %v3155_v11 = vpack.c.bf16 %v1931_v3, %v1923_v2  ;;  %v1930_v12 = vld [vmem:[%s5407_s22 + $0x3450] sm:$0xff]  ;;  %v1947_v17 = vld [vmem:[%s5407_s22 + $0x34d8] sm:$0xff] }
 0x1f8   : > { %3633 = vmatpush1.bf16.msra.mxu0 %v3088_v28  ;;  %3952 = vmatmul.mubr.bf16.vlgmr.msra.gmra.mrb[0].mxu1 %v6235_v22  ;;  %v1872_v28 = vld [vmem:[%s5407_s22 + $0x3280] sm:$0xff] }
 0x1f9   : > { %3961 = vmatpush1.bf16.msra.mxu1 %v3090_v29  ;;  %3634 = vmatprep.subr.bf16.mxu0 %v3097_v31  ;;  %v1880_v29 = vld [vmem:[%s5407_s22 + $0x32c0] sm:$0xff]  ;;  %v1874_v31 = vld [vmem:[%s5407_s22 + $0x3290] sm:$0xff] }
 0x1fa   : > { %3962 = vmatprep.subr.bf16.mxu1 %v3099_v35  ;;  %3664 = vmatprep.mubr.bf16.mxu0 %v6245_v39  ;;  %v1897_v35 = vld [vmem:[%s5407_s22 + $0x3348] sm:$0xff]  ;;  %v3128_v38 = vpack.c.bf16 %v1880_v29, %v1872_v28  ;;  %v3130_v40 = vpack.c.bf16 %v1882_v33, %v1874_v31  ;;  %v3163_v28 = vpack.c.bf16 %v1947_v17, %v1939_v16  ;;  %v1946_v29 = vld [vmem:[%s5407_s22 + $0x34d0] sm:$0xff]  ;;  %v1955_v33 = vld [vmem:[%s5407_s22 + $0x3518] sm:$0xff] }
 0x1fb   : > { %3992 = vmatprep.mubr.bf16.mxu1 %v6245_v39  ;;  %v3137_v41 = vpack.c.bf16 %v1897_v35, %v1889_v34  ;;  %v1953_v31 = vld [vmem:[%s5407_s22 + $0x3508] sm:$0xff]  ;;  %v1963_v34 = vld [vmem:[%s5407_s22 + $0x3558] sm:$0xff] }
 0x1fc   : > { %3635 = vmatpush1.bf16.msra.mxu0 %v3096_v43  ;;  %v1888_v43 = vld [vmem:[%s5407_s22 + $0x3300] sm:$0xff] }
 0x1fd   : > { %3963 = vmatpush1.bf16.msra.mxu1 %v3098_v45  ;;  %3636 = vmatprep.subr.bf16.mxu0 %v3105_v46  ;;  %v1896_v45 = vld [vmem:[%s5407_s22 + $0x3340] sm:$0xff]  ;;  %v1890_v46 = vld [vmem:[%s5407_s22 + $0x3310] sm:$0xff] }
 0x1fe   : > { %3964 = vmatprep.subr.bf16.mxu1 %v3107_v51  ;;  %v1913_v51 = vld [vmem:[%s5407_s22 + $0x33c8] sm:$0xff]  ;;  %v3136_v54 = vpack.c.bf16 %v1896_v45, %v1888_v43  ;;  %v3138_v55 = vpack.c.bf16 %v1898_v49, %v1890_v46  ;;  %v3171_v43 = vpack.c.bf16 %v1963_v34, %v1955_v33  ;;  %v1962_v45 = vld [vmem:[%s5407_s22 + $0x3550] sm:$0xff]  ;;  %v1971_v49 = vld [vmem:[%s5407_s22 + $0x3598] sm:$0xff] }
 0x1ff   : > { %v3145_v56 = vpack.c.bf16 %v1913_v51, %v1905_v50  ;;  %v1969_v46 = vld [vmem:[%s5407_s22 + $0x3588] sm:$0xff]  ;;  %v1979_v50 = vld [vmem:[%s5407_s22 + $0x35d8] sm:$0xff] }
 0x200   : > { %3637 = vmatpush1.bf16.msra.mxu0 %v3104_v57  ;;  %v1904_v57 = vld [vmem:[%s5407_s22 + $0x3380] sm:$0xff] }
 0x201   : > { %3965 = vmatpush1.bf16.msra.mxu1 %v3106_v58  ;;  %3638 = vmatprep.subr.bf16.mxu0 %v3113_v60  ;;  %v1912_v58 = vld [vmem:[%s5407_s22 + $0x33c0] sm:$0xff]  ;;  %v1906_v60 = vld [vmem:[%s5407_s22 + $0x3390] sm:$0xff] }
 0x202   : > { %3966 = vmatprep.subr.bf16.mxu1 %v3115_v1  ;;  %v1929_v1 = vld [vmem:[%s5407_s22 + $0x3448] sm:$0xff]  ;;  %v3144_v4 = vpack.c.bf16 %v1912_v58, %v1904_v57  ;;  %v3146_v5 = vpack.c.bf16 %v1914_v63, %v1906_v60  ;;  %v3179_v57 = vpack.c.bf16 %v1979_v50, %v1971_v49  ;;  %v1978_v58 = vld [vmem:[%s5407_s22 + $0x35d0] sm:$0xff]  ;;  %v1987_v63 = vld [vmem:[%s5407_s22 + $0x3618] sm:$0xff] }
 0x203   : > { %v3153_v6 = vpack.c.bf16 %v1929_v1, %v1921_v0  ;;  %v1985_v60 = vld [vmem:[%s5407_s22 + $0x3608] sm:$0xff]  ;;  %v1995_v0 = vld [vmem:[%s5407_s22 + $0x3658] sm:$0xff] }
 0x204   : > { %3639 = vmatpush1.bf16.msra.mxu0 %v3112_v7  ;;  %v1920_v7 = vld [vmem:[%s5407_s22 + $0x3400] sm:$0xff] }
 0x205   : > { %3967 = vmatpush1.bf16.msra.mxu1 %v3114_v9  ;;  %3640 = vmatprep.subr.bf16.mxu0 %v3121_v10  ;;  %v1928_v9 = vld [vmem:[%s5407_s22 + $0x3440] sm:$0xff]  ;;  %v1922_v10 = vld [vmem:[%s5407_s22 + $0x3410] sm:$0xff] }
 0x206   : > { %3968 = vmatprep.subr.bf16.mxu1 %v3123_v14  ;;  %v1945_v14 = vld [vmem:[%s5407_s22 + $0x34c8] sm:$0xff]  ;;  %v3152_v18 = vpack.c.bf16 %v1928_v9, %v1920_v7  ;;  %v3154_v20 = vpack.c.bf16 %v1930_v12, %v1922_v10  ;;  %v3187_v7 = vpack.c.bf16 %v1995_v0, %v1987_v63  ;;  %v1994_v9 = vld [vmem:[%s5407_s22 + $0x3650] sm:$0xff]  ;;  %v2003_v12 = vld [vmem:[%s5407_s22 + $0x3698] sm:$0xff] }
 0x207   : > { %v3161_v21 = vpack.c.bf16 %v1945_v14, %v1937_v13  ;;  %v2001_v10 = vld [vmem:[%s5407_s22 + $0x3688] sm:$0xff]  ;;  %v2011_v13 = vld [vmem:[%s5407_s22 + $0x36d8] sm:$0xff]  ;;  %v252_v63 = vld [vmem:[#allocation2 + $0x60] sm:$0xff] }
 0x208   : > { %3641 = vmatpush1.bf16.msra.mxu0 %v3120_v23  ;;  %v1936_v23 = vld [vmem:[%s5407_s22 + $0x3480] sm:$0xff] }
 0x209   : > { %3969 = vmatpush1.bf16.msra.mxu1 %v3122_v25  ;;  %3642 = vmatprep.subr.bf16.mxu0 %v3129_v26  ;;  %v1944_v25 = vld [vmem:[%s5407_s22 + $0x34c0] sm:$0xff]  ;;  %v1938_v26 = vld [vmem:[%s5407_s22 + $0x3490] sm:$0xff] }
 0x20a   : > { %3970 = vmatprep.subr.bf16.mxu1 %v3131_v32  ;;  %v1961_v32 = vld [vmem:[%s5407_s22 + $0x3548] sm:$0xff]  ;;  %v3160_v35 = vpack.c.bf16 %v1944_v25, %v1936_v23  ;;  %v3162_v36 = vpack.c.bf16 %v1946_v29, %v1938_v26  ;;  %v3195_v23 = vpack.c.bf16 %v2011_v13, %v2003_v12  ;;  %v2010_v25 = vld [vmem:[%s5407_s22 + $0x36d0] sm:$0xff]  ;;  %v2019_v29 = vld [vmem:[%s5407_s22 + $0x3718] sm:$0xff] }
 0x20b   : > { %v3169_v37 = vpack.c.bf16 %v1961_v32, %v1953_v31  ;;  %v2017_v26 = vld [vmem:[%s5407_s22 + $0x3708] sm:$0xff]  ;;  %v2027_v31 = vld [vmem:[%s5407_s22 + $0x3758] sm:$0xff] }
 0x20c   : > { %3643 = vmatpush1.bf16.msra.mxu0 %v3128_v38  ;;  %v1952_v38 = vld [vmem:[%s5407_s22 + $0x3500] sm:$0xff]  ;;  %v2075_v12 = vld [vmem:[%s5407_s22 + $0x38d8] sm:$0xff] }
 0x20d   : > { %3971 = vmatpush1.bf16.msra.mxu1 %v3130_v40  ;;  %3644 = vmatprep.subr.bf16.mxu0 %v3137_v41  ;;  %v1960_v40 = vld [vmem:[%s5407_s22 + $0x3540] sm:$0xff]  ;;  %v1954_v41 = vld [vmem:[%s5407_s22 + $0x3510] sm:$0xff]  ;;  %v255_v13 = vld [vmem:[#allocation2 + $0x78] sm:$0xff] }
 0x20e   : > { %3972 = vmatprep.subr.bf16.mxu1 %v3139_v48  ;;  %v1977_v48 = vld [vmem:[%s5407_s22 + $0x35c8] sm:$0xff]  ;;  %v3168_v51 = vpack.c.bf16 %v1960_v40, %v1952_v38  ;;  %v3170_v52 = vpack.c.bf16 %v1962_v45, %v1954_v41  ;;  %v3203_v38 = vpack.c.bf16 %v2027_v31, %v2019_v29  ;;  %v2026_v40 = vld [vmem:[%s5407_s22 + $0x3750] sm:$0xff]  ;;  %v2035_v45 = vld [vmem:[%s5407_s22 + $0x3798] sm:$0xff]  ;;  %v6381_v29 = vpack.c.bf16 %v255_v13, %v255_v13 }
 0x20f   : > { %v3177_v53 = vpack.c.bf16 %v1977_v48, %v1969_v46  ;;  %v2033_v41 = vld [vmem:[%s5407_s22 + $0x3788] sm:$0xff]  ;;  %v2043_v46 = vld [vmem:[%s5407_s22 + $0x37d8] sm:$0xff] }
 0x210   : > { %3645 = vmatpush1.bf16.msra.mxu0 %v3136_v54  ;;  %v1968_v54 = vld [vmem:[%s5407_s22 + $0x3580] sm:$0xff]  ;;  %v2083_v31 = vld [vmem:[%s5407_s22 + $0x3918] sm:$0xff] }
 0x211   : > { %3973 = vmatpush1.bf16.msra.mxu1 %v3138_v55  ;;  %3646 = vmatprep.subr.bf16.mxu0 %v3145_v56  ;;  %v1976_v55 = vld [vmem:[%s5407_s22 + $0x35c0] sm:$0xff]  ;;  %v1970_v56 = vld [vmem:[%s5407_s22 + $0x3590] sm:$0xff] }
 0x212   : > { %3974 = vmatprep.subr.bf16.mxu1 %v3147_v62  ;;  %v1993_v62 = vld [vmem:[%s5407_s22 + $0x3648] sm:$0xff]  ;;  %v3176_v1 = vpack.c.bf16 %v1976_v55, %v1968_v54  ;;  %v3178_v2 = vpack.c.bf16 %v1978_v58, %v1970_v56  ;;  %v3211_v54 = vpack.c.bf16 %v2043_v46, %v2035_v45  ;;  %v2042_v55 = vld [vmem:[%s5407_s22 + $0x37d0] sm:$0xff]  ;;  %v2051_v58 = vld [vmem:[%s5407_s22 + $0x3818] sm:$0xff] }
 0x213   : > { %v3185_v3 = vpack.c.bf16 %v1993_v62, %v1985_v60  ;;  %v2049_v56 = vld [vmem:[%s5407_s22 + $0x3808] sm:$0xff]  ;;  %v2059_v60 = vld [vmem:[%s5407_s22 + $0x3858] sm:$0xff] }
 0x214   : > { %3647 = vmatpush1.bf16.msra.mxu0 %v3144_v4  ;;  %v1984_v4 = vld [vmem:[%s5407_s22 + $0x3600] sm:$0xff]  ;;  %v2105_v45 = vld [vmem:[%s5407_s22 + $0x39c8] sm:$0xff]  ;;  %v2099_v46 = vld [vmem:[%s5407_s22 + $0x3998] sm:$0xff] }
 0x215   : > { %3975 = vmatpush1.bf16.msra.mxu1 %v3146_v5  ;;  %3648 = vmatprep.subr.bf16.mxu0 %v3153_v6  ;;  %v1992_v5 = vld [vmem:[%s5407_s22 + $0x3640] sm:$0xff]  ;;  %v1986_v6 = vld [vmem:[%s5407_s22 + $0x3610] sm:$0xff] }
 0x216   : > { %3976 = vmatprep.subr.bf16.mxu1 %v3155_v11  ;;  %v2009_v11 = vld [vmem:[%s5407_s22 + $0x36c8] sm:$0xff]  ;;  %v3184_v14 = vpack.c.bf16 %v1992_v5, %v1984_v4  ;;  %v3186_v16 = vpack.c.bf16 %v1994_v9, %v1986_v6  ;;  %v2050_v4 = vld [vmem:[%s5407_s22 + $0x3810] sm:$0xff]  ;;  %v3219_v5 = vpack.c.bf16 %v2059_v60, %v2051_v58  ;;  %v2115_v60 = vld [vmem:[%s5407_s22 + $0x3a18] sm:$0xff] }
 0x217   : > { %v3193_v17 = vpack.c.bf16 %v2009_v11, %v2001_v10  ;;  %v2058_v6 = vld [vmem:[%s5407_s22 + $0x3850] sm:$0xff]  ;;  %v2073_v9 = vld [vmem:[%s5407_s22 + $0x38c8] sm:$0xff]  ;;  %v6371_v10 = vpack.c.bf16 %v252_v63, %v252_v63  ;;  %v2067_v11 = vld [vmem:[%s5407_s22 + $0x3898] sm:$0xff] }
 0x218   : > { %3649 = vmatpush1.bf16.msra.mxu0 %v3152_v18  ;;  %v2000_v18 = vld [vmem:[%s5407_s22 + $0x3680] sm:$0xff]  ;;  %v2121_v58 = vld [vmem:[%s5407_s22 + $0x3a48] sm:$0xff] }
 0x219   : > { %3977 = vmatpush1.bf16.msra.mxu1 %v3154_v20  ;;  %3650 = vmatprep.subr.bf16.mxu0 %v3161_v21  ;;  %v2008_v20 = vld [vmem:[%s5407_s22 + $0x36c0] sm:$0xff]  ;;  %v2002_v21 = vld [vmem:[%s5407_s22 + $0x3690] sm:$0xff] }
 0x21a   : > { %3978 = vmatprep.subr.bf16.mxu1 %v3163_v28  ;;  %v2025_v28 = vld [vmem:[%s5407_s22 + $0x3748] sm:$0xff]  ;;  %v3192_v32 = vpack.c.bf16 %v2008_v20, %v2000_v18  ;;  %v3194_v33 = vpack.c.bf16 %v2010_v25, %v2002_v21  ;;  %v2064_v18 = vld [vmem:[%s5407_s22 + $0x3880] sm:$0xff]  ;;  %v2066_v21 = vld [vmem:[%s5407_s22 + $0x3890] sm:$0xff] }
 0x21b   : > { %v3201_v34 = vpack.c.bf16 %v2025_v28, %v2017_v26  ;;  %v2072_v20 = vld [vmem:[%s5407_s22 + $0x38c0] sm:$0xff]  ;;  %v2074_v25 = vld [vmem:[%s5407_s22 + $0x38d0] sm:$0xff]  ;;  %v2081_v26 = vld [vmem:[%s5407_s22 + $0x3908] sm:$0xff] }
 0x21c   : > { %3651 = vmatpush1.bf16.msra.mxu0 %v3160_v35  ;;  %v2016_v35 = vld [vmem:[%s5407_s22 + $0x3700] sm:$0xff]  ;;  %v2089_v28 = vld [vmem:[%s5407_s22 + $0x3948] sm:$0xff] }
 0x21d   : > { %3979 = vmatpush1.bf16.msra.mxu1 %v3162_v36  ;;  %3652 = vmatprep.subr.bf16.mxu0 %v3169_v37  ;;  %v2024_v36 = vld [vmem:[%s5407_s22 + $0x3740] sm:$0xff]  ;;  %v2018_v37 = vld [vmem:[%s5407_s22 + $0x3710] sm:$0xff] }
 0x21e   : > { %3980 = vmatprep.subr.bf16.mxu1 %v3171_v43  ;;  %v2041_v43 = vld [vmem:[%s5407_s22 + $0x37c8] sm:$0xff]  ;;  %v3200_v48 = vpack.c.bf16 %v2024_v36, %v2016_v35  ;;  %v3202_v49 = vpack.c.bf16 %v2026_v40, %v2018_v37  ;;  %v3233_v35 = vpack.c.bf16 %v2089_v28, %v2081_v26  ;;  %v2080_v36 = vld [vmem:[%s5407_s22 + $0x3900] sm:$0xff]  ;;  %v2147_v28 = vld [vmem:[%s5407_s22 + $0x3b18] sm:$0xff] }
 0x21f   : > { %v3209_v50 = vpack.c.bf16 %v2041_v43, %v2033_v41  ;;  %v2088_v37 = vld [vmem:[%s5407_s22 + $0x3940] sm:$0xff]  ;;  %v2090_v41 = vld [vmem:[%s5407_s22 + $0x3950] sm:$0xff]  ;;  %v2097_v43 = vld [vmem:[%s5407_s22 + $0x3988] sm:$0xff] }
 0x220   : > { %3653 = vmatpush1.bf16.msra.mxu0 %v3168_v51  ;;  %v2032_v51 = vld [vmem:[%s5407_s22 + $0x3780] sm:$0xff]  ;;  %v2153_v26 = vld [vmem:[%s5407_s22 + $0x3b48] sm:$0xff] }
 0x221   : > { %3981 = vmatpush1.bf16.msra.mxu1 %v3170_v52  ;;  %3654 = vmatprep.subr.bf16.mxu0 %v3177_v53  ;;  %v2040_v52 = vld [vmem:[%s5407_s22 + $0x37c0] sm:$0xff]  ;;  %v2034_v53 = vld [vmem:[%s5407_s22 + $0x3790] sm:$0xff] }
 0x222   : > { %3982 = vmatprep.subr.bf16.mxu1 %v3179_v57  ;;  %v2057_v57 = vld [vmem:[%s5407_s22 + $0x3848] sm:$0xff]  ;;  %v3208_v62 = vpack.c.bf16 %v2040_v52, %v2032_v51  ;;  %v3210_v0 = vpack.c.bf16 %v2042_v55, %v2034_v53  ;;  %v3241_v51 = vpack.c.bf16 %v2105_v45, %v2097_v43  ;;  %v2096_v52 = vld [vmem:[%s5407_s22 + $0x3980] sm:$0xff]  ;;  %v2163_v45 = vld [vmem:[%s5407_s22 + $0x3b98] sm:$0xff] }
 0x223   : > { %v2104_v53 = vld [vmem:[%s5407_s22 + $0x39c0] sm:$0xff]  ;;  %v2169_v43 = vld [vmem:[%s5407_s22 + $0x3bc8] sm:$0xff] }
 0x224   : > { %3655 = vmatpush1.bf16.msra.mxu0 %v3176_v1  ;;  %v3217_v1 = vpack.c.bf16 %v2057_v57, %v2049_v56  ;;  %v2106_v56 = vld [vmem:[%s5407_s22 + $0x39d0] sm:$0xff]  ;;  %v2113_v57 = vld [vmem:[%s5407_s22 + $0x3a08] sm:$0xff]  ;;  %v3240_v63 = vpack.c.bf16 %v2104_v53, %v2096_v52  ;;  %v2168_v52 = vld [vmem:[%s5407_s22 + $0x3bc0] sm:$0xff] }
 0x225   : > { %3983 = vmatpush1.bf16.msra.mxu1 %v3178_v2  ;;  %3656 = vmatprep.subr.bf16.mxu0 %v3185_v3  ;;  %v2048_v2 = vld [vmem:[%s5407_s22 + $0x3800] sm:$0xff]  ;;  %v2162_v53 = vld [vmem:[%s5407_s22 + $0x3b90] sm:$0xff] }
 0x226   : > { %3984 = vmatprep.subr.bf16.mxu1 %v3187_v7  ;;  %v2056_v3 = vld [vmem:[%s5407_s22 + $0x3840] sm:$0xff]  ;;  %v2065_v7 = vld [vmem:[%s5407_s22 + $0x3888] sm:$0xff] }
 0x228   : > { %3657 = vmatpush1.bf16.msra.mxu0 %v3184_v14  ;;  %v3216_v14 = vpack.c.bf16 %v2056_v3, %v2048_v2  ;;  %v2112_v2 = vld [vmem:[%s5407_s22 + $0x3a00] sm:$0xff] }
 0x229   : > { %3985 = vmatpush1.bf16.msra.mxu1 %v3186_v16  ;;  %3658 = vmatprep.subr.bf16.mxu0 %v3193_v17  ;;  %v3218_v16 = vpack.c.bf16 %v2058_v6, %v2050_v4  ;;  %v3225_v17 = vpack.c.bf16 %v2073_v9, %v2065_v7  ;;  %v2120_v3 = vld [vmem:[%s5407_s22 + $0x3a40] sm:$0xff]  ;;  %v2114_v4 = vld [vmem:[%s5407_s22 + $0x3a10] sm:$0xff]  ;;  %v2129_v7 = vld [vmem:[%s5407_s22 + $0x3a88] sm:$0xff] }
 0x22a   : > { %3986 = vmatprep.subr.bf16.mxu1 %v3195_v23  ;;  %v3227_v23 = vpack.c.bf16 %v2075_v12, %v2067_v11  ;;  %v2122_v6 = vld [vmem:[%s5407_s22 + $0x3a50] sm:$0xff]  ;;  %v2137_v9 = vld [vmem:[%s5407_s22 + $0x3ac8] sm:$0xff]  ;;  %v2131_v11 = vld [vmem:[%s5407_s22 + $0x3a98] sm:$0xff]  ;;  %v3248_v13 = vpack.c.bf16 %v2120_v3, %v2112_v2 }
 0x22b   : > { %v2139_v12 = vld [vmem:[%s5407_s22 + $0x3ad8] sm:$0xff]  ;;  %v2184_v2 = vld [vmem:[%s5407_s22 + $0x3c40] sm:$0xff]  ;;  %v2178_v3 = vld [vmem:[%s5407_s22 + $0x3c10] sm:$0xff] }
 0x22c   : > { %3659 = vmatpush1.bf16.msra.mxu0 %v3192_v32  ;;  %v2091_v32 = vld [vmem:[%s5407_s22 + $0x3958] sm:$0xff] }
 0x22d   : > { %3987 = vmatpush1.bf16.msra.mxu1 %v3194_v33  ;;  %3660 = vmatprep.subr.bf16.mxu0 %v3201_v34  ;;  %v3224_v33 = vpack.c.bf16 %v2072_v20, %v2064_v18  ;;  %v3226_v34 = vpack.c.bf16 %v2074_v25, %v2066_v21  ;;  %v3235_v40 = vpack.c.bf16 %v2091_v32, %v2083_v31  ;;  %v2136_v18 = vld [vmem:[%s5407_s22 + $0x3ac0] sm:$0xff]  ;;  %v2130_v20 = vld [vmem:[%s5407_s22 + $0x3a90] sm:$0xff]  ;;  %v2145_v25 = vld [vmem:[%s5407_s22 + $0x3b08] sm:$0xff] }
 0x22e   : > { %3988 = vmatprep.subr.bf16.mxu1 %v3203_v38  ;;  %v2082_v38 = vld [vmem:[%s5407_s22 + $0x3910] sm:$0xff]  ;;  %v3259_v21 = vpack.c.bf16 %v2139_v12, %v2131_v11  ;;  %v2155_v31 = vld [vmem:[%s5407_s22 + $0x3b58] sm:$0xff] }
 0x22f   : > { %v2203_v11 = vld [vmem:[%s5407_s22 + $0x3cd8] sm:$0xff] }
 0x230   : > { %3661 = vmatpush1.bf16.msra.mxu0 %v3200_v48  ;;  %v2107_v48 = vld [vmem:[%s5407_s22 + $0x39d8] sm:$0xff] }
 0x231   : > { %3989 = vmatpush1.bf16.msra.mxu1 %v3202_v49  ;;  %3662 = vmatprep.subr.bf16.mxu0 %v3209_v50  ;;  %v3232_v49 = vpack.c.bf16 %v2088_v37, %v2080_v36  ;;  %v3234_v50 = vpack.c.bf16 %v2090_v41, %v2082_v38  ;;  %v3243_v55 = vpack.c.bf16 %v2107_v48, %v2099_v46  ;;  %v2152_v36 = vld [vmem:[%s5407_s22 + $0x3b40] sm:$0xff]  ;;  %v2146_v37 = vld [vmem:[%s5407_s22 + $0x3b10] sm:$0xff]  ;;  %v2161_v41 = vld [vmem:[%s5407_s22 + $0x3b88] sm:$0xff] }
 0x232   : > { %3990 = vmatprep.subr.bf16.mxu1 %v3211_v54  ;;  %v2098_v54 = vld [vmem:[%s5407_s22 + $0x3990] sm:$0xff]  ;;  %v3267_v38 = vpack.c.bf16 %v2155_v31, %v2147_v28  ;;  %v2171_v46 = vld [vmem:[%s5407_s22 + $0x3bd8] sm:$0xff] }
 0x233   : > { %v2219_v28 = vld [vmem:[%s5407_s22 + $0x3d58] sm:$0xff] }
 0x234   : > { %3663 = vmatpush1.bf16.msra.mxu0 %v3208_v62  ;;  %v2123_v62 = vld [vmem:[%s5407_s22 + $0x3a58] sm:$0xff] }
 0x235   : > { %3991 = vmatpush1.bf16.msra.mxu1 %v3210_v0  ;;  %3673 = vmatprep.subr.bf16.mxu0 %v3217_v1  ;;  %v3242_v0 = vpack.c.bf16 %v2106_v56, %v2098_v54  ;;  %v3249_v1 = vpack.c.bf16 %v2121_v58, %v2113_v57  ;;  %v3275_v54 = vpack.c.bf16 %v2171_v46, %v2163_v45  ;;  %v2177_v56 = vld [vmem:[%s5407_s22 + $0x3c08] sm:$0xff]  ;;  %v2179_v58 = vld [vmem:[%s5407_s22 + $0x3c18] sm:$0xff] }
 0x236   : > { %4001 = vmatprep.subr.bf16.mxu1 %v3219_v5  ;;  %v3251_v5 = vpack.c.bf16 %v2123_v62, %v2115_v60  ;;  %v2185_v57 = vld [vmem:[%s5407_s22 + $0x3c48] sm:$0xff]  ;;  %v2187_v60 = vld [vmem:[%s5407_s22 + $0x3c58] sm:$0xff] }
 0x237   : > { %3665 = vmatmul.mubr.bf16.vlgmr.msra.gmra.mrb[0].mxu0 %v6371_v10  ;;  %v2235_v45 = vld [vmem:[%s5407_s22 + $0x3dd8] sm:$0xff] }
 0x238   : > { %3674 = vmatpush1.bf16.msra.mxu0 %v3216_v14  ;;  %3993 = vmatmul.mubr.bf16.vlgmr.msra.gmra.mrb[0].mxu1 %v6371_v10  ;;  %v3250_v14 = vpack.c.bf16 %v2122_v6, %v2114_v4  ;;  %v3283_v4 = vpack.c.bf16 %v2187_v60, %v2179_v58  ;;  %v2193_v6 = vld [vmem:[%s5407_s22 + $0x3c88] sm:$0xff]  ;;  %v2251_v58 = vld [vmem:[%s5407_s22 + $0x3e58] sm:$0xff] }
 0x239   : > { %4002 = vmatpush1.bf16.msra.mxu1 %v3218_v16  ;;  %3675 = vmatprep.subr.bf16.mxu0 %v3225_v17  ;;  %v3257_v16 = vpack.c.bf16 %v2137_v9, %v2129_v7  ;;  %v2128_v17 = vld [vmem:[%s5407_s22 + $0x3a80] sm:$0xff]  ;;  %v2201_v7 = vld [vmem:[%s5407_s22 + $0x3cc8] sm:$0xff]  ;;  %v2195_v9 = vld [vmem:[%s5407_s22 + $0x3c98] sm:$0xff] }
 0x23a   : > { %4003 = vmatprep.subr.bf16.mxu1 %v3227_v23  ;;  %3705 = vmatprep.mubr.bf16.mxu0 %v6381_v29  ;;  %v2138_v23 = vld [vmem:[%s5407_s22 + $0x3ad0] sm:$0xff]  ;;  %v3256_v32 = vpack.c.bf16 %v2136_v18, %v2128_v17  ;;  %v2200_v17 = vld [vmem:[%s5407_s22 + $0x3cc0] sm:$0xff] }
 0x23b   : > { %4033 = vmatprep.mubr.bf16.mxu1 %v6381_v29  ;;  %v2194_v18 = vld [vmem:[%s5407_s22 + $0x3c90] sm:$0xff] }
 0x23c   : > { %3676 = vmatpush1.bf16.msra.mxu0 %v3224_v33  ;;  %v3258_v33 = vpack.c.bf16 %v2138_v23, %v2130_v20  ;;  %v3291_v20 = vpack.c.bf16 %v2203_v11, %v2195_v9  ;;  %v2209_v23 = vld [vmem:[%s5407_s22 + $0x3d08] sm:$0xff]  ;;  %v2267_v9 = vld [vmem:[%s5407_s22 + $0x3ed8] sm:$0xff] }
 0x23d   : > { %4004 = vmatpush1.bf16.msra.mxu1 %v3226_v34  ;;  %3677 = vmatprep.subr.bf16.mxu0 %v3233_v35  ;;  %v3265_v34 = vpack.c.bf16 %v2153_v26, %v2145_v25  ;;  %v2144_v35 = vld [vmem:[%s5407_s22 + $0x3b00] sm:$0xff]  ;;  %v2217_v25 = vld [vmem:[%s5407_s22 + $0x3d48] sm:$0xff]  ;;  %v2211_v26 = vld [vmem:[%s5407_s22 + $0x3d18] sm:$0xff] }
 0x23e   : > { %4005 = vmatprep.subr.bf16.mxu1 %v3235_v40  ;;  %v2154_v40 = vld [vmem:[%s5407_s22 + $0x3b50] sm:$0xff]  ;;  %v3264_v48 = vpack.c.bf16 %v2152_v36, %v2144_v35  ;;  %v2216_v35 = vld [vmem:[%s5407_s22 + $0x3d40] sm:$0xff] }
 0x23f   : > { %v2210_v36 = vld [vmem:[%s5407_s22 + $0x3d10] sm:$0xff] }
 0x240   : > { %3678 = vmatpush1.bf16.msra.mxu0 %v3232_v49  ;;  %v3266_v49 = vpack.c.bf16 %v2154_v40, %v2146_v37  ;;  %v3299_v37 = vpack.c.bf16 %v2219_v28, %v2211_v26  ;;  %v2225_v40 = vld [vmem:[%s5407_s22 + $0x3d88] sm:$0xff]  ;;  %v2283_v26 = vld [vmem:[%s5407_s22 + $0x3f58] sm:$0xff] }
 0x241   : > { %4006 = vmatpush1.bf16.msra.mxu1 %v3234_v50  ;;  %3679 = vmatprep.subr.bf16.mxu0 %v3241_v51  ;;  %v3273_v50 = vpack.c.bf16 %v2169_v43, %v2161_v41  ;;  %v2160_v51 = vld [vmem:[%s5407_s22 + $0x3b80] sm:$0xff]  ;;  %v2233_v41 = vld [vmem:[%s5407_s22 + $0x3dc8] sm:$0xff]  ;;  %v2227_v43 = vld [vmem:[%s5407_s22 + $0x3d98] sm:$0xff] }
 0x242   : > { %4007 = vmatprep.subr.bf16.mxu1 %v3243_v55  ;;  %v2170_v55 = vld [vmem:[%s5407_s22 + $0x3bd0] sm:$0xff]  ;;  %v3272_v62 = vpack.c.bf16 %v2168_v52, %v2160_v51  ;;  %v2232_v51 = vld [vmem:[%s5407_s22 + $0x3dc0] sm:$0xff] }
 0x243   : > { %v2226_v52 = vld [vmem:[%s5407_s22 + $0x3d90] sm:$0xff] }
 0x244   : > { %3680 = vmatpush1.bf16.msra.mxu0 %v3240_v63  ;;  %v3274_v63 = vpack.c.bf16 %v2170_v55, %v2162_v53  ;;  %v3307_v53 = vpack.c.bf16 %v2235_v45, %v2227_v43  ;;  %v2241_v55 = vld [vmem:[%s5407_s22 + $0x3e08] sm:$0xff]  ;;  %v2299_v43 = vld [vmem:[%s5407_s22 + $0x3fd8] sm:$0xff] }
 0x245   : > { %4008 = vmatpush1.bf16.msra.mxu1 %v3242_v0  ;;  %3681 = vmatprep.subr.bf16.mxu0 %v3249_v1  ;;  %v3281_v0 = vpack.c.bf16 %v2185_v57, %v2177_v56  ;;  %v2176_v1 = vld [vmem:[%s5407_s22 + $0x3c00] sm:$0xff]  ;;  %v2249_v56 = vld [vmem:[%s5407_s22 + $0x3e48] sm:$0xff]  ;;  %v2243_v57 = vld [vmem:[%s5407_s22 + $0x3e18] sm:$0xff] }
 0x246   : > { %4009 = vmatprep.subr.bf16.mxu1 %v3251_v5  ;;  %v2186_v5 = vld [vmem:[%s5407_s22 + $0x3c50] sm:$0xff]  ;;  %v3280_v12 = vpack.c.bf16 %v2184_v2, %v2176_v1  ;;  %v2248_v1 = vld [vmem:[%s5407_s22 + $0x3e40] sm:$0xff] }
 0x247   : > { %v2242_v2 = vld [vmem:[%s5407_s22 + $0x3e10] sm:$0xff] }
 0x248   : > { %3682 = vmatpush1.bf16.msra.mxu0 %v3248_v13  ;;  %v3282_v13 = vpack.c.bf16 %v2186_v5, %v2178_v3  ;;  %v3315_v3 = vpack.c.bf16 %v2251_v58, %v2243_v57  ;;  %v2257_v5 = vld [vmem:[%s5407_s22 + $0x3e88] sm:$0xff]  ;;  %v271_v57 = vld [vmem:[%s5407_s22 + $0x78] sm:$0xff] }
 0x249   : > { %4010 = vmatpush1.bf16.msra.mxu1 %v3250_v14  ;;  %3683 = vmatprep.subr.bf16.mxu0 %v3257_v16  ;;  %v3289_v14 = vpack.c.bf16 %v2201_v7, %v2193_v6  ;;  %v2192_v16 = vld [vmem:[%s5407_s22 + $0x3c80] sm:$0xff]  ;;  %v2265_v6 = vld [vmem:[%s5407_s22 + $0x3ec8] sm:$0xff]  ;;  %v2259_v7 = vld [vmem:[%s5407_s22 + $0x3e98] sm:$0xff] }
 0x24a   : > { %4011 = vmatprep.subr.bf16.mxu1 %v3259_v21  ;;  %v2202_v21 = vld [vmem:[%s5407_s22 + $0x3cd0] sm:$0xff]  ;;  %v3288_v31 = vpack.c.bf16 %v2200_v17, %v2192_v16  ;;  %v2264_v16 = vld [vmem:[%s5407_s22 + $0x3ec0] sm:$0xff] }
 0x24b   : > { %v2258_v17 = vld [vmem:[%s5407_s22 + $0x3e90] sm:$0xff] }
 0x24c   : > { %3684 = vmatpush1.bf16.msra.mxu0 %v3256_v32  ;;  %v3290_v32 = vpack.c.bf16 %v2202_v21, %v2194_v18  ;;  %v3323_v18 = vpack.c.bf16 %v2267_v9, %v2259_v7  ;;  %v2273_v21 = vld [vmem:[%s5407_s22 + $0x3f08] sm:$0xff]  ;;  %v279_v9 = vld [vmem:[%s5407_s22 + $0xb8] sm:$0xff] }
 0x24d   : > { %4012 = vmatpush1.bf16.msra.mxu1 %v3258_v33  ;;  %3685 = vmatprep.subr.bf16.mxu0 %v3265_v34  ;;  %v3297_v33 = vpack.c.bf16 %v2217_v25, %v2209_v23  ;;  %v2208_v34 = vld [vmem:[%s5407_s22 + $0x3d00] sm:$0xff]  ;;  %v2281_v23 = vld [vmem:[%s5407_s22 + $0x3f48] sm:$0xff]  ;;  %v2275_v25 = vld [vmem:[%s5407_s22 + $0x3f18] sm:$0xff] }
 0x24e   : > { %4013 = vmatprep.subr.bf16.mxu1 %v3267_v38  ;;  %v2218_v38 = vld [vmem:[%s5407_s22 + $0x3d50] sm:$0xff]  ;;  %v3296_v46 = vpack.c.bf16 %v2216_v35, %v2208_v34  ;;  %v2280_v34 = vld [vmem:[%s5407_s22 + $0x3f40] sm:$0xff] }
 0x24f   : > { %v2274_v35 = vld [vmem:[%s5407_s22 + $0x3f10] sm:$0xff] }
 0x250   : > { %3686 = vmatpush1.bf16.msra.mxu0 %v3264_v48  ;;  %v3298_v48 = vpack.c.bf16 %v2218_v38, %v2210_v36  ;;  %v3331_v36 = vpack.c.bf16 %v2283_v26, %v2275_v25  ;;  %v2289_v38 = vld [vmem:[%s5407_s22 + $0x3f88] sm:$0xff]  ;;  %v295_v26 = vld [vmem:[%s5407_s22 + $0x138] sm:$0xff] }
 0x251   : > { %4014 = vmatpush1.bf16.msra.mxu1 %v3266_v49  ;;  %3687 = vmatprep.subr.bf16.mxu0 %v3273_v50  ;;  %v3305_v49 = vpack.c.bf16 %v2233_v41, %v2225_v40  ;;  %v2224_v50 = vld [vmem:[%s5407_s22 + $0x3d80] sm:$0xff]  ;;  %v2297_v40 = vld [vmem:[%s5407_s22 + $0x3fc8] sm:$0xff]  ;;  %v2291_v41 = vld [vmem:[%s5407_s22 + $0x3f98] sm:$0xff] }
 0x252   : > { %4015 = vmatprep.subr.bf16.mxu1 %v3275_v54  ;;  %v2234_v54 = vld [vmem:[%s5407_s22 + $0x3dd0] sm:$0xff]  ;;  %v3304_v60 = vpack.c.bf16 %v2232_v51, %v2224_v50  ;;  %v2296_v50 = vld [vmem:[%s5407_s22 + $0x3fc0] sm:$0xff]  ;;  %v301_v25 = vld [vmem:[%s5407_s22 + $0x168] sm:$0xff] }
 0x253   : > { %v2290_v51 = vld [vmem:[%s5407_s22 + $0x3f90] sm:$0xff] }
 0x254   : > { %3688 = vmatpush1.bf16.msra.mxu0 %v3272_v62  ;;  %v3306_v62 = vpack.c.bf16 %v2234_v54, %v2226_v52  ;;  %v3339_v52 = vpack.c.bf16 %v2299_v43, %v2291_v41  ;;  %v261_v54 = vld [vmem:[%s5407_s22 + $0x28] sm:$0xff]  ;;  %v311_v43 = vld [vmem:[%s5407_s22 + $0x1b8] sm:$0xff] }
 0x255   : > { %4016 = vmatpush1.bf16.msra.mxu1 %v3274_v63  ;;  %3689 = vmatprep.subr.bf16.mxu0 %v3281_v0  ;;  %v3313_v63 = vpack.c.bf16 %v2249_v56, %v2241_v55  ;;  %v2240_v0 = vld [vmem:[%s5407_s22 + $0x3e00] sm:$0xff]  ;;  %v269_v55 = vld [vmem:[%s5407_s22 + $0x68] sm:$0xff]  ;;  %v263_v56 = vld [vmem:[%s5407_s22 + $0x38] sm:$0xff] }
 0x256   : > { %4017 = vmatprep.subr.bf16.mxu1 %v3283_v4  ;;  %v2250_v4 = vld [vmem:[%s5407_s22 + $0x3e50] sm:$0xff]  ;;  %v3312_v11 = vpack.c.bf16 %v2248_v1, %v2240_v0  ;;  %v260_v0 = vld [vmem:[%s5407_s22 + $0x20] sm:$0xff]  ;;  %v317_v41 = vld [vmem:[%s5407_s22 + $0x1e8] sm:$0xff] }
 0x257   : > { %v268_v1 = vld [vmem:[%s5407_s22 + $0x60] sm:$0xff] }
 0x258   : > { %3690 = vmatpush1.bf16.msra.mxu0 %v3280_v12  ;;  %v3314_v12 = vpack.c.bf16 %v2250_v4, %v2242_v2  ;;  %v262_v2 = vld [vmem:[%s5407_s22 + $0x30] sm:$0xff] }
 0x259   : > { %4018 = vmatpush1.bf16.msra.mxu1 %v3282_v13  ;;  %3691 = vmatprep.subr.bf16.mxu0 %v3289_v14  ;;  %v3321_v13 = vpack.c.bf16 %v2265_v6, %v2257_v5  ;;  %v2256_v14 = vld [vmem:[%s5407_s22 + $0x3e80] sm:$0xff]  ;;  %v270_v4 = vld [vmem:[%s5407_s22 + $0x70] sm:$0xff]  ;;  %v277_v5 = vld [vmem:[%s5407_s22 + $0xa8] sm:$0xff] }
 0x25a   : > { %4019 = vmatprep.subr.bf16.mxu1 %v3291_v20  ;;  %v2266_v20 = vld [vmem:[%s5407_s22 + $0x3ed0] sm:$0xff]  ;;  %v3320_v28 = vpack.c.bf16 %v2264_v16, %v2256_v14  ;;  %v285_v6 = vld [vmem:[%s5407_s22 + $0xe8] sm:$0xff]  ;;  %v276_v16 = vld [vmem:[%s5407_s22 + $0xa0] sm:$0xff] }
 0x25b   : > { %v2333_v14 = vpack.c.bf16 %v285_v6, %v277_v5  ;;  %v349_v5 = vld [vmem:[%s5407_s22 + $0x2e8] sm:$0xff]  ;;  %v343_v6 = vld [vmem:[%s5407_s22 + $0x2b8] sm:$0xff] }
 0x25c   : > { %3692 = vmatpush1.bf16.msra.mxu0 %v3288_v31  ;;  %v3322_v31 = vpack.c.bf16 %v2266_v20, %v2258_v17  ;;  %v284_v17 = vld [vmem:[%s5407_s22 + $0xe0] sm:$0xff] }
 0x25d   : > { %4020 = vmatpush1.bf16.msra.mxu1 %v3290_v32  ;;  %3693 = vmatprep.subr.bf16.mxu0 %v3297_v33  ;;  %v3329_v32 = vpack.c.bf16 %v2281_v23, %v2273_v21  ;;  %v2272_v33 = vld [vmem:[%s5407_s22 + $0x3f00] sm:$0xff]  ;;  %v286_v21 = vld [vmem:[%s5407_s22 + $0xf0] sm:$0xff]  ;;  %v293_v23 = vld [vmem:[%s5407_s22 + $0x128] sm:$0xff] }
 0x25e   : > { %4021 = vmatprep.subr.bf16.mxu1 %v3299_v37  ;;  %v2282_v37 = vld [vmem:[%s5407_s22 + $0x3f50] sm:$0xff]  ;;  %v3328_v45 = vpack.c.bf16 %v2280_v34, %v2272_v33  ;;  %v2341_v33 = vpack.c.bf16 %v301_v25, %v293_v23  ;;  %v292_v34 = vld [vmem:[%s5407_s22 + $0x120] sm:$0xff]  ;;  %v365_v23 = vld [vmem:[%s5407_s22 + $0x368] sm:$0xff] }
 0x25f   : > { %v359_v25 = vld [vmem:[%s5407_s22 + $0x338] sm:$0xff] }
 0x260   : > { %3694 = vmatpush1.bf16.msra.mxu0 %v3296_v46  ;;  %v3330_v46 = vpack.c.bf16 %v2282_v37, %v2274_v35  ;;  %v300_v35 = vld [vmem:[%s5407_s22 + $0x160] sm:$0xff] }
 0x261   : > { %4022 = vmatpush1.bf16.msra.mxu1 %v3298_v48  ;;  %3695 = vmatprep.subr.bf16.mxu0 %v3305_v49  ;;  %v3337_v48 = vpack.c.bf16 %v2297_v40, %v2289_v38  ;;  %v2288_v49 = vld [vmem:[%s5407_s22 + $0x3f80] sm:$0xff]  ;;  %v302_v38 = vld [vmem:[%s5407_s22 + $0x170] sm:$0xff]  ;;  %v309_v40 = vld [vmem:[%s5407_s22 + $0x1a8] sm:$0xff] }
 0x262   : > { %4023 = vmatprep.subr.bf16.mxu1 %v3307_v53  ;;  %v2298_v53 = vld [vmem:[%s5407_s22 + $0x3fd0] sm:$0xff]  ;;  %v3336_v58 = vpack.c.bf16 %v2296_v50, %v2288_v49  ;;  %v2349_v49 = vpack.c.bf16 %v317_v41, %v309_v40  ;;  %v308_v50 = vld [vmem:[%s5407_s22 + $0x1a0] sm:$0xff]  ;;  %v381_v40 = vld [vmem:[%s5407_s22 + $0x3e8] sm:$0xff] }
 0x263   : > { %v375_v41 = vld [vmem:[%s5407_s22 + $0x3b8] sm:$0xff] }
 0x264   : > { %3696 = vmatpush1.bf16.msra.mxu0 %v3304_v60  ;;  %v254_v60 = vld [vmem:[#allocation2 + $0x70] sm:$0xff] }
 0x265   : > { %4024 = vmatpush1.bf16.msra.mxu1 %v3306_v62  ;;  %3697 = vmatprep.subr.bf16.mxu0 %v3313_v63  ;;  %v3338_v62 = vpack.c.bf16 %v2298_v53, %v2290_v51  ;;  %v2325_v63 = vpack.c.bf16 %v269_v55, %v261_v54  ;;  %v6507_v7 = vpack.c.bf16 %v254_v60, %v254_v60  ;;  %v316_v51 = vld [vmem:[%s5407_s22 + $0x1e0] sm:$0xff]  ;;  %v318_v54 = vld [vmem:[%s5407_s22 + $0x1f0] sm:$0xff]  ;;  %v325_v55 = vld [vmem:[%s5407_s22 + $0x228] sm:$0xff] }
 0x266   : > { %4025 = vmatprep.subr.bf16.mxu1 %v3315_v3  ;;  %v2327_v3 = vpack.c.bf16 %v271_v57, %v263_v56  ;;  %v327_v56 = vld [vmem:[%s5407_s22 + $0x238] sm:$0xff] }
 0x267   : > { %v335_v57 = vld [vmem:[%s5407_s22 + $0x278] sm:$0xff] }
 0x268   : > { %3698 = vmatpush1.bf16.msra.mxu0 %v3312_v11  ;;  %v287_v11 = vld [vmem:[%s5407_s22 + $0xf8] sm:$0xff] }
 0x269   : > { %4026 = vmatpush1.bf16.msra.mxu1 %v3314_v12  ;;  %3699 = vmatprep.subr.bf16.mxu0 %v3321_v13  ;;  %v2324_v12 = vpack.c.bf16 %v268_v1, %v260_v0  ;;  %v2326_v13 = vpack.c.bf16 %v270_v4, %v262_v2  ;;  %v2335_v20 = vpack.c.bf16 %v287_v11, %v279_v9  ;;  %v332_v0 = vld [vmem:[%s5407_s22 + $0x260] sm:$0xff]  ;;  %v326_v1 = vld [vmem:[%s5407_s22 + $0x230] sm:$0xff]  ;;  %v341_v4 = vld [vmem:[%s5407_s22 + $0x2a8] sm:$0xff] }
 0x26a   : > { %4027 = vmatprep.subr.bf16.mxu1 %v3323_v18  ;;  %v278_v18 = vld [vmem:[%s5407_s22 + $0xb0] sm:$0xff]  ;;  %v2359_v2 = vpack.c.bf16 %v335_v57, %v327_v56  ;;  %v351_v9 = vld [vmem:[%s5407_s22 + $0x2f8] sm:$0xff] }
 0x26b   : > { %v399_v56 = vld [vmem:[%s5407_s22 + $0x478] sm:$0xff] }
 0x26c   : > { %3700 = vmatpush1.bf16.msra.mxu0 %v3320_v28  ;;  %v303_v28 = vld [vmem:[%s5407_s22 + $0x178] sm:$0xff] }
 0x26d   : > { %4028 = vmatpush1.bf16.msra.mxu1 %v3322_v31  ;;  %3701 = vmatprep.subr.bf16.mxu0 %v3329_v32  ;;  %v2332_v31 = vpack.c.bf16 %v284_v17, %v276_v16  ;;  %v2334_v32 = vpack.c.bf16 %v286_v21, %v278_v18  ;;  %v2343_v37 = vpack.c.bf16 %v303_v28, %v295_v26  ;;  %v348_v16 = vld [vmem:[%s5407_s22 + $0x2e0] sm:$0xff]  ;;  %v342_v17 = vld [vmem:[%s5407_s22 + $0x2b0] sm:$0xff]  ;;  %v357_v21 = vld [vmem:[%s5407_s22 + $0x328] sm:$0xff] }
 0x26e   : > { %4029 = vmatprep.subr.bf16.mxu1 %v3331_v36  ;;  %v294_v36 = vld [vmem:[%s5407_s22 + $0x130] sm:$0xff]  ;;  %v2367_v18 = vpack.c.bf16 %v351_v9, %v343_v6  ;;  %v367_v26 = vld [vmem:[%s5407_s22 + $0x378] sm:$0xff] }
 0x26f   : > { %v415_v6 = vld [vmem:[%s5407_s22 + $0x4f8] sm:$0xff] }
 0x270   : > { %3702 = vmatpush1.bf16.msra.mxu0 %v3328_v45  ;;  %v319_v45 = vld [vmem:[%s5407_s22 + $0x1f8] sm:$0xff] }
 0x271   : > { %4030 = vmatpush1.bf16.msra.mxu1 %v3330_v46  ;;  %3703 = vmatprep.subr.bf16.mxu0 %v3337_v48  ;;  %v2340_v46 = vpack.c.bf16 %v300_v35, %v292_v34  ;;  %v2342_v48 = vpack.c.bf16 %v302_v38, %v294_v36  ;;  %v2351_v53 = vpack.c.bf16 %v319_v45, %v311_v43  ;;  %v364_v34 = vld [vmem:[%s5407_s22 + $0x360] sm:$0xff]  ;;  %v358_v35 = vld [vmem:[%s5407_s22 + $0x330] sm:$0xff]  ;;  %v373_v38 = vld [vmem:[%s5407_s22 + $0x3a8] sm:$0xff] }
 0x272   : > { %4031 = vmatprep.subr.bf16.mxu1 %v3339_v52  ;;  %v310_v52 = vld [vmem:[%s5407_s22 + $0x1b0] sm:$0xff]  ;;  %v2375_v36 = vpack.c.bf16 %v367_v26, %v359_v25  ;;  %v383_v43 = vld [vmem:[%s5407_s22 + $0x3f8] sm:$0xff] }
 0x273   : > { %v2350_v60 = vpack.c.bf16 %v318_v54, %v310_v52  ;;  %v2383_v52 = vpack.c.bf16 %v383_v43, %v375_v41  ;;  %v389_v54 = vld [vmem:[%s5407_s22 + $0x428] sm:$0xff]  ;;  %v431_v25 = vld [vmem:[%s5407_s22 + $0x578] sm:$0xff] }
 0x274   : > { %3704 = vmatpush1.bf16.msra.mxu0 %v3336_v58  ;;  %v2348_v58 = vpack.c.bf16 %v316_v51, %v308_v50  ;;  %v380_v50 = vld [vmem:[%s5407_s22 + $0x3e0] sm:$0xff]  ;;  %v374_v51 = vld [vmem:[%s5407_s22 + $0x3b0] sm:$0xff]  ;;  %v447_v41 = vld [vmem:[%s5407_s22 + $0x5f8] sm:$0xff] }
 0x275   : > { %4032 = vmatpush1.bf16.msra.mxu1 %v3338_v62  ;;  %4042 = vmatprep.subr.bf16.mxu0 %v2325_v63  ;;  %v324_v63 = vld [vmem:[%s5407_s22 + $0x220] sm:$0xff] }
 0x276   : > { %4370 = vmatprep.subr.bf16.mxu1 %v2327_v3  ;;  %v334_v3 = vld [vmem:[%s5407_s22 + $0x270] sm:$0xff]  ;;  %v2356_v11 = vpack.c.bf16 %v332_v0, %v324_v63  ;;  %v396_v63 = vld [vmem:[%s5407_s22 + $0x460] sm:$0xff] }
 0x277   : > { %3706 = vmatmul.mubr.bf16.vlgmr.msra.gmra.mrb[0].mxu0 %v6507_v7  ;;  %v390_v0 = vld [vmem:[%s5407_s22 + $0x430] sm:$0xff] }
 0x278   : > { %4034 = vmatmul.mubr.bf16.vlgmr.msra.gmra.mrb[0].mxu1 %v6507_v7  ;;  %4043 = vmatpush1.bf16.msra.mxu0 %v2324_v12  ;;  %v2358_v12 = vpack.c.bf16 %v334_v3, %v326_v1  ;;  %v405_v3 = vld [vmem:[%s5407_s22 + $0x4a8] sm:$0xff] }
 0x279   : > { %4371 = vmatpush1.bf16.msra.mxu1 %v2326_v13  ;;  %4044 = vmatprep.subr.bf16.mxu0 %v2333_v14  ;;  %v2365_v13 = vpack.c.bf16 %v349_v5, %v341_v4  ;;  %v340_v14 = vld [vmem:[%s5407_s22 + $0x2a0] sm:$0xff]  ;;  %v413_v4 = vld [vmem:[%s5407_s22 + $0x4e8] sm:$0xff]  ;;  %v407_v5 = vld [vmem:[%s5407_s22 + $0x4b8] sm:$0xff] }
 0x27a   : > { %4372 = vmatprep.subr.bf16.mxu1 %v2335_v20  ;;  %4074 = vmatprep.mubr.bf16.mxu0 %v5513_v19  ;;  %v350_v20 = vld [vmem:[%s5407_s22 + $0x2f0] sm:$0xff]  ;;  %v2364_v28 = vpack.c.bf16 %v348_v16, %v340_v14  ;;  %v412_v14 = vld [vmem:[%s5407_s22 + $0x4e0] sm:$0xff] }
 0x27b   : > { %4402 = vmatprep.mubr.bf16.mxu1 %v5513_v19  ;;  %v333_v19 = vld [vmem:[%s5407_s22 + $0x268] sm:$0xff]  ;;  %v406_v16 = vld [vmem:[%s5407_s22 + $0x4b0] sm:$0xff] }
 0x27c   : > { %4045 = vmatpush1.bf16.msra.mxu0 %v2332_v31  ;;  %v2357_v62 = vpack.c.bf16 %v333_v19, %v325_v55  ;;  %v2366_v31 = vpack.c.bf16 %v350_v20, %v342_v17  ;;  %v397_v55 = vld [vmem:[%s5407_s22 + $0x468] sm:$0xff]  ;;  %v391_v19 = vld [vmem:[%s5407_s22 + $0x438] sm:$0xff]  ;;  %v2399_v17 = vpack.c.bf16 %v415_v6, %v407_v5 }
 0x27d   : > { %4373 = vmatpush1.bf16.msra.mxu1 %v2334_v32  ;;  %4046 = vmatprep.subr.bf16.mxu0 %v2341_v33  ;;  %v2373_v32 = vpack.c.bf16 %v365_v23, %v357_v21  ;;  %v356_v33 = vld [vmem:[%s5407_s22 + $0x320] sm:$0xff]  ;;  %v2391_v1 = vpack.c.bf16 %v399_v56, %v391_v19  ;;  %v421_v20 = vld [vmem:[%s5407_s22 + $0x528] sm:$0xff]  ;;  %v423_v23 = vld [vmem:[%s5407_s22 + $0x538] sm:$0xff] }
 0x27e   : > { %4374 = vmatprep.subr.bf16.mxu1 %v2343_v37  ;;  %v366_v37 = vld [vmem:[%s5407_s22 + $0x370] sm:$0xff]  ;;  %v2372_v45 = vpack.c.bf16 %v364_v34, %v356_v33  ;;  %v429_v21 = vld [vmem:[%s5407_s22 + $0x568] sm:$0xff]  ;;  %v428_v33 = vld [vmem:[%s5407_s22 + $0x560] sm:$0xff] }
 0x27f   : > { %v422_v34 = vld [vmem:[%s5407_s22 + $0x530] sm:$0xff]  ;;  %v463_v19 = vld [vmem:[%s5407_s22 + $0x678] sm:$0xff] }
 0x280   : > { %4047 = vmatpush1.bf16.msra.mxu0 %v2340_v46  ;;  %v2374_v46 = vpack.c.bf16 %v366_v37, %v358_v35  ;;  %v2407_v35 = vpack.c.bf16 %v431_v25, %v423_v23  ;;  %v437_v37 = vld [vmem:[%s5407_s22 + $0x5a8] sm:$0xff]  ;;  %v479_v5 = vld [vmem:[%s5407_s22 + $0x6f8] sm:$0xff] }
 0x281   : > { %4375 = vmatpush1.bf16.msra.mxu1 %v2342_v48  ;;  %4048 = vmatprep.subr.bf16.mxu0 %v2349_v49  ;;  %v2381_v48 = vpack.c.bf16 %v381_v40, %v373_v38  ;;  %v372_v49 = vld [vmem:[%s5407_s22 + $0x3a0] sm:$0xff]  ;;  %v445_v38 = vld [vmem:[%s5407_s22 + $0x5e8] sm:$0xff]  ;;  %v439_v40 = vld [vmem:[%s5407_s22 + $0x5b8] sm:$0xff] }
 0x282   : > { %4376 = vmatprep.subr.bf16.mxu1 %v2351_v53  ;;  %v382_v53 = vld [vmem:[%s5407_s22 + $0x3f0] sm:$0xff]  ;;  %v2380_v57 = vpack.c.bf16 %v380_v50, %v372_v49  ;;  %v444_v49 = vld [vmem:[%s5407_s22 + $0x5e0] sm:$0xff]  ;;  %v495_v23 = vld [vmem:[%s5407_s22 + $0x778] sm:$0xff] }
 0x283   : > { %v438_v50 = vld [vmem:[%s5407_s22 + $0x5b0] sm:$0xff] }
 0x284   : > { %4049 = vmatpush1.bf16.msra.mxu0 %v2348_v58  ;;  %v2382_v58 = vpack.c.bf16 %v382_v53, %v374_v51  ;;  %v2415_v51 = vpack.c.bf16 %v447_v41, %v439_v40  ;;  %v453_v53 = vld [vmem:[%s5407_s22 + $0x628] sm:$0xff]  ;;  %v511_v40 = vld [vmem:[%s5407_s22 + $0x7f8] sm:$0xff] }
 0x285   : > { %4377 = vmatpush1.bf16.msra.mxu1 %v2350_v60  ;;  %4050 = vmatprep.subr.bf16.mxu0 %v2357_v62  ;;  %v2389_v60 = vpack.c.bf16 %v397_v55, %v389_v54  ;;  %v388_v62 = vld [vmem:[%s5407_s22 + $0x420] sm:$0xff]  ;;  %v461_v54 = vld [vmem:[%s5407_s22 + $0x668] sm:$0xff]  ;;  %v455_v55 = vld [vmem:[%s5407_s22 + $0x638] sm:$0xff] }
 0x286   : > { %4378 = vmatprep.subr.bf16.mxu1 %v2359_v2  ;;  %v398_v2 = vld [vmem:[%s5407_s22 + $0x470] sm:$0xff]  ;;  %v2388_v9 = vpack.c.bf16 %v396_v63, %v388_v62  ;;  %v460_v62 = vld [vmem:[%s5407_s22 + $0x660] sm:$0xff] }
 0x287   : > { %v454_v63 = vld [vmem:[%s5407_s22 + $0x630] sm:$0xff] }
 0x288   : > { %4051 = vmatpush1.bf16.msra.mxu0 %v2356_v11  ;;  %v2390_v11 = vpack.c.bf16 %v398_v2, %v390_v0  ;;  %v2423_v0 = vpack.c.bf16 %v463_v19, %v455_v55  ;;  %v469_v2 = vld [vmem:[%s5407_s22 + $0x6a8] sm:$0xff]  ;;  %v527_v55 = vld [vmem:[%s5407_s22 + $0x878] sm:$0xff] }
 0x289   : > { %4379 = vmatpush1.bf16.msra.mxu1 %v2358_v12  ;;  %4052 = vmatprep.subr.bf16.mxu0 %v2365_v13  ;;  %v2397_v12 = vpack.c.bf16 %v413_v4, %v405_v3  ;;  %v404_v13 = vld [vmem:[%s5407_s22 + $0x4a0] sm:$0xff]  ;;  %v477_v3 = vld [vmem:[%s5407_s22 + $0x6e8] sm:$0xff]  ;;  %v471_v4 = vld [vmem:[%s5407_s22 + $0x6b8] sm:$0xff] }
 0x28a   : > { %4380 = vmatprep.subr.bf16.mxu1 %v2367_v18  ;;  %v414_v18 = vld [vmem:[%s5407_s22 + $0x4f0] sm:$0xff]  ;;  %v2396_v26 = vpack.c.bf16 %v412_v14, %v404_v13  ;;  %v476_v13 = vld [vmem:[%s5407_s22 + $0x6e0] sm:$0xff] }
 0x28b   : > { %v470_v14 = vld [vmem:[%s5407_s22 + $0x6b0] sm:$0xff] }
 0x28c   : > { %4053 = vmatpush1.bf16.msra.mxu0 %v2364_v28  ;;  %v2398_v28 = vpack.c.bf16 %v414_v18, %v406_v16  ;;  %v2431_v16 = vpack.c.bf16 %v479_v5, %v471_v4  ;;  %v485_v18 = vld [vmem:[%s5407_s22 + $0x728] sm:$0xff]  ;;  %v543_v4 = vld [vmem:[%s5407_s22 + $0x8f8] sm:$0xff] }
 0x28d   : > { %4381 = vmatpush1.bf16.msra.mxu1 %v2366_v31  ;;  %4054 = vmatprep.subr.bf16.mxu0 %v2373_v32  ;;  %v2405_v31 = vpack.c.bf16 %v429_v21, %v421_v20  ;;  %v420_v32 = vld [vmem:[%s5407_s22 + $0x520] sm:$0xff]  ;;  %v493_v20 = vld [vmem:[%s5407_s22 + $0x768] sm:$0xff]  ;;  %v487_v21 = vld [vmem:[%s5407_s22 + $0x738] sm:$0xff] }
 0x28e   : > { %4382 = vmatprep.subr.bf16.mxu1 %v2375_v36  ;;  %v430_v36 = vld [vmem:[%s5407_s22 + $0x570] sm:$0xff]  ;;  %v2404_v43 = vpack.c.bf16 %v428_v33, %v420_v32  ;;  %v492_v32 = vld [vmem:[%s5407_s22 + $0x760] sm:$0xff] }
 0x28f   : > { %v486_v33 = vld [vmem:[%s5407_s22 + $0x730] sm:$0xff] }
 0x290   : > { %4055 = vmatpush1.bf16.msra.mxu0 %v2372_v45  ;;  %v2406_v45 = vpack.c.bf16 %v430_v36, %v422_v34  ;;  %v2439_v34 = vpack.c.bf16 %v495_v23, %v487_v21  ;;  %v501_v36 = vld [vmem:[%s5407_s22 + $0x7a8] sm:$0xff]  ;;  %v559_v21 = vld [vmem:[%s5407_s22 + $0x978] sm:$0xff] }
 0x291   : > { %4383 = vmatpush1.bf16.msra.mxu1 %v2374_v46  ;;  %4056 = vmatprep.subr.bf16.mxu0 %v2381_v48  ;;  %v2413_v46 = vpack.c.bf16 %v445_v38, %v437_v37  ;;  %v436_v48 = vld [vmem:[%s5407_s22 + $0x5a0] sm:$0xff]  ;;  %v509_v37 = vld [vmem:[%s5407_s22 + $0x7e8] sm:$0xff]  ;;  %v503_v38 = vld [vmem:[%s5407_s22 + $0x7b8] sm:$0xff] }
 0x292   : > { %4384 = vmatprep.subr.bf16.mxu1 %v2383_v52  ;;  %v446_v52 = vld [vmem:[%s5407_s22 + $0x5f0] sm:$0xff]  ;;  %v2412_v56 = vpack.c.bf16 %v444_v49, %v436_v48  ;;  %v508_v48 = vld [vmem:[%s5407_s22 + $0x7e0] sm:$0xff] }
 0x293   : > { %v502_v49 = vld [vmem:[%s5407_s22 + $0x7b0] sm:$0xff] }
 0x294   : > { %4057 = vmatpush1.bf16.msra.mxu0 %v2380_v57  ;;  %v2414_v57 = vpack.c.bf16 %v446_v52, %v438_v50  ;;  %v2447_v50 = vpack.c.bf16 %v511_v40, %v503_v38  ;;  %v517_v52 = vld [vmem:[%s5407_s22 + $0x828] sm:$0xff] }
 0x295   : > { %4385 = vmatpush1.bf16.msra.mxu1 %v2382_v58  ;;  %4058 = vmatprep.subr.bf16.mxu0 %v2389_v60  ;;  %v2421_v58 = vpack.c.bf16 %v461_v54, %v453_v53  ;;  %v452_v60 = vld [vmem:[%s5407_s22 + $0x620] sm:$0xff]  ;;  %v525_v53 = vld [vmem:[%s5407_s22 + $0x868] sm:$0xff]  ;;  %v519_v54 = vld [vmem:[%s5407_s22 + $0x838] sm:$0xff] }
 0x296   : > { %4386 = vmatprep.subr.bf16.mxu1 %v2391_v1  ;;  %v462_v1 = vld [vmem:[%s5407_s22 + $0x670] sm:$0xff]  ;;  %v2420_v6 = vpack.c.bf16 %v460_v62, %v452_v60  ;;  %v524_v60 = vld [vmem:[%s5407_s22 + $0x860] sm:$0xff] }
 0x297   : > { %v518_v62 = vld [vmem:[%s5407_s22 + $0x830] sm:$0xff] }
 0x298   : > { %4059 = vmatpush1.bf16.msra.mxu0 %v2388_v9  ;;  %v2422_v9 = vpack.c.bf16 %v462_v1, %v454_v63  ;;  %v2455_v63 = vpack.c.bf16 %v527_v55, %v519_v54  ;;  %v533_v1 = vld [vmem:[%s5407_s22 + $0x8a8] sm:$0xff] }
 0x299   : > { %4387 = vmatpush1.bf16.msra.mxu1 %v2390_v11  ;;  %4060 = vmatprep.subr.bf16.mxu0 %v2397_v12  ;;  %v2429_v11 = vpack.c.bf16 %v477_v3, %v469_v2  ;;  %v468_v12 = vld [vmem:[%s5407_s22 + $0x6a0] sm:$0xff]  ;;  %v541_v2 = vld [vmem:[%s5407_s22 + $0x8e8] sm:$0xff]  ;;  %v535_v3 = vld [vmem:[%s5407_s22 + $0x8b8] sm:$0xff] }
 0x29a   : > { %4388 = vmatprep.subr.bf16.mxu1 %v2399_v17  ;;  %v478_v17 = vld [vmem:[%s5407_s22 + $0x6f0] sm:$0xff]  ;;  %v2428_v25 = vpack.c.bf16 %v476_v13, %v468_v12  ;;  %v540_v12 = vld [vmem:[%s5407_s22 + $0x8e0] sm:$0xff] }
 0x29b   : > { %v534_v13 = vld [vmem:[%s5407_s22 + $0x8b0] sm:$0xff] }
 0x29c   : > { %4061 = vmatpush1.bf16.msra.mxu0 %v2396_v26  ;;  %v2430_v26 = vpack.c.bf16 %v478_v17, %v470_v14  ;;  %v2463_v14 = vpack.c.bf16 %v543_v4, %v535_v3  ;;  %v549_v17 = vld [vmem:[%s5407_s22 + $0x928] sm:$0xff] }
 0x29d   : > { %4389 = vmatpush1.bf16.msra.mxu1 %v2398_v28  ;;  %4062 = vmatprep.subr.bf16.mxu0 %v2405_v31  ;;  %v2437_v28 = vpack.c.bf16 %v493_v20, %v485_v18  ;;  %v484_v31 = vld [vmem:[%s5407_s22 + $0x720] sm:$0xff]  ;;  %v557_v18 = vld [vmem:[%s5407_s22 + $0x968] sm:$0xff]  ;;  %v551_v20 = vld [vmem:[%s5407_s22 + $0x938] sm:$0xff] }
 0x29e   : > { %4390 = vmatprep.subr.bf16.mxu1 %v2407_v35  ;;  %v494_v35 = vld [vmem:[%s5407_s22 + $0x770] sm:$0xff]  ;;  %v2436_v41 = vpack.c.bf16 %v492_v32, %v484_v31  ;;  %v556_v31 = vld [vmem:[%s5407_s22 + $0x960] sm:$0xff] }
 0x29f   : > { %v550_v32 = vld [vmem:[%s5407_s22 + $0x930] sm:$0xff] }
 0x2a0   : > { %4063 = vmatpush1.bf16.msra.mxu0 %v2404_v43  ;;  %v2438_v43 = vpack.c.bf16 %v494_v35, %v486_v33  ;;  %v2471_v33 = vpack.c.bf16 %v559_v21, %v551_v20  ;;  %v565_v35 = vld [vmem:[%s5407_s22 + $0x9a8] sm:$0xff] }
 0x2a1   : > { %4391 = vmatpush1.bf16.msra.mxu1 %v2406_v45  ;;  %4064 = vmatprep.subr.bf16.mxu0 %v2413_v46  ;;  %v2445_v45 = vpack.c.bf16 %v509_v37, %v501_v36  ;;  %v500_v46 = vld [vmem:[%s5407_s22 + $0x7a0] sm:$0xff]  ;;  %v573_v36 = vld [vmem:[%s5407_s22 + $0x9e8] sm:$0xff]  ;;  %v575_v37 = vld [vmem:[%s5407_s22 + $0x9f8] sm:$0xff] }
 0x2a2   : > { %4392 = vmatprep.subr.bf16.mxu1 %v2415_v51  ;;  %v510_v51 = vld [vmem:[%s5407_s22 + $0x7f0] sm:$0xff]  ;;  %v2444_v19 = vpack.c.bf16 %v508_v48, %v500_v46 }
 0x2a3   : > { %v566_v46 = vld [vmem:[%s5407_s22 + $0x9b0] sm:$0xff] }
 0x2a4   : > { %4065 = vmatpush1.bf16.msra.mxu0 %v2412_v56  ;;  %v2446_v56 = vpack.c.bf16 %v510_v51, %v502_v49  ;;  %v574_v49 = vld [vmem:[%s5407_s22 + $0x9f0] sm:$0xff]  ;;  %v583_v51 = vld [vmem:[%s5407_s22 + $0xa38] sm:$0xff] }
 0x2a5   : > { %4393 = vmatpush1.bf16.msra.mxu1 %v2414_v57  ;;  %4066 = vmatprep.subr.bf16.mxu0 %v2421_v58  ;;  %v2453_v57 = vpack.c.bf16 %v525_v53, %v517_v52  ;;  %v516_v58 = vld [vmem:[%s5407_s22 + $0x820] sm:$0xff]  ;;  %v591_v52 = vld [vmem:[%s5407_s22 + $0xa78] sm:$0xff]  ;;  %v2478_v54 = vpack.c.bf16 %v574_v49, %v566_v46  ;;  %v645_v46 = vld [vmem:[%s5407_s22 + $0xc28] sm:$0xff] }
 0x2a6   : > { %4394 = vmatprep.subr.bf16.mxu1 %v2423_v0  ;;  %v526_v0 = vld [vmem:[%s5407_s22 + $0x870] sm:$0xff]  ;;  %v2452_v5 = vpack.c.bf16 %v524_v60, %v516_v58  ;;  %v2487_v58 = vpack.c.bf16 %v591_v52, %v583_v51  ;;  %v647_v49 = vld [vmem:[%s5407_s22 + $0xc38] sm:$0xff] }
 0x2a7   : > { %v590_v60 = vld [vmem:[%s5407_s22 + $0xa70] sm:$0xff] }
 0x2a8   : > { %4067 = vmatpush1.bf16.msra.mxu0 %v2420_v6  ;;  %v2454_v6 = vpack.c.bf16 %v526_v0, %v518_v62  ;;  %v597_v62 = vld [vmem:[%s5407_s22 + $0xaa8] sm:$0xff]  ;;  %v599_v0 = vld [vmem:[%s5407_s22 + $0xab8] sm:$0xff] }
 0x2a9   : > { %4395 = vmatpush1.bf16.msra.mxu1 %v2422_v9  ;;  %4068 = vmatprep.subr.bf16.mxu0 %v2429_v11  ;;  %v2461_v9 = vpack.c.bf16 %v541_v2, %v533_v1  ;;  %v532_v11 = vld [vmem:[%s5407_s22 + $0x8a0] sm:$0xff]  ;;  %v607_v1 = vld [vmem:[%s5407_s22 + $0xaf8] sm:$0xff] }
 0x2aa   : > { %4396 = vmatprep.subr.bf16.mxu1 %v2431_v16  ;;  %v542_v16 = vld [vmem:[%s5407_s22 + $0x8f0] sm:$0xff]  ;;  %v2460_v23 = vpack.c.bf16 %v540_v12, %v532_v11  ;;  %v2495_v11 = vpack.c.bf16 %v607_v1, %v599_v0 }
 0x2ab   : > { %v606_v12 = vld [vmem:[%s5407_s22 + $0xaf0] sm:$0xff] }
 0x2ac   : > { %4069 = vmatpush1.bf16.msra.mxu0 %v2428_v25  ;;  %v2462_v25 = vpack.c.bf16 %v542_v16, %v534_v13  ;;  %v613_v13 = vld [vmem:[%s5407_s22 + $0xb28] sm:$0xff]  ;;  %v615_v16 = vld [vmem:[%s5407_s22 + $0xb38] sm:$0xff] }
 0x2ad   : > { %4397 = vmatpush1.bf16.msra.mxu1 %v2430_v26  ;;  %4070 = vmatprep.subr.bf16.mxu0 %v2437_v28  ;;  %v2469_v26 = vpack.c.bf16 %v557_v18, %v549_v17  ;;  %v548_v28 = vld [vmem:[%s5407_s22 + $0x920] sm:$0xff]  ;;  %v623_v17 = vld [vmem:[%s5407_s22 + $0xb78] sm:$0xff] }
 0x2ae   : > { %4398 = vmatprep.subr.bf16.mxu1 %v2439_v34  ;;  %v558_v34 = vld [vmem:[%s5407_s22 + $0x970] sm:$0xff]  ;;  %v2468_v38 = vpack.c.bf16 %v556_v31, %v548_v28  ;;  %v2503_v28 = vpack.c.bf16 %v623_v17, %v615_v16 }
 0x2af   : > { %v2470_v40 = vpack.c.bf16 %v558_v34, %v550_v32  ;;  %v622_v31 = vld [vmem:[%s5407_s22 + $0xb70] sm:$0xff]  ;;  %v629_v32 = vld [vmem:[%s5407_s22 + $0xba8] sm:$0xff]  ;;  %v631_v34 = vld [vmem:[%s5407_s22 + $0xbb8] sm:$0xff] }
 0x2b0   : > { %4071 = vmatpush1.bf16.msra.mxu0 %v2436_v41  ;;  %v2477_v41 = vpack.c.bf16 %v573_v36, %v565_v35  ;;  %v639_v35 = vld [vmem:[%s5407_s22 + $0xbf8] sm:$0xff] }
 0x2b1   : > { %4399 = vmatpush1.bf16.msra.mxu1 %v2438_v43  ;;  %4072 = vmatprep.subr.bf16.mxu0 %v2445_v45  ;;  %v564_v43 = vld [vmem:[%s5407_s22 + $0x9a0] sm:$0xff] }
 0x2b2   : > { %4400 = vmatprep.subr.bf16.mxu1 %v2447_v50  ;;  %v572_v45 = vld [vmem:[%s5407_s22 + $0x9e0] sm:$0xff]  ;;  %v581_v50 = vld [vmem:[%s5407_s22 + $0xa28] sm:$0xff] }
 0x2b3   : > { %v2476_v53 = vpack.c.bf16 %v572_v45, %v564_v43  ;;  %v2511_v43 = vpack.c.bf16 %v639_v35, %v631_v34  ;;  %v638_v45 = vld [vmem:[%s5407_s22 + $0xbf0] sm:$0xff] }
 0x2b4   : > { %4073 = vmatpush1.bf16.msra.mxu0 %v2444_v19  ;;  %v580_v19 = vld [vmem:[%s5407_s22 + $0xa20] sm:$0xff] }
 0x2b5   : > { %4401 = vmatpush1.bf16.msra.mxu1 %v2446_v56  ;;  %4083 = vmatprep.subr.bf16.mxu0 %v2453_v57  ;;  %v588_v56 = vld [vmem:[%s5407_s22 + $0xa60] sm:$0xff]  ;;  %v582_v57 = vld [vmem:[%s5407_s22 + $0xa30] sm:$0xff] }
 0x2b6   : > { %4411 = vmatprep.subr.bf16.mxu1 %v2455_v63  ;;  %v605_v63 = vld [vmem:[%s5407_s22 + $0xae8] sm:$0xff]  ;;  %v2484_v2 = vpack.c.bf16 %v588_v56, %v580_v19  ;;  %v2486_v3 = vpack.c.bf16 %v590_v60, %v582_v57  ;;  %v654_v56 = vld [vmem:[%s5407_s22 + $0xc70] sm:$0xff]  ;;  %v663_v60 = vld [vmem:[%s5407_s22 + $0xcb8] sm:$0xff] }
 0x2b7   : > { %4075 = vmatmul.mubr.bf16.vlgmr.msra.gmra.mrb[4].mxu0 %v5555_v15  ;;  %v2493_v4 = vpack.c.bf16 %v605_v63, %v597_v62  ;;  %v661_v57 = vld [vmem:[%s5407_s22 + $0xca8] sm:$0xff]  ;;  %v671_v62 = vld [vmem:[%s5407_s22 + $0xcf8] sm:$0xff] }
 0x2b8   : > { %4084 = vmatpush1.bf16.msra.mxu0 %v2452_v5  ;;  %4403 = vmatmul.mubr.bf16.vlgmr.msra.gmra.mrb[4].mxu1 %v5555_v15  ;;  %v567_v15 = vld [vmem:[%s5407_s22 + $0x9b8] sm:$0xff]  ;;  %v596_v5 = vld [vmem:[%s5407_s22 + $0xaa0] sm:$0xff] }
 0x2b9   : > { %4412 = vmatpush1.bf16.msra.mxu1 %v2454_v6  ;;  %4085 = vmatprep.subr.bf16.mxu0 %v2461_v9  ;;  %v2479_v48 = vpack.c.bf16 %v575_v37, %v567_v15  ;;  %v604_v6 = vld [vmem:[%s5407_s22 + $0xae0] sm:$0xff]  ;;  %v598_v9 = vld [vmem:[%s5407_s22 + $0xab0] sm:$0xff] }
 0x2ba   : > { %4413 = vmatprep.subr.bf16.mxu1 %v2463_v14  ;;  %4115 = vmatprep.mubr.bf16.mxu0 %v5609_v30  ;;  %v621_v14 = vld [vmem:[%s5407_s22 + $0xb68] sm:$0xff]  ;;  %v2492_v18 = vpack.c.bf16 %v604_v6, %v596_v5  ;;  %v2494_v20 = vpack.c.bf16 %v606_v12, %v598_v9  ;;  %v2527_v5 = vpack.c.bf16 %v671_v62, %v663_v60  ;;  %v670_v6 = vld [vmem:[%s5407_s22 + $0xcf0] sm:$0xff]  ;;  %v679_v12 = vld [vmem:[%s5407_s22 + $0xd38] sm:$0xff] }
 0x2bb   : > { %4443 = vmatprep.mubr.bf16.mxu1 %v5609_v30  ;;  %v589_v30 = vld [vmem:[%s5407_s22 + $0xa68] sm:$0xff]  ;;  %v2501_v21 = vpack.c.bf16 %v621_v14, %v613_v13  ;;  %v687_v13 = vld [vmem:[%s5407_s22 + $0xd78] sm:$0xff] }
 0x2bc   : > { %4086 = vmatpush1.bf16.msra.mxu0 %v2460_v23  ;;  %v2485_v55 = vpack.c.bf16 %v589_v30, %v581_v50  ;;  %v612_v23 = vld [vmem:[%s5407_s22 + $0xb20] sm:$0xff]  ;;  %v655_v50 = vld [vmem:[%s5407_s22 + $0xc78] sm:$0xff]  ;;  %v677_v9 = vld [vmem:[%s5407_s22 + $0xd28] sm:$0xff] }
 0x2bd   : > { %4414 = vmatpush1.bf16.msra.mxu1 %v2462_v25  ;;  %4087 = vmatprep.subr.bf16.mxu0 %v2469_v26  ;;  %v620_v25 = vld [vmem:[%s5407_s22 + $0xb60] sm:$0xff]  ;;  %v614_v26 = vld [vmem:[%s5407_s22 + $0xb30] sm:$0xff]  ;;  %v2519_v19 = vpack.c.bf16 %v655_v50, %v647_v49 }
 0x2be   : > { %4415 = vmatprep.subr.bf16.mxu1 %v2471_v33  ;;  %v637_v33 = vld [vmem:[%s5407_s22 + $0xbe8] sm:$0xff]  ;;  %v2500_v36 = vpack.c.bf16 %v620_v25, %v612_v23  ;;  %v2502_v15 = vpack.c.bf16 %v622_v31, %v614_v26  ;;  %v2535_v23 = vpack.c.bf16 %v687_v13, %v679_v12  ;;  %v686_v25 = vld [vmem:[%s5407_s22 + $0xd70] sm:$0xff]  ;;  %v695_v31 = vld [vmem:[%s5407_s22 + $0xdb8] sm:$0xff] }
 0x2bf   : > { %v2509_v37 = vpack.c.bf16 %v637_v33, %v629_v32  ;;  %v693_v26 = vld [vmem:[%s5407_s22 + $0xda8] sm:$0xff]  ;;  %v703_v32 = vld [vmem:[%s5407_s22 + $0xdf8] sm:$0xff] }
 0x2c0   : > { %4088 = vmatpush1.bf16.msra.mxu0 %v2468_v38  ;;  %v628_v38 = vld [vmem:[%s5407_s22 + $0xba0] sm:$0xff] }
 0x2c1   : > { %4416 = vmatpush1.bf16.msra.mxu1 %v2470_v40  ;;  %4089 = vmatprep.subr.bf16.mxu0 %v2477_v41  ;;  %v636_v40 = vld [vmem:[%s5407_s22 + $0xbe0] sm:$0xff]  ;;  %v630_v41 = vld [vmem:[%s5407_s22 + $0xbb0] sm:$0xff] }
 0x2c2   : > { %4417 = vmatprep.subr.bf16.mxu1 %v2479_v48  ;;  %v653_v48 = vld [vmem:[%s5407_s22 + $0xc68] sm:$0xff]  ;;  %v2508_v30 = vpack.c.bf16 %v636_v40, %v628_v38  ;;  %v2510_v51 = vpack.c.bf16 %v638_v45, %v630_v41  ;;  %v2543_v38 = vpack.c.bf16 %v703_v32, %v695_v31  ;;  %v702_v40 = vld [vmem:[%s5407_s22 + $0xdf0] sm:$0xff]  ;;  %v711_v45 = vld [vmem:[%s5407_s22 + $0xe38] sm:$0xff] }
 0x2c3   : > { %v2517_v52 = vpack.c.bf16 %v653_v48, %v645_v46  ;;  %v709_v41 = vld [vmem:[%s5407_s22 + $0xe28] sm:$0xff]  ;;  %v719_v46 = vld [vmem:[%s5407_s22 + $0xe78] sm:$0xff] }
 0x2c4   : > { %4090 = vmatpush1.bf16.msra.mxu0 %v2476_v53  ;;  %v644_v53 = vld [vmem:[%s5407_s22 + $0xc20] sm:$0xff] }
 0x2c5   : > { %4418 = vmatpush1.bf16.msra.mxu1 %v2478_v54  ;;  %4091 = vmatprep.subr.bf16.mxu0 %v2485_v55  ;;  %v652_v54 = vld [vmem:[%s5407_s22 + $0xc60] sm:$0xff]  ;;  %v646_v55 = vld [vmem:[%s5407_s22 + $0xc30] sm:$0xff] }
 0x2c6   : > { %4419 = vmatprep.subr.bf16.mxu1 %v2487_v58  ;;  %v669_v58 = vld [vmem:[%s5407_s22 + $0xce8] sm:$0xff]  ;;  %v2516_v63 = vpack.c.bf16 %v652_v54, %v644_v53  ;;  %v2518_v0 = vpack.c.bf16 %v654_v56, %v646_v55  ;;  %v2551_v53 = vpack.c.bf16 %v719_v46, %v711_v45  ;;  %v718_v54 = vld [vmem:[%s5407_s22 + $0xe70] sm:$0xff]  ;;  %v727_v56 = vld [vmem:[%s5407_s22 + $0xeb8] sm:$0xff] }
 0x2c7   : > { %v2525_v1 = vpack.c.bf16 %v669_v58, %v661_v57  ;;  %v725_v55 = vld [vmem:[%s5407_s22 + $0xea8] sm:$0xff]  ;;  %v735_v57 = vld [vmem:[%s5407_s22 + $0xef8] sm:$0xff] }
 0x2c8   : > { %4092 = vmatpush1.bf16.msra.mxu0 %v2484_v2  ;;  %v660_v2 = vld [vmem:[%s5407_s22 + $0xca0] sm:$0xff] }
 0x2c9   : > { %4420 = vmatpush1.bf16.msra.mxu1 %v2486_v3  ;;  %4093 = vmatprep.subr.bf16.mxu0 %v2493_v4  ;;  %v668_v3 = vld [vmem:[%s5407_s22 + $0xce0] sm:$0xff]  ;;  %v662_v4 = vld [vmem:[%s5407_s22 + $0xcb0] sm:$0xff] }
 0x2ca   : > { %4421 = vmatprep.subr.bf16.mxu1 %v2495_v11  ;;  %v685_v11 = vld [vmem:[%s5407_s22 + $0xd68] sm:$0xff]  ;;  %v2524_v14 = vpack.c.bf16 %v668_v3, %v660_v2  ;;  %v2526_v16 = vpack.c.bf16 %v670_v6, %v662_v4  ;;  %v2559_v2 = vpack.c.bf16 %v735_v57, %v727_v56  ;;  %v734_v3 = vld [vmem:[%s5407_s22 + $0xef0] sm:$0xff]  ;;  %v743_v6 = vld [vmem:[%s5407_s22 + $0xf38] sm:$0xff] }
 0x2cb   : > { %v2533_v17 = vpack.c.bf16 %v685_v11, %v677_v9  ;;  %v741_v4 = vld [vmem:[%s5407_s22 + $0xf28] sm:$0xff]  ;;  %v751_v9 = vld [vmem:[%s5407_s22 + $0xf78] sm:$0xff] }
 0x2cc   : > { %4094 = vmatpush1.bf16.msra.mxu0 %v2492_v18  ;;  %v676_v18 = vld [vmem:[%s5407_s22 + $0xd20] sm:$0xff] }
 0x2cd   : > { %4422 = vmatpush1.bf16.msra.mxu1 %v2494_v20  ;;  %4095 = vmatprep.subr.bf16.mxu0 %v2501_v21  ;;  %v684_v20 = vld [vmem:[%s5407_s22 + $0xd60] sm:$0xff]  ;;  %v678_v21 = vld [vmem:[%s5407_s22 + $0xd30] sm:$0xff] }
 0x2ce   : > { %4423 = vmatprep.subr.bf16.mxu1 %v2503_v28  ;;  %v701_v28 = vld [vmem:[%s5407_s22 + $0xde8] sm:$0xff]  ;;  %v2532_v33 = vpack.c.bf16 %v684_v20, %v676_v18  ;;  %v2534_v34 = vpack.c.bf16 %v686_v25, %v678_v21  ;;  %v2567_v18 = vpack.c.bf16 %v751_v9, %v743_v6  ;;  %v750_v20 = vld [vmem:[%s5407_s22 + $0xf70] sm:$0xff]  ;;  %v759_v25 = vld [vmem:[%s5407_s22 + $0xfb8] sm:$0xff] }
 0x2cf   : > { %v2541_v35 = vpack.c.bf16 %v701_v28, %v693_v26  ;;  %v757_v21 = vld [vmem:[%s5407_s22 + $0xfa8] sm:$0xff]  ;;  %v767_v26 = vld [vmem:[%s5407_s22 + $0xff8] sm:$0xff] }
 0x2d0   : > { %4096 = vmatpush1.bf16.msra.mxu0 %v2500_v36  ;;  %v692_v36 = vld [vmem:[%s5407_s22 + $0xda0] sm:$0xff] }
 0x2d1   : > { %4424 = vmatpush1.bf16.msra.mxu1 %v2502_v15  ;;  %4097 = vmatprep.subr.bf16.mxu0 %v2509_v37  ;;  %v700_v15 = vld [vmem:[%s5407_s22 + $0xde0] sm:$0xff]  ;;  %v694_v37 = vld [vmem:[%s5407_s22 + $0xdb0] sm:$0xff] }
 0x2d2   : > { %4425 = vmatprep.subr.bf16.mxu1 %v2511_v43  ;;  %v717_v43 = vld [vmem:[%s5407_s22 + $0xe68] sm:$0xff]  ;;  %v2540_v48 = vpack.c.bf16 %v700_v15, %v692_v36  ;;  %v2542_v49 = vpack.c.bf16 %v702_v40, %v694_v37  ;;  %v2575_v36 = vpack.c.bf16 %v767_v26, %v759_v25  ;;  %v766_v15 = vld [vmem:[%s5407_s22 + $0xff0] sm:$0xff]  ;;  %v775_v40 = vld [vmem:[%s5407_s22 + $0x1038] sm:$0xff] }
 0x2d3   : > { %v2549_v50 = vpack.c.bf16 %v717_v43, %v709_v41  ;;  %v773_v37 = vld [vmem:[%s5407_s22 + $0x1028] sm:$0xff]  ;;  %v783_v41 = vld [vmem:[%s5407_s22 + $0x1078] sm:$0xff]  ;;  %v820_v26 = vld [vmem:[%s5407_s22 + $0x11a0] sm:$0xff] }
 0x2d4   : > { %4098 = vmatpush1.bf16.msra.mxu0 %v2508_v30  ;;  %v708_v30 = vld [vmem:[%s5407_s22 + $0xe20] sm:$0xff] }
 0x2d5   : > { %4426 = vmatpush1.bf16.msra.mxu1 %v2510_v51  ;;  %4099 = vmatprep.subr.bf16.mxu0 %v2517_v52  ;;  %v716_v51 = vld [vmem:[%s5407_s22 + $0xe60] sm:$0xff]  ;;  %v710_v52 = vld [vmem:[%s5407_s22 + $0xe30] sm:$0xff] }
 0x2d6   : > { %4427 = vmatprep.subr.bf16.mxu1 %v2519_v19  ;;  %v733_v19 = vld [vmem:[%s5407_s22 + $0xee8] sm:$0xff]  ;;  %v2548_v58 = vpack.c.bf16 %v716_v51, %v708_v30  ;;  %v2550_v60 = vpack.c.bf16 %v718_v54, %v710_v52  ;;  %v2583_v30 = vpack.c.bf16 %v783_v41, %v775_v40  ;;  %v782_v51 = vld [vmem:[%s5407_s22 + $0x1070] sm:$0xff]  ;;  %v791_v54 = vld [vmem:[%s5407_s22 + $0x10b8] sm:$0xff] }
 0x2d7   : > { %v2557_v62 = vpack.c.bf16 %v733_v19, %v725_v55  ;;  %v789_v52 = vld [vmem:[%s5407_s22 + $0x10a8] sm:$0xff]  ;;  %v799_v55 = vld [vmem:[%s5407_s22 + $0x10f8] sm:$0xff]  ;;  %v836_v40 = vld [vmem:[%s5407_s22 + $0x1220] sm:$0xff] }
 0x2d8   : > { %4100 = vmatpush1.bf16.msra.mxu0 %v2516_v63  ;;  %v724_v63 = vld [vmem:[%s5407_s22 + $0xea0] sm:$0xff] }
 0x2d9   : > { %4428 = vmatpush1.bf16.msra.mxu1 %v2518_v0  ;;  %4101 = vmatprep.subr.bf16.mxu0 %v2525_v1  ;;  %v732_v0 = vld [vmem:[%s5407_s22 + $0xee0] sm:$0xff]  ;;  %v726_v1 = vld [vmem:[%s5407_s22 + $0xeb0] sm:$0xff] }
 0x2da   : > { %4429 = vmatprep.subr.bf16.mxu1 %v2527_v5  ;;  %v749_v5 = vld [vmem:[%s5407_s22 + $0xf68] sm:$0xff]  ;;  %v2556_v11 = vpack.c.bf16 %v732_v0, %v724_v63  ;;  %v2558_v12 = vpack.c.bf16 %v734_v3, %v726_v1  ;;  %v2591_v63 = vpack.c.bf16 %v799_v55, %v791_v54  ;;  %v798_v0 = vld [vmem:[%s5407_s22 + $0x10f0] sm:$0xff]  ;;  %v807_v3 = vld [vmem:[%s5407_s22 + $0x1138] sm:$0xff] }
 0x2db   : > { %v2565_v13 = vpack.c.bf16 %v749_v5, %v741_v4  ;;  %v805_v1 = vld [vmem:[%s5407_s22 + $0x1128] sm:$0xff]  ;;  %v815_v4 = vld [vmem:[%s5407_s22 + $0x1178] sm:$0xff]  ;;  %v844_v41 = vld [vmem:[%s5407_s22 + $0x1260] sm:$0xff] }
 0x2dc   : > { %4102 = vmatpush1.bf16.msra.mxu0 %v2524_v14  ;;  %v740_v14 = vld [vmem:[%s5407_s22 + $0xf20] sm:$0xff] }
 0x2dd   : > { %4430 = vmatpush1.bf16.msra.mxu1 %v2526_v16  ;;  %4103 = vmatprep.subr.bf16.mxu0 %v2533_v17  ;;  %v748_v16 = vld [vmem:[%s5407_s22 + $0xf60] sm:$0xff]  ;;  %v742_v17 = vld [vmem:[%s5407_s22 + $0xf30] sm:$0xff] }
 0x2de   : > { %4431 = vmatprep.subr.bf16.mxu1 %v2535_v23  ;;  %v765_v23 = vld [vmem:[%s5407_s22 + $0xfe8] sm:$0xff]  ;;  %v2564_v28 = vpack.c.bf16 %v748_v16, %v740_v14  ;;  %v2566_v31 = vpack.c.bf16 %v750_v20, %v742_v17  ;;  %v2599_v14 = vpack.c.bf16 %v815_v4, %v807_v3  ;;  %v814_v16 = vld [vmem:[%s5407_s22 + $0x1170] sm:$0xff]  ;;  %v831_v20 = vld [vmem:[%s5407_s22 + $0x11f8] sm:$0xff] }
 0x2df   : > { %v2573_v32 = vpack.c.bf16 %v765_v23, %v757_v21  ;;  %v821_v17 = vld [vmem:[%s5407_s22 + $0x11a8] sm:$0xff]  ;;  %v852_v54 = vld [vmem:[%s5407_s22 + $0x12a0] sm:$0xff] }
 0x2e0   : > { %4104 = vmatpush1.bf16.msra.mxu0 %v2532_v33  ;;  %v756_v33 = vld [vmem:[%s5407_s22 + $0xfa0] sm:$0xff] }
 0x2e1   : > { %4432 = vmatpush1.bf16.msra.mxu1 %v2534_v34  ;;  %4105 = vmatprep.subr.bf16.mxu0 %v2541_v35  ;;  %v764_v34 = vld [vmem:[%s5407_s22 + $0xfe0] sm:$0xff]  ;;  %v758_v35 = vld [vmem:[%s5407_s22 + $0xfb0] sm:$0xff] }
 0x2e2   : > { %4433 = vmatprep.subr.bf16.mxu1 %v2543_v38  ;;  %v781_v38 = vld [vmem:[%s5407_s22 + $0x1068] sm:$0xff]  ;;  %v2572_v43 = vpack.c.bf16 %v764_v34, %v756_v33  ;;  %v2574_v45 = vpack.c.bf16 %v766_v15, %v758_v35  ;;  %v830_v33 = vld [vmem:[%s5407_s22 + $0x11f0] sm:$0xff]  ;;  %v839_v35 = vld [vmem:[%s5407_s22 + $0x1238] sm:$0xff] }
 0x2e3   : > { %v2581_v46 = vpack.c.bf16 %v781_v38, %v773_v37  ;;  %v837_v34 = vld [vmem:[%s5407_s22 + $0x1228] sm:$0xff]  ;;  %v860_v55 = vld [vmem:[%s5407_s22 + $0x12e0] sm:$0xff] }
 0x2e4   : > { %4106 = vmatpush1.bf16.msra.mxu0 %v2540_v48  ;;  %v772_v48 = vld [vmem:[%s5407_s22 + $0x1020] sm:$0xff] }
 0x2e5   : > { %4434 = vmatpush1.bf16.msra.mxu1 %v2542_v49  ;;  %4107 = vmatprep.subr.bf16.mxu0 %v2549_v50  ;;  %v780_v49 = vld [vmem:[%s5407_s22 + $0x1060] sm:$0xff]  ;;  %v774_v50 = vld [vmem:[%s5407_s22 + $0x1030] sm:$0xff] }
 0x2e6   : > { %4435 = vmatprep.subr.bf16.mxu1 %v2551_v53  ;;  %v797_v53 = vld [vmem:[%s5407_s22 + $0x10e8] sm:$0xff]  ;;  %v2580_v19 = vpack.c.bf16 %v780_v49, %v772_v48  ;;  %v2582_v56 = vpack.c.bf16 %v782_v51, %v774_v50  ;;  %v855_v50 = vld [vmem:[%s5407_s22 + $0x12b8] sm:$0xff]  ;;  %v2612_v51 = vpack.c.bf16 %v844_v41, %v836_v40  ;;  %v868_v3 = vld [vmem:[%s5407_s22 + $0x1320] sm:$0xff] }
 0x2e7   : > { %v2589_v57 = vpack.c.bf16 %v797_v53, %v789_v52  ;;  %v853_v48 = vld [vmem:[%s5407_s22 + $0x12a8] sm:$0xff]  ;;  %v876_v4 = vld [vmem:[%s5407_s22 + $0x1360] sm:$0xff] }
 0x2e8   : > { %4108 = vmatpush1.bf16.msra.mxu0 %v2548_v58  ;;  %v788_v58 = vld [vmem:[%s5407_s22 + $0x10a0] sm:$0xff]  ;;  %v861_v49 = vld [vmem:[%s5407_s22 + $0x12e8] sm:$0xff] }
 0x2e9   : > { %4436 = vmatpush1.bf16.msra.mxu1 %v2550_v60  ;;  %4109 = vmatprep.subr.bf16.mxu0 %v2557_v62  ;;  %v796_v60 = vld [vmem:[%s5407_s22 + $0x10e0] sm:$0xff]  ;;  %v790_v62 = vld [vmem:[%s5407_s22 + $0x10b0] sm:$0xff]  ;;  %v2621_v53 = vpack.c.bf16 %v861_v49, %v853_v48  ;;  %v917_v40 = vld [vmem:[%s5407_s22 + $0x14a8] sm:$0xff] }
 0x2ea   : > { %4437 = vmatprep.subr.bf16.mxu1 %v2559_v2  ;;  %v813_v2 = vld [vmem:[%s5407_s22 + $0x1168] sm:$0xff]  ;;  %v2588_v5 = vpack.c.bf16 %v796_v60, %v788_v58  ;;  %v2590_v6 = vpack.c.bf16 %v798_v0, %v790_v62  ;;  %v871_v62 = vld [vmem:[%s5407_s22 + $0x1338] sm:$0xff]  ;;  %v2620_v0 = vpack.c.bf16 %v860_v55, %v852_v54 }
 0x2eb   : > { %v2597_v9 = vpack.c.bf16 %v813_v2, %v805_v1  ;;  %v869_v58 = vld [vmem:[%s5407_s22 + $0x1328] sm:$0xff] }
 0x2ec   : > { %4110 = vmatpush1.bf16.msra.mxu0 %v2556_v11  ;;  %v804_v11 = vld [vmem:[%s5407_s22 + $0x1120] sm:$0xff]  ;;  %v877_v60 = vld [vmem:[%s5407_s22 + $0x1368] sm:$0xff] }
 0x2ed   : > { %4438 = vmatpush1.bf16.msra.mxu1 %v2558_v12  ;;  %4111 = vmatprep.subr.bf16.mxu0 %v2565_v13  ;;  %v812_v12 = vld [vmem:[%s5407_s22 + $0x1160] sm:$0xff]  ;;  %v806_v13 = vld [vmem:[%s5407_s22 + $0x1130] sm:$0xff]  ;;  %v2629_v2 = vpack.c.bf16 %v877_v60, %v869_v58  ;;  %v925_v41 = vld [vmem:[%s5407_s22 + $0x14e8] sm:$0xff] }
 0x2ee   : > { %4439 = vmatprep.subr.bf16.mxu1 %v2567_v18  ;;  %v829_v18 = vld [vmem:[%s5407_s22 + $0x11e8] sm:$0xff]  ;;  %v2596_v21 = vpack.c.bf16 %v812_v12, %v804_v11  ;;  %v2598_v23 = vpack.c.bf16 %v814_v16, %v806_v13  ;;  %v887_v13 = vld [vmem:[%s5407_s22 + $0x13b8] sm:$0xff]  ;;  %v2628_v16 = vpack.c.bf16 %v876_v4, %v868_v3  ;;  %v2653_v49 = vpack.c.bf16 %v925_v41, %v917_v40 }
 0x2ef   : > { %v2605_v25 = vpack.c.bf16 %v829_v18, %v821_v17  ;;  %v885_v11 = vld [vmem:[%s5407_s22 + $0x13a8] sm:$0xff] }
 0x2f0   : > { %4112 = vmatpush1.bf16.msra.mxu0 %v2564_v28  ;;  %v828_v28 = vld [vmem:[%s5407_s22 + $0x11e0] sm:$0xff]  ;;  %v893_v12 = vld [vmem:[%s5407_s22 + $0x13e8] sm:$0xff] }
 0x2f1   : > { %4440 = vmatpush1.bf16.msra.mxu1 %v2566_v31  ;;  %4113 = vmatprep.subr.bf16.mxu0 %v2573_v32  ;;  %v822_v31 = vld [vmem:[%s5407_s22 + $0x11b0] sm:$0xff]  ;;  %v2604_v15 = vpack.c.bf16 %v828_v28, %v820_v26  ;;  %v2637_v18 = vpack.c.bf16 %v893_v12, %v885_v11  ;;  %v901_v26 = vld [vmem:[%s5407_s22 + $0x1428] sm:$0xff] }
 0x2f2   : > { %4441 = vmatprep.subr.bf16.mxu1 %v2575_v36  ;;  %v847_v36 = vld [vmem:[%s5407_s22 + $0x1278] sm:$0xff]  ;;  %v2606_v37 = vpack.c.bf16 %v830_v33, %v822_v31  ;;  %v909_v28 = vld [vmem:[%s5407_s22 + $0x1468] sm:$0xff] }
 0x2f3   : > { %v903_v31 = vld [vmem:[%s5407_s22 + $0x1438] sm:$0xff]  ;;  %v933_v54 = vld [vmem:[%s5407_s22 + $0x1528] sm:$0xff] }
 0x2f4   : > { %4114 = vmatpush1.bf16.msra.mxu0 %v2572_v43  ;;  %v838_v43 = vld [vmem:[%s5407_s22 + $0x1230] sm:$0xff]  ;;  %v941_v55 = vld [vmem:[%s5407_s22 + $0x1568] sm:$0xff] }
 0x2f5   : > { %4442 = vmatpush1.bf16.msra.mxu1 %v2574_v45  ;;  %4124 = vmatprep.subr.bf16.mxu0 %v2581_v46  ;;  %v2615_v45 = vpack.c.bf16 %v847_v36, %v839_v35  ;;  %v846_v46 = vld [vmem:[%s5407_s22 + $0x1270] sm:$0xff]  ;;  %v900_v35 = vld [vmem:[%s5407_s22 + $0x1420] sm:$0xff]  ;;  %v2661_v60 = vpack.c.bf16 %v941_v55, %v933_v54  ;;  %v949_v3 = vld [vmem:[%s5407_s22 + $0x15a8] sm:$0xff] }
 0x2f6   : > { %4452 = vmatprep.subr.bf16.mxu1 %v2583_v30  ;;  %v863_v30 = vld [vmem:[%s5407_s22 + $0x12f8] sm:$0xff]  ;;  %v2614_v52 = vpack.c.bf16 %v846_v46, %v838_v43  ;;  %v908_v36 = vld [vmem:[%s5407_s22 + $0x1460] sm:$0xff]  ;;  %v957_v4 = vld [vmem:[%s5407_s22 + $0x15e8] sm:$0xff] }
 0x2f7   : > { %4116 = vmatmul.mubr.bf16.vlgmr.msra.gmra.mrb[4].mxu0 %v5691_v27  ;;  %v919_v43 = vld [vmem:[%s5407_s22 + $0x14b8] sm:$0xff]  ;;  %v2644_v46 = vpack.c.bf16 %v908_v36, %v900_v35  ;;  %v2669_v12 = vpack.c.bf16 %v957_v4, %v949_v3  ;;  %v981_v35 = vld [vmem:[%s5407_s22 + $0x16a8] sm:$0xff] }
 0x2f8   : > { %4125 = vmatpush1.bf16.msra.mxu0 %v2580_v19  ;;  %4444 = vmatmul.mubr.bf16.vlgmr.msra.gmra.mrb[4].mxu1 %v5691_v27  ;;  %v823_v27 = vld [vmem:[%s5407_s22 + $0x11b8] sm:$0xff]  ;;  %v854_v19 = vld [vmem:[%s5407_s22 + $0x12b0] sm:$0xff]  ;;  %v989_v36 = vld [vmem:[%s5407_s22 + $0x16e8] sm:$0xff] }
 0x2f9   : > { %4453 = vmatpush1.bf16.msra.mxu1 %v2582_v56  ;;  %4126 = vmatprep.subr.bf16.mxu0 %v2589_v57  ;;  %v2607_v32 = vpack.c.bf16 %v831_v20, %v823_v27  ;;  %v2623_v56 = vpack.c.bf16 %v863_v30, %v855_v50  ;;  %v862_v57 = vld [vmem:[%s5407_s22 + $0x12f0] sm:$0xff]  ;;  %v884_v27 = vld [vmem:[%s5407_s22 + $0x13a0] sm:$0xff]  ;;  %v2685_v41 = vpack.c.bf16 %v989_v36, %v981_v35 }
 0x2fa   : > { %4454 = vmatprep.subr.bf16.mxu1 %v2591_v63  ;;  %4156 = vmatprep.mubr.bf16.mxu0 %v5701_v42  ;;  %v879_v63 = vld [vmem:[%s5407_s22 + $0x1378] sm:$0xff]  ;;  %v2622_v1 = vpack.c.bf16 %v862_v57, %v854_v19  ;;  %v892_v20 = vld [vmem:[%s5407_s22 + $0x13e0] sm:$0xff] }
 0x2fb   : > { %4484 = vmatprep.mubr.bf16.mxu1 %v5701_v42  ;;  %v845_v42 = vld [vmem:[%s5407_s22 + $0x1268] sm:$0xff]  ;;  %v2636_v33 = vpack.c.bf16 %v892_v20, %v884_v27  ;;  %v916_v50 = vld [vmem:[%s5407_s22 + $0x14a0] sm:$0xff]  ;;  %v935_v19 = vld [vmem:[%s5407_s22 + $0x1538] sm:$0xff] }
 0x2fc   : > { %4127 = vmatpush1.bf16.msra.mxu0 %v2588_v5  ;;  %v2613_v38 = vpack.c.bf16 %v845_v42, %v837_v34  ;;  %v870_v5 = vld [vmem:[%s5407_s22 + $0x1330] sm:$0xff]  ;;  %v2645_v42 = vpack.c.bf16 %v909_v28, %v901_v26  ;;  %v924_v30 = vld [vmem:[%s5407_s22 + $0x14e0] sm:$0xff]  ;;  %v965_v27 = vld [vmem:[%s5407_s22 + $0x1628] sm:$0xff] }
 0x2fd   : > { %4455 = vmatpush1.bf16.msra.mxu1 %v2590_v6  ;;  %4128 = vmatprep.subr.bf16.mxu0 %v2597_v9  ;;  %v2631_v6 = vpack.c.bf16 %v879_v63, %v871_v62  ;;  %v878_v9 = vld [vmem:[%s5407_s22 + $0x1370] sm:$0xff]  ;;  %v2652_v57 = vpack.c.bf16 %v924_v30, %v916_v50  ;;  %v932_v62 = vld [vmem:[%s5407_s22 + $0x1520] sm:$0xff]  ;;  %v973_v20 = vld [vmem:[%s5407_s22 + $0x1668] sm:$0xff] }
 0x2fe   : > { %4456 = vmatprep.subr.bf16.mxu1 %v2599_v14  ;;  %v895_v14 = vld [vmem:[%s5407_s22 + $0x13f8] sm:$0xff]  ;;  %v2630_v17 = vpack.c.bf16 %v878_v9, %v870_v5  ;;  %v940_v63 = vld [vmem:[%s5407_s22 + $0x1560] sm:$0xff]  ;;  %v2677_v28 = vpack.c.bf16 %v973_v20, %v965_v27  ;;  %v997_v50 = vld [vmem:[%s5407_s22 + $0x1728] sm:$0xff] }
 0x2ff   : > { %v951_v5 = vld [vmem:[%s5407_s22 + $0x15b8] sm:$0xff]  ;;  %v2660_v9 = vpack.c.bf16 %v940_v63, %v932_v62  ;;  %v1005_v30 = vld [vmem:[%s5407_s22 + $0x1768] sm:$0xff] }
 0x300   : > { %4129 = vmatpush1.bf16.msra.mxu0 %v2596_v21  ;;  %v886_v21 = vld [vmem:[%s5407_s22 + $0x13b0] sm:$0xff]  ;;  %v2693_v55 = vpack.c.bf16 %v1005_v30, %v997_v50  ;;  %v1013_v62 = vld [vmem:[%s5407_s22 + $0x17a8] sm:$0xff] }
 0x301   : > { %4457 = vmatpush1.bf16.msra.mxu1 %v2598_v23  ;;  %4130 = vmatprep.subr.bf16.mxu0 %v2605_v25  ;;  %v2639_v23 = vpack.c.bf16 %v895_v14, %v887_v13  ;;  %v894_v25 = vld [vmem:[%s5407_s22 + $0x13f0] sm:$0xff]  ;;  %v948_v13 = vld [vmem:[%s5407_s22 + $0x15a0] sm:$0xff]  ;;  %v1021_v63 = vld [vmem:[%s5407_s22 + $0x17e8] sm:$0xff] }
 0x302   : > { %4458 = vmatprep.subr.bf16.mxu1 %v2607_v32  ;;  %v911_v32 = vld [vmem:[%s5407_s22 + $0x1478] sm:$0xff]  ;;  %v2638_v34 = vpack.c.bf16 %v894_v25, %v886_v21  ;;  %v956_v14 = vld [vmem:[%s5407_s22 + $0x15e0] sm:$0xff]  ;;  %v2701_v4 = vpack.c.bf16 %v1021_v63, %v1013_v62 }
 0x303   : > { %v967_v21 = vld [vmem:[%s5407_s22 + $0x1638] sm:$0xff]  ;;  %v2668_v25 = vpack.c.bf16 %v956_v14, %v948_v13  ;;  %v1029_v13 = vld [vmem:[%s5407_s22 + $0x1828] sm:$0xff] }
 0x304   : > { %4131 = vmatpush1.bf16.msra.mxu0 %v2604_v15  ;;  %v902_v15 = vld [vmem:[%s5407_s22 + $0x1430] sm:$0xff]  ;;  %v1037_v14 = vld [vmem:[%s5407_s22 + $0x1868] sm:$0xff] }
 0x305   : > { %4459 = vmatpush1.bf16.msra.mxu1 %v2606_v37  ;;  %4132 = vmatprep.subr.bf16.mxu0 %v2613_v38  ;;  %v2647_v37 = vpack.c.bf16 %v911_v32, %v903_v31  ;;  %v910_v38 = vld [vmem:[%s5407_s22 + $0x1470] sm:$0xff]  ;;  %v964_v31 = vld [vmem:[%s5407_s22 + $0x1620] sm:$0xff]  ;;  %v2709_v20 = vpack.c.bf16 %v1037_v14, %v1029_v13 }
 0x306   : > { %4460 = vmatprep.subr.bf16.mxu1 %v2615_v45  ;;  %v927_v45 = vld [vmem:[%s5407_s22 + $0x14f8] sm:$0xff]  ;;  %v2646_v48 = vpack.c.bf16 %v910_v38, %v902_v15  ;;  %v972_v32 = vld [vmem:[%s5407_s22 + $0x1660] sm:$0xff] }
 0x307   : > { %v983_v15 = vld [vmem:[%s5407_s22 + $0x16b8] sm:$0xff]  ;;  %v2676_v38 = vpack.c.bf16 %v972_v32, %v964_v31  ;;  %v1045_v31 = vld [vmem:[%s5407_s22 + $0x18a8] sm:$0xff] }
 0x308   : > { %4133 = vmatpush1.bf16.msra.mxu0 %v2612_v51  ;;  %v918_v51 = vld [vmem:[%s5407_s22 + $0x14b0] sm:$0xff]  ;;  %v1053_v32 = vld [vmem:[%s5407_s22 + $0x18e8] sm:$0xff] }
 0x309   : > { %4461 = vmatpush1.bf16.msra.mxu1 %v2614_v52  ;;  %4134 = vmatprep.subr.bf16.mxu0 %v2621_v53  ;;  %v2655_v52 = vpack.c.bf16 %v927_v45, %v919_v43  ;;  %v926_v53 = vld [vmem:[%s5407_s22 + $0x14f0] sm:$0xff]  ;;  %v980_v43 = vld [vmem:[%s5407_s22 + $0x16a0] sm:$0xff]  ;;  %v2717_v36 = vpack.c.bf16 %v1053_v32, %v1045_v31 }
 0x30a   : > { %4462 = vmatprep.subr.bf16.mxu1 %v2623_v56  ;;  %v943_v56 = vld [vmem:[%s5407_s22 + $0x1578] sm:$0xff]  ;;  %v2654_v58 = vpack.c.bf16 %v926_v53, %v918_v51  ;;  %v988_v45 = vld [vmem:[%s5407_s22 + $0x16e0] sm:$0xff] }
 0x30b   : > { %v999_v51 = vld [vmem:[%s5407_s22 + $0x1738] sm:$0xff]  ;;  %v2684_v53 = vpack.c.bf16 %v988_v45, %v980_v43  ;;  %v1061_v43 = vld [vmem:[%s5407_s22 + $0x1928] sm:$0xff] }
 0x30c   : > { %4135 = vmatpush1.bf16.msra.mxu0 %v2620_v0  ;;  %v934_v0 = vld [vmem:[%s5407_s22 + $0x1530] sm:$0xff]  ;;  %v1069_v45 = vld [vmem:[%s5407_s22 + $0x1968] sm:$0xff] }
 0x30d   : > { %4463 = vmatpush1.bf16.msra.mxu1 %v2622_v1  ;;  %4136 = vmatprep.subr.bf16.mxu0 %v2629_v2  ;;  %v2663_v1 = vpack.c.bf16 %v943_v56, %v935_v19  ;;  %v942_v2 = vld [vmem:[%s5407_s22 + $0x1570] sm:$0xff]  ;;  %v996_v19 = vld [vmem:[%s5407_s22 + $0x1720] sm:$0xff]  ;;  %v2725_v30 = vpack.c.bf16 %v1069_v45, %v1061_v43  ;;  %v1125_v43 = vld [vmem:[%s5407_s22 + $0x1b28] sm:$0xff] }
 0x30e   : > { %4464 = vmatprep.subr.bf16.mxu1 %v2631_v6  ;;  %v959_v6 = vld [vmem:[%s5407_s22 + $0x15f8] sm:$0xff]  ;;  %v2662_v11 = vpack.c.bf16 %v942_v2, %v934_v0  ;;  %v1004_v56 = vld [vmem:[%s5407_s22 + $0x1760] sm:$0xff]  ;;  %v1133_v45 = vld [vmem:[%s5407_s22 + $0x1b68] sm:$0xff] }
 0x30f   : > { %v1015_v0 = vld [vmem:[%s5407_s22 + $0x17b8] sm:$0xff]  ;;  %v2692_v2 = vpack.c.bf16 %v1004_v56, %v996_v19  ;;  %v1077_v19 = vld [vmem:[%s5407_s22 + $0x19a8] sm:$0xff] }
 0x310   : > { %4137 = vmatpush1.bf16.msra.mxu0 %v2628_v16  ;;  %v950_v16 = vld [vmem:[%s5407_s22 + $0x15b0] sm:$0xff]  ;;  %v1085_v56 = vld [vmem:[%s5407_s22 + $0x19e8] sm:$0xff] }
 0x311   : > { %4465 = vmatpush1.bf16.msra.mxu1 %v2630_v17  ;;  %4138 = vmatprep.subr.bf16.mxu0 %v2637_v18  ;;  %v2671_v17 = vpack.c.bf16 %v959_v6, %v951_v5  ;;  %v958_v18 = vld [vmem:[%s5407_s22 + $0x15f0] sm:$0xff]  ;;  %v1012_v5 = vld [vmem:[%s5407_s22 + $0x17a0] sm:$0xff]  ;;  %v2733_v63 = vpack.c.bf16 %v1085_v56, %v1077_v19 }
 0x312   : > { %4466 = vmatprep.subr.bf16.mxu1 %v2639_v23  ;;  %v975_v23 = vld [vmem:[%s5407_s22 + $0x1678] sm:$0xff]  ;;  %v2670_v26 = vpack.c.bf16 %v958_v18, %v950_v16  ;;  %v1020_v6 = vld [vmem:[%s5407_s22 + $0x17e0] sm:$0xff]  ;;  %v1126_v56 = vld [vmem:[%s5407_s22 + $0x1b30] sm:$0xff] }
 0x313   : > { %v1031_v16 = vld [vmem:[%s5407_s22 + $0x1838] sm:$0xff]  ;;  %v2700_v18 = vpack.c.bf16 %v1020_v6, %v1012_v5  ;;  %v1093_v5 = vld [vmem:[%s5407_s22 + $0x1a28] sm:$0xff]  ;;  %v1132_v19 = vld [vmem:[%s5407_s22 + $0x1b60] sm:$0xff] }
 0x314   : > { %4139 = vmatpush1.bf16.msra.mxu0 %v2636_v33  ;;  %v966_v33 = vld [vmem:[%s5407_s22 + $0x1630] sm:$0xff]  ;;  %v1101_v6 = vld [vmem:[%s5407_s22 + $0x1a68] sm:$0xff] }
 0x315   : > { %4467 = vmatpush1.bf16.msra.mxu1 %v2638_v34  ;;  %4140 = vmatprep.subr.bf16.mxu0 %v2645_v42  ;;  %v2679_v34 = vpack.c.bf16 %v975_v23, %v967_v21  ;;  %v974_v42 = vld [vmem:[%s5407_s22 + $0x1670] sm:$0xff]  ;;  %v1028_v21 = vld [vmem:[%s5407_s22 + $0x1820] sm:$0xff]  ;;  %v2741_v14 = vpack.c.bf16 %v1101_v6, %v1093_v5 }
 0x316   : > { %4468 = vmatprep.subr.bf16.mxu1 %v2647_v37  ;;  %v991_v37 = vld [vmem:[%s5407_s22 + $0x16f8] sm:$0xff]  ;;  %v2678_v40 = vpack.c.bf16 %v974_v42, %v966_v33  ;;  %v1036_v23 = vld [vmem:[%s5407_s22 + $0x1860] sm:$0xff] }
 0x317   : > { %v1047_v33 = vld [vmem:[%s5407_s22 + $0x18b8] sm:$0xff]  ;;  %v2708_v42 = vpack.c.bf16 %v1036_v23, %v1028_v21  ;;  %v1109_v21 = vld [vmem:[%s5407_s22 + $0x1aa8] sm:$0xff] }
 0x318   : > { %4141 = vmatpush1.bf16.msra.mxu0 %v2644_v46  ;;  %v982_v46 = vld [vmem:[%s5407_s22 + $0x16b0] sm:$0xff]  ;;  %v1117_v23 = vld [vmem:[%s5407_s22 + $0x1ae8] sm:$0xff] }
 0x319   : > { %4469 = vmatpush1.bf16.msra.mxu1 %v2646_v48  ;;  %4142 = vmatprep.subr.bf16.mxu0 %v2653_v49  ;;  %v2687_v48 = vpack.c.bf16 %v991_v37, %v983_v15  ;;  %v990_v49 = vld [vmem:[%s5407_s22 + $0x16f0] sm:$0xff]  ;;  %v1044_v15 = vld [vmem:[%s5407_s22 + $0x18a0] sm:$0xff] }
 0x31a   : > { %4470 = vmatprep.subr.bf16.mxu1 %v2655_v52  ;;  %v1007_v52 = vld [vmem:[%s5407_s22 + $0x1778] sm:$0xff]  ;;  %v2686_v54 = vpack.c.bf16 %v990_v49, %v982_v46  ;;  %v1052_v37 = vld [vmem:[%s5407_s22 + $0x18e0] sm:$0xff] }
 0x31b   : > { %v1063_v46 = vld [vmem:[%s5407_s22 + $0x1938] sm:$0xff]  ;;  %v2716_v49 = vpack.c.bf16 %v1052_v37, %v1044_v15  ;;  %v3344_v32 = vld [vmem:[%s6947_s27] sm:$0xff] }
 0x31c   : > { %4143 = vmatpush1.bf16.msra.mxu0 %v2652_v57  ;;  %v998_v57 = vld [vmem:[%s5407_s22 + $0x1730] sm:$0xff]  ;;  %v1108_v15 = vld [vmem:[%s5407_s22 + $0x1aa0] sm:$0xff] }
 0x31d   : > { %4471 = vmatpush1.bf16.msra.mxu1 %v2654_v58  ;;  %4144 = vmatprep.subr.bf16.mxu0 %v2661_v60  ;;  %v2695_v58 = vpack.c.bf16 %v1007_v52, %v999_v51  ;;  %v1006_v60 = vld [vmem:[%s5407_s22 + $0x1770] sm:$0xff]  ;;  %v1060_v51 = vld [vmem:[%s5407_s22 + $0x1920] sm:$0xff] }
 0x31e   : > { %4472 = vmatprep.subr.bf16.mxu1 %v2663_v1  ;;  %v1023_v1 = vld [vmem:[%s5407_s22 + $0x17f8] sm:$0xff]  ;;  %v2694_v3 = vpack.c.bf16 %v1006_v60, %v998_v57  ;;  %v1068_v52 = vld [vmem:[%s5407_s22 + $0x1960] sm:$0xff] }
 0x31f   : > { %v1087_v57 = vld [vmem:[%s5407_s22 + $0x19f8] sm:$0xff]  ;;  %v2724_v60 = vpack.c.bf16 %v1068_v52, %v1060_v51  ;;  %v1116_v37 = vld [vmem:[%s5407_s22 + $0x1ae0] sm:$0xff] }
 0x320   : > { %4145 = vmatpush1.bf16.msra.mxu0 %v2660_v9  ;;  %v1014_v9 = vld [vmem:[%s5407_s22 + $0x17b0] sm:$0xff]  ;;  %v2748_v51 = vpack.c.bf16 %v1116_v37, %v1108_v15 }
 0x321   : > { %4473 = vmatpush1.bf16.msra.mxu1 %v2662_v11  ;;  %4146 = vmatprep.subr.bf16.mxu0 %v2669_v12  ;;  %v2703_v11 = vpack.c.bf16 %v1023_v1, %v1015_v0  ;;  %v1022_v12 = vld [vmem:[%s5407_s22 + $0x17f0] sm:$0xff]  ;;  %v1076_v0 = vld [vmem:[%s5407_s22 + $0x19a0] sm:$0xff] }
 0x322   : > { %4474 = vmatprep.subr.bf16.mxu1 %v2671_v17  ;;  %v1039_v17 = vld [vmem:[%s5407_s22 + $0x1878] sm:$0xff]  ;;  %v2702_v27 = vpack.c.bf16 %v1022_v12, %v1014_v9  ;;  %v1084_v1 = vld [vmem:[%s5407_s22 + $0x19e0] sm:$0xff] }
 0x323   : > { %v1103_v9 = vld [vmem:[%s5407_s22 + $0x1a78] sm:$0xff]  ;;  %v2732_v12 = vpack.c.bf16 %v1084_v1, %v1076_v0 }
 0x324   : > { %4147 = vmatpush1.bf16.msra.mxu0 %v2668_v25  ;;  %v1030_v25 = vld [vmem:[%s5407_s22 + $0x1830] sm:$0xff] }
 0x325   : > { %4475 = vmatpush1.bf16.msra.mxu1 %v2670_v26  ;;  %4148 = vmatprep.subr.bf16.mxu0 %v2677_v28  ;;  %v2711_v26 = vpack.c.bf16 %v1039_v17, %v1031_v16  ;;  %v1038_v28 = vld [vmem:[%s5407_s22 + $0x1870] sm:$0xff]  ;;  %v1092_v16 = vld [vmem:[%s5407_s22 + $0x1a20] sm:$0xff] }
 0x326   : > { %4476 = vmatprep.subr.bf16.mxu1 %v2679_v34  ;;  %v1055_v34 = vld [vmem:[%s5407_s22 + $0x18f8] sm:$0xff]  ;;  %v2710_v35 = vpack.c.bf16 %v1038_v28, %v1030_v25  ;;  %v1100_v17 = vld [vmem:[%s5407_s22 + $0x1a60] sm:$0xff] }
 0x327   : > { %v1119_v28 = vld [vmem:[%s5407_s22 + $0x1af8] sm:$0xff]  ;;  %v2740_v31 = vpack.c.bf16 %v1100_v17, %v1092_v16 }
 0x328   : > { %4149 = vmatpush1.bf16.msra.mxu0 %v2676_v38  ;;  %v1046_v38 = vld [vmem:[%s5407_s22 + $0x18b0] sm:$0xff] }
 0x329   : > { %4477 = vmatpush1.bf16.msra.mxu1 %v2678_v40  ;;  %4150 = vmatprep.subr.bf16.mxu0 %v2685_v41  ;;  %v2719_v40 = vpack.c.bf16 %v1055_v34, %v1047_v33  ;;  %v1054_v41 = vld [vmem:[%s5407_s22 + $0x18f0] sm:$0xff] }
 0x32a   : > { %4478 = vmatprep.subr.bf16.mxu1 %v2687_v48  ;;  %v1071_v48 = vld [vmem:[%s5407_s22 + $0x1978] sm:$0xff]  ;;  %v2718_v50 = vpack.c.bf16 %v1054_v41, %v1046_v38  ;;  %v1110_v38 = vld [vmem:[%s5407_s22 + $0x1ab0] sm:$0xff] }
 0x32b   : > { %v1118_v41 = vld [vmem:[%s5407_s22 + $0x1af0] sm:$0xff] }
 0x32c   : > { %4151 = vmatpush1.bf16.msra.mxu0 %v2684_v53  ;;  %v1062_v53 = vld [vmem:[%s5407_s22 + $0x1930] sm:$0xff] }
 0x32d   : > { %4479 = vmatpush1.bf16.msra.mxu1 %v2686_v54  ;;  %4152 = vmatprep.subr.bf16.mxu0 %v2693_v55  ;;  %v2727_v54 = vpack.c.bf16 %v1071_v48, %v1063_v46  ;;  %v1070_v55 = vld [vmem:[%s5407_s22 + $0x1970] sm:$0xff]  ;;  %v1127_v48 = vld [vmem:[%s5407_s22 + $0x1b38] sm:$0xff] }
 0x32e   : > { %4480 = vmatprep.subr.bf16.mxu1 %v2695_v58  ;;  %v3346_v58 = vlaneseq  ;;  %v2726_v62 = vpack.c.bf16 %v1070_v55, %v1062_v53  ;;  %v2750_v53 = vpack.c.bf16 %v1118_v41, %v1110_v38  ;;  %v1124_v55 = vld [vmem:[%s5407_s22 + $0x1b20] sm:$0xff]  ;;  %v1158_v41 = vld [vmem:[%s5407_s22 + $0x1c30] sm:$0xff] }
 0x32f   : > { %v1156_v38 = vld [vmem:[%s5407_s22 + $0x1c20] sm:$0xff] }
 0x330   : > { %4153 = vmatpush1.bf16.msra.mxu0 %v2692_v2  ;;  %v1078_v2 = vld [vmem:[%s5407_s22 + $0x19b0] sm:$0xff] }
 0x331   : > { %4481 = vmatpush1.bf16.msra.mxu1 %v2694_v3  ;;  %4154 = vmatprep.subr.bf16.mxu0 %v2701_v4  ;;  %v1086_v4 = vld [vmem:[%s5407_s22 + $0x19f0] sm:$0xff] }
 0x332   : > { %4482 = vmatprep.subr.bf16.mxu1 %v2703_v11  ;;  %v6936_v11 = vshrl.u32 %v3346_v58, 7  ;;  %v2734_v13 = vpack.c.bf16 %v1086_v4, %v1078_v2  ;;  %v1134_v58 = vld [vmem:[%s5407_s22 + $0x1b70] sm:$0xff]  ;;  %v1143_v2 = vld [vmem:[%s5407_s22 + $0x1bb8] sm:$0xff] }
 0x333   : > { %v2758_v17 = vpack.c.bf16 %v1134_v58, %v1126_v56  ;;  %v1182_v56 = vld [vmem:[%s5407_s22 + $0x1cf0] sm:$0xff]  ;;  %v1191_v58 = vld [vmem:[%s5407_s22 + $0x1d38] sm:$0xff] }
 0x334   : > { %4155 = vmatpush1.bf16.msra.mxu0 %v2700_v18  ;;  %v1094_v18 = vld [vmem:[%s5407_s22 + $0x1a30] sm:$0xff]  ;;  %v3348_v25 = vsub.s32 0, %v6936_v11  ;;  %v3356_v33 = vsub.s32 2, %v6936_v11  ;;  %v3352_v34 = vsub.s32 1, %v6936_v11 }
 0x335   : > { %4483 = vmatpush1.bf16.msra.mxu1 %v2702_v27  ;;  %4165 = vmatprep.subr.bf16.mxu0 %v2709_v20  ;;  %v1102_v20 = vld [vmem:[%s5407_s22 + $0x1a70] sm:$0xff] }
 0x336   : > { %4493 = vmatprep.subr.bf16.mxu1 %v2711_v26  ;;  %v1111_v26 = vld [vmem:[%s5407_s22 + $0x1ab8] sm:$0xff]  ;;  %v3349_v46 = vrot.slane %v3344_v32, %v3348_v25 }
 0x337   : > { %4157 = vmatmul.mubr.bf16.vlgmr.msra.gmra.mrb[4].mxu0 %v5827_v47 }
 0x338   : > { %4166 = vmatpush1.bf16.msra.mxu0 %v2708_v42  ;;  %4485 = vmatmul.mubr.bf16.vlgmr.msra.gmra.mrb[4].mxu1 %v5827_v47  ;;  %v1079_v47 = vld [vmem:[%s5407_s22 + $0x19b8] sm:$0xff]  ;;  %v2742_v42 = vpack.c.bf16 %v1102_v20, %v1094_v18  ;;  %v1148_v20 = vld [vmem:[%s5407_s22 + $0x1be0] sm:$0xff] }
 0x339   : > { %4494 = vmatpush1.bf16.msra.mxu1 %v2710_v35  ;;  %4167 = vmatprep.subr.bf16.mxu0 %v2717_v36  ;;  %v2735_v3 = vpack.c.bf16 %v1087_v57, %v1079_v47  ;;  %v3360_v35 = vsub.s32 3, %v6936_v11  ;;  %v2749_v36 = vpack.c.bf16 %v1117_v23, %v1109_v21  ;;  %v1142_v21 = vld [vmem:[%s5407_s22 + $0x1bb0] sm:$0xff] }
 0x33a   : > { %4495 = vmatprep.subr.bf16.mxu1 %v2719_v40  ;;  %4197 = vmatprep.mubr.bf16.mxu0 %v5837_v61  ;;  %v2751_v40 = vpack.c.bf16 %v1119_v28, %v1111_v26 }
 0x33b   : > { %4525 = vmatprep.mubr.bf16.mxu1 %v5837_v61  ;;  %v1095_v61 = vld [vmem:[%s5407_s22 + $0x1a38] sm:$0xff]  ;;  %v3361_v52 = vrot.slane %v3344_v32, %v3360_v35 }
 0x33c   : > { %4168 = vmatpush1.bf16.msra.mxu0 %v2716_v49  ;;  %v2743_v27 = vpack.c.bf16 %v1103_v9, %v1095_v61  ;;  %v1135_v49 = vld [vmem:[%s5407_s22 + $0x1b78] sm:$0xff]  ;;  %v2756_v9 = vpack.c.bf16 %v1132_v19, %v1124_v55  ;;  %v1174_v55 = vld [vmem:[%s5407_s22 + $0x1cb0] sm:$0xff] }
 0x33d   : > { %4496 = vmatpush1.bf16.msra.mxu1 %v2718_v50  ;;  %4169 = vmatprep.subr.bf16.mxu0 %v2725_v30  ;;  %v3357_v50 = vrot.slane %v3344_v32, %v3356_v33  ;;  %v3353_v30 = vrot.slane %v3344_v32, %v3352_v34  ;;  %v2759_v57 = vpack.c.bf16 %v1135_v49, %v1127_v48  ;;  %v1157_v32 = vld [vmem:[%s5407_s22 + $0x1c28] sm:$0xff]  ;;  %v1167_v35 = vld [vmem:[%s5407_s22 + $0x1c78] sm:$0xff] }
 0x33e   : > { %4497 = vmatprep.subr.bf16.mxu1 %v2727_v54  ;;  %v2757_v54 = vpack.c.bf16 %v1133_v45, %v1125_v43  ;;  %v1165_v33 = vld [vmem:[%s5407_s22 + $0x1c68] sm:$0xff]  ;;  %v1166_v45 = vld [vmem:[%s5407_s22 + $0x1c70] sm:$0xff]  ;;  %v1175_v49 = vld [vmem:[%s5407_s22 + $0x1cb8] sm:$0xff] }
 0x33f   : > { %v2773_v37 = vpack.c.bf16 %v1165_v33, %v1157_v32  ;;  %v1181_v48 = vld [vmem:[%s5407_s22 + $0x1ce8] sm:$0xff] }
 0x340   : > { %4170 = vmatpush1.bf16.msra.mxu0 %v2724_v60  ;;  %v1141_v60 = vld [vmem:[%s5407_s22 + $0x1ba8] sm:$0xff] }
 0x341   : > { %4498 = vmatpush1.bf16.msra.mxu1 %v2726_v62  ;;  %4171 = vmatprep.subr.bf16.mxu0 %v2733_v63  ;;  %v1149_v62 = vld [vmem:[%s5407_s22 + $0x1be8] sm:$0xff] }
 0x342   : > { %4499 = vmatprep.subr.bf16.mxu1 %v2735_v3  ;;  %v1151_v3 = vld [vmem:[%s5407_s22 + $0x1bf8] sm:$0xff]  ;;  %v2765_v18 = vpack.c.bf16 %v1149_v62, %v1141_v60 }
 0x343   : > { %v2767_v28 = vpack.c.bf16 %v1151_v3, %v1143_v2  ;;  %v1199_v60 = vld [vmem:[%s5407_s22 + $0x1d78] sm:$0xff]  ;;  %v1196_v2 = vld [vmem:[%s5407_s22 + $0x1d60] sm:$0xff]  ;;  %v1190_v3 = vld [vmem:[%s5407_s22 + $0x1d30] sm:$0xff] }
 0x344   : > { %4172 = vmatpush1.bf16.msra.mxu0 %v2732_v12 }
 0x345   : > { %4500 = vmatpush1.bf16.msra.mxu1 %v2734_v13  ;;  %4173 = vmatprep.subr.bf16.mxu0 %v2741_v14 }
 0x346   : > { %4501 = vmatprep.subr.bf16.mxu1 %v2743_v27  ;;  %v1140_v27 = vld [vmem:[%s5407_s22 + $0x1ba0] sm:$0xff] }
 0x348   : > { %4174 = vmatpush1.bf16.msra.mxu0 %v2740_v31  ;;  %v1150_v31 = vld [vmem:[%s5407_s22 + $0x1bf0] sm:$0xff] }
 0x349   : > { %4502 = vmatpush1.bf16.msra.mxu1 %v2742_v42  ;;  %4175 = vmatprep.subr.bf16.mxu0 %v2749_v36  ;;  %v1159_v42 = vld [vmem:[%s5407_s22 + $0x1c38] sm:$0xff]  ;;  %v2764_v36 = vpack.c.bf16 %v1148_v20, %v1140_v27  ;;  %v2766_v15 = vpack.c.bf16 %v1150_v31, %v1142_v21  ;;  %v1206_v27 = vld [vmem:[%s5407_s22 + $0x1db0] sm:$0xff] }
 0x34a   : > { %v3707_v47 = vpop.f32.mrb[0].mxu0  ;;  %4503 = vmatprep.subr.bf16.mxu1 %v2751_v40  ;;  %v1164_v40 = vld [vmem:[%s5407_s22 + $0x1c60] sm:$0xff]  ;;  %v2775_v43 = vpack.c.bf16 %v1167_v35, %v1159_v42  ;;  %v1214_v21 = vld [vmem:[%s5407_s22 + $0x1df0] sm:$0xff] }
 0x34b   : > { %v4854_v63 = vadd.f32 %v3707_v47, %v3349_v46  ;;  %v4035_v0 = vpop.f32.mrb[0].mxu1  ;;  %v3709_v1 = vpop.f32.mrb[1].mxu0  ;;  %v1173_v46 = vld [vmem:[%s5407_s22 + $0x1ca8] sm:$0xff]  ;;  %v2798_v32 = vpack.c.bf16 %v1214_v21, %v1206_v27  ;;  %v1228_v42 = vld [vmem:[%s5407_s22 + $0x1e60] sm:$0xff]  ;;  %v1222_v35 = vld [vmem:[%s5407_s22 + $0x1e30] sm:$0xff] }
 0x34c   : > { %v4856_v4 = vadd.f32 %v4035_v0, %v3357_v50  ;;  %v4855_v5 = vadd.f32 %v3709_v1, %v3353_v30  ;;  %v4037_v6 = vpop.f32.mrb[1].mxu1  ;;  %v3711_v61 = vpop.f32.mrb[2].mxu0  ;;  %4176 = vmatpush1.bf16.msra.mxu0 %v2748_v51  ;;  %v1183_v50 = vld [vmem:[%s5407_s22 + $0x1cf8] sm:$0xff]  ;;  %v2772_v30 = vpack.c.bf16 %v1164_v40, %v1156_v38  ;;  %v2774_v51 = vpack.c.bf16 %v1166_v45, %v1158_v41  ;;  %v1189_v47 = vld [vmem:[%s5407_s22 + $0x1d28] sm:$0xff]  ;;  %v1188_v1 = vld [vmem:[%s5407_s22 + $0x1d20] sm:$0xff] }
 0x34d   : > { %v4698_v12 = vmax.f32 %v4854_v63, 0.0  ;;  %v4857_v13 = vadd.f32 %v4037_v6, %v3361_v52  ;;  %v4039_v14 = vpop.f32.mrb[2].mxu1  ;;  %4504 = vmatpush1.bf16.msra.mxu1 %v2750_v53  ;;  %v3712_v16 = vpop.f32.mrb[3].mxu0  ;;  %4177 = vmatprep.subr.bf16.mxu0 %v2757_v54  ;;  %v2781_v52 = vpack.c.bf16 %v1181_v48, %v1173_v46  ;;  %v1172_v53 = vld [vmem:[%s5407_s22 + $0x1ca0] sm:$0xff]  ;;  %v2783_v19 = vpack.c.bf16 %v1183_v50, %v1175_v49  ;;  %v1205_v6 = vld [vmem:[%s5407_s22 + $0x1da8] sm:$0xff]  ;;  %v1239_v40 = vld [vmem:[%s5407_s22 + $0x1eb8] sm:$0xff] }
 0x34e   : > { %v4700_v23 = vmax.f32 %v4856_v4, 0.0  ;;  %v4699_v25 = vmax.f32 %v4855_v5, 0.0  ;;  %v4040_v26 = vpop.f32.mrb[3].mxu1  ;;  %4505 = vmatprep.subr.bf16.mxu1 %v2759_v57  ;;  %v1180_v54 = vld [vmem:[%s5407_s22 + $0x1ce0] sm:$0xff]  ;;  %v1197_v57 = vld [vmem:[%s5407_s22 + $0x1d68] sm:$0xff]  ;;  %v2782_v63 = vpack.c.bf16 %v1182_v56, %v1174_v55  ;;  %v2791_v4 = vpack.c.bf16 %v1199_v60, %v1191_v58  ;;  %v1198_v5 = vld [vmem:[%s5407_s22 + $0x1d70] sm:$0xff] }
 0x34f   : > { %4706 = vst [vmem:[%s6978_s10] sm:$0xff] %v4698_v12  ;;  %v4701_v34 = vmax.f32 %v4857_v13, 0.0  ;;  %v2780_v62 = vpack.c.bf16 %v1180_v54, %v1172_v53  ;;  %v2789_v0 = vpack.c.bf16 %v1197_v57, %v1189_v47  ;;  %v1213_v61 = vld [vmem:[%s5407_s22 + $0x1de8] sm:$0xff]  ;;  %v1215_v12 = vld [vmem:[%s5407_s22 + $0x1df8] sm:$0xff]  ;;  %v2788_v13 = vpack.c.bf16 %v1196_v2, %v1188_v1  ;;  %v1236_v48 = vld [vmem:[%s5407_s22 + $0x1ea0] sm:$0xff] }
 0x350   : > { %4708 = vst [vmem:[%s6978_s10 + $0x10] sm:$0xff] %v4700_v23  ;;  %4707 = vst [vmem:[%s6978_s10 + $0x8] sm:$0xff] %v4699_v25  ;;  %4178 = vmatpush1.bf16.msra.mxu0 %v2756_v9  ;;  %v1207_v9 = vld [vmem:[%s5407_s22 + $0x1db8] sm:$0xff]  ;;  %v2790_v14 = vpack.c.bf16 %v1198_v5, %v1190_v3  ;;  %v2797_v16 = vpack.c.bf16 %v1213_v61, %v1205_v6  ;;  %v1221_v23 = vld [vmem:[%s5407_s22 + $0x1e28] sm:$0xff] }
 0x351   : > { %4709 = vst [vmem:[%s6978_s10 + $0x18] sm:$0xff] %v4701_v34  ;;  %4506 = vmatpush1.bf16.msra.mxu1 %v2758_v17  ;;  %4179 = vmatprep.subr.bf16.mxu0 %v2765_v18  ;;  %v1204_v17 = vld [vmem:[%s5407_s22 + $0x1da0] sm:$0xff]  ;;  %v2799_v20 = vpack.c.bf16 %v1215_v12, %v1207_v9  ;;  %v1229_v25 = vld [vmem:[%s5407_s22 + $0x1e68] sm:$0xff]  ;;  %v1223_v26 = vld [vmem:[%s5407_s22 + $0x1e38] sm:$0xff] }
 0x352   : > { %4507 = vmatprep.subr.bf16.mxu1 %v2767_v28  ;;  %v1212_v18 = vld [vmem:[%s5407_s22 + $0x1de0] sm:$0xff]  ;;  %v1231_v28 = vld [vmem:[%s5407_s22 + $0x1e78] sm:$0xff]  ;;  %v2805_v33 = vpack.c.bf16 %v1229_v25, %v1221_v23  ;;  %v1245_v38 = vld [vmem:[%s5407_s22 + $0x1ee8] sm:$0xff] }
 0x353   : > { %v2796_v31 = vpack.c.bf16 %v1212_v18, %v1204_v17  ;;  %v1220_v34 = vld [vmem:[%s5407_s22 + $0x1e20] sm:$0xff]  ;;  %v1247_v41 = vld [vmem:[%s5407_s22 + $0x1ef8] sm:$0xff]  ;;  %v1238_v50 = vld [vmem:[%s5407_s22 + $0x1eb0] sm:$0xff] }
 0x354   : > { %4180 = vmatpush1.bf16.msra.mxu0 %v2764_v36  ;;  %v2807_v36 = vpack.c.bf16 %v1231_v28, %v1223_v26  ;;  %v1244_v49 = vld [vmem:[%s5407_s22 + $0x1ee0] sm:$0xff]  ;;  %v1261_v53 = vld [vmem:[%s5407_s22 + $0x1f68] sm:$0xff]  ;;  %v1255_v54 = vld [vmem:[%s5407_s22 + $0x1f38] sm:$0xff] }
 0x355   : > { %4508 = vmatpush1.bf16.msra.mxu1 %v2766_v15  ;;  %4181 = vmatprep.subr.bf16.mxu0 %v2773_v37  ;;  %v1230_v15 = vld [vmem:[%s5407_s22 + $0x1e70] sm:$0xff]  ;;  %v1237_v37 = vld [vmem:[%s5407_s22 + $0x1ea8] sm:$0xff]  ;;  %v1263_v55 = vld [vmem:[%s5407_s22 + $0x1f78] sm:$0xff] }
 0x356   : > { %4509 = vmatprep.subr.bf16.mxu1 %v2775_v43  ;;  %v2804_v43 = vpack.c.bf16 %v1228_v42, %v1220_v34  ;;  %v2806_v45 = vpack.c.bf16 %v1230_v15, %v1222_v35  ;;  %v2813_v46 = vpack.c.bf16 %v1245_v38, %v1237_v37  ;;  %v1252_v57 = vld [vmem:[%s5407_s22 + $0x1f20] sm:$0xff]  ;;  %v1254_v60 = vld [vmem:[%s5407_s22 + $0x1f30] sm:$0xff]  ;;  %v1277_v1 = vld [vmem:[%s5407_s22 + $0x1fe8] sm:$0xff] }
 0x357   : > { %v1260_v58 = vld [vmem:[%s5407_s22 + $0x1f60] sm:$0xff]  ;;  %v1271_v2 = vld [vmem:[%s5407_s22 + $0x1fb8] sm:$0xff]  ;;  %v1270_v12 = vld [vmem:[%s5407_s22 + $0x1fb0] sm:$0xff] }
 0x358   : > { %4182 = vmatpush1.bf16.msra.mxu0 %v2772_v30  ;;  %v2815_v30 = vpack.c.bf16 %v1247_v41, %v1239_v40  ;;  %v1279_v3 = vld [vmem:[%s5407_s22 + $0x1ff8] sm:$0xff]  ;;  %v1268_v61 = vld [vmem:[%s5407_s22 + $0x1fa0] sm:$0xff]  ;;  %v1293_v17 = vld [vmem:[%s5407_s22 + $0x2068] sm:$0xff] }
 0x359   : > { %4510 = vmatpush1.bf16.msra.mxu1 %v2774_v51  ;;  %4183 = vmatprep.subr.bf16.mxu0 %v2781_v52  ;;  %v1246_v51 = vld [vmem:[%s5407_s22 + $0x1ef0] sm:$0xff]  ;;  %v1253_v52 = vld [vmem:[%s5407_s22 + $0x1f28] sm:$0xff]  ;;  %v1276_v9 = vld [vmem:[%s5407_s22 + $0x1fe0] sm:$0xff] }
 0x35a   : > { %4511 = vmatprep.subr.bf16.mxu1 %v2783_v19  ;;  %v2812_v19 = vpack.c.bf16 %v1244_v49, %v1236_v48  ;;  %v2814_v56 = vpack.c.bf16 %v1246_v51, %v1238_v50  ;;  %v2821_v47 = vpack.c.bf16 %v1261_v53, %v1253_v52  ;;  %v1287_v18 = vld [vmem:[%s5407_s22 + $0x2038] sm:$0xff]  ;;  %v1284_v25 = vld [vmem:[%s5407_s22 + $0x2020] sm:$0xff]  ;;  %v1286_v28 = vld [vmem:[%s5407_s22 + $0x2030] sm:$0xff] }
 0x35b   : > { %v1295_v27 = vld [vmem:[%s5407_s22 + $0x2078] sm:$0xff]  ;;  %v1292_v26 = vld [vmem:[%s5407_s22 + $0x2060] sm:$0xff]  ;;  %v1309_v34 = vld [vmem:[%s5407_s22 + $0x20e8] sm:$0xff] }
 0x35c   : > { %4184 = vmatpush1.bf16.msra.mxu0 %v2780_v62  ;;  %v2823_v62 = vpack.c.bf16 %v1263_v55, %v1255_v54  ;;  %v1303_v42 = vld [vmem:[%s5407_s22 + $0x20b8] sm:$0xff]  ;;  %v1300_v38 = vld [vmem:[%s5407_s22 + $0x20a0] sm:$0xff]  ;;  %v1302_v41 = vld [vmem:[%s5407_s22 + $0x20b0] sm:$0xff] }
 0x35d   : > { %4512 = vmatpush1.bf16.msra.mxu1 %v2782_v63  ;;  %4185 = vmatprep.subr.bf16.mxu0 %v2789_v0  ;;  %v1262_v63 = vld [vmem:[%s5407_s22 + $0x1f70] sm:$0xff]  ;;  %v1269_v0 = vld [vmem:[%s5407_s22 + $0x1fa8] sm:$0xff]  ;;  %v1311_v35 = vld [vmem:[%s5407_s22 + $0x20f8] sm:$0xff] }
 0x35e   : > { %4513 = vmatprep.subr.bf16.mxu1 %v2791_v4  ;;  %v2820_v4 = vpack.c.bf16 %v1260_v58, %v1252_v57  ;;  %v2822_v5 = vpack.c.bf16 %v1262_v63, %v1254_v60  ;;  %v2829_v6 = vpack.c.bf16 %v1277_v1, %v1269_v0  ;;  %v1308_v40 = vld [vmem:[%s5407_s22 + $0x20e0] sm:$0xff]  ;;  %v1325_v48 = vld [vmem:[%s5407_s22 + $0x2168] sm:$0xff]  ;;  %v1319_v49 = vld [vmem:[%s5407_s22 + $0x2138] sm:$0xff] }
 0x35f   : > { %v1327_v50 = vld [vmem:[%s5407_s22 + $0x2178] sm:$0xff]  ;;  %v1316_v53 = vld [vmem:[%s5407_s22 + $0x2120] sm:$0xff]  ;;  %v1318_v55 = vld [vmem:[%s5407_s22 + $0x2130] sm:$0xff] }
 0x360   : > { %4186 = vmatpush1.bf16.msra.mxu0 %v2788_v13  ;;  %v2831_v13 = vpack.c.bf16 %v1279_v3, %v1271_v2  ;;  %v1324_v54 = vld [vmem:[%s5407_s22 + $0x2160] sm:$0xff]  ;;  %v1341_v57 = vld [vmem:[%s5407_s22 + $0x21e8] sm:$0xff]  ;;  %v1343_v58 = vld [vmem:[%s5407_s22 + $0x21f8] sm:$0xff] }
 0x361   : > { %4514 = vmatpush1.bf16.msra.mxu1 %v2790_v14  ;;  %4187 = vmatprep.subr.bf16.mxu0 %v2797_v16  ;;  %v1278_v14 = vld [vmem:[%s5407_s22 + $0x1ff0] sm:$0xff]  ;;  %v1285_v16 = vld [vmem:[%s5407_s22 + $0x2028] sm:$0xff]  ;;  %v2852_v60 = vpack.c.bf16 %v1324_v54, %v1316_v53  ;;  %v1332_v0 = vld [vmem:[%s5407_s22 + $0x21a0] sm:$0xff] }
 0x362   : > { %4515 = vmatprep.subr.bf16.mxu1 %v2799_v20  ;;  %v2828_v20 = vpack.c.bf16 %v1276_v9, %v1268_v61  ;;  %v2830_v21 = vpack.c.bf16 %v1278_v14, %v1270_v12  ;;  %v2837_v23 = vpack.c.bf16 %v1293_v17, %v1285_v16  ;;  %v1340_v1 = vld [vmem:[%s5407_s22 + $0x21e0] sm:$0xff]  ;;  %v1334_v2 = vld [vmem:[%s5407_s22 + $0x21b0] sm:$0xff]  ;;  %v1359_v61 = vld [vmem:[%s5407_s22 + $0x2278] sm:$0xff] }
 0x363   : > { %v2860_v9 = vpack.c.bf16 %v1340_v1, %v1332_v0  ;;  %v1348_v14 = vld [vmem:[%s5407_s22 + $0x2220] sm:$0xff]  ;;  %v1350_v17 = vld [vmem:[%s5407_s22 + $0x2230] sm:$0xff]  ;;  %v1407_v53 = vld [vmem:[%s5407_s22 + $0x23f8] sm:$0xff] }
 0x364   : > { %4188 = vmatpush1.bf16.msra.mxu0 %v2796_v31  ;;  %v2839_v31 = vpack.c.bf16 %v1295_v27, %v1287_v18  ;;  %v1356_v16 = vld [vmem:[%s5407_s22 + $0x2260] sm:$0xff]  ;;  %v1358_v27 = vld [vmem:[%s5407_s22 + $0x2270] sm:$0xff]  ;;  %v1423_v0 = vld [vmem:[%s5407_s22 + $0x2478] sm:$0xff] }
 0x365   : > { %4516 = vmatpush1.bf16.msra.mxu1 %v2798_v32  ;;  %4189 = vmatprep.subr.bf16.mxu0 %v2805_v33  ;;  %v1294_v32 = vld [vmem:[%s5407_s22 + $0x2070] sm:$0xff]  ;;  %v1301_v33 = vld [vmem:[%s5407_s22 + $0x20a8] sm:$0xff] }
 0x366   : > { %4517 = vmatprep.subr.bf16.mxu1 %v2807_v36  ;;  %v2836_v36 = vpack.c.bf16 %v1292_v26, %v1284_v25  ;;  %v2838_v15 = vpack.c.bf16 %v1294_v32, %v1286_v28  ;;  %v2845_v37 = vpack.c.bf16 %v1309_v34, %v1301_v33  ;;  %v1375_v25 = vld [vmem:[%s5407_s22 + $0x22f8] sm:$0xff]  ;;  %v2868_v26 = vpack.c.bf16 %v1356_v16, %v1348_v14  ;;  %v1364_v32 = vld [vmem:[%s5407_s22 + $0x22a0] sm:$0xff]  ;;  %v1366_v34 = vld [vmem:[%s5407_s22 + $0x22b0] sm:$0xff] }
 0x367   : > { %v2870_v28 = vpack.c.bf16 %v1358_v27, %v1350_v17  ;;  %v1372_v33 = vld [vmem:[%s5407_s22 + $0x22e0] sm:$0xff]  ;;  %v1439_v14 = vld [vmem:[%s5407_s22 + $0x24f8] sm:$0xff] }
 0x368   : > { %4190 = vmatpush1.bf16.msra.mxu0 %v2804_v43  ;;  %v2847_v43 = vpack.c.bf16 %v1311_v35, %v1303_v42  ;;  %v1374_v35 = vld [vmem:[%s5407_s22 + $0x22f0] sm:$0xff]  ;;  %v1428_v27 = vld [vmem:[%s5407_s22 + $0x24a0] sm:$0xff] }
 0x369   : > { %4518 = vmatpush1.bf16.msra.mxu1 %v2806_v45  ;;  %4191 = vmatprep.subr.bf16.mxu0 %v2813_v46  ;;  %v1310_v45 = vld [vmem:[%s5407_s22 + $0x20f0] sm:$0xff]  ;;  %v1317_v46 = vld [vmem:[%s5407_s22 + $0x2128] sm:$0xff] }
 0x36a   : > { %4519 = vmatprep.subr.bf16.mxu1 %v2815_v30  ;;  %v2844_v30 = vpack.c.bf16 %v1308_v40, %v1300_v38  ;;  %v2846_v51 = vpack.c.bf16 %v1310_v45, %v1302_v41  ;;  %v2853_v52 = vpack.c.bf16 %v1325_v48, %v1317_v46  ;;  %v1391_v38 = vld [vmem:[%s5407_s22 + $0x2378] sm:$0xff]  ;;  %v2876_v40 = vpack.c.bf16 %v1372_v33, %v1364_v32  ;;  %v1380_v45 = vld [vmem:[%s5407_s22 + $0x2320] sm:$0xff]  ;;  %v1382_v48 = vld [vmem:[%s5407_s22 + $0x2330] sm:$0xff] }
 0x36b   : > { %v2878_v41 = vpack.c.bf16 %v1374_v35, %v1366_v34  ;;  %v1388_v46 = vld [vmem:[%s5407_s22 + $0x2360] sm:$0xff]  ;;  %v1455_v32 = vld [vmem:[%s5407_s22 + $0x2578] sm:$0xff] }
 0x36c   : > { %4192 = vmatpush1.bf16.msra.mxu0 %v2812_v19  ;;  %v2855_v19 = vpack.c.bf16 %v1327_v50, %v1319_v49  ;;  %v1390_v50 = vld [vmem:[%s5407_s22 + $0x2370] sm:$0xff]  ;;  %v2884_v54 = vpack.c.bf16 %v1388_v46, %v1380_v45  ;;  %v1444_v35 = vld [vmem:[%s5407_s22 + $0x2520] sm:$0xff]  ;;  %v1471_v45 = vld [vmem:[%s5407_s22 + $0x25f8] sm:$0xff] }
 0x36d   : > { %4520 = vmatpush1.bf16.msra.mxu1 %v2814_v56  ;;  %4193 = vmatprep.subr.bf16.mxu0 %v2821_v47  ;;  %v1326_v56 = vld [vmem:[%s5407_s22 + $0x2170] sm:$0xff]  ;;  %v1333_v47 = vld [vmem:[%s5407_s22 + $0x21a8] sm:$0xff] }
 0x36e   : > { %4521 = vmatprep.subr.bf16.mxu1 %v2823_v62  ;;  %v2854_v62 = vpack.c.bf16 %v1326_v56, %v1318_v55  ;;  %v2861_v63 = vpack.c.bf16 %v1341_v57, %v1333_v47  ;;  %v2886_v55 = vpack.c.bf16 %v1390_v50, %v1382_v48  ;;  %v1396_v56 = vld [vmem:[%s5407_s22 + $0x23a0] sm:$0xff]  ;;  %v1398_v57 = vld [vmem:[%s5407_s22 + $0x23b0] sm:$0xff] }
 0x36f   : > { %v1404_v47 = vld [vmem:[%s5407_s22 + $0x23e0] sm:$0xff] }
 0x370   : > { %4194 = vmatpush1.bf16.msra.mxu0 %v2820_v4  ;;  %v1342_v4 = vld [vmem:[%s5407_s22 + $0x21f0] sm:$0xff]  ;;  %v2892_v1 = vpack.c.bf16 %v1404_v47, %v1396_v56  ;;  %v1460_v50 = vld [vmem:[%s5407_s22 + $0x25a0] sm:$0xff]  ;;  %v1487_v56 = vld [vmem:[%s5407_s22 + $0x2678] sm:$0xff] }
 0x371   : > { %4522 = vmatpush1.bf16.msra.mxu1 %v2822_v5  ;;  %4195 = vmatprep.subr.bf16.mxu0 %v2829_v6  ;;  %v1349_v5 = vld [vmem:[%s5407_s22 + $0x2228] sm:$0xff]  ;;  %v1351_v6 = vld [vmem:[%s5407_s22 + $0x2238] sm:$0xff]  ;;  %v2862_v12 = vpack.c.bf16 %v1342_v4, %v1334_v2  ;;  %v1412_v4 = vld [vmem:[%s5407_s22 + $0x2420] sm:$0xff] }
 0x372   : > { %4523 = vmatprep.subr.bf16.mxu1 %v2831_v13  ;;  %v2871_v18 = vpack.c.bf16 %v1359_v61, %v1351_v6  ;;  %v1422_v61 = vld [vmem:[%s5407_s22 + $0x2470] sm:$0xff] }
 0x374   : > { %4196 = vmatpush1.bf16.msra.mxu0 %v2828_v20  ;;  %v1365_v20 = vld [vmem:[%s5407_s22 + $0x22a8] sm:$0xff] }
 0x375   : > { %4524 = vmatpush1.bf16.msra.mxu1 %v2830_v21  ;;  %4206 = vmatprep.subr.bf16.mxu0 %v2837_v23  ;;  %v1373_v21 = vld [vmem:[%s5407_s22 + $0x22e8] sm:$0xff]  ;;  %v1367_v23 = vld [vmem:[%s5407_s22 + $0x22b8] sm:$0xff] }
 0x376   : > { %4534 = vmatprep.subr.bf16.mxu1 %v2839_v31  ;;  %v2877_v31 = vpack.c.bf16 %v1373_v21, %v1365_v20  ;;  %v2879_v42 = vpack.c.bf16 %v1375_v25, %v1367_v23  ;;  %v1436_v20 = vld [vmem:[%s5407_s22 + $0x24e0] sm:$0xff]  ;;  %v1430_v21 = vld [vmem:[%s5407_s22 + $0x24b0] sm:$0xff] }
 0x377   : > { %4198 = vmatmul.mubr.bf16.vlgmr.msra.gmra.mrb[4].mxu0 %v5963_v8  ;;  %v1438_v25 = vld [vmem:[%s5407_s22 + $0x24f0] sm:$0xff]  ;;  %v2908_v33 = vpack.c.bf16 %v1436_v20, %v1428_v27  ;;  %v1519_v27 = vld [vmem:[%s5407_s22 + $0x2778] sm:$0xff] }
 0x378   : > { %4207 = vmatpush1.bf16.msra.mxu0 %v2836_v36  ;;  %4526 = vmatmul.mubr.bf16.vlgmr.msra.gmra.mrb[4].mxu1 %v5963_v8  ;;  %v1335_v8 = vld [vmem:[%s5407_s22 + $0x21b8] sm:$0xff]  ;;  %v1381_v36 = vld [vmem:[%s5407_s22 + $0x2328] sm:$0xff]  ;;  %v2910_v34 = vpack.c.bf16 %v1438_v25, %v1430_v21  ;;  %v1508_v25 = vld [vmem:[%s5407_s22 + $0x2720] sm:$0xff] }
 0x379   : > { %4535 = vmatpush1.bf16.msra.mxu1 %v2838_v15  ;;  %4208 = vmatprep.subr.bf16.mxu0 %v2845_v37  ;;  %v2863_v3 = vpack.c.bf16 %v1343_v58, %v1335_v8  ;;  %v1389_v15 = vld [vmem:[%s5407_s22 + $0x2368] sm:$0xff]  ;;  %v1383_v37 = vld [vmem:[%s5407_s22 + $0x2338] sm:$0xff]  ;;  %v1406_v58 = vld [vmem:[%s5407_s22 + $0x23f0] sm:$0xff] }
 0x37a   : > { %4536 = vmatprep.subr.bf16.mxu1 %v2847_v43  ;;  %4238 = vmatprep.mubr.bf16.mxu0 %v5973_v24  ;;  %v2885_v43 = vpack.c.bf16 %v1389_v15, %v1381_v36  ;;  %v2887_v49 = vpack.c.bf16 %v1391_v38, %v1383_v37  ;;  %v2894_v2 = vpack.c.bf16 %v1406_v58, %v1398_v57  ;;  %v1452_v36 = vld [vmem:[%s5407_s22 + $0x2560] sm:$0xff]  ;;  %v1446_v15 = vld [vmem:[%s5407_s22 + $0x2530] sm:$0xff] }
 0x37b   : > { %4566 = vmatprep.mubr.bf16.mxu1 %v5973_v24  ;;  %v1357_v24 = vld [vmem:[%s5407_s22 + $0x2268] sm:$0xff]  ;;  %v1454_v38 = vld [vmem:[%s5407_s22 + $0x2570] sm:$0xff]  ;;  %v2916_v46 = vpack.c.bf16 %v1452_v36, %v1444_v35  ;;  %v1476_v58 = vld [vmem:[%s5407_s22 + $0x2620] sm:$0xff] }
 0x37c   : > { %4209 = vmatpush1.bf16.msra.mxu0 %v2844_v30  ;;  %v2869_v13 = vpack.c.bf16 %v1357_v24, %v1349_v5  ;;  %v1397_v30 = vld [vmem:[%s5407_s22 + $0x23a8] sm:$0xff]  ;;  %v1420_v5 = vld [vmem:[%s5407_s22 + $0x2460] sm:$0xff]  ;;  %v1414_v24 = vld [vmem:[%s5407_s22 + $0x2430] sm:$0xff]  ;;  %v2918_v48 = vpack.c.bf16 %v1454_v38, %v1446_v15 }
 0x37d   : > { %4537 = vmatpush1.bf16.msra.mxu1 %v2846_v51  ;;  %4210 = vmatprep.subr.bf16.mxu0 %v2853_v52  ;;  %v1405_v51 = vld [vmem:[%s5407_s22 + $0x23e8] sm:$0xff]  ;;  %v1399_v52 = vld [vmem:[%s5407_s22 + $0x23b8] sm:$0xff]  ;;  %v2900_v16 = vpack.c.bf16 %v1420_v5, %v1412_v4  ;;  %v2902_v17 = vpack.c.bf16 %v1422_v61, %v1414_v24  ;;  %v1492_v61 = vld [vmem:[%s5407_s22 + $0x26a0] sm:$0xff] }
 0x37e   : > { %4538 = vmatprep.subr.bf16.mxu1 %v2855_v19  ;;  %v2893_v19 = vpack.c.bf16 %v1405_v51, %v1397_v30  ;;  %v2895_v8 = vpack.c.bf16 %v1407_v53, %v1399_v52  ;;  %v1468_v30 = vld [vmem:[%s5407_s22 + $0x25e0] sm:$0xff]  ;;  %v1462_v51 = vld [vmem:[%s5407_s22 + $0x25b0] sm:$0xff]  ;;  %v1503_v4 = vld [vmem:[%s5407_s22 + $0x26f8] sm:$0xff] }
 0x37f   : > { %v1470_v53 = vld [vmem:[%s5407_s22 + $0x25f0] sm:$0xff]  ;;  %v2924_v47 = vpack.c.bf16 %v1468_v30, %v1460_v50  ;;  %v1535_v35 = vld [vmem:[%s5407_s22 + $0x27f8] sm:$0xff]  ;;  %v1524_v38 = vld [vmem:[%s5407_s22 + $0x27a0] sm:$0xff] }
 0x380   : > { %4211 = vmatpush1.bf16.msra.mxu0 %v2852_v60  ;;  %v1413_v60 = vld [vmem:[%s5407_s22 + $0x2428] sm:$0xff]  ;;  %v2926_v57 = vpack.c.bf16 %v1470_v53, %v1462_v51  ;;  %v1551_v50 = vld [vmem:[%s5407_s22 + $0x2878] sm:$0xff]  ;;  %v1540_v53 = vld [vmem:[%s5407_s22 + $0x2820] sm:$0xff] }
 0x381   : > { %4539 = vmatpush1.bf16.msra.mxu1 %v2854_v62  ;;  %4212 = vmatprep.subr.bf16.mxu0 %v2861_v63  ;;  %v1421_v62 = vld [vmem:[%s5407_s22 + $0x2468] sm:$0xff]  ;;  %v1415_v63 = vld [vmem:[%s5407_s22 + $0x2438] sm:$0xff] }
 0x382   : > { %4540 = vmatprep.subr.bf16.mxu1 %v2863_v3  ;;  %v2901_v3 = vpack.c.bf16 %v1421_v62, %v1413_v60  ;;  %v2903_v6 = vpack.c.bf16 %v1423_v0, %v1415_v63  ;;  %v1484_v60 = vld [vmem:[%s5407_s22 + $0x2660] sm:$0xff]  ;;  %v1478_v62 = vld [vmem:[%s5407_s22 + $0x2630] sm:$0xff] }
 0x383   : > { %v1486_v0 = vld [vmem:[%s5407_s22 + $0x2670] sm:$0xff]  ;;  %v2932_v5 = vpack.c.bf16 %v1484_v60, %v1476_v58  ;;  %v1567_v58 = vld [vmem:[%s5407_s22 + $0x28f8] sm:$0xff] }
 0x384   : > { %4213 = vmatpush1.bf16.msra.mxu0 %v2860_v9  ;;  %v1429_v9 = vld [vmem:[%s5407_s22 + $0x24a8] sm:$0xff]  ;;  %v2934_v24 = vpack.c.bf16 %v1486_v0, %v1478_v62  ;;  %v1556_v0 = vld [vmem:[%s5407_s22 + $0x28a0] sm:$0xff] }
 0x385   : > { %4541 = vmatpush1.bf16.msra.mxu1 %v2862_v12  ;;  %4214 = vmatprep.subr.bf16.mxu0 %v2869_v13  ;;  %v1437_v12 = vld [vmem:[%s5407_s22 + $0x24e8] sm:$0xff]  ;;  %v1431_v13 = vld [vmem:[%s5407_s22 + $0x24b8] sm:$0xff] }
 0x386   : > { %4542 = vmatprep.subr.bf16.mxu1 %v2871_v18  ;;  %v2909_v18 = vpack.c.bf16 %v1437_v12, %v1429_v9  ;;  %v2911_v23 = vpack.c.bf16 %v1439_v14, %v1431_v13  ;;  %v1500_v9 = vld [vmem:[%s5407_s22 + $0x26e0] sm:$0xff]  ;;  %v1494_v12 = vld [vmem:[%s5407_s22 + $0x26b0] sm:$0xff] }
 0x387   : > { %v1502_v14 = vld [vmem:[%s5407_s22 + $0x26f0] sm:$0xff]  ;;  %v2940_v20 = vpack.c.bf16 %v1500_v9, %v1492_v61  ;;  %v1583_v61 = vld [vmem:[%s5407_s22 + $0x2978] sm:$0xff] }
 0x388   : > { %4215 = vmatpush1.bf16.msra.mxu0 %v2868_v26  ;;  %v1445_v26 = vld [vmem:[%s5407_s22 + $0x2528] sm:$0xff]  ;;  %v2942_v21 = vpack.c.bf16 %v1502_v14, %v1494_v12  ;;  %v1572_v14 = vld [vmem:[%s5407_s22 + $0x2920] sm:$0xff] }
 0x389   : > { %4543 = vmatpush1.bf16.msra.mxu1 %v2870_v28  ;;  %4216 = vmatprep.subr.bf16.mxu0 %v2877_v31  ;;  %v1453_v28 = vld [vmem:[%s5407_s22 + $0x2568] sm:$0xff]  ;;  %v1447_v31 = vld [vmem:[%s5407_s22 + $0x2538] sm:$0xff] }
 0x38a   : > { %4544 = vmatprep.subr.bf16.mxu1 %v2879_v42  ;;  %v2917_v42 = vpack.c.bf16 %v1453_v28, %v1445_v26  ;;  %v2919_v37 = vpack.c.bf16 %v1455_v32, %v1447_v31  ;;  %v1516_v26 = vld [vmem:[%s5407_s22 + $0x2760] sm:$0xff]  ;;  %v1510_v28 = vld [vmem:[%s5407_s22 + $0x2730] sm:$0xff] }
 0x38b   : > { %v1518_v32 = vld [vmem:[%s5407_s22 + $0x2770] sm:$0xff]  ;;  %v2948_v36 = vpack.c.bf16 %v1516_v26, %v1508_v25 }
 0x38c   : > { %4217 = vmatpush1.bf16.msra.mxu0 %v2876_v40  ;;  %v1461_v40 = vld [vmem:[%s5407_s22 + $0x25a8] sm:$0xff]  ;;  %v2950_v15 = vpack.c.bf16 %v1518_v32, %v1510_v28  ;;  %v1596_v32 = vld [vmem:[%s5407_s22 + $0x29e0] sm:$0xff] }
 0x38d   : > { %4545 = vmatpush1.bf16.msra.mxu1 %v2878_v41  ;;  %4218 = vmatprep.subr.bf16.mxu0 %v2885_v43  ;;  %v1469_v41 = vld [vmem:[%s5407_s22 + $0x25e8] sm:$0xff]  ;;  %v1463_v43 = vld [vmem:[%s5407_s22 + $0x25b8] sm:$0xff] }
 0x38e   : > { %4546 = vmatprep.subr.bf16.mxu1 %v2887_v49  ;;  %v2925_v49 = vpack.c.bf16 %v1469_v41, %v1461_v40  ;;  %v2927_v52 = vpack.c.bf16 %v1471_v45, %v1463_v43  ;;  %v1532_v40 = vld [vmem:[%s5407_s22 + $0x27e0] sm:$0xff]  ;;  %v1526_v41 = vld [vmem:[%s5407_s22 + $0x27b0] sm:$0xff] }
 0x38f   : > { %v1534_v45 = vld [vmem:[%s5407_s22 + $0x27f0] sm:$0xff]  ;;  %v2956_v30 = vpack.c.bf16 %v1532_v40, %v1524_v38 }
 0x390   : > { %4219 = vmatpush1.bf16.msra.mxu0 %v2884_v54  ;;  %v1477_v54 = vld [vmem:[%s5407_s22 + $0x2628] sm:$0xff]  ;;  %v2958_v51 = vpack.c.bf16 %v1534_v45, %v1526_v41  ;;  %v1604_v41 = vld [vmem:[%s5407_s22 + $0x2a20] sm:$0xff]  ;;  %v1606_v45 = vld [vmem:[%s5407_s22 + $0x2a30] sm:$0xff] }
 0x391   : > { %4547 = vmatpush1.bf16.msra.mxu1 %v2886_v55  ;;  %4220 = vmatprep.subr.bf16.mxu0 %v2893_v19  ;;  %v1485_v55 = vld [vmem:[%s5407_s22 + $0x2668] sm:$0xff]  ;;  %v1479_v19 = vld [vmem:[%s5407_s22 + $0x2638] sm:$0xff] }
 0x392   : > { %4548 = vmatprep.subr.bf16.mxu1 %v2895_v8  ;;  %v2933_v8 = vpack.c.bf16 %v1485_v55, %v1477_v54  ;;  %v2935_v63 = vpack.c.bf16 %v1487_v56, %v1479_v19  ;;  %v1548_v54 = vld [vmem:[%s5407_s22 + $0x2860] sm:$0xff]  ;;  %v1542_v55 = vld [vmem:[%s5407_s22 + $0x2830] sm:$0xff] }
 0x393   : > { %v1550_v56 = vld [vmem:[%s5407_s22 + $0x2870] sm:$0xff]  ;;  %v2964_v60 = vpack.c.bf16 %v1548_v54, %v1540_v53 }
 0x394   : > { %4221 = vmatpush1.bf16.msra.mxu0 %v2892_v1  ;;  %v1493_v1 = vld [vmem:[%s5407_s22 + $0x26a8] sm:$0xff]  ;;  %v2966_v62 = vpack.c.bf16 %v1550_v56, %v1542_v55  ;;  %v1620_v55 = vld [vmem:[%s5407_s22 + $0x2aa0] sm:$0xff]  ;;  %v1622_v56 = vld [vmem:[%s5407_s22 + $0x2ab0] sm:$0xff] }
 0x395   : > { %4549 = vmatpush1.bf16.msra.mxu1 %v2894_v2  ;;  %4222 = vmatprep.subr.bf16.mxu0 %v2901_v3  ;;  %v1501_v2 = vld [vmem:[%s5407_s22 + $0x26e8] sm:$0xff]  ;;  %v1495_v3 = vld [vmem:[%s5407_s22 + $0x26b8] sm:$0xff] }
 0x396   : > { %4550 = vmatprep.subr.bf16.mxu1 %v2903_v6  ;;  %v2941_v6 = vpack.c.bf16 %v1501_v2, %v1493_v1  ;;  %v2943_v13 = vpack.c.bf16 %v1503_v4, %v1495_v3  ;;  %v1564_v1 = vld [vmem:[%s5407_s22 + $0x28e0] sm:$0xff]  ;;  %v1558_v2 = vld [vmem:[%s5407_s22 + $0x28b0] sm:$0xff] }
 0x397   : > { %v1566_v4 = vld [vmem:[%s5407_s22 + $0x28f0] sm:$0xff]  ;;  %v2972_v9 = vpack.c.bf16 %v1564_v1, %v1556_v0 }
 0x398   : > { %4223 = vmatpush1.bf16.msra.mxu0 %v2900_v16  ;;  %v1509_v16 = vld [vmem:[%s5407_s22 + $0x2728] sm:$0xff]  ;;  %v2974_v12 = vpack.c.bf16 %v1566_v4, %v1558_v2  ;;  %v1636_v2 = vld [vmem:[%s5407_s22 + $0x2b20] sm:$0xff]  ;;  %v1638_v4 = vld [vmem:[%s5407_s22 + $0x2b30] sm:$0xff] }
 0x399   : > { %4551 = vmatpush1.bf16.msra.mxu1 %v2902_v17  ;;  %4224 = vmatprep.subr.bf16.mxu0 %v2909_v18  ;;  %v1517_v17 = vld [vmem:[%s5407_s22 + $0x2768] sm:$0xff]  ;;  %v1511_v18 = vld [vmem:[%s5407_s22 + $0x2738] sm:$0xff] }
 0x39a   : > { %4552 = vmatprep.subr.bf16.mxu1 %v2911_v23  ;;  %v2949_v23 = vpack.c.bf16 %v1517_v17, %v1509_v16  ;;  %v2951_v31 = vpack.c.bf16 %v1519_v27, %v1511_v18  ;;  %v1580_v16 = vld [vmem:[%s5407_s22 + $0x2960] sm:$0xff]  ;;  %v1574_v17 = vld [vmem:[%s5407_s22 + $0x2930] sm:$0xff] }
 0x39b   : > { %v1582_v27 = vld [vmem:[%s5407_s22 + $0x2970] sm:$0xff]  ;;  %v2980_v25 = vpack.c.bf16 %v1580_v16, %v1572_v14 }
 0x39c   : > { %4225 = vmatpush1.bf16.msra.mxu0 %v2908_v33  ;;  %v1525_v33 = vld [vmem:[%s5407_s22 + $0x27a8] sm:$0xff]  ;;  %v2982_v26 = vpack.c.bf16 %v1582_v27, %v1574_v17  ;;  %v1652_v17 = vld [vmem:[%s5407_s22 + $0x2ba0] sm:$0xff]  ;;  %v1654_v27 = vld [vmem:[%s5407_s22 + $0x2bb0] sm:$0xff] }
 0x39d   : > { %4553 = vmatpush1.bf16.msra.mxu1 %v2910_v34  ;;  %4226 = vmatprep.subr.bf16.mxu0 %v2917_v42  ;;  %v1533_v34 = vld [vmem:[%s5407_s22 + $0x27e8] sm:$0xff]  ;;  %v1527_v42 = vld [vmem:[%s5407_s22 + $0x27b8] sm:$0xff] }
 0x39e   : > { %4554 = vmatprep.subr.bf16.mxu1 %v2919_v37  ;;  %v2957_v37 = vpack.c.bf16 %v1533_v34, %v1525_v33  ;;  %v2959_v43 = vpack.c.bf16 %v1535_v35, %v1527_v42  ;;  %v1590_v33 = vld [vmem:[%s5407_s22 + $0x29b0] sm:$0xff]  ;;  %v1605_v35 = vld [vmem:[%s5407_s22 + $0x2a28] sm:$0xff] }
 0x39f   : > { %v1598_v42 = vld [vmem:[%s5407_s22 + $0x29f0] sm:$0xff] }
 0x3a0   : > { %4227 = vmatpush1.bf16.msra.mxu0 %v2916_v46  ;;  %v1541_v46 = vld [vmem:[%s5407_s22 + $0x2828] sm:$0xff]  ;;  %v2990_v38 = vpack.c.bf16 %v1598_v42, %v1590_v33  ;;  %v1668_v33 = vld [vmem:[%s5407_s22 + $0x2c20] sm:$0xff]  ;;  %v1670_v42 = vld [vmem:[%s5407_s22 + $0x2c30] sm:$0xff] }
 0x3a1   : > { %4555 = vmatpush1.bf16.msra.mxu1 %v2918_v48  ;;  %4228 = vmatprep.subr.bf16.mxu0 %v2925_v49  ;;  %v1549_v48 = vld [vmem:[%s5407_s22 + $0x2868] sm:$0xff]  ;;  %v1543_v49 = vld [vmem:[%s5407_s22 + $0x2838] sm:$0xff] }
 0x3a2   : > { %4556 = vmatprep.subr.bf16.mxu1 %v2927_v52  ;;  %v2965_v52 = vpack.c.bf16 %v1549_v48, %v1541_v46  ;;  %v2967_v19 = vpack.c.bf16 %v1551_v50, %v1543_v49  ;;  %v1614_v48 = vld [vmem:[%s5407_s22 + $0x2a70] sm:$0xff]  ;;  %v1621_v49 = vld [vmem:[%s5407_s22 + $0x2aa8] sm:$0xff] }
 0x3a3   : > { %v1629_v50 = vld [vmem:[%s5407_s22 + $0x2ae8] sm:$0xff]  ;;  %v2998_v53 = vpack.c.bf16 %v1614_v48, %v1606_v45  ;;  %v1684_v45 = vld [vmem:[%s5407_s22 + $0x2ca0] sm:$0xff]  ;;  %v1686_v48 = vld [vmem:[%s5407_s22 + $0x2cb0] sm:$0xff] }
 0x3a4   : > { %4229 = vmatpush1.bf16.msra.mxu0 %v2924_v47  ;;  %v1557_v47 = vld [vmem:[%s5407_s22 + $0x28a8] sm:$0xff]  ;;  %v3005_v54 = vpack.c.bf16 %v1629_v50, %v1621_v49  ;;  %v1694_v50 = vld [vmem:[%s5407_s22 + $0x2cf0] sm:$0xff] }
 0x3a5   : > { %4557 = vmatpush1.bf16.msra.mxu1 %v2926_v57  ;;  %4230 = vmatprep.subr.bf16.mxu0 %v2933_v8  ;;  %v1565_v57 = vld [vmem:[%s5407_s22 + $0x28e8] sm:$0xff]  ;;  %v1559_v8 = vld [vmem:[%s5407_s22 + $0x28b8] sm:$0xff] }
 0x3a6   : > { %4558 = vmatprep.subr.bf16.mxu1 %v2935_v63  ;;  %v2973_v63 = vpack.c.bf16 %v1565_v57, %v1557_v47  ;;  %v2975_v3 = vpack.c.bf16 %v1567_v58, %v1559_v8  ;;  %v1630_v57 = vld [vmem:[%s5407_s22 + $0x2af0] sm:$0xff]  ;;  %v1637_v8 = vld [vmem:[%s5407_s22 + $0x2b28] sm:$0xff] }
 0x3a7   : > { %v1645_v58 = vld [vmem:[%s5407_s22 + $0x2b68] sm:$0xff]  ;;  %v3006_v0 = vpack.c.bf16 %v1630_v57, %v1622_v56  ;;  %v1700_v56 = vld [vmem:[%s5407_s22 + $0x2d20] sm:$0xff]  ;;  %v1702_v57 = vld [vmem:[%s5407_s22 + $0x2d30] sm:$0xff] }
 0x3a8   : > { %4231 = vmatpush1.bf16.msra.mxu0 %v2932_v5  ;;  %v1573_v5 = vld [vmem:[%s5407_s22 + $0x2928] sm:$0xff]  ;;  %v3013_v1 = vpack.c.bf16 %v1645_v58, %v1637_v8  ;;  %v1710_v58 = vld [vmem:[%s5407_s22 + $0x2d70] sm:$0xff] }
 0x3a9   : > { %4559 = vmatpush1.bf16.msra.mxu1 %v2934_v24  ;;  %4232 = vmatprep.subr.bf16.mxu0 %v2941_v6  ;;  %v1581_v24 = vld [vmem:[%s5407_s22 + $0x2968] sm:$0xff]  ;;  %v1575_v6 = vld [vmem:[%s5407_s22 + $0x2938] sm:$0xff] }
 0x3aa   : > { %4560 = vmatprep.subr.bf16.mxu1 %v2943_v13  ;;  %v2981_v13 = vpack.c.bf16 %v1581_v24, %v1573_v5  ;;  %v2983_v18 = vpack.c.bf16 %v1583_v61, %v1575_v6  ;;  %v1646_v24 = vld [vmem:[%s5407_s22 + $0x2b70] sm:$0xff]  ;;  %v1653_v6 = vld [vmem:[%s5407_s22 + $0x2ba8] sm:$0xff] }
 0x3ab   : > { %v1661_v61 = vld [vmem:[%s5407_s22 + $0x2be8] sm:$0xff]  ;;  %v3014_v14 = vpack.c.bf16 %v1646_v24, %v1638_v4  ;;  %v1716_v4 = vld [vmem:[%s5407_s22 + $0x2da0] sm:$0xff]  ;;  %v1718_v24 = vld [vmem:[%s5407_s22 + $0x2db0] sm:$0xff] }
 0x3ac   : > { %4233 = vmatpush1.bf16.msra.mxu0 %v2940_v20  ;;  %v1589_v20 = vld [vmem:[%s5407_s22 + $0x29a8] sm:$0xff]  ;;  %v3021_v16 = vpack.c.bf16 %v1661_v61, %v1653_v6  ;;  %v1726_v61 = vld [vmem:[%s5407_s22 + $0x2df0] sm:$0xff] }
 0x3ad   : > { %4561 = vmatpush1.bf16.msra.mxu1 %v2942_v21  ;;  %4234 = vmatprep.subr.bf16.mxu0 %v2949_v23  ;;  %v1597_v21 = vld [vmem:[%s5407_s22 + $0x29e8] sm:$0xff]  ;;  %v1599_v23 = vld [vmem:[%s5407_s22 + $0x29f8] sm:$0xff] }
 0x3ae   : > { %4562 = vmatprep.subr.bf16.mxu1 %v2951_v31  ;;  %v2989_v28 = vpack.c.bf16 %v1597_v21, %v1589_v20  ;;  %v1588_v31 = vld [vmem:[%s5407_s22 + $0x29a0] sm:$0xff]  ;;  %v1662_v21 = vld [vmem:[%s5407_s22 + $0x2bf0] sm:$0xff] }
 0x3b0   : > { %4235 = vmatpush1.bf16.msra.mxu0 %v2948_v36  ;;  %v1607_v36 = vld [vmem:[%s5407_s22 + $0x2a38] sm:$0xff] }
 0x3b1   : > { %4563 = vmatpush1.bf16.msra.mxu1 %v2950_v15  ;;  %4236 = vmatprep.subr.bf16.mxu0 %v2957_v37  ;;  %v1615_v15 = vld [vmem:[%s5407_s22 + $0x2a78] sm:$0xff]  ;;  %v2988_v37 = vpack.c.bf16 %v1596_v32, %v1588_v31  ;;  %v3022_v31 = vpack.c.bf16 %v1662_v21, %v1654_v27  ;;  %v1732_v27 = vld [vmem:[%s5407_s22 + $0x2e20] sm:$0xff]  ;;  %v1734_v21 = vld [vmem:[%s5407_s22 + $0x2e30] sm:$0xff] }
 0x3b2   : > { %4564 = vmatprep.subr.bf16.mxu1 %v2959_v43  ;;  %v1612_v43 = vld [vmem:[%s5407_s22 + $0x2a60] sm:$0xff]  ;;  %v2999_v46 = vpack.c.bf16 %v1615_v15, %v1607_v36  ;;  %v1685_v36 = vld [vmem:[%s5407_s22 + $0x2ca8] sm:$0xff] }
 0x3b3   : > { %v1693_v15 = vld [vmem:[%s5407_s22 + $0x2ce8] sm:$0xff] }
 0x3b4   : > { %4237 = vmatpush1.bf16.msra.mxu0 %v2956_v30  ;;  %v1623_v30 = vld [vmem:[%s5407_s22 + $0x2ab8] sm:$0xff] }
 0x3b5   : > { %4565 = vmatpush1.bf16.msra.mxu1 %v2958_v51  ;;  %4247 = vmatprep.subr.bf16.mxu0 %v2965_v52  ;;  %v1631_v51 = vld [vmem:[%s5407_s22 + $0x2af8] sm:$0xff]  ;;  %v2996_v52 = vpack.c.bf16 %v1612_v43, %v1604_v41  ;;  %v3037_v43 = vpack.c.bf16 %v1693_v15, %v1685_v36  ;;  %v1758_v15 = vld [vmem:[%s5407_s22 + $0x2ef0] sm:$0xff] }
 0x3b6   : > { %4575 = vmatprep.subr.bf16.mxu1 %v2967_v19  ;;  %v1628_v19 = vld [vmem:[%s5407_s22 + $0x2ae0] sm:$0xff]  ;;  %v3007_v47 = vpack.c.bf16 %v1631_v51, %v1623_v30  ;;  %v1701_v30 = vld [vmem:[%s5407_s22 + $0x2d28] sm:$0xff] }
 0x3b7   : > { %4239 = vmatmul.mubr.bf16.vlgmr.msra.gmra.mrb[4].mxu0 %v6099_v44  ;;  %v1709_v51 = vld [vmem:[%s5407_s22 + $0x2d68] sm:$0xff] }
 0x3b8   : > { %4248 = vmatpush1.bf16.msra.mxu0 %v2964_v60  ;;  %4567 = vmatmul.mubr.bf16.vlgmr.msra.gmra.mrb[4].mxu1 %v6099_v44  ;;  %v1591_v44 = vld [vmem:[%s5407_s22 + $0x29b8] sm:$0xff] }
 0x3b9   : > { %4576 = vmatpush1.bf16.msra.mxu1 %v2966_v62  ;;  %4249 = vmatprep.subr.bf16.mxu0 %v2973_v63  ;;  %v2991_v34 = vpack.c.bf16 %v1599_v23, %v1591_v44  ;;  %v1639_v60 = vld [vmem:[%s5407_s22 + $0x2b38] sm:$0xff]  ;;  %v3004_v63 = vpack.c.bf16 %v1628_v19, %v1620_v55  ;;  %v1669_v44 = vld [vmem:[%s5407_s22 + $0x2c28] sm:$0xff]  ;;  %v3038_v55 = vpack.c.bf16 %v1694_v50, %v1686_v48  ;;  %v1764_v48 = vld [vmem:[%s5407_s22 + $0x2f20] sm:$0xff] }
 0x3ba   : > { %4577 = vmatprep.subr.bf16.mxu1 %v2975_v3  ;;  %4279 = vmatprep.mubr.bf16.mxu0 %v6109_v59  ;;  %v1647_v62 = vld [vmem:[%s5407_s22 + $0x2b78] sm:$0xff]  ;;  %v1644_v3 = vld [vmem:[%s5407_s22 + $0x2b60] sm:$0xff]  ;;  %v1677_v23 = vld [vmem:[%s5407_s22 + $0x2c68] sm:$0xff]  ;;  %v3045_v19 = vpack.c.bf16 %v1709_v51, %v1701_v30 }
 0x3bb   : > { %4607 = vmatprep.mubr.bf16.mxu1 %v6109_v59  ;;  %v1613_v59 = vld [vmem:[%s5407_s22 + $0x2a68] sm:$0xff]  ;;  %v3015_v5 = vpack.c.bf16 %v1647_v62, %v1639_v60  ;;  %v3029_v32 = vpack.c.bf16 %v1677_v23, %v1669_v44  ;;  %v1742_v23 = vld [vmem:[%s5407_s22 + $0x2e70] sm:$0xff] }
 0x3bc   : > { %4250 = vmatpush1.bf16.msra.mxu0 %v2972_v9  ;;  %v2997_v40 = vpack.c.bf16 %v1613_v59, %v1605_v35  ;;  %v1655_v9 = vld [vmem:[%s5407_s22 + $0x2bb8] sm:$0xff]  ;;  %v1678_v59 = vld [vmem:[%s5407_s22 + $0x2c70] sm:$0xff]  ;;  %v1717_v60 = vld [vmem:[%s5407_s22 + $0x2da8] sm:$0xff] }
 0x3bd   : > { %4578 = vmatpush1.bf16.msra.mxu1 %v2974_v12  ;;  %4251 = vmatprep.subr.bf16.mxu0 %v2981_v13  ;;  %v1663_v12 = vld [vmem:[%s5407_s22 + $0x2bf8] sm:$0xff]  ;;  %v3012_v13 = vpack.c.bf16 %v1644_v3, %v1636_v2  ;;  %v3030_v41 = vpack.c.bf16 %v1678_v59, %v1670_v42  ;;  %v1725_v62 = vld [vmem:[%s5407_s22 + $0x2de8] sm:$0xff]  ;;  %v3046_v2 = vpack.c.bf16 %v1710_v58, %v1702_v57  ;;  %v1748_v42 = vld [vmem:[%s5407_s22 + $0x2ea0] sm:$0xff] }
 0x3be   : > { %4579 = vmatprep.subr.bf16.mxu1 %v2983_v18  ;;  %v1660_v18 = vld [vmem:[%s5407_s22 + $0x2be0] sm:$0xff]  ;;  %v3023_v20 = vpack.c.bf16 %v1663_v12, %v1655_v9  ;;  %v3053_v3 = vpack.c.bf16 %v1725_v62, %v1717_v60  ;;  %v1733_v9 = vld [vmem:[%s5407_s22 + $0x2e28] sm:$0xff]  ;;  %v1750_v59 = vld [vmem:[%s5407_s22 + $0x2eb0] sm:$0xff] }
 0x3bf   : > { %v1741_v12 = vld [vmem:[%s5407_s22 + $0x2e68] sm:$0xff]  ;;  %v1766_v50 = vld [vmem:[%s5407_s22 + $0x2f30] sm:$0xff]  ;;  %v1780_v57 = vld [vmem:[%s5407_s22 + $0x2fa0] sm:$0xff] }
 0x3c0   : > { %4252 = vmatpush1.bf16.msra.mxu0 %v2980_v25  ;;  %v1671_v25 = vld [vmem:[%s5407_s22 + $0x2c38] sm:$0xff]  ;;  %v1774_v51 = vld [vmem:[%s5407_s22 + $0x2f70] sm:$0xff] }
 0x3c1   : > { %4580 = vmatpush1.bf16.msra.mxu1 %v2982_v26  ;;  %4253 = vmatprep.subr.bf16.mxu0 %v2989_v28  ;;  %v1679_v26 = vld [vmem:[%s5407_s22 + $0x2c78] sm:$0xff]  ;;  %v3020_v28 = vpack.c.bf16 %v1660_v18, %v1652_v17  ;;  %v3054_v17 = vpack.c.bf16 %v1726_v61, %v1718_v24  ;;  %v3061_v18 = vpack.c.bf16 %v1741_v12, %v1733_v9  ;;  %v1782_v58 = vld [vmem:[%s5407_s22 + $0x2fb0] sm:$0xff]  ;;  %v1796_v24 = vld [vmem:[%s5407_s22 + $0x3020] sm:$0xff] }
 0x3c2   : > { %4581 = vmatprep.subr.bf16.mxu1 %v2991_v34  ;;  %v1676_v34 = vld [vmem:[%s5407_s22 + $0x2c60] sm:$0xff]  ;;  %v3031_v35 = vpack.c.bf16 %v1679_v26, %v1671_v25  ;;  %v1749_v25 = vld [vmem:[%s5407_s22 + $0x2ea8] sm:$0xff]  ;;  %v1790_v62 = vld [vmem:[%s5407_s22 + $0x2ff0] sm:$0xff] }
 0x3c3   : > { %v1757_v26 = vld [vmem:[%s5407_s22 + $0x2ee8] sm:$0xff]  ;;  %v1798_v61 = vld [vmem:[%s5407_s22 + $0x3030] sm:$0xff] }
 0x3c4   : > { %4254 = vmatpush1.bf16.msra.mxu0 %v2988_v37  ;;  %v1687_v37 = vld [vmem:[%s5407_s22 + $0x2cb8] sm:$0xff]  ;;  %v1806_v12 = vld [vmem:[%s5407_s22 + $0x3070] sm:$0xff] }
 0x3c5   : > { %4582 = vmatpush1.bf16.msra.mxu1 %v2990_v38  ;;  %4255 = vmatprep.subr.bf16.mxu0 %v2997_v40  ;;  %v1695_v38 = vld [vmem:[%s5407_s22 + $0x2cf8] sm:$0xff]  ;;  %v3028_v40 = vpack.c.bf16 %v1676_v34, %v1668_v33  ;;  %v3062_v33 = vpack.c.bf16 %v1742_v23, %v1734_v21  ;;  %v3069_v34 = vpack.c.bf16 %v1757_v26, %v1749_v25  ;;  %v1812_v21 = vld [vmem:[%s5407_s22 + $0x30a0] sm:$0xff]  ;;  %v1814_v23 = vld [vmem:[%s5407_s22 + $0x30b0] sm:$0xff] }
 0x3c6   : > { %4583 = vmatprep.subr.bf16.mxu1 %v2999_v46  ;;  %v1692_v46 = vld [vmem:[%s5407_s22 + $0x2ce0] sm:$0xff]  ;;  %v3039_v49 = vpack.c.bf16 %v1695_v38, %v1687_v37  ;;  %v1765_v37 = vld [vmem:[%s5407_s22 + $0x2f28] sm:$0xff]  ;;  %v1822_v26 = vld [vmem:[%s5407_s22 + $0x30f0] sm:$0xff] }
 0x3c7   : > { %v1773_v38 = vld [vmem:[%s5407_s22 + $0x2f68] sm:$0xff] }
 0x3c8   : > { %4256 = vmatpush1.bf16.msra.mxu0 %v2996_v52  ;;  %v1703_v52 = vld [vmem:[%s5407_s22 + $0x2d38] sm:$0xff] }
 0x3c9   : > { %4584 = vmatpush1.bf16.msra.mxu1 %v2998_v53  ;;  %4257 = vmatprep.subr.bf16.mxu0 %v3005_v54  ;;  %v1711_v53 = vld [vmem:[%s5407_s22 + $0x2d78] sm:$0xff]  ;;  %v3036_v54 = vpack.c.bf16 %v1692_v46, %v1684_v45  ;;  %v3070_v45 = vpack.c.bf16 %v1758_v15, %v1750_v59  ;;  %v3077_v46 = vpack.c.bf16 %v1773_v38, %v1765_v37  ;;  %v1828_v59 = vld [vmem:[%s5407_s22 + $0x3120] sm:$0xff]  ;;  %v1830_v15 = vld [vmem:[%s5407_s22 + $0x3130] sm:$0xff] }
 0x3ca   : > { %4585 = vmatprep.subr.bf16.mxu1 %v3007_v47  ;;  %v1708_v47 = vld [vmem:[%s5407_s22 + $0x2d60] sm:$0xff]  ;;  %v3047_v8 = vpack.c.bf16 %v1711_v53, %v1703_v52  ;;  %v1781_v52 = vld [vmem:[%s5407_s22 + $0x2fa8] sm:$0xff]  ;;  %v1838_v38 = vld [vmem:[%s5407_s22 + $0x3170] sm:$0xff] }
 0x3cb   : > { %v1789_v53 = vld [vmem:[%s5407_s22 + $0x2fe8] sm:$0xff] }
 0x3cc   : > { %4258 = vmatpush1.bf16.msra.mxu0 %v3004_v63  ;;  %v1719_v63 = vld [vmem:[%s5407_s22 + $0x2db8] sm:$0xff] }
 0x3cd   : > { %4586 = vmatpush1.bf16.msra.mxu1 %v3006_v0  ;;  %4259 = vmatprep.subr.bf16.mxu0 %v3013_v1  ;;  %v1727_v0 = vld [vmem:[%s5407_s22 + $0x2df8] sm:$0xff]  ;;  %v3044_v1 = vpack.c.bf16 %v1708_v47, %v1700_v56  ;;  %v3078_v56 = vpack.c.bf16 %v1774_v51, %v1766_v50  ;;  %v3085_v47 = vpack.c.bf16 %v1789_v53, %v1781_v52  ;;  %v1852_v50 = vld [vmem:[%s5407_s22 + $0x31e0] sm:$0xff]  ;;  %v1854_v52 = vld [vmem:[%s5407_s22 + $0x31f0] sm:$0xff] }
 0x3ce   : > { %4587 = vmatprep.subr.bf16.mxu1 %v3015_v5  ;;  %v1724_v5 = vld [vmem:[%s5407_s22 + $0x2de0] sm:$0xff]  ;;  %v3055_v6 = vpack.c.bf16 %v1727_v0, %v1719_v63  ;;  %v1797_v63 = vld [vmem:[%s5407_s22 + $0x3028] sm:$0xff] }
 0x3cf   : > { %v1805_v0 = vld [vmem:[%s5407_s22 + $0x3068] sm:$0xff] }
 0x3d0   : > { %4260 = vmatpush1.bf16.msra.mxu0 %v3012_v13  ;;  %v1735_v13 = vld [vmem:[%s5407_s22 + $0x2e38] sm:$0xff]  ;;  %v1861_v53 = vld [vmem:[%s5407_s22 + $0x3228] sm:$0xff] }
 0x3d1   : > { %4588 = vmatpush1.bf16.msra.mxu1 %v3014_v14  ;;  %4261 = vmatprep.subr.bf16.mxu0 %v3021_v16  ;;  %v1743_v14 = vld [vmem:[%s5407_s22 + $0x2e78] sm:$0xff]  ;;  %v3052_v16 = vpack.c.bf16 %v1724_v5, %v1716_v4  ;;  %v3086_v4 = vpack.c.bf16 %v1790_v62, %v1782_v58  ;;  %v3093_v5 = vpack.c.bf16 %v1805_v0, %v1797_v63  ;;  %v1862_v58 = vld [vmem:[%s5407_s22 + $0x3230] sm:$0xff]  ;;  %v1877_v63 = vld [vmem:[%s5407_s22 + $0x32a8] sm:$0xff] }
 0x3d2   : > { %4589 = vmatprep.subr.bf16.mxu1 %v3023_v20  ;;  %v1740_v20 = vld [vmem:[%s5407_s22 + $0x2e60] sm:$0xff]  ;;  %v3063_v44 = vpack.c.bf16 %v1743_v14, %v1735_v13  ;;  %v1813_v13 = vld [vmem:[%s5407_s22 + $0x30a8] sm:$0xff]  ;;  %v1870_v62 = vld [vmem:[%s5407_s22 + $0x3270] sm:$0xff] }
 0x3d3   : > { %v1821_v14 = vld [vmem:[%s5407_s22 + $0x30e8] sm:$0xff] }
 0x3d4   : > { %4262 = vmatpush1.bf16.msra.mxu0 %v3020_v28  ;;  %v1751_v28 = vld [vmem:[%s5407_s22 + $0x2eb8] sm:$0xff]  ;;  %v1885_v0 = vld [vmem:[%s5407_s22 + $0x32e8] sm:$0xff] }
 0x3d5   : > { %4590 = vmatpush1.bf16.msra.mxu1 %v3022_v31  ;;  %4263 = vmatprep.subr.bf16.mxu0 %v3029_v32  ;;  %v1759_v31 = vld [vmem:[%s5407_s22 + $0x2ef8] sm:$0xff]  ;;  %v3060_v32 = vpack.c.bf16 %v1740_v20, %v1732_v27  ;;  %v3094_v27 = vpack.c.bf16 %v1806_v12, %v1798_v61  ;;  %v3101_v20 = vpack.c.bf16 %v1821_v14, %v1813_v13  ;;  %v1878_v61 = vld [vmem:[%s5407_s22 + $0x32b0] sm:$0xff]  ;;  %v1893_v13 = vld [vmem:[%s5407_s22 + $0x3328] sm:$0xff] }
 0x3d6   : > { %4591 = vmatprep.subr.bf16.mxu1 %v3031_v35  ;;  %v1756_v35 = vld [vmem:[%s5407_s22 + $0x2ee0] sm:$0xff]  ;;  %v3071_v36 = vpack.c.bf16 %v1759_v31, %v1751_v28  ;;  %v1829_v28 = vld [vmem:[%s5407_s22 + $0x3128] sm:$0xff]  ;;  %v1886_v12 = vld [vmem:[%s5407_s22 + $0x32f0] sm:$0xff] }
 0x3d7   : > { %v1837_v31 = vld [vmem:[%s5407_s22 + $0x3168] sm:$0xff] }
 0x3d8   : > { %4264 = vmatpush1.bf16.msra.mxu0 %v3028_v40  ;;  %v1767_v40 = vld [vmem:[%s5407_s22 + $0x2f38] sm:$0xff]  ;;  %v1901_v14 = vld [vmem:[%s5407_s22 + $0x3368] sm:$0xff] }
 0x3d9   : > { %4592 = vmatpush1.bf16.msra.mxu1 %v3030_v41  ;;  %4265 = vmatprep.subr.bf16.mxu0 %v3037_v43  ;;  %v1775_v41 = vld [vmem:[%s5407_s22 + $0x2f78] sm:$0xff]  ;;  %v3068_v43 = vpack.c.bf16 %v1756_v35, %v1748_v42  ;;  %v3102_v42 = vpack.c.bf16 %v1822_v26, %v1814_v23  ;;  %v3109_v35 = vpack.c.bf16 %v1837_v31, %v1829_v28  ;;  %v1894_v23 = vld [vmem:[%s5407_s22 + $0x3330] sm:$0xff]  ;;  %v1909_v28 = vld [vmem:[%s5407_s22 + $0x33a8] sm:$0xff] }
 0x3da   : > { %4593 = vmatprep.subr.bf16.mxu1 %v3039_v49  ;;  %v1772_v49 = vld [vmem:[%s5407_s22 + $0x2f60] sm:$0xff]  ;;  %v3079_v30 = vpack.c.bf16 %v1775_v41, %v1767_v40  ;;  %v1845_v40 = vld [vmem:[%s5407_s22 + $0x31a8] sm:$0xff]  ;;  %v1902_v26 = vld [vmem:[%s5407_s22 + $0x3370] sm:$0xff] }
 0x3db   : > { %v1853_v41 = vld [vmem:[%s5407_s22 + $0x31e8] sm:$0xff] }
 0x3dc   : > { %4266 = vmatpush1.bf16.msra.mxu0 %v3036_v54  ;;  %v1783_v54 = vld [vmem:[%s5407_s22 + $0x2fb8] sm:$0xff]  ;;  %v1917_v31 = vld [vmem:[%s5407_s22 + $0x33e8] sm:$0xff] }
 0x3dd   : > { %4594 = vmatpush1.bf16.msra.mxu1 %v3038_v55  ;;  %4267 = vmatprep.subr.bf16.mxu0 %v3045_v19  ;;  %v1791_v55 = vld [vmem:[%s5407_s22 + $0x2ff8] sm:$0xff]  ;;  %v3076_v19 = vpack.c.bf16 %v1772_v49, %v1764_v48  ;;  %v3117_v48 = vpack.c.bf16 %v1853_v41, %v1845_v40  ;;  %v1844_v49 = vld [vmem:[%s5407_s22 + $0x31a0] sm:$0xff]  ;;  %v1925_v40 = vld [vmem:[%s5407_s22 + $0x3428] sm:$0xff] }
 0x3de   : > { %4595 = vmatprep.subr.bf16.mxu1 %v3047_v8  ;;  %v1788_v8 = vld [vmem:[%s5407_s22 + $0x2fe0] sm:$0xff]  ;;  %v3087_v60 = vpack.c.bf16 %v1791_v55, %v1783_v54  ;;  %v1863_v54 = vld [vmem:[%s5407_s22 + $0x3238] sm:$0xff]  ;;  %v1933_v41 = vld [vmem:[%s5407_s22 + $0x3468] sm:$0xff] }
 0x3df   : > { %v1871_v55 = vld [vmem:[%s5407_s22 + $0x3278] sm:$0xff] }
 0x3e0   : > { %4268 = vmatpush1.bf16.msra.mxu0 %v3044_v1  ;;  %v1799_v1 = vld [vmem:[%s5407_s22 + $0x3038] sm:$0xff] }
 0x3e1   : > { %4596 = vmatpush1.bf16.msra.mxu1 %v3046_v2  ;;  %4269 = vmatprep.subr.bf16.mxu0 %v3053_v3  ;;  %v1807_v2 = vld [vmem:[%s5407_s22 + $0x3078] sm:$0xff]  ;;  %v3084_v3 = vpack.c.bf16 %v1788_v8, %v1780_v57  ;;  %v1860_v57 = vld [vmem:[%s5407_s22 + $0x3220] sm:$0xff] }
 0x3e2   : > { %4597 = vmatprep.subr.bf16.mxu1 %v3055_v6  ;;  %v1804_v6 = vld [vmem:[%s5407_s22 + $0x3060] sm:$0xff]  ;;  %v3095_v9 = vpack.c.bf16 %v1807_v2, %v1799_v1  ;;  %v1879_v1 = vld [vmem:[%s5407_s22 + $0x32b8] sm:$0xff] }
 0x3e3   : > { %v1868_v8 = vld [vmem:[%s5407_s22 + $0x3260] sm:$0xff]  ;;  %v1887_v2 = vld [vmem:[%s5407_s22 + $0x32f8] sm:$0xff] }
 0x3e4   : > { %4270 = vmatpush1.bf16.msra.mxu0 %v3052_v16  ;;  %v1815_v16 = vld [vmem:[%s5407_s22 + $0x30b8] sm:$0xff] }
 0x3e5   : > { %4598 = vmatpush1.bf16.msra.mxu1 %v3054_v17  ;;  %4271 = vmatprep.subr.bf16.mxu0 %v3061_v18  ;;  %v1823_v17 = vld [vmem:[%s5407_s22 + $0x30f8] sm:$0xff]  ;;  %v3092_v18 = vpack.c.bf16 %v1804_v6, %v1796_v24  ;;  %v1876_v24 = vld [vmem:[%s5407_s22 + $0x32a0] sm:$0xff] }
 0x3e6   : > { %4599 = vmatprep.subr.bf16.mxu1 %v3063_v44  ;;  %v1820_v44 = vld [vmem:[%s5407_s22 + $0x30e0] sm:$0xff]  ;;  %v3103_v25 = vpack.c.bf16 %v1823_v17, %v1815_v16  ;;  %v1895_v16 = vld [vmem:[%s5407_s22 + $0x3338] sm:$0xff] }
 0x3e7   : > { %v1884_v6 = vld [vmem:[%s5407_s22 + $0x32e0] sm:$0xff]  ;;  %v1903_v17 = vld [vmem:[%s5407_s22 + $0x3378] sm:$0xff] }
 0x3e8   : > { %4272 = vmatpush1.bf16.msra.mxu0 %v3060_v32  ;;  %v1831_v32 = vld [vmem:[%s5407_s22 + $0x3138] sm:$0xff] }
 0x3e9   : > { %4600 = vmatpush1.bf16.msra.mxu1 %v3062_v33  ;;  %4273 = vmatprep.subr.bf16.mxu0 %v3069_v34  ;;  %v1839_v33 = vld [vmem:[%s5407_s22 + $0x3178] sm:$0xff]  ;;  %v3100_v34 = vpack.c.bf16 %v1820_v44, %v1812_v21  ;;  %v1892_v21 = vld [vmem:[%s5407_s22 + $0x3320] sm:$0xff] }
 0x3ea   : > { %4601 = vmatprep.subr.bf16.mxu1 %v3071_v36  ;;  %v1836_v36 = vld [vmem:[%s5407_s22 + $0x3160] sm:$0xff]  ;;  %v3111_v37 = vpack.c.bf16 %v1839_v33, %v1831_v32  ;;  %v1911_v32 = vld [vmem:[%s5407_s22 + $0x33b8] sm:$0xff] }
 0x3eb   : > { %v1900_v44 = vld [vmem:[%s5407_s22 + $0x3360] sm:$0xff]  ;;  %v1919_v33 = vld [vmem:[%s5407_s22 + $0x33f8] sm:$0xff] }
 0x3ec   : > { %4274 = vmatpush1.bf16.msra.mxu0 %v3068_v43  ;;  %v1855_v43 = vld [vmem:[%s5407_s22 + $0x31f8] sm:$0xff] }
 0x3ed   : > { %4602 = vmatpush1.bf16.msra.mxu1 %v3070_v45  ;;  %4275 = vmatprep.subr.bf16.mxu0 %v3077_v46  ;;  %v3108_v45 = vpack.c.bf16 %v1836_v36, %v1828_v59  ;;  %v3110_v46 = vpack.c.bf16 %v1838_v38, %v1830_v15  ;;  %v1908_v59 = vld [vmem:[%s5407_s22 + $0x33a0] sm:$0xff]  ;;  %v1910_v15 = vld [vmem:[%s5407_s22 + $0x33b0] sm:$0xff] }
 0x3ee   : > { %4603 = vmatprep.subr.bf16.mxu1 %v3079_v30  ;;  %v1846_v30 = vld [vmem:[%s5407_s22 + $0x31b0] sm:$0xff]  ;;  %v1916_v36 = vld [vmem:[%s5407_s22 + $0x33e0] sm:$0xff] }
 0x3ef   : > { %v1918_v38 = vld [vmem:[%s5407_s22 + $0x33f0] sm:$0xff] }
 0x3f0   : > { %4276 = vmatpush1.bf16.msra.mxu0 %v3076_v19  ;;  %v3116_v19 = vpack.c.bf16 %v1852_v50, %v1844_v49  ;;  %v1924_v49 = vld [vmem:[%s5407_s22 + $0x3420] sm:$0xff] }
 0x3f1   : > { %4604 = vmatpush1.bf16.msra.mxu1 %v3078_v56  ;;  %4277 = vmatprep.subr.bf16.mxu0 %v3085_v47  ;;  %v3118_v56 = vpack.c.bf16 %v1854_v52, %v1846_v30  ;;  %v1932_v50 = vld [vmem:[%s5407_s22 + $0x3460] sm:$0xff]  ;;  %v1926_v30 = vld [vmem:[%s5407_s22 + $0x3430] sm:$0xff] }
 0x3f2   : > { %4605 = vmatprep.subr.bf16.mxu1 %v3087_v60  ;;  %v3127_v60 = vpack.c.bf16 %v1871_v55, %v1863_v54  ;;  %v1934_v52 = vld [vmem:[%s5407_s22 + $0x3470] sm:$0xff]  ;;  %v1943_v54 = vld [vmem:[%s5407_s22 + $0x34b8] sm:$0xff] }
 0x3f3   : > { %v1951_v55 = vld [vmem:[%s5407_s22 + $0x34f8] sm:$0xff] }
 0x3f4   : > { %4278 = vmatpush1.bf16.msra.mxu0 %v3084_v3  ;;  %v3124_v3 = vpack.c.bf16 %v1868_v8, %v1860_v57  ;;  %v1940_v57 = vld [vmem:[%s5407_s22 + $0x34a0] sm:$0xff] }
 0x3f5   : > { %4606 = vmatpush1.bf16.msra.mxu1 %v3086_v4  ;;  %4288 = vmatprep.subr.bf16.mxu0 %v3093_v5  ;;  %v3126_v4 = vpack.c.bf16 %v1870_v62, %v1862_v58  ;;  %v3133_v5 = vpack.c.bf16 %v1885_v0, %v1877_v63  ;;  %v1948_v8 = vld [vmem:[%s5407_s22 + $0x34e0] sm:$0xff]  ;;  %v1942_v58 = vld [vmem:[%s5407_s22 + $0x34b0] sm:$0xff]  ;;  %v1957_v63 = vld [vmem:[%s5407_s22 + $0x3528] sm:$0xff] }
 0x3f6   : > { %4616 = vmatprep.subr.bf16.mxu1 %v3095_v9  ;;  %v3135_v9 = vpack.c.bf16 %v1887_v2, %v1879_v1  ;;  %v1950_v62 = vld [vmem:[%s5407_s22 + $0x34f0] sm:$0xff]  ;;  %v1965_v0 = vld [vmem:[%s5407_s22 + $0x3568] sm:$0xff]  ;;  %v1959_v1 = vld [vmem:[%s5407_s22 + $0x3538] sm:$0xff] }
 0x3f7   : > { %4280 = vmatmul.mubr.bf16.vlgmr.msra.gmra.mrb[4].mxu0 %v6235_v22  ;;  %v1967_v2 = vld [vmem:[%s5407_s22 + $0x3578] sm:$0xff] }
 0x3f8   : > { %4289 = vmatpush1.bf16.msra.mxu0 %v3092_v18  ;;  %4608 = vmatmul.mubr.bf16.vlgmr.msra.gmra.mrb[4].mxu1 %v6235_v22  ;;  %v1847_v22 = vld [vmem:[%s5407_s22 + $0x31b8] sm:$0xff]  ;;  %v3132_v18 = vpack.c.bf16 %v1884_v6, %v1876_v24  ;;  %v1956_v24 = vld [vmem:[%s5407_s22 + $0x3520] sm:$0xff] }
 0x3f9   : > { %4617 = vmatpush1.bf16.msra.mxu1 %v3094_v27  ;;  %4290 = vmatprep.subr.bf16.mxu0 %v3101_v20  ;;  %v3119_v51 = vpack.c.bf16 %v1855_v43, %v1847_v22  ;;  %v3134_v27 = vpack.c.bf16 %v1886_v12, %v1878_v61  ;;  %v3141_v20 = vpack.c.bf16 %v1901_v14, %v1893_v13  ;;  %v1927_v22 = vld [vmem:[%s5407_s22 + $0x3438] sm:$0xff]  ;;  %v1964_v6 = vld [vmem:[%s5407_s22 + $0x3560] sm:$0xff]  ;;  %v1958_v61 = vld [vmem:[%s5407_s22 + $0x3530] sm:$0xff] }
 0x3fa   : > { %4618 = vmatprep.subr.bf16.mxu1 %v3103_v25  ;;  %4320 = vmatprep.mubr.bf16.mxu0 %v6245_v39  ;;  %v3143_v25 = vpack.c.bf16 %v1903_v17, %v1895_v16  ;;  %v1935_v43 = vld [vmem:[%s5407_s22 + $0x3478] sm:$0xff]  ;;  %v1966_v12 = vld [vmem:[%s5407_s22 + $0x3570] sm:$0xff]  ;;  %v1973_v13 = vld [vmem:[%s5407_s22 + $0x35a8] sm:$0xff] }
 0x3fb   : > { %4648 = vmatprep.mubr.bf16.mxu1 %v6245_v39  ;;  %v1869_v39 = vld [vmem:[%s5407_s22 + $0x3268] sm:$0xff]  ;;  %v1975_v16 = vld [vmem:[%s5407_s22 + $0x35b8] sm:$0xff] }
 0x3fc   : > { %4291 = vmatpush1.bf16.msra.mxu0 %v3100_v34  ;;  %v3125_v47 = vpack.c.bf16 %v1869_v39, %v1861_v53  ;;  %v3140_v34 = vpack.c.bf16 %v1900_v44, %v1892_v21  ;;  %v1941_v53 = vld [vmem:[%s5407_s22 + $0x34a8] sm:$0xff]  ;;  %v1983_v17 = vld [vmem:[%s5407_s22 + $0x35f8] sm:$0xff]  ;;  %v1972_v21 = vld [vmem:[%s5407_s22 + $0x35a0] sm:$0xff] }
 0x3fd   : > { %4619 = vmatpush1.bf16.msra.mxu1 %v3102_v42  ;;  %4292 = vmatprep.subr.bf16.mxu0 %v3109_v35  ;;  %v3142_v42 = vpack.c.bf16 %v1902_v26, %v1894_v23  ;;  %v3149_v35 = vpack.c.bf16 %v1917_v31, %v1909_v28  ;;  %v1949_v39 = vld [vmem:[%s5407_s22 + $0x34e8] sm:$0xff]  ;;  %v1980_v44 = vld [vmem:[%s5407_s22 + $0x35e0] sm:$0xff]  ;;  %v1974_v23 = vld [vmem:[%s5407_s22 + $0x35b0] sm:$0xff] }
 0x3fe   : > { %4620 = vmatprep.subr.bf16.mxu1 %v3111_v37  ;;  %v3151_v37 = vpack.c.bf16 %v1919_v33, %v1911_v32  ;;  %v1981_v14 = vld [vmem:[%s5407_s22 + $0x35e8] sm:$0xff]  ;;  %v1982_v26 = vld [vmem:[%s5407_s22 + $0x35f0] sm:$0xff]  ;;  %v1991_v32 = vld [vmem:[%s5407_s22 + $0x3638] sm:$0xff] }
 0x3ff   : > { %v1989_v28 = vld [vmem:[%s5407_s22 + $0x3628] sm:$0xff]  ;;  %v1999_v33 = vld [vmem:[%s5407_s22 + $0x3678] sm:$0xff] }
 0x400   : > { %4293 = vmatpush1.bf16.msra.mxu0 %v3108_v45  ;;  %v3148_v45 = vpack.c.bf16 %v1916_v36, %v1908_v59  ;;  %v1997_v31 = vld [vmem:[%s5407_s22 + $0x3668] sm:$0xff]  ;;  %v1988_v59 = vld [vmem:[%s5407_s22 + $0x3620] sm:$0xff] }
 0x401   : > { %4621 = vmatpush1.bf16.msra.mxu1 %v3110_v46  ;;  %4294 = vmatprep.subr.bf16.mxu0 %v3117_v48  ;;  %v3150_v46 = vpack.c.bf16 %v1918_v38, %v1910_v15  ;;  %v3157_v48 = vpack.c.bf16 %v1933_v41, %v1925_v40  ;;  %v1996_v36 = vld [vmem:[%s5407_s22 + $0x3660] sm:$0xff]  ;;  %v1990_v15 = vld [vmem:[%s5407_s22 + $0x3630] sm:$0xff]  ;;  %v2005_v40 = vld [vmem:[%s5407_s22 + $0x36a8] sm:$0xff] }
 0x402   : > { %4622 = vmatprep.subr.bf16.mxu1 %v3119_v51  ;;  %v3159_v51 = vpack.c.bf16 %v1935_v43, %v1927_v22  ;;  %v1998_v38 = vld [vmem:[%s5407_s22 + $0x3670] sm:$0xff]  ;;  %v2013_v41 = vld [vmem:[%s5407_s22 + $0x36e8] sm:$0xff]  ;;  %v2007_v22 = vld [vmem:[%s5407_s22 + $0x36b8] sm:$0xff] }
 0x403   : > { %v2015_v43 = vld [vmem:[%s5407_s22 + $0x36f8] sm:$0xff] }
 0x404   : > { %4295 = vmatpush1.bf16.msra.mxu0 %v3116_v19  ;;  %v3156_v19 = vpack.c.bf16 %v1932_v50, %v1924_v49  ;;  %v2004_v49 = vld [vmem:[%s5407_s22 + $0x36a0] sm:$0xff] }
 0x405   : > { %4623 = vmatpush1.bf16.msra.mxu1 %v3118_v56  ;;  %4296 = vmatprep.subr.bf16.mxu0 %v3125_v47  ;;  %v3158_v56 = vpack.c.bf16 %v1934_v52, %v1926_v30  ;;  %v3165_v47 = vpack.c.bf16 %v1949_v39, %v1941_v53  ;;  %v2012_v50 = vld [vmem:[%s5407_s22 + $0x36e0] sm:$0xff]  ;;  %v2006_v30 = vld [vmem:[%s5407_s22 + $0x36b0] sm:$0xff]  ;;  %v2021_v53 = vld [vmem:[%s5407_s22 + $0x3728] sm:$0xff] }
 0x406   : > { %4624 = vmatprep.subr.bf16.mxu1 %v3127_v60  ;;  %v3167_v60 = vpack.c.bf16 %v1951_v55, %v1943_v54  ;;  %v2014_v52 = vld [vmem:[%s5407_s22 + $0x36f0] sm:$0xff]  ;;  %v2029_v39 = vld [vmem:[%s5407_s22 + $0x3768] sm:$0xff]  ;;  %v2023_v54 = vld [vmem:[%s5407_s22 + $0x3738] sm:$0xff] }
 0x407   : > { %v2031_v55 = vld [vmem:[%s5407_s22 + $0x3778] sm:$0xff] }
 0x408   : > { %4297 = vmatpush1.bf16.msra.mxu0 %v3124_v3  ;;  %v3164_v3 = vpack.c.bf16 %v1948_v8, %v1940_v57  ;;  %v2020_v57 = vld [vmem:[%s5407_s22 + $0x3720] sm:$0xff] }
 0x409   : > { %4625 = vmatpush1.bf16.msra.mxu1 %v3126_v4  ;;  %4298 = vmatprep.subr.bf16.mxu0 %v3133_v5  ;;  %v3166_v4 = vpack.c.bf16 %v1950_v62, %v1942_v58  ;;  %v3173_v5 = vpack.c.bf16 %v1965_v0, %v1957_v63  ;;  %v2028_v8 = vld [vmem:[%s5407_s22 + $0x3760] sm:$0xff]  ;;  %v2022_v58 = vld [vmem:[%s5407_s22 + $0x3730] sm:$0xff]  ;;  %v2037_v63 = vld [vmem:[%s5407_s22 + $0x37a8] sm:$0xff] }
 0x40a   : > { %4626 = vmatprep.subr.bf16.mxu1 %v3135_v9  ;;  %v3175_v9 = vpack.c.bf16 %v1967_v2, %v1959_v1  ;;  %v2030_v62 = vld [vmem:[%s5407_s22 + $0x3770] sm:$0xff]  ;;  %v2045_v0 = vld [vmem:[%s5407_s22 + $0x37e8] sm:$0xff]  ;;  %v2039_v1 = vld [vmem:[%s5407_s22 + $0x37b8] sm:$0xff] }
 0x40b   : > { %v2047_v2 = vld [vmem:[%s5407_s22 + $0x37f8] sm:$0xff] }
 0x40c   : > { %4299 = vmatpush1.bf16.msra.mxu0 %v3132_v18  ;;  %v3172_v18 = vpack.c.bf16 %v1964_v6, %v1956_v24  ;;  %v2036_v24 = vld [vmem:[%s5407_s22 + $0x37a0] sm:$0xff] }
 0x40d   : > { %4627 = vmatpush1.bf16.msra.mxu1 %v3134_v27  ;;  %4300 = vmatprep.subr.bf16.mxu0 %v3141_v20  ;;  %v3174_v27 = vpack.c.bf16 %v1966_v12, %v1958_v61  ;;  %v3181_v20 = vpack.c.bf16 %v1981_v14, %v1973_v13  ;;  %v2044_v6 = vld [vmem:[%s5407_s22 + $0x37e0] sm:$0xff]  ;;  %v2038_v61 = vld [vmem:[%s5407_s22 + $0x37b0] sm:$0xff]  ;;  %v2053_v13 = vld [vmem:[%s5407_s22 + $0x3828] sm:$0xff] }
 0x40e   : > { %4628 = vmatprep.subr.bf16.mxu1 %v3143_v25  ;;  %v3183_v25 = vpack.c.bf16 %v1983_v17, %v1975_v16  ;;  %v2046_v12 = vld [vmem:[%s5407_s22 + $0x37f0] sm:$0xff]  ;;  %v2061_v14 = vld [vmem:[%s5407_s22 + $0x3868] sm:$0xff]  ;;  %v2055_v16 = vld [vmem:[%s5407_s22 + $0x3838] sm:$0xff] }
 0x40f   : > { %v2063_v17 = vld [vmem:[%s5407_s22 + $0x3878] sm:$0xff] }
 0x410   : > { %4301 = vmatpush1.bf16.msra.mxu0 %v3140_v34  ;;  %v3180_v34 = vpack.c.bf16 %v1980_v44, %v1972_v21  ;;  %v2052_v21 = vld [vmem:[%s5407_s22 + $0x3820] sm:$0xff] }
 0x411   : > { %4629 = vmatpush1.bf16.msra.mxu1 %v3142_v42  ;;  %4302 = vmatprep.subr.bf16.mxu0 %v3149_v35  ;;  %v3182_v42 = vpack.c.bf16 %v1982_v26, %v1974_v23  ;;  %v3189_v35 = vpack.c.bf16 %v1997_v31, %v1989_v28  ;;  %v2060_v44 = vld [vmem:[%s5407_s22 + $0x3860] sm:$0xff]  ;;  %v2054_v23 = vld [vmem:[%s5407_s22 + $0x3830] sm:$0xff]  ;;  %v2069_v28 = vld [vmem:[%s5407_s22 + $0x38a8] sm:$0xff] }
 0x412   : > { %4630 = vmatprep.subr.bf16.mxu1 %v3151_v37  ;;  %v3191_v37 = vpack.c.bf16 %v1999_v33, %v1991_v32  ;;  %v2062_v26 = vld [vmem:[%s5407_s22 + $0x3870] sm:$0xff]  ;;  %v2077_v31 = vld [vmem:[%s5407_s22 + $0x38e8] sm:$0xff]  ;;  %v2071_v32 = vld [vmem:[%s5407_s22 + $0x38b8] sm:$0xff] }
 0x413   : > { %v2079_v33 = vld [vmem:[%s5407_s22 + $0x38f8] sm:$0xff] }
 0x414   : > { %4303 = vmatpush1.bf16.msra.mxu0 %v3148_v45  ;;  %v3188_v45 = vpack.c.bf16 %v1996_v36, %v1988_v59  ;;  %v2068_v59 = vld [vmem:[%s5407_s22 + $0x38a0] sm:$0xff] }
 0x415   : > { %4631 = vmatpush1.bf16.msra.mxu1 %v3150_v46  ;;  %4304 = vmatprep.subr.bf16.mxu0 %v3157_v48  ;;  %v3190_v46 = vpack.c.bf16 %v1998_v38, %v1990_v15  ;;  %v3197_v48 = vpack.c.bf16 %v2013_v41, %v2005_v40  ;;  %v2076_v36 = vld [vmem:[%s5407_s22 + $0x38e0] sm:$0xff]  ;;  %v2070_v15 = vld [vmem:[%s5407_s22 + $0x38b0] sm:$0xff]  ;;  %v2085_v40 = vld [vmem:[%s5407_s22 + $0x3928] sm:$0xff] }
 0x416   : > { %4632 = vmatprep.subr.bf16.mxu1 %v3159_v51  ;;  %v3199_v51 = vpack.c.bf16 %v2015_v43, %v2007_v22  ;;  %v2078_v38 = vld [vmem:[%s5407_s22 + $0x38f0] sm:$0xff]  ;;  %v2093_v41 = vld [vmem:[%s5407_s22 + $0x3968] sm:$0xff]  ;;  %v2087_v22 = vld [vmem:[%s5407_s22 + $0x3938] sm:$0xff] }
 0x417   : > { %v2095_v43 = vld [vmem:[%s5407_s22 + $0x3978] sm:$0xff] }
 0x418   : > { %4305 = vmatpush1.bf16.msra.mxu0 %v3156_v19  ;;  %v3196_v19 = vpack.c.bf16 %v2012_v50, %v2004_v49  ;;  %v2084_v49 = vld [vmem:[%s5407_s22 + $0x3920] sm:$0xff] }
 0x419   : > { %4633 = vmatpush1.bf16.msra.mxu1 %v3158_v56  ;;  %4306 = vmatprep.subr.bf16.mxu0 %v3165_v47  ;;  %v3198_v56 = vpack.c.bf16 %v2014_v52, %v2006_v30  ;;  %v3205_v47 = vpack.c.bf16 %v2029_v39, %v2021_v53  ;;  %v2092_v50 = vld [vmem:[%s5407_s22 + $0x3960] sm:$0xff]  ;;  %v2086_v30 = vld [vmem:[%s5407_s22 + $0x3930] sm:$0xff]  ;;  %v2101_v53 = vld [vmem:[%s5407_s22 + $0x39a8] sm:$0xff] }
 0x41a   : > { %4634 = vmatprep.subr.bf16.mxu1 %v3167_v60  ;;  %v3207_v60 = vpack.c.bf16 %v2031_v55, %v2023_v54  ;;  %v2094_v52 = vld [vmem:[%s5407_s22 + $0x3970] sm:$0xff]  ;;  %v2109_v39 = vld [vmem:[%s5407_s22 + $0x39e8] sm:$0xff]  ;;  %v2111_v54 = vld [vmem:[%s5407_s22 + $0x39f8] sm:$0xff]  ;;  %v3236_v55 = vpack.c.bf16 %v2092_v50, %v2084_v49 }
 0x41b   : > { %v2166_v49 = vld [vmem:[%s5407_s22 + $0x3bb0] sm:$0xff] }
 0x41c   : > { %4307 = vmatpush1.bf16.msra.mxu0 %v3164_v3  ;;  %v3204_v3 = vpack.c.bf16 %v2028_v8, %v2020_v57  ;;  %v2108_v57 = vld [vmem:[%s5407_s22 + $0x39e0] sm:$0xff]  ;;  %v2102_v8 = vld [vmem:[%s5407_s22 + $0x39b0] sm:$0xff] }
 0x41d   : > { %4635 = vmatpush1.bf16.msra.mxu1 %v3166_v4  ;;  %4308 = vmatprep.subr.bf16.mxu0 %v3173_v5  ;;  %v3206_v4 = vpack.c.bf16 %v2030_v62, %v2022_v58  ;;  %v3213_v5 = vpack.c.bf16 %v2045_v0, %v2037_v63  ;;  %v2117_v62 = vld [vmem:[%s5407_s22 + $0x3a28] sm:$0xff]  ;;  %v2119_v63 = vld [vmem:[%s5407_s22 + $0x3a38] sm:$0xff] }
 0x41e   : > { %4636 = vmatprep.subr.bf16.mxu1 %v3175_v9  ;;  %v3215_v9 = vpack.c.bf16 %v2047_v2, %v2039_v1  ;;  %v2127_v0 = vld [vmem:[%s5407_s22 + $0x3a78] sm:$0xff] }
 0x420   : > { %4309 = vmatpush1.bf16.msra.mxu0 %v3172_v18  ;;  %v3212_v18 = vpack.c.bf16 %v2044_v6, %v2036_v24  ;;  %v2118_v24 = vld [vmem:[%s5407_s22 + $0x3a30] sm:$0xff]  ;;  %v3255_v6 = vpack.c.bf16 %v2127_v0, %v2119_v63 }
 0x421   : > { %4637 = vmatpush1.bf16.msra.mxu1 %v3174_v27  ;;  %4310 = vmatprep.subr.bf16.mxu0 %v3181_v20  ;;  %v3214_v27 = vpack.c.bf16 %v2046_v12, %v2038_v61  ;;  %v3221_v20 = vpack.c.bf16 %v2061_v14, %v2053_v13  ;;  %v2126_v61 = vld [vmem:[%s5407_s22 + $0x3a70] sm:$0xff]  ;;  %v2141_v12 = vld [vmem:[%s5407_s22 + $0x3ae8] sm:$0xff]  ;;  %v2135_v13 = vld [vmem:[%s5407_s22 + $0x3ab8] sm:$0xff] }
 0x422   : > { %4638 = vmatprep.subr.bf16.mxu1 %v3183_v25  ;;  %v3223_v25 = vpack.c.bf16 %v2063_v17, %v2055_v16  ;;  %v2143_v14 = vld [vmem:[%s5407_s22 + $0x3af8] sm:$0xff]  ;;  %v3254_v17 = vpack.c.bf16 %v2126_v61, %v2118_v24  ;;  %v2206_v24 = vld [vmem:[%s5407_s22 + $0x3cf0] sm:$0xff]  ;;  %v2221_v61 = vld [vmem:[%s5407_s22 + $0x3d68] sm:$0xff] }
 0x424   : > { %4311 = vmatpush1.bf16.msra.mxu0 %v3180_v34  ;;  %v3220_v34 = vpack.c.bf16 %v2060_v44, %v2052_v21  ;;  %v2134_v21 = vld [vmem:[%s5407_s22 + $0x3ab0] sm:$0xff]  ;;  %v3263_v44 = vpack.c.bf16 %v2143_v14, %v2135_v13 }
 0x425   : > { %4639 = vmatpush1.bf16.msra.mxu1 %v3182_v42  ;;  %4312 = vmatprep.subr.bf16.mxu0 %v3189_v35  ;;  %v3222_v42 = vpack.c.bf16 %v2062_v26, %v2054_v23  ;;  %v3229_v35 = vpack.c.bf16 %v2077_v31, %v2069_v28  ;;  %v2142_v23 = vld [vmem:[%s5407_s22 + $0x3af0] sm:$0xff]  ;;  %v2157_v26 = vld [vmem:[%s5407_s22 + $0x3b68] sm:$0xff]  ;;  %v2151_v28 = vld [vmem:[%s5407_s22 + $0x3b38] sm:$0xff] }
 0x426   : > { %4640 = vmatprep.subr.bf16.mxu1 %v3191_v37  ;;  %v3231_v37 = vpack.c.bf16 %v2079_v33, %v2071_v32  ;;  %v2159_v31 = vld [vmem:[%s5407_s22 + $0x3b78] sm:$0xff]  ;;  %v3262_v33 = vpack.c.bf16 %v2142_v23, %v2134_v21  ;;  %v2222_v21 = vld [vmem:[%s5407_s22 + $0x3d70] sm:$0xff]  ;;  %v2237_v23 = vld [vmem:[%s5407_s22 + $0x3de8] sm:$0xff] }
 0x428   : > { %4313 = vmatpush1.bf16.msra.mxu0 %v3188_v45  ;;  %v3228_v45 = vpack.c.bf16 %v2076_v36, %v2068_v59  ;;  %v2150_v59 = vld [vmem:[%s5407_s22 + $0x3b30] sm:$0xff]  ;;  %v3271_v36 = vpack.c.bf16 %v2159_v31, %v2151_v28 }
 0x429   : > { %4641 = vmatpush1.bf16.msra.mxu1 %v3190_v46  ;;  %4314 = vmatprep.subr.bf16.mxu0 %v3197_v48  ;;  %v3230_v46 = vpack.c.bf16 %v2078_v38, %v2070_v15  ;;  %v3237_v48 = vpack.c.bf16 %v2093_v41, %v2085_v40  ;;  %v2158_v15 = vld [vmem:[%s5407_s22 + $0x3b70] sm:$0xff]  ;;  %v2173_v38 = vld [vmem:[%s5407_s22 + $0x3be8] sm:$0xff]  ;;  %v2167_v40 = vld [vmem:[%s5407_s22 + $0x3bb8] sm:$0xff] }
 0x42a   : > { %4642 = vmatprep.subr.bf16.mxu1 %v3199_v51  ;;  %v3239_v51 = vpack.c.bf16 %v2095_v43, %v2087_v22  ;;  %v2175_v41 = vld [vmem:[%s5407_s22 + $0x3bf8] sm:$0xff]  ;;  %v3270_v43 = vpack.c.bf16 %v2158_v15, %v2150_v59  ;;  %v2238_v59 = vld [vmem:[%s5407_s22 + $0x3df0] sm:$0xff]  ;;  %v2253_v15 = vld [vmem:[%s5407_s22 + $0x3e68] sm:$0xff] }
 0x42b   : > { %v3279_v50 = vpack.c.bf16 %v2175_v41, %v2167_v40 }
 0x42c   : > { %4315 = vmatpush1.bf16.msra.mxu0 %v3196_v19  ;;  %v3238_v19 = vpack.c.bf16 %v2094_v52, %v2086_v30  ;;  %v2174_v30 = vld [vmem:[%s5407_s22 + $0x3bf0] sm:$0xff]  ;;  %v2189_v52 = vld [vmem:[%s5407_s22 + $0x3c68] sm:$0xff] }
 0x42d   : > { %4643 = vmatpush1.bf16.msra.mxu1 %v3198_v56  ;;  %4316 = vmatprep.subr.bf16.mxu0 %v3205_v47  ;;  %v3245_v56 = vpack.c.bf16 %v2109_v39, %v2101_v53  ;;  %v2100_v47 = vld [vmem:[%s5407_s22 + $0x39a0] sm:$0xff]  ;;  %v2183_v53 = vld [vmem:[%s5407_s22 + $0x3c38] sm:$0xff] }
 0x42e   : > { %4644 = vmatprep.subr.bf16.mxu1 %v3207_v60  ;;  %v2110_v60 = vld [vmem:[%s5407_s22 + $0x39f0] sm:$0xff]  ;;  %v3244_v1 = vpack.c.bf16 %v2108_v57, %v2100_v47  ;;  %v2191_v39 = vld [vmem:[%s5407_s22 + $0x3c78] sm:$0xff] }
 0x42f   : > { %v3246_v2 = vpack.c.bf16 %v2110_v60, %v2102_v8  ;;  %v2182_v47 = vld [vmem:[%s5407_s22 + $0x3c30] sm:$0xff]  ;;  %v3287_v57 = vpack.c.bf16 %v2191_v39, %v2183_v53  ;;  %v2205_v60 = vld [vmem:[%s5407_s22 + $0x3ce8] sm:$0xff] }
 0x430   : > { %4317 = vmatpush1.bf16.msra.mxu0 %v3204_v3  ;;  %v2190_v8 = vld [vmem:[%s5407_s22 + $0x3c70] sm:$0xff] }
 0x431   : > { %4645 = vmatpush1.bf16.msra.mxu1 %v3206_v4  ;;  %4318 = vmatprep.subr.bf16.mxu0 %v3213_v5  ;;  %v2116_v4 = vld [vmem:[%s5407_s22 + $0x3a20] sm:$0xff]  ;;  %v3286_v0 = vpack.c.bf16 %v2190_v8, %v2182_v47  ;;  %v2270_v47 = vld [vmem:[%s5407_s22 + $0x3ef0] sm:$0xff]  ;;  %v2285_v8 = vld [vmem:[%s5407_s22 + $0x3f68] sm:$0xff] }
 0x432   : > { %4646 = vmatprep.subr.bf16.mxu1 %v3215_v9  ;;  %v2124_v5 = vld [vmem:[%s5407_s22 + $0x3a60] sm:$0xff]  ;;  %v2133_v9 = vld [vmem:[%s5407_s22 + $0x3aa8] sm:$0xff] }
 0x433   : > { %v3252_v16 = vpack.c.bf16 %v2124_v5, %v2116_v4  ;;  %v2198_v4 = vld [vmem:[%s5407_s22 + $0x3cb0] sm:$0xff] }
 0x434   : > { %4319 = vmatpush1.bf16.msra.mxu0 %v3212_v18  ;;  %v3261_v18 = vpack.c.bf16 %v2141_v12, %v2133_v9  ;;  %v2215_v9 = vld [vmem:[%s5407_s22 + $0x3d38] sm:$0xff]  ;;  %v3294_v14 = vpack.c.bf16 %v2206_v24, %v2198_v4  ;;  %v2286_v4 = vld [vmem:[%s5407_s22 + $0x3f70] sm:$0xff]  ;;  %v2301_v24 = vld [vmem:[%s5407_s22 + $0x3fe8] sm:$0xff] }
 0x435   : > { %4647 = vmatpush1.bf16.msra.mxu1 %v3214_v27  ;;  %4329 = vmatprep.subr.bf16.mxu0 %v3221_v20  ;;  %v2132_v27 = vld [vmem:[%s5407_s22 + $0x3aa0] sm:$0xff]  ;;  %v2223_v12 = vld [vmem:[%s5407_s22 + $0x3d78] sm:$0xff] }
 0x436   : > { %4657 = vmatprep.subr.bf16.mxu1 %v3223_v25  ;;  %v2140_v20 = vld [vmem:[%s5407_s22 + $0x3ae0] sm:$0xff]  ;;  %v2149_v25 = vld [vmem:[%s5407_s22 + $0x3b28] sm:$0xff] }
 0x437   : > { %4321 = vmatmul.mubr.bf16.vlgmr.msra.gmra.mrb[4].mxu0 %v6371_v10  ;;  %v3260_v32 = vpack.c.bf16 %v2140_v20, %v2132_v27  ;;  %v2214_v27 = vld [vmem:[%s5407_s22 + $0x3d30] sm:$0xff]  ;;  %v3303_v20 = vpack.c.bf16 %v2223_v12, %v2215_v9 }
 0x438   : > { %4330 = vmatpush1.bf16.msra.mxu0 %v3220_v34  ;;  %4649 = vmatmul.mubr.bf16.vlgmr.msra.gmra.mrb[4].mxu1 %v6371_v10  ;;  %v2103_v10 = vld [vmem:[%s5407_s22 + $0x39b8] sm:$0xff]  ;;  %v3269_v34 = vpack.c.bf16 %v2157_v26, %v2149_v25  ;;  %v3302_v31 = vpack.c.bf16 %v2222_v21, %v2214_v27  ;;  %v2302_v27 = vld [vmem:[%s5407_s22 + $0x3ff0] sm:$0xff] }
 0x439   : > { %4658 = vmatpush1.bf16.msra.mxu1 %v3222_v42  ;;  %4331 = vmatprep.subr.bf16.mxu0 %v3229_v35  ;;  %v3247_v58 = vpack.c.bf16 %v2111_v54, %v2103_v10  ;;  %v2148_v42 = vld [vmem:[%s5407_s22 + $0x3b20] sm:$0xff]  ;;  %v3278_v54 = vpack.c.bf16 %v2174_v30, %v2166_v49  ;;  %v2231_v25 = vld [vmem:[%s5407_s22 + $0x3db8] sm:$0xff]  ;;  %v2254_v49 = vld [vmem:[%s5407_s22 + $0x3e70] sm:$0xff] }
 0x43a   : > { %4659 = vmatprep.subr.bf16.mxu1 %v3231_v37  ;;  %4361 = vmatprep.mubr.bf16.mxu0 %v6381_v29  ;;  %v2156_v35 = vld [vmem:[%s5407_s22 + $0x3b60] sm:$0xff]  ;;  %v2165_v37 = vld [vmem:[%s5407_s22 + $0x3ba8] sm:$0xff]  ;;  %v2239_v26 = vld [vmem:[%s5407_s22 + $0x3df8] sm:$0xff] }
 0x43b   : > { %4689 = vmatprep.mubr.bf16.mxu1 %v6381_v29  ;;  %v2125_v29 = vld [vmem:[%s5407_s22 + $0x3a68] sm:$0xff]  ;;  %v3268_v22 = vpack.c.bf16 %v2156_v35, %v2148_v42  ;;  %v2230_v42 = vld [vmem:[%s5407_s22 + $0x3db0] sm:$0xff]  ;;  %v3311_v35 = vpack.c.bf16 %v2239_v26, %v2231_v25  ;;  %v3368_v25 = vsub.s32 5, %v6936_v11  ;;  %v3376_v26 = vsub.s32 7, %v6936_v11 }
 0x43c   : > { %4332 = vmatpush1.bf16.msra.mxu0 %v3228_v45  ;;  %v3253_v3 = vpack.c.bf16 %v2125_v29, %v2117_v62  ;;  %v3277_v45 = vpack.c.bf16 %v2173_v38, %v2165_v37  ;;  %v2199_v62 = vld [vmem:[%s5407_s22 + $0x3cb8] sm:$0xff]  ;;  %v3310_v41 = vpack.c.bf16 %v2238_v59, %v2230_v42  ;;  %v2269_v30 = vld [vmem:[%s5407_s22 + $0x3ee8] sm:$0xff] }
 0x43d   : > { %4660 = vmatpush1.bf16.msra.mxu1 %v3230_v46  ;;  %4333 = vmatprep.subr.bf16.mxu0 %v3237_v48  ;;  %v2164_v46 = vld [vmem:[%s5407_s22 + $0x3ba0] sm:$0xff]  ;;  %v2207_v29 = vld [vmem:[%s5407_s22 + $0x3cf8] sm:$0xff] }
 0x43e   : > { %4661 = vmatprep.subr.bf16.mxu1 %v3239_v51  ;;  %v2172_v48 = vld [vmem:[%s5407_s22 + $0x3be0] sm:$0xff]  ;;  %v2181_v51 = vld [vmem:[%s5407_s22 + $0x3c28] sm:$0xff]  ;;  %v3295_v5 = vpack.c.bf16 %v2207_v29, %v2199_v62  ;;  %v2247_v37 = vld [vmem:[%s5407_s22 + $0x3e38] sm:$0xff] }
 0x43f   : > { %v3276_v10 = vpack.c.bf16 %v2172_v48, %v2164_v46  ;;  %v2255_v38 = vld [vmem:[%s5407_s22 + $0x3e78] sm:$0xff]  ;;  %v2246_v46 = vld [vmem:[%s5407_s22 + $0x3e30] sm:$0xff] }
 0x440   : > { %4334 = vmatpush1.bf16.msra.mxu0 %v3236_v55  ;;  %v3285_v55 = vpack.c.bf16 %v2189_v52, %v2181_v51  ;;  %v3319_v48 = vpack.c.bf16 %v2255_v38, %v2247_v37  ;;  %v2263_v51 = vld [vmem:[%s5407_s22 + $0x3eb8] sm:$0xff]  ;;  %v3318_v39 = vpack.c.bf16 %v2254_v49, %v2246_v46 }
 0x441   : > { %4662 = vmatpush1.bf16.msra.mxu1 %v3238_v19  ;;  %4335 = vmatprep.subr.bf16.mxu0 %v3245_v56  ;;  %v2180_v19 = vld [vmem:[%s5407_s22 + $0x3c20] sm:$0xff]  ;;  %v2271_v52 = vld [vmem:[%s5407_s22 + $0x3ef8] sm:$0xff] }
 0x442   : > { %4663 = vmatprep.subr.bf16.mxu1 %v3247_v58  ;;  %v2188_v56 = vld [vmem:[%s5407_s22 + $0x3c60] sm:$0xff]  ;;  %v2197_v58 = vld [vmem:[%s5407_s22 + $0x3ca8] sm:$0xff] }
 0x443   : > { %v3284_v63 = vpack.c.bf16 %v2188_v56, %v2180_v19  ;;  %v2262_v19 = vld [vmem:[%s5407_s22 + $0x3eb0] sm:$0xff]  ;;  %v3327_v56 = vpack.c.bf16 %v2271_v52, %v2263_v51 }
 0x444   : > { %4336 = vmatpush1.bf16.msra.mxu0 %v3244_v1  ;;  %v3293_v1 = vpack.c.bf16 %v2205_v60, %v2197_v58  ;;  %v2279_v58 = vld [vmem:[%s5407_s22 + $0x3f38] sm:$0xff]  ;;  %v3326_v29 = vpack.c.bf16 %v2270_v47, %v2262_v19 }
 0x445   : > { %4664 = vmatpush1.bf16.msra.mxu1 %v3246_v2  ;;  %4337 = vmatprep.subr.bf16.mxu0 %v3253_v3  ;;  %v2196_v2 = vld [vmem:[%s5407_s22 + $0x3ca0] sm:$0xff]  ;;  %v2287_v60 = vld [vmem:[%s5407_s22 + $0x3f78] sm:$0xff] }
 0x446   : > { %4665 = vmatprep.subr.bf16.mxu1 %v3255_v6  ;;  %v2204_v3 = vld [vmem:[%s5407_s22 + $0x3ce0] sm:$0xff]  ;;  %v2213_v6 = vld [vmem:[%s5407_s22 + $0x3d28] sm:$0xff] }
 0x447   : > { %v3292_v13 = vpack.c.bf16 %v2204_v3, %v2196_v2  ;;  %v2278_v2 = vld [vmem:[%s5407_s22 + $0x3f30] sm:$0xff]  ;;  %v3335_v3 = vpack.c.bf16 %v2287_v60, %v2279_v58 }
 0x448   : > { %4338 = vmatpush1.bf16.msra.mxu0 %v3252_v16  ;;  %v3301_v16 = vpack.c.bf16 %v2221_v61, %v2213_v6  ;;  %v2295_v6 = vld [vmem:[%s5407_s22 + $0x3fb8] sm:$0xff]  ;;  %v3334_v12 = vpack.c.bf16 %v2286_v4, %v2278_v2 }
 0x449   : > { %4666 = vmatpush1.bf16.msra.mxu1 %v3254_v17  ;;  %4339 = vmatprep.subr.bf16.mxu0 %v3261_v18  ;;  %v2212_v17 = vld [vmem:[%s5407_s22 + $0x3d20] sm:$0xff]  ;;  %v2303_v61 = vld [vmem:[%s5407_s22 + $0x3ff8] sm:$0xff] }
 0x44a   : > { %4667 = vmatprep.subr.bf16.mxu1 %v3263_v44  ;;  %v2220_v18 = vld [vmem:[%s5407_s22 + $0x3d60] sm:$0xff]  ;;  %v2229_v44 = vld [vmem:[%s5407_s22 + $0x3da8] sm:$0xff] }
 0x44b   : > { %v3300_v28 = vpack.c.bf16 %v2220_v18, %v2212_v17  ;;  %v3343_v17 = vpack.c.bf16 %v2303_v61, %v2295_v6  ;;  %v2294_v18 = vld [vmem:[%s5407_s22 + $0x3fb0] sm:$0xff] }
 0x44c   : > { %4340 = vmatpush1.bf16.msra.mxu0 %v3260_v32  ;;  %v3309_v32 = vpack.c.bf16 %v2237_v23, %v2229_v44  ;;  %v3342_v21 = vpack.c.bf16 %v2302_v27, %v2294_v18  ;;  %v3364_v44 = vsub.s32 4, %v6936_v11  ;;  %v3372_v23 = vsub.s32 6, %v6936_v11 }
 0x44d   : > { %4668 = vmatpush1.bf16.msra.mxu1 %v3262_v33  ;;  %4341 = vmatprep.subr.bf16.mxu0 %v3269_v34  ;;  %v2228_v33 = vld [vmem:[%s5407_s22 + $0x3da0] sm:$0xff] }
 0x44e   : > { %4669 = vmatprep.subr.bf16.mxu1 %v3271_v36  ;;  %v2236_v34 = vld [vmem:[%s5407_s22 + $0x3de0] sm:$0xff]  ;;  %v2245_v36 = vld [vmem:[%s5407_s22 + $0x3e28] sm:$0xff] }
 0x44f   : > { %v3308_v40 = vpack.c.bf16 %v2236_v34, %v2228_v33 }
 0x450   : > { %4342 = vmatpush1.bf16.msra.mxu0 %v3268_v22  ;;  %v3317_v22 = vpack.c.bf16 %v2253_v15, %v2245_v36 }
 0x451   : > { %4670 = vmatpush1.bf16.msra.mxu1 %v3270_v43  ;;  %4343 = vmatprep.subr.bf16.mxu0 %v3277_v45  ;;  %v2244_v43 = vld [vmem:[%s5407_s22 + $0x3e20] sm:$0xff] }
 0x452   : > { %4671 = vmatprep.subr.bf16.mxu1 %v3279_v50  ;;  %v2252_v45 = vld [vmem:[%s5407_s22 + $0x3e60] sm:$0xff]  ;;  %v2261_v50 = vld [vmem:[%s5407_s22 + $0x3ea8] sm:$0xff] }
 0x453   : > { %v3316_v53 = vpack.c.bf16 %v2252_v45, %v2244_v43 }
 0x454   : > { %4344 = vmatpush1.bf16.msra.mxu0 %v3276_v10  ;;  %v3325_v10 = vpack.c.bf16 %v2269_v30, %v2261_v50 }
 0x455   : > { %4672 = vmatpush1.bf16.msra.mxu1 %v3278_v54  ;;  %4345 = vmatprep.subr.bf16.mxu0 %v3285_v55  ;;  %v2260_v54 = vld [vmem:[%s5407_s22 + $0x3ea0] sm:$0xff] }
 0x456   : > { %4673 = vmatprep.subr.bf16.mxu1 %v3287_v57  ;;  %v2268_v55 = vld [vmem:[%s5407_s22 + $0x3ee0] sm:$0xff]  ;;  %v2277_v57 = vld [vmem:[%s5407_s22 + $0x3f28] sm:$0xff] }
 0x457   : > { %v3324_v62 = vpack.c.bf16 %v2268_v55, %v2260_v54 }
 0x458   : > { %4346 = vmatpush1.bf16.msra.mxu0 %v3284_v63  ;;  %v3333_v63 = vpack.c.bf16 %v2285_v8, %v2277_v57 }
 0x459   : > { %4674 = vmatpush1.bf16.msra.mxu1 %v3286_v0  ;;  %4347 = vmatprep.subr.bf16.mxu0 %v3293_v1  ;;  %v2276_v0 = vld [vmem:[%s5407_s22 + $0x3f20] sm:$0xff] }
 0x45a   : > { %4675 = vmatprep.subr.bf16.mxu1 %v3295_v5  ;;  %v2284_v1 = vld [vmem:[%s5407_s22 + $0x3f60] sm:$0xff]  ;;  %v2293_v5 = vld [vmem:[%s5407_s22 + $0x3fa8] sm:$0xff] }
 0x45b   : > { %v3332_v9 = vpack.c.bf16 %v2284_v1, %v2276_v0 }
 0x45c   : > { %4348 = vmatpush1.bf16.msra.mxu0 %v3292_v13  ;;  %v3341_v13 = vpack.c.bf16 %v2301_v24, %v2293_v5 }
 0x45d   : > { %4676 = vmatpush1.bf16.msra.mxu1 %v3294_v14  ;;  %4349 = vmatprep.subr.bf16.mxu0 %v3301_v16  ;;  %v2292_v14 = vld [vmem:[%s5407_s22 + $0x3fa0] sm:$0xff] }
 0x45e   : > { %4677 = vmatprep.subr.bf16.mxu1 %v3303_v20  ;;  %v2300_v16 = vld [vmem:[%s5407_s22 + $0x3fe0] sm:$0xff] }
 0x45f   : > { %v3340_v20 = vpack.c.bf16 %v2300_v16, %v2292_v14 }
 0x460   : > { %4350 = vmatpush1.bf16.msra.mxu0 %v3300_v28  ;;  %v5039_v28 = vld [vmem:[%s6947_s27] sm:$0xff] }
 0x461   : > { %4678 = vmatpush1.bf16.msra.mxu1 %v3302_v31  ;;  %4351 = vmatprep.subr.bf16.mxu0 %v3309_v32  ;;  %v3365_v31 = vrot.slane %v5039_v28, %v3364_v44  ;;  %v3373_v32 = vrot.slane %v5039_v28, %v3372_v23  ;;  %v3369_v33 = vrot.slane %v5039_v28, %v3368_v25 }
 0x462   : > { %4679 = vmatprep.subr.bf16.mxu1 %v3311_v35  ;;  %v3377_v34 = vrot.slane %v5039_v28, %v3376_v26 }
 0x464   : > { %4352 = vmatpush1.bf16.msra.mxu0 %v3308_v40 }
 0x465   : > { %4680 = vmatpush1.bf16.msra.mxu1 %v3310_v41  ;;  %4353 = vmatprep.subr.bf16.mxu0 %v3317_v22 }
 0x466   : > { %4681 = vmatprep.subr.bf16.mxu1 %v3319_v48 }
 0x468   : > { %4354 = vmatpush1.bf16.msra.mxu0 %v3316_v53 }
 0x469   : > { %4682 = vmatpush1.bf16.msra.mxu1 %v3318_v39  ;;  %4355 = vmatprep.subr.bf16.mxu0 %v3325_v10 }
 0x46a   : > { %4683 = vmatprep.subr.bf16.mxu1 %v3327_v56 }
 0x46c   : > { %4356 = vmatpush1.bf16.msra.mxu0 %v3324_v62 }
 0x46d   : > { %4684 = vmatpush1.bf16.msra.mxu1 %v3326_v29  ;;  %4357 = vmatprep.subr.bf16.mxu0 %v3333_v63 }
 0x46e   : > { %4685 = vmatprep.subr.bf16.mxu1 %v3335_v3 }
 0x470   : > { %4358 = vmatpush1.bf16.msra.mxu0 %v3332_v9 }
 0x471   : > { %4686 = vmatpush1.bf16.msra.mxu1 %v3334_v12  ;;  %4359 = vmatprep.subr.bf16.mxu0 %v3341_v13 }
 0x472   : > { %4687 = vmatprep.subr.bf16.mxu1 %v3343_v17 }
 0x474   : > { %4360 = vmatpush1.bf16.msra.mxu0 %v3340_v20 }
 0x475   : > { %4688 = vmatpush1.bf16.msra.mxu1 %v3342_v21 }
 0x477   : > { %4362 = vmatmul.mubr.bf16.vlgmr.msra.gmra.mrb[4].mxu0 %v6507_v7 }
 0x478   : > { %4690 = vmatmul.mubr.bf16.vlgmr.msra.gmra.mrb[4].mxu1 %v6507_v7 }
 0x54a   : > { %v4363_v42 = vpop.f32.mrb[4].mxu0 }
 0x54b   : > { %v4858_v35 = vadd.f32 %v4363_v42, %v3365_v31  ;;  %v4691_v59 = vpop.f32.mrb[4].mxu1  ;;  %v4365_v7 = vpop.f32.mrb[5].mxu0 }
 0x54c   : > { %v4860_v36 = vadd.f32 %v4691_v59, %v3373_v32  ;;  %v4859_v15 = vadd.f32 %v4365_v7, %v3369_v33  ;;  %v4693_v37 = vpop.f32.mrb[5].mxu1  ;;  %v4367_v38 = vpop.f32.mrb[6].mxu0 }
 0x54d   : > { %v4702_v11 = vmax.f32 %v4858_v35, 0.0  ;;  %v4861_v40 = vadd.f32 %v4693_v37, %v3377_v34  ;;  %v4695_v41 = vpop.f32.mrb[6].mxu1  ;;  %v4368_v22 = vpop.f32.mrb[7].mxu0 }
 0x54e   : > { %v4704_v43 = vmax.f32 %v4860_v36, 0.0  ;;  %v4703_v45 = vmax.f32 %v4859_v15, 0.0  ;;  %v4696_v46 = vpop.f32.mrb[7].mxu1 }
 0x54f   : > { %4710 = vst [vmem:[%s6978_s10 + $0x20] sm:$0xff] %v4702_v11  ;;  %v4705_v48 = vmax.f32 %v4861_v40, 0.0 }
 0x550   : > { %4712 = vst [vmem:[%s6978_s10 + $0x30] sm:$0xff] %v4704_v43  ;;  %4711 = vst [vmem:[%s6978_s10 + $0x28] sm:$0xff] %v4703_v45 }
 0x551   : > { %4713 = vst [vmem:[%s6978_s10 + $0x38] sm:$0xff] %v4705_v48 }
 0x552   : > { %5141 = shalt.err (!%p5138_p1)
}
 0x553   : > { %s5142_s17 = scalar_lea.hbm %s7587_s5, 1024  ;;  %s5146_s21 = scalar_lea.hbm %s7636_s3, 4096 }
 0x554   : > { %p5143_p5 = scmp.ne.s32.totalorder %s7587_s5, %s5142_s17  ;;  %p5147_p6 = scmp.lt.u32.totalorder %s7587_s5, %s7636_s3 }
 0x555   : > { %p5148_p8 = scmp.lt.u32.totalorder %s5146_s21, %s5142_s17  ;;  %p5150_p11 = scmp.lt.u32.totalorder %s5142_s17, %s7587_s5 }
 0x556   : > { %p5144_p4 = pnand %p5143_p5, %p7657_p3 }
 0x557   : > { %p5149_p13 = por %p5148_p8, %p5147_p6 }
 0x558   : > { %p5145_p2 = pneg %p5144_p4 }
 0x559   : > { %p5151_p0 = por %p5150_p11, %p5149_p13 }
 0x55b   : > { %p5152_p10 = pnand %p5151_p0, %p5145_p2 }
 0x55d   : > { %5155 = shalt.err (!%p5152_p10)
}
 0x55e   : > { %4982 = dma.vmem_to_hbm [thread:$0]  (%p7657_p3), %s7589_s23, 1024, %s7587_s5, %s4715_s24  }
 0x55f PF: > { %p5002_p12 = scmp.ge.s32.totalorder %s5198_s15, 2  ;;  %s4741_s27 = sand.u32 1, %s5186_s12  }
 0x560   : > { %p7658_p9 = scmp.ne.s32.totalorder %s7647_s28, 0  ;;  %s4742_s4 = scalar_lea.sflag [#allocation4], %s4741_s27 }
 0x562   : > { %p4996_p7 = pnand %p5002_p12, %p7658_p9 }
 0x564   : > { %5181 = dma.done.wait (!%p4996_p7), %s4742_s4, 1024  }
 0x565   : > { %5183 = vsyncadd (!%p4996_p7), %s4742_s4, 4294966272  ;;  %p17_p1 = scmp.ge.s32.totalorder %s5248_s16, 6   ;;  %s7659_s12 = smov %s5190_s13 }
 0x566   : > { %s7660_s13 = smov %s5194_s14  ;;  %s7661_s14 = smov %s5258_s19 }
 0x567   : > { %s7662_s15 = smov %s5248_s16  ;;  %19 = sbr.rel (!%p17_p1) target bundleno = 6 (0x6), region = 93 }
 0x56e   :  { %4747 = vsyncpa [#allocation3], 1 }
 0x56f   :  { %4749 = vsyncpa [#allocation3 + $0x1], 1 }
 0x570   :  { %4750 = vsyncpa [#allocation6], 1 }
 0x571   :  { %4752 = vsyncpa [#allocation6 + $0x1], 1 }
 0x572   :  { %4753 = vsyncpa [#allocation4], 1 }
 0x573   :  { %4755 = vsyncpa [#allocation4 + $0x1], 1 }

</bundles_post_ra>
